<compile_context>
chip_gen: v7x
topology: tpu7x:2x2x1
jax: 0.10.0
libtpu: 0.0.40
codegen_flags: <defaults>
</compile_context>

<pallas_src>
import jax
import jax.numpy as jnp
from jax.experimental import pallas as pl
from jax.experimental.pallas import tpu as pltpu

NEG_SLOPE = 0.2
NUM_FILTERS = 64                       # growth per layer == block input channels
NUM_LAYERS = 5
C_IN = 64
C_TOTAL = C_IN + NUM_LAYERS * NUM_FILTERS   # 384 = 3 * 128 lanes


def _round_up(x, m):
    return (x + m - 1) // m * m


def _make_dense_block_kernel(num_layers):
    """Builds the fused kernel for a fixed (static) number of dense layers."""

    def kernel(x_ref, *rest):
        w_refs = rest[:num_layers]          # per-layer (c_l, 9*G) bf16, exact K
        b_ref = rest[num_layers]            # (L, 1, G) f32
        o_ref = rest[num_layers + 1]        # (1, H, W, C_TOTAL)
        slab_ref = rest[num_layers + 2]     # (H+2, Wp, C_TOTAL) bf16 scratch

        _, H, W, c_in = x_ref.shape
        Hp, Wp, c_total = slab_ref.shape
        growth = b_ref.shape[-1]
        dt = slab_ref.dtype

        # ---- zero only the halo (perimeter), never the whole slab ----------
        # Top/bottom halo rows and the trailing pad columns must be zero for
        # every channel a later dot contracts; the interior is fully
        # overwritten below, so no area-sized zeroing is needed.
        slab_ref[0:1, :, :] = jnp.zeros((1, Wp, c_total), dt)
        slab_ref[H + 1:Hp, :, :] = jnp.zeros((Hp - H - 1, Wp, c_total), dt)
        slab_ref[:, W:Wp, :] = jnp.zeros((Hp, Wp - W, c_total), dt)

        # Input occupies channels [0, c_in) of the interior rows/cols.
        slab_ref[1:H + 1, 0:W, 0:c_in] = x_ref[0].astype(dt)

        # Interior-column mask (hoisted once, reused by every unrolled layer).
        col_ok = jax.lax.broadcasted_iota(jnp.int32, (H, Wp, growth), 1) < W

        for l in range(num_layers):                     # static unroll (5)
            c_l = c_in + l * growth                     # exact K for this layer
            # One lane-dense load of the already-written channel range, all
            # padded rows at once (merge of leading dims is layout-free since
            # Wp is a multiple of the bf16 sublane tile).
            rows = slab_ref[:, :, 0:c_l].reshape(Hp * Wp, c_l)
            # ONE tap-fused matmul per layer: (M, c_l) x (c_l, 9*G), f32 acc.
            z = jnp.dot(rows, w_refs[l][...],
                        preferred_element_type=jnp.float32)
            z = z.reshape(Hp, Wp, 9 * growth)

            # Accumulator starts at the broadcast bias (saves one full add).
            acc = jnp.broadcast_to(b_ref[l], (H, Wp, growth)).astype(jnp.float32)
            for kh in range(3):
                zr = z[kh:kh + H]                       # row shift: free axis-0 slice
                for kw in range(3):
                    t = kh * 3 + kw
                    zt = zr[:, :, t * growth:(t + 1) * growth]  # narrow 64-lane slice
                    if kw != 1:
                        # Column shift via XLU sublane rotation; zeros wrap in
                        # from the pad columns -> SAME-padding semantics.
                        zt = pltpu.roll(zt, shift=(1 - kw) % Wp, axis=1)
                    acc = acc + zt
            acc = jnp.where(acc >= 0.0, acc, NEG_SLOPE * acc)   # LeakyReLU(0.2)
            acc = jnp.where(col_ok, acc, 0.0)                   # keep pad cols zero
            # Dense concatenation: full aligned (H, Wp) planes, no offset
            # interior column window.
            slab_ref[1:H + 1, :, c_l:c_l + growth] = acc.astype(dt)

        # Lane-dense final store: last dim = c_total = 384 = 3 * 128 lanes.
        o_ref[0] = slab_ref[1:H + 1, 0:W, :].astype(o_ref.dtype)

    return kernel


def pack_dense_block_params(params):
    """One-time parameter packing (do NOT call per forward).

    params: list of (w, b) with w: (3, 3, cin_l, 64) HWIO, b: (64,)
    returns ((w_0, ..., w_{L-1}), b_all) with
      w_l  : (cin_l, 9*64) bf16  -- exact (ragged) K, 3x3 taps fused along N
      b_all: (L, 1, 64) f32
    """
    w_list, b_list = [], []
    for (w, b) in params:
        kh, kw, cin, cout = w.shape
        wt = jnp.transpose(w, (2, 0, 1, 3)).reshape(cin, kh * kw * cout)
        w_list.append(wt.astype(jnp.bfloat16))
        b_list.append(b.astype(jnp.float32))
    b_all = jnp.stack(b_list)[:, None, :]
    return tuple(w_list), b_all


def dense_block_forward_nhwc(x_nhwc, packed_params):
    """Fused DenseBlock forward. x_nhwc: (N, H, W, 64) -> (N, H, W, 384)."""
    w_list, b_all = packed_params
    num_layers = len(w_list)
    N, H, W, c_in = x_nhwc.shape
    growth = b_all.shape[-1]
    c_total = c_in + num_layers * growth
    Hp = H + 2                           # top+bottom halo rows (axis 0: untiled)
    Wp = _round_up(W + 1, 16)            # >=1 zero pad column; bf16 sublane tile

    # Advisory cost + VMEM budget computed from the real buffer sizes.
    sum_k = sum(int(w.shape[0]) for w in w_list)                 # 960
    flops = 2 * N * H * W * 9 * sum_k * growth
    w_bytes = sum(int(w.size) * 2 for w in w_list)
    b_bytes = int(b_all.size) * 4
    bytes_accessed = (int(x_nhwc.size) * 4 + N * H * W * c_total * 4
                      + w_bytes + b_bytes)
    vmem_bytes = int(
        Hp * Wp * c_total * 2                        # bf16 feature slab (scratch)
        + 2 * (w_bytes + b_bytes)                    # double-buffered weights/bias
        + 2 * (H * W * c_in + H * W * c_total) * 4   # double-buffered I/O blocks
        + 3 * Hp * Wp * 9 * growth * 4               # z / rows / acc working set
        + (8 << 20))                                 # headroom
    vmem_bytes = min(max(vmem_bytes, 16 << 20), 96 << 20)

    in_specs = [pl.BlockSpec((1, H, W, c_in), lambda n: (n, 0, 0, 0))]
    in_specs += [pl.BlockSpec(w.shape, lambda n: (0, 0)) for w in w_list]
    in_specs += [pl.BlockSpec(b_all.shape, lambda n: (0, 0, 0))]

    return pl.pallas_call(
        _make_dense_block_kernel(num_layers),
        out_shape=jax.ShapeDtypeStruct((N, H, W, c_total), x_nhwc.dtype),
        grid=(N,),
        in_specs=in_specs,
        out_specs=pl.BlockSpec((1, H, W, c_total), lambda n: (n, 0, 0, 0)),
        scratch_shapes=[pltpu.VMEM((Hp, Wp, c_total), jnp.bfloat16)],
        compiler_params=pltpu.CompilerParams(
            dimension_semantics=("parallel",),
            vmem_limit_bytes=vmem_bytes),
        cost_estimate=pl.CostEstimate(
            flops=flops, transcendentals=0, bytes_accessed=bytes_accessed),
    )(x_nhwc, *w_list, b_all)


def dense_block_forward(x_nchw, packed_params):
    """PyTorch-layout wrapper (NCHW in / NCHW out). NHWC callers should use
    dense_block_forward_nhwc directly to avoid the one-shot layout glue."""
    x = jnp.transpose(x_nchw, (0, 2, 3, 1))        # NCHW -> NHWC
    y = dense_block_forward_nhwc(x, packed_params)
    return jnp.transpose(y, (0, 3, 1, 2))          # NHWC -> NCHW


def init_dense_block_params(key, num_filters=NUM_FILTERS, num_layers=NUM_LAYERS):
    """Deterministic synthetic parameters matching the PyTorch module shapes."""
    params = []
    for i in range(num_layers):
        cin = num_filters * i + 64
        key, k_w, k_b = jax.random.split(key, 3)
        scale = 1.0 / jnp.sqrt(jnp.float32(cin * 9))
        w = jax.random.normal(k_w, (3, 3, cin, 64), jnp.float32) * scale  # HWIO
        b = jax.random.normal(k_b, (64,), jnp.float32) * 0.01
        params.append((w, b))
    return params


def reference_forward(x_nchw, params):
    """Pure-JAX reference (lax.conv, f32 HIGHEST) for a correctness check."""
    x = jnp.transpose(x_nchw, (0, 2, 3, 1))
    feats = [x]
    for (w, b) in params:
        inp = jnp.concatenate(feats, axis=-1)
        out = jax.lax.conv_general_dilated(
            inp, w, window_strides=(1, 1), padding="SAME",
            dimension_numbers=("NHWC", "HWIO", "NHWC"),
            precision=jax.lax.Precision.HIGHEST)
        out = out + b
        out = jnp.where(out >= 0, out, NEG_SLOPE * out)
        feats.append(out)
    y = jnp.concatenate(feats, axis=-1)
    return jnp.transpose(y, (0, 3, 1, 2))


if __name__ == "__main__":
    key = jax.random.PRNGKey(0)
    k_x, k_p = jax.random.split(key)

    # Layer 0 of DenseBlock expects 64 input channels; keep spatial small.
    N, C, H, W = 2, 64, 8, 8
    x = jax.random.normal(k_x, (N, C, H, W), jnp.float32)
    params = init_dense_block_params(k_p)
    packed = pack_dense_block_params(params)        # hoisted, done once

    fwd = jax.jit(dense_block_forward)
    y = jax.block_until_ready(fwd(x, packed))

    expected_channels = 64 + NUM_LAYERS * 64        # 384
    assert y.shape == (N, expected_channels, H, W), y.shape

    y_ref = reference_forward(x, params)
    # bf16 matmul operands / bf16 feature slab with f32 accumulation:
    # standard bf16 tolerance vs the f32 HIGHEST reference.
    ok = bool(jnp.all(jnp.abs(y - y_ref) <= 2e-2 + 2e-2 * jnp.abs(y_ref)))
    if not ok:
        max_err = float(jnp.max(jnp.abs(y - y_ref)))
        raise SystemExit(f"mismatch vs reference, max abs err = {max_err}")

    print("KERNEL_OK")
</pallas_src>

<mosaic_0001>
module attributes {stable_mosaic.version = 11 : i64} {
  func.func @kernel(%arg0: i32, %arg1: memref<1x8x8x64xf32, #tpu.memory_space<vmem>>, %arg2: memref<64x576xbf16, #tpu.memory_space<vmem>>, %arg3: memref<128x576xbf16, #tpu.memory_space<vmem>>, %arg4: memref<192x576xbf16, #tpu.memory_space<vmem>>, %arg5: memref<256x576xbf16, #tpu.memory_space<vmem>>, %arg6: memref<320x576xbf16, #tpu.memory_space<vmem>>, %arg7: memref<5x1x64xf32, #tpu.memory_space<vmem>>, %arg8: memref<1x8x8x384xf32, #tpu.memory_space<vmem>>, %arg9: memref<10x16x384xbf16, #tpu.memory_space<vmem>>) attributes {dimension_semantics = [#tpu.dimension_semantics<parallel>], iteration_bounds = array<i64: 2>, scalar_prefetch = 0 : i64, scratch_operands = 1 : i64, tpu.core_type = #tpu.core_type<tc>, window_params = [{transform_indices = @transform_0, window_bounds = array<i64: 1, 8, 8, 64>}, {pipeline_mode = #tpu.pipeline_mode<synchronous>, transform_indices = @transform_1, window_bounds = array<i64: 64, 576>}, {pipeline_mode = #tpu.pipeline_mode<synchronous>, transform_indices = @transform_2, window_bounds = array<i64: 128, 576>}, {pipeline_mode = #tpu.pipeline_mode<synchronous>, transform_indices = @transform_3, window_bounds = array<i64: 192, 576>}, {pipeline_mode = #tpu.pipeline_mode<synchronous>, transform_indices = @transform_4, window_bounds = array<i64: 256, 576>}, {pipeline_mode = #tpu.pipeline_mode<synchronous>, transform_indices = @transform_5, window_bounds = array<i64: 320, 576>}, {pipeline_mode = #tpu.pipeline_mode<synchronous>, transform_indices = @transform_6, window_bounds = array<i64: 5, 1, 64>}, {transform_indices = @transform_7, window_bounds = array<i64: 1, 8, 8, 384>}]} {
    %cst = arith.constant 0.000000e+00 : bf16
    %0 = vector.broadcast %cst : bf16 to vector<1x16x384xbf16>
    %c0 = arith.constant 0 : index
    %c0_0 = arith.constant 0 : index
    %c0_1 = arith.constant 0 : index
    %1 = vector.load %arg9[%c0, %c0_0, %c0_1] : memref<10x16x384xbf16, #tpu.memory_space<vmem>>, vector<1x16x384xbf16>
    tpu.vector_store %arg9[%c0, %c0_0, %c0_1], %0 {strides = array<i32>} : memref<10x16x384xbf16, #tpu.memory_space<vmem>>, vector<1x16x384xbf16>,
    %cst_2 = arith.constant 0.000000e+00 : bf16
    %2 = vector.broadcast %cst_2 : bf16 to vector<1x16x384xbf16>
    %c9 = arith.constant 9 : index
    %c0_3 = arith.constant 0 : index
    %c0_4 = arith.constant 0 : index
    %3 = vector.load %arg9[%c9, %c0_3, %c0_4] : memref<10x16x384xbf16, #tpu.memory_space<vmem>>, vector<1x16x384xbf16>
    tpu.vector_store %arg9[%c9, %c0_3, %c0_4], %2 {strides = array<i32>} : memref<10x16x384xbf16, #tpu.memory_space<vmem>>, vector<1x16x384xbf16>,
    %cst_5 = arith.constant 0.000000e+00 : bf16
    %4 = vector.broadcast %cst_5 : bf16 to vector<10x8x384xbf16>
    %c0_6 = arith.constant 0 : index
    %c8 = arith.constant 8 : index
    %c0_7 = arith.constant 0 : index
    %5 = vector.load %arg9[%c0_6, %c8, %c0_7] : memref<10x16x384xbf16, #tpu.memory_space<vmem>>, vector<10x8x384xbf16>
    tpu.vector_store %arg9[%c0_6, %c8, %c0_7], %4 {strides = array<i32>} : memref<10x16x384xbf16, #tpu.memory_space<vmem>>, vector<10x8x384xbf16>,
    %c0_8 = arith.constant 0 : index
    %c0_9 = arith.constant 0 : index
    %c0_10 = arith.constant 0 : index
    %c0_11 = arith.constant 0 : index
    %6 = vector.load %arg1[%c0_8, %c0_9, %c0_10, %c0_11] : memref<1x8x8x64xf32, #tpu.memory_space<vmem>>, vector<1x8x8x64xf32>
    %7 = vector.shape_cast %6 : vector<1x8x8x64xf32> to vector<8x8x64xf32>
    %8 = arith.truncf %7 : vector<8x8x64xf32> to vector<8x8x64xbf16>
    %c1 = arith.constant 1 : index
    %c0_12 = arith.constant 0 : index
    %c0_13 = arith.constant 0 : index
    %9 = vector.load %arg9[%c1, %c0_12, %c0_13] : memref<10x16x384xbf16, #tpu.memory_space<vmem>>, vector<8x8x64xbf16>
    tpu.vector_store %arg9[%c1, %c0_12, %c0_13], %8 {strides = array<i32>} : memref<10x16x384xbf16, #tpu.memory_space<vmem>>, vector<8x8x64xbf16>,
    %10 = tpu.iota {dimensions = array<i32: 1>} : vector<8x16x64xi32>
    %c8_i32 = arith.constant 8 : i32
    %11 = vector.broadcast %c8_i32 : i32 to vector<8x16x64xi32>
    %12 = arith.cmpi slt, %10, %11 : vector<8x16x64xi32>
    %c0_14 = arith.constant 0 : index
    %c0_15 = arith.constant 0 : index
    %c0_16 = arith.constant 0 : index
    %13 = vector.load %arg9[%c0_14, %c0_15, %c0_16] : memref<10x16x384xbf16, #tpu.memory_space<vmem>>, vector<10x16x64xbf16>
    %14 = vector.shape_cast %13 : vector<10x16x64xbf16> to vector<160x64xbf16>
    %c0_17 = arith.constant 0 : index
    %c0_18 = arith.constant 0 : index
    %15 = vector.load %arg2[%c0_17, %c0_18] : memref<64x576xbf16, #tpu.memory_space<vmem>>, vector<64x576xbf16>
    %cst_19 = arith.constant dense<0.000000e+00> : vector<160x576xf32>
    %16 = tpu.matmul %14, %15, %cst_19 {dimension_numbers = #tpu.dot_dimension_numbers<[1], [0], [0], [1], [0, 0, 1, 1], [], []>} : vector<160x64xbf16>, vector<64x576xbf16>, vector<160x576xf32> -> vector<160x576xf32>
    %17 = vector.shape_cast %16 : vector<160x576xf32> to vector<10x16x576xf32>
    %c0_20 = arith.constant 0 : index
    %c0_21 = arith.constant 0 : index
    %c0_22 = arith.constant 0 : index
    %18 = vector.load %arg7[%c0_20, %c0_21, %c0_22] : memref<5x1x64xf32, #tpu.memory_space<vmem>>, vector<1x1x64xf32>
    %19 = vector.shape_cast %18 : vector<1x1x64xf32> to vector<1x64xf32>
    %20 = vector.shape_cast %19 : vector<1x64xf32> to vector<1x1x64xf32>
    %21 = vector.broadcast %20 : vector<1x1x64xf32> to vector<8x16x64xf32>
    %22 = vector.extract_strided_slice %17 {offsets = [0, 0, 0], sizes = [8, 16, 576], strides = [1, 1, 1]} : vector<10x16x576xf32> to vector<8x16x576xf32>
    %23 = vector.extract_strided_slice %22 {offsets = [0, 0, 0], sizes = [8, 16, 64], strides = [1, 1, 1]} : vector<8x16x576xf32> to vector<8x16x64xf32>
    %c1_i32 = arith.constant 1 : i32
    %24 = tpu.dynamic_rotate %23 by %c1_i32 dim 1 : vector<8x16x64xf32>, i32 -> vector<8x16x64xf32>
    %25 = arith.addf %21, %24 : vector<8x16x64xf32>
    %26 = vector.extract_strided_slice %22 {offsets = [0, 0, 64], sizes = [8, 16, 64], strides = [1, 1, 1]} : vector<8x16x576xf32> to vector<8x16x64xf32>
    %27 = arith.addf %25, %26 : vector<8x16x64xf32>
    %28 = vector.extract_strided_slice %22 {offsets = [0, 0, 128], sizes = [8, 16, 64], strides = [1, 1, 1]} : vector<8x16x576xf32> to vector<8x16x64xf32>
    %c15_i32 = arith.constant 15 : i32
    %29 = tpu.dynamic_rotate %28 by %c15_i32 dim 1 : vector<8x16x64xf32>, i32 -> vector<8x16x64xf32>
    %30 = arith.addf %27, %29 : vector<8x16x64xf32>
    %31 = vector.extract_strided_slice %17 {offsets = [1, 0, 0], sizes = [8, 16, 576], strides = [1, 1, 1]} : vector<10x16x576xf32> to vector<8x16x576xf32>
    %32 = vector.extract_strided_slice %31 {offsets = [0, 0, 192], sizes = [8, 16, 64], strides = [1, 1, 1]} : vector<8x16x576xf32> to vector<8x16x64xf32>
    %c1_i32_23 = arith.constant 1 : i32
    %33 = tpu.dynamic_rotate %32 by %c1_i32_23 dim 1 : vector<8x16x64xf32>, i32 -> vector<8x16x64xf32>
    %34 = arith.addf %30, %33 : vector<8x16x64xf32>
    %35 = vector.extract_strided_slice %31 {offsets = [0, 0, 256], sizes = [8, 16, 64], strides = [1, 1, 1]} : vector<8x16x576xf32> to vector<8x16x64xf32>
    %36 = arith.addf %34, %35 : vector<8x16x64xf32>
    %37 = vector.extract_strided_slice %31 {offsets = [0, 0, 320], sizes = [8, 16, 64], strides = [1, 1, 1]} : vector<8x16x576xf32> to vector<8x16x64xf32>
    %c15_i32_24 = arith.constant 15 : i32
    %38 = tpu.dynamic_rotate %37 by %c15_i32_24 dim 1 : vector<8x16x64xf32>, i32 -> vector<8x16x64xf32>
    %39 = arith.addf %36, %38 : vector<8x16x64xf32>
    %40 = vector.extract_strided_slice %17 {offsets = [2, 0, 0], sizes = [8, 16, 576], strides = [1, 1, 1]} : vector<10x16x576xf32> to vector<8x16x576xf32>
    %41 = vector.extract_strided_slice %40 {offsets = [0, 0, 384], sizes = [8, 16, 64], strides = [1, 1, 1]} : vector<8x16x576xf32> to vector<8x16x64xf32>
    %c1_i32_25 = arith.constant 1 : i32
    %42 = tpu.dynamic_rotate %41 by %c1_i32_25 dim 1 : vector<8x16x64xf32>, i32 -> vector<8x16x64xf32>
    %43 = arith.addf %39, %42 : vector<8x16x64xf32>
    %44 = vector.extract_strided_slice %40 {offsets = [0, 0, 448], sizes = [8, 16, 64], strides = [1, 1, 1]} : vector<8x16x576xf32> to vector<8x16x64xf32>
    %45 = arith.addf %43, %44 : vector<8x16x64xf32>
    %46 = vector.extract_strided_slice %40 {offsets = [0, 0, 512], sizes = [8, 16, 64], strides = [1, 1, 1]} : vector<8x16x576xf32> to vector<8x16x64xf32>
    %c15_i32_26 = arith.constant 15 : i32
    %47 = tpu.dynamic_rotate %46 by %c15_i32_26 dim 1 : vector<8x16x64xf32>, i32 -> vector<8x16x64xf32>
    %48 = arith.addf %45, %47 : vector<8x16x64xf32>
    %cst_27 = arith.constant 0.000000e+00 : f32
    %49 = vector.broadcast %cst_27 : f32 to vector<8x16x64xf32>
    %50 = arith.cmpf oge, %48, %49 : vector<8x16x64xf32>
    %cst_28 = arith.constant 2.000000e-01 : f32
    %51 = vector.broadcast %cst_28 : f32 to vector<8x16x64xf32>
    %52 = arith.mulf %51, %48 : vector<8x16x64xf32>
    %53 = arith.select %50, %48, %52 : vector<8x16x64xi1>, vector<8x16x64xf32>
    %cst_29 = arith.constant 0.000000e+00 : f32
    %54 = vector.broadcast %cst_29 : f32 to vector<8x16x64xf32>
    %55 = arith.select %12, %53, %54 : vector<8x16x64xi1>, vector<8x16x64xf32>
    %56 = arith.truncf %55 : vector<8x16x64xf32> to vector<8x16x64xbf16>
    %c1_30 = arith.constant 1 : index
    %c0_31 = arith.constant 0 : index
    %c64 = arith.constant 64 : index
    %57 = vector.load %arg9[%c1_30, %c0_31, %c64] : memref<10x16x384xbf16, #tpu.memory_space<vmem>>, vector<8x16x64xbf16>
    tpu.vector_store %arg9[%c1_30, %c0_31, %c64], %56 {strides = array<i32>} : memref<10x16x384xbf16, #tpu.memory_space<vmem>>, vector<8x16x64xbf16>,
    %c0_32 = arith.constant 0 : index
    %c0_33 = arith.constant 0 : index
    %c0_34 = arith.constant 0 : index
    %58 = vector.load %arg9[%c0_32, %c0_33, %c0_34] : memref<10x16x384xbf16, #tpu.memory_space<vmem>>, vector<10x16x128xbf16>
    %59 = vector.shape_cast %58 : vector<10x16x128xbf16> to vector<160x128xbf16>
    %c0_35 = arith.constant 0 : index
    %c0_36 = arith.constant 0 : index
    %60 = vector.load %arg3[%c0_35, %c0_36] : memref<128x576xbf16, #tpu.memory_space<vmem>>, vector<128x576xbf16>
    %cst_37 = arith.constant dense<0.000000e+00> : vector<160x576xf32>
    %61 = tpu.matmul %59, %60, %cst_37 {dimension_numbers = #tpu.dot_dimension_numbers<[1], [0], [0], [1], [0, 0, 1, 1], [], []>} : vector<160x128xbf16>, vector<128x576xbf16>, vector<160x576xf32> -> vector<160x576xf32>
    %62 = vector.shape_cast %61 : vector<160x576xf32> to vector<10x16x576xf32>
    %c1_38 = arith.constant 1 : index
    %c0_39 = arith.constant 0 : index
    %c0_40 = arith.constant 0 : index
    %63 = vector.load %arg7[%c1_38, %c0_39, %c0_40] : memref<5x1x64xf32, #tpu.memory_space<vmem>>, vector<1x1x64xf32>
    %64 = vector.shape_cast %63 : vector<1x1x64xf32> to vector<1x64xf32>
    %65 = vector.shape_cast %64 : vector<1x64xf32> to vector<1x1x64xf32>
    %66 = vector.broadcast %65 : vector<1x1x64xf32> to vector<8x16x64xf32>
    %67 = vector.extract_strided_slice %62 {offsets = [0, 0, 0], sizes = [8, 16, 576], strides = [1, 1, 1]} : vector<10x16x576xf32> to vector<8x16x576xf32>
    %68 = vector.extract_strided_slice %67 {offsets = [0, 0, 0], sizes = [8, 16, 64], strides = [1, 1, 1]} : vector<8x16x576xf32> to vector<8x16x64xf32>
    %c1_i32_41 = arith.constant 1 : i32
    %69 = tpu.dynamic_rotate %68 by %c1_i32_41 dim 1 : vector<8x16x64xf32>, i32 -> vector<8x16x64xf32>
    %70 = arith.addf %66, %69 : vector<8x16x64xf32>
    %71 = vector.extract_strided_slice %67 {offsets = [0, 0, 64], sizes = [8, 16, 64], strides = [1, 1, 1]} : vector<8x16x576xf32> to vector<8x16x64xf32>
    %72 = arith.addf %70, %71 : vector<8x16x64xf32>
    %73 = vector.extract_strided_slice %67 {offsets = [0, 0, 128], sizes = [8, 16, 64], strides = [1, 1, 1]} : vector<8x16x576xf32> to vector<8x16x64xf32>
    %c15_i32_42 = arith.constant 15 : i32
    %74 = tpu.dynamic_rotate %73 by %c15_i32_42 dim 1 : vector<8x16x64xf32>, i32 -> vector<8x16x64xf32>
    %75 = arith.addf %72, %74 : vector<8x16x64xf32>
    %76 = vector.extract_strided_slice %62 {offsets = [1, 0, 0], sizes = [8, 16, 576], strides = [1, 1, 1]} : vector<10x16x576xf32> to vector<8x16x576xf32>
    %77 = vector.extract_strided_slice %76 {offsets = [0, 0, 192], sizes = [8, 16, 64], strides = [1, 1, 1]} : vector<8x16x576xf32> to vector<8x16x64xf32>
    %c1_i32_43 = arith.constant 1 : i32
    %78 = tpu.dynamic_rotate %77 by %c1_i32_43 dim 1 : vector<8x16x64xf32>, i32 -> vector<8x16x64xf32>
    %79 = arith.addf %75, %78 : vector<8x16x64xf32>
    %80 = vector.extract_strided_slice %76 {offsets = [0, 0, 256], sizes = [8, 16, 64], strides = [1, 1, 1]} : vector<8x16x576xf32> to vector<8x16x64xf32>
    %81 = arith.addf %79, %80 : vector<8x16x64xf32>
    %82 = vector.extract_strided_slice %76 {offsets = [0, 0, 320], sizes = [8, 16, 64], strides = [1, 1, 1]} : vector<8x16x576xf32> to vector<8x16x64xf32>
    %c15_i32_44 = arith.constant 15 : i32
    %83 = tpu.dynamic_rotate %82 by %c15_i32_44 dim 1 : vector<8x16x64xf32>, i32 -> vector<8x16x64xf32>
    %84 = arith.addf %81, %83 : vector<8x16x64xf32>
    %85 = vector.extract_strided_slice %62 {offsets = [2, 0, 0], sizes = [8, 16, 576], strides = [1, 1, 1]} : vector<10x16x576xf32> to vector<8x16x576xf32>
    %86 = vector.extract_strided_slice %85 {offsets = [0, 0, 384], sizes = [8, 16, 64], strides = [1, 1, 1]} : vector<8x16x576xf32> to vector<8x16x64xf32>
    %c1_i32_45 = arith.constant 1 : i32
    %87 = tpu.dynamic_rotate %86 by %c1_i32_45 dim 1 : vector<8x16x64xf32>, i32 -> vector<8x16x64xf32>
    %88 = arith.addf %84, %87 : vector<8x16x64xf32>
    %89 = vector.extract_strided_slice %85 {offsets = [0, 0, 448], sizes = [8, 16, 64], strides = [1, 1, 1]} : vector<8x16x576xf32> to vector<8x16x64xf32>
    %90 = arith.addf %88, %89 : vector<8x16x64xf32>
    %91 = vector.extract_strided_slice %85 {offsets = [0, 0, 512], sizes = [8, 16, 64], strides = [1, 1, 1]} : vector<8x16x576xf32> to vector<8x16x64xf32>
    %c15_i32_46 = arith.constant 15 : i32
    %92 = tpu.dynamic_rotate %91 by %c15_i32_46 dim 1 : vector<8x16x64xf32>, i32 -> vector<8x16x64xf32>
    %93 = arith.addf %90, %92 : vector<8x16x64xf32>
    %cst_47 = arith.constant 0.000000e+00 : f32
    %94 = vector.broadcast %cst_47 : f32 to vector<8x16x64xf32>
    %95 = arith.cmpf oge, %93, %94 : vector<8x16x64xf32>
    %cst_48 = arith.constant 2.000000e-01 : f32
    %96 = vector.broadcast %cst_48 : f32 to vector<8x16x64xf32>
    %97 = arith.mulf %96, %93 : vector<8x16x64xf32>
    %98 = arith.select %95, %93, %97 : vector<8x16x64xi1>, vector<8x16x64xf32>
    %cst_49 = arith.constant 0.000000e+00 : f32
    %99 = vector.broadcast %cst_49 : f32 to vector<8x16x64xf32>
    %100 = arith.select %12, %98, %99 : vector<8x16x64xi1>, vector<8x16x64xf32>
    %101 = arith.truncf %100 : vector<8x16x64xf32> to vector<8x16x64xbf16>
    %c1_50 = arith.constant 1 : index
    %c0_51 = arith.constant 0 : index
    %c128 = arith.constant 128 : index
    %102 = vector.load %arg9[%c1_50, %c0_51, %c128] : memref<10x16x384xbf16, #tpu.memory_space<vmem>>, vector<8x16x64xbf16>
    tpu.vector_store %arg9[%c1_50, %c0_51, %c128], %101 {strides = array<i32>} : memref<10x16x384xbf16, #tpu.memory_space<vmem>>, vector<8x16x64xbf16>,
    %c0_52 = arith.constant 0 : index
    %c0_53 = arith.constant 0 : index
    %c0_54 = arith.constant 0 : index
    %103 = vector.load %arg9[%c0_52, %c0_53, %c0_54] : memref<10x16x384xbf16, #tpu.memory_space<vmem>>, vector<10x16x192xbf16>
    %104 = vector.shape_cast %103 : vector<10x16x192xbf16> to vector<160x192xbf16>
    %c0_55 = arith.constant 0 : index
    %c0_56 = arith.constant 0 : index
    %105 = vector.load %arg4[%c0_55, %c0_56] : memref<192x576xbf16, #tpu.memory_space<vmem>>, vector<192x576xbf16>
    %cst_57 = arith.constant dense<0.000000e+00> : vector<160x576xf32>
    %106 = tpu.matmul %104, %105, %cst_57 {dimension_numbers = #tpu.dot_dimension_numbers<[1], [0], [0], [1], [0, 0, 1, 1], [], []>} : vector<160x192xbf16>, vector<192x576xbf16>, vector<160x576xf32> -> vector<160x576xf32>
    %107 = vector.shape_cast %106 : vector<160x576xf32> to vector<10x16x576xf32>
    %c2 = arith.constant 2 : index
    %c0_58 = arith.constant 0 : index
    %c0_59 = arith.constant 0 : index
    %108 = vector.load %arg7[%c2, %c0_58, %c0_59] : memref<5x1x64xf32, #tpu.memory_space<vmem>>, vector<1x1x64xf32>
    %109 = vector.shape_cast %108 : vector<1x1x64xf32> to vector<1x64xf32>
    %110 = vector.shape_cast %109 : vector<1x64xf32> to vector<1x1x64xf32>
    %111 = vector.broadcast %110 : vector<1x1x64xf32> to vector<8x16x64xf32>
    %112 = vector.extract_strided_slice %107 {offsets = [0, 0, 0], sizes = [8, 16, 576], strides = [1, 1, 1]} : vector<10x16x576xf32> to vector<8x16x576xf32>
    %113 = vector.extract_strided_slice %112 {offsets = [0, 0, 0], sizes = [8, 16, 64], strides = [1, 1, 1]} : vector<8x16x576xf32> to vector<8x16x64xf32>
    %c1_i32_60 = arith.constant 1 : i32
    %114 = tpu.dynamic_rotate %113 by %c1_i32_60 dim 1 : vector<8x16x64xf32>, i32 -> vector<8x16x64xf32>
    %115 = arith.addf %111, %114 : vector<8x16x64xf32>
    %116 = vector.extract_strided_slice %112 {offsets = [0, 0, 64], sizes = [8, 16, 64], strides = [1, 1, 1]} : vector<8x16x576xf32> to vector<8x16x64xf32>
    %117 = arith.addf %115, %116 : vector<8x16x64xf32>
    %118 = vector.extract_strided_slice %112 {offsets = [0, 0, 128], sizes = [8, 16, 64], strides = [1, 1, 1]} : vector<8x16x576xf32> to vector<8x16x64xf32>
    %c15_i32_61 = arith.constant 15 : i32
    %119 = tpu.dynamic_rotate %118 by %c15_i32_61 dim 1 : vector<8x16x64xf32>, i32 -> vector<8x16x64xf32>
    %120 = arith.addf %117, %119 : vector<8x16x64xf32>
    %121 = vector.extract_strided_slice %107 {offsets = [1, 0, 0], sizes = [8, 16, 576], strides = [1, 1, 1]} : vector<10x16x576xf32> to vector<8x16x576xf32>
    %122 = vector.extract_strided_slice %121 {offsets = [0, 0, 192], sizes = [8, 16, 64], strides = [1, 1, 1]} : vector<8x16x576xf32> to vector<8x16x64xf32>
    %c1_i32_62 = arith.constant 1 : i32
    %123 = tpu.dynamic_rotate %122 by %c1_i32_62 dim 1 : vector<8x16x64xf32>, i32 -> vector<8x16x64xf32>
    %124 = arith.addf %120, %123 : vector<8x16x64xf32>
    %125 = vector.extract_strided_slice %121 {offsets = [0, 0, 256], sizes = [8, 16, 64], strides = [1, 1, 1]} : vector<8x16x576xf32> to vector<8x16x64xf32>
    %126 = arith.addf %124, %125 : vector<8x16x64xf32>
    %127 = vector.extract_strided_slice %121 {offsets = [0, 0, 320], sizes = [8, 16, 64], strides = [1, 1, 1]} : vector<8x16x576xf32> to vector<8x16x64xf32>
    %c15_i32_63 = arith.constant 15 : i32
    %128 = tpu.dynamic_rotate %127 by %c15_i32_63 dim 1 : vector<8x16x64xf32>, i32 -> vector<8x16x64xf32>
    %129 = arith.addf %126, %128 : vector<8x16x64xf32>
    %130 = vector.extract_strided_slice %107 {offsets = [2, 0, 0], sizes = [8, 16, 576], strides = [1, 1, 1]} : vector<10x16x576xf32> to vector<8x16x576xf32>
    %131 = vector.extract_strided_slice %130 {offsets = [0, 0, 384], sizes = [8, 16, 64], strides = [1, 1, 1]} : vector<8x16x576xf32> to vector<8x16x64xf32>
    %c1_i32_64 = arith.constant 1 : i32
    %132 = tpu.dynamic_rotate %131 by %c1_i32_64 dim 1 : vector<8x16x64xf32>, i32 -> vector<8x16x64xf32>
    %133 = arith.addf %129, %132 : vector<8x16x64xf32>
    %134 = vector.extract_strided_slice %130 {offsets = [0, 0, 448], sizes = [8, 16, 64], strides = [1, 1, 1]} : vector<8x16x576xf32> to vector<8x16x64xf32>
    %135 = arith.addf %133, %134 : vector<8x16x64xf32>
    %136 = vector.extract_strided_slice %130 {offsets = [0, 0, 512], sizes = [8, 16, 64], strides = [1, 1, 1]} : vector<8x16x576xf32> to vector<8x16x64xf32>
    %c15_i32_65 = arith.constant 15 : i32
    %137 = tpu.dynamic_rotate %136 by %c15_i32_65 dim 1 : vector<8x16x64xf32>, i32 -> vector<8x16x64xf32>
    %138 = arith.addf %135, %137 : vector<8x16x64xf32>
    %cst_66 = arith.constant 0.000000e+00 : f32
    %139 = vector.broadcast %cst_66 : f32 to vector<8x16x64xf32>
    %140 = arith.cmpf oge, %138, %139 : vector<8x16x64xf32>
    %cst_67 = arith.constant 2.000000e-01 : f32
    %141 = vector.broadcast %cst_67 : f32 to vector<8x16x64xf32>
    %142 = arith.mulf %141, %138 : vector<8x16x64xf32>
    %143 = arith.select %140, %138, %142 : vector<8x16x64xi1>, vector<8x16x64xf32>
    %cst_68 = arith.constant 0.000000e+00 : f32
    %144 = vector.broadcast %cst_68 : f32 to vector<8x16x64xf32>
    %145 = arith.select %12, %143, %144 : vector<8x16x64xi1>, vector<8x16x64xf32>
    %146 = arith.truncf %145 : vector<8x16x64xf32> to vector<8x16x64xbf16>
    %c1_69 = arith.constant 1 : index
    %c0_70 = arith.constant 0 : index
    %c192 = arith.constant 192 : index
    %147 = vector.load %arg9[%c1_69, %c0_70, %c192] : memref<10x16x384xbf16, #tpu.memory_space<vmem>>, vector<8x16x64xbf16>
    tpu.vector_store %arg9[%c1_69, %c0_70, %c192], %146 {strides = array<i32>} : memref<10x16x384xbf16, #tpu.memory_space<vmem>>, vector<8x16x64xbf16>,
    %c0_71 = arith.constant 0 : index
    %c0_72 = arith.constant 0 : index
    %c0_73 = arith.constant 0 : index
    %148 = vector.load %arg9[%c0_71, %c0_72, %c0_73] : memref<10x16x384xbf16, #tpu.memory_space<vmem>>, vector<10x16x256xbf16>
    %149 = vector.shape_cast %148 : vector<10x16x256xbf16> to vector<160x256xbf16>
    %c0_74 = arith.constant 0 : index
    %c0_75 = arith.constant 0 : index
    %150 = vector.load %arg5[%c0_74, %c0_75] : memref<256x576xbf16, #tpu.memory_space<vmem>>, vector<256x576xbf16>
    %cst_76 = arith.constant dense<0.000000e+00> : vector<160x576xf32>
    %151 = tpu.matmul %149, %150, %cst_76 {dimension_numbers = #tpu.dot_dimension_numbers<[1], [0], [0], [1], [0, 0, 1, 1], [], []>} : vector<160x256xbf16>, vector<256x576xbf16>, vector<160x576xf32> -> vector<160x576xf32>
    %152 = vector.shape_cast %151 : vector<160x576xf32> to vector<10x16x576xf32>
    %c3 = arith.constant 3 : index
    %c0_77 = arith.constant 0 : index
    %c0_78 = arith.constant 0 : index
    %153 = vector.load %arg7[%c3, %c0_77, %c0_78] : memref<5x1x64xf32, #tpu.memory_space<vmem>>, vector<1x1x64xf32>
    %154 = vector.shape_cast %153 : vector<1x1x64xf32> to vector<1x64xf32>
    %155 = vector.shape_cast %154 : vector<1x64xf32> to vector<1x1x64xf32>
    %156 = vector.broadcast %155 : vector<1x1x64xf32> to vector<8x16x64xf32>
    %157 = vector.extract_strided_slice %152 {offsets = [0, 0, 0], sizes = [8, 16, 576], strides = [1, 1, 1]} : vector<10x16x576xf32> to vector<8x16x576xf32>
    %158 = vector.extract_strided_slice %157 {offsets = [0, 0, 0], sizes = [8, 16, 64], strides = [1, 1, 1]} : vector<8x16x576xf32> to vector<8x16x64xf32>
    %c1_i32_79 = arith.constant 1 : i32
    %159 = tpu.dynamic_rotate %158 by %c1_i32_79 dim 1 : vector<8x16x64xf32>, i32 -> vector<8x16x64xf32>
    %160 = arith.addf %156, %159 : vector<8x16x64xf32>
    %161 = vector.extract_strided_slice %157 {offsets = [0, 0, 64], sizes = [8, 16, 64], strides = [1, 1, 1]} : vector<8x16x576xf32> to vector<8x16x64xf32>
    %162 = arith.addf %160, %161 : vector<8x16x64xf32>
    %163 = vector.extract_strided_slice %157 {offsets = [0, 0, 128], sizes = [8, 16, 64], strides = [1, 1, 1]} : vector<8x16x576xf32> to vector<8x16x64xf32>
    %c15_i32_80 = arith.constant 15 : i32
    %164 = tpu.dynamic_rotate %163 by %c15_i32_80 dim 1 : vector<8x16x64xf32>, i32 -> vector<8x16x64xf32>
    %165 = arith.addf %162, %164 : vector<8x16x64xf32>
    %166 = vector.extract_strided_slice %152 {offsets = [1, 0, 0], sizes = [8, 16, 576], strides = [1, 1, 1]} : vector<10x16x576xf32> to vector<8x16x576xf32>
    %167 = vector.extract_strided_slice %166 {offsets = [0, 0, 192], sizes = [8, 16, 64], strides = [1, 1, 1]} : vector<8x16x576xf32> to vector<8x16x64xf32>
    %c1_i32_81 = arith.constant 1 : i32
    %168 = tpu.dynamic_rotate %167 by %c1_i32_81 dim 1 : vector<8x16x64xf32>, i32 -> vector<8x16x64xf32>
    %169 = arith.addf %165, %168 : vector<8x16x64xf32>
    %170 = vector.extract_strided_slice %166 {offsets = [0, 0, 256], sizes = [8, 16, 64], strides = [1, 1, 1]} : vector<8x16x576xf32> to vector<8x16x64xf32>
    %171 = arith.addf %169, %170 : vector<8x16x64xf32>
    %172 = vector.extract_strided_slice %166 {offsets = [0, 0, 320], sizes = [8, 16, 64], strides = [1, 1, 1]} : vector<8x16x576xf32> to vector<8x16x64xf32>
    %c15_i32_82 = arith.constant 15 : i32
    %173 = tpu.dynamic_rotate %172 by %c15_i32_82 dim 1 : vector<8x16x64xf32>, i32 -> vector<8x16x64xf32>
    %174 = arith.addf %171, %173 : vector<8x16x64xf32>
    %175 = vector.extract_strided_slice %152 {offsets = [2, 0, 0], sizes = [8, 16, 576], strides = [1, 1, 1]} : vector<10x16x576xf32> to vector<8x16x576xf32>
    %176 = vector.extract_strided_slice %175 {offsets = [0, 0, 384], sizes = [8, 16, 64], strides = [1, 1, 1]} : vector<8x16x576xf32> to vector<8x16x64xf32>
    %c1_i32_83 = arith.constant 1 : i32
    %177 = tpu.dynamic_rotate %176 by %c1_i32_83 dim 1 : vector<8x16x64xf32>, i32 -> vector<8x16x64xf32>
    %178 = arith.addf %174, %177 : vector<8x16x64xf32>
    %179 = vector.extract_strided_slice %175 {offsets = [0, 0, 448], sizes = [8, 16, 64], strides = [1, 1, 1]} : vector<8x16x576xf32> to vector<8x16x64xf32>
    %180 = arith.addf %178, %179 : vector<8x16x64xf32>
    %181 = vector.extract_strided_slice %175 {offsets = [0, 0, 512], sizes = [8, 16, 64], strides = [1, 1, 1]} : vector<8x16x576xf32> to vector<8x16x64xf32>
    %c15_i32_84 = arith.constant 15 : i32
    %182 = tpu.dynamic_rotate %181 by %c15_i32_84 dim 1 : vector<8x16x64xf32>, i32 -> vector<8x16x64xf32>
    %183 = arith.addf %180, %182 : vector<8x16x64xf32>
    %cst_85 = arith.constant 0.000000e+00 : f32
    %184 = vector.broadcast %cst_85 : f32 to vector<8x16x64xf32>
    %185 = arith.cmpf oge, %183, %184 : vector<8x16x64xf32>
    %cst_86 = arith.constant 2.000000e-01 : f32
    %186 = vector.broadcast %cst_86 : f32 to vector<8x16x64xf32>
    %187 = arith.mulf %186, %183 : vector<8x16x64xf32>
    %188 = arith.select %185, %183, %187 : vector<8x16x64xi1>, vector<8x16x64xf32>
    %cst_87 = arith.constant 0.000000e+00 : f32
    %189 = vector.broadcast %cst_87 : f32 to vector<8x16x64xf32>
    %190 = arith.select %12, %188, %189 : vector<8x16x64xi1>, vector<8x16x64xf32>
    %191 = arith.truncf %190 : vector<8x16x64xf32> to vector<8x16x64xbf16>
    %c1_88 = arith.constant 1 : index
    %c0_89 = arith.constant 0 : index
    %c256 = arith.constant 256 : index
    %192 = vector.load %arg9[%c1_88, %c0_89, %c256] : memref<10x16x384xbf16, #tpu.memory_space<vmem>>, vector<8x16x64xbf16>
    tpu.vector_store %arg9[%c1_88, %c0_89, %c256], %191 {strides = array<i32>} : memref<10x16x384xbf16, #tpu.memory_space<vmem>>, vector<8x16x64xbf16>,
    %c0_90 = arith.constant 0 : index
    %c0_91 = arith.constant 0 : index
    %c0_92 = arith.constant 0 : index
    %193 = vector.load %arg9[%c0_90, %c0_91, %c0_92] : memref<10x16x384xbf16, #tpu.memory_space<vmem>>, vector<10x16x320xbf16>
    %194 = vector.shape_cast %193 : vector<10x16x320xbf16> to vector<160x320xbf16>
    %c0_93 = arith.constant 0 : index
    %c0_94 = arith.constant 0 : index
    %195 = vector.load %arg6[%c0_93, %c0_94] : memref<320x576xbf16, #tpu.memory_space<vmem>>, vector<320x576xbf16>
    %cst_95 = arith.constant dense<0.000000e+00> : vector<160x576xf32>
    %196 = tpu.matmul %194, %195, %cst_95 {dimension_numbers = #tpu.dot_dimension_numbers<[1], [0], [0], [1], [0, 0, 1, 1], [], []>} : vector<160x320xbf16>, vector<320x576xbf16>, vector<160x576xf32> -> vector<160x576xf32>
    %197 = vector.shape_cast %196 : vector<160x576xf32> to vector<10x16x576xf32>
    %c4 = arith.constant 4 : index
    %c0_96 = arith.constant 0 : index
    %c0_97 = arith.constant 0 : index
    %198 = vector.load %arg7[%c4, %c0_96, %c0_97] : memref<5x1x64xf32, #tpu.memory_space<vmem>>, vector<1x1x64xf32>
    %199 = vector.shape_cast %198 : vector<1x1x64xf32> to vector<1x64xf32>
    %200 = vector.shape_cast %199 : vector<1x64xf32> to vector<1x1x64xf32>
    %201 = vector.broadcast %200 : vector<1x1x64xf32> to vector<8x16x64xf32>
    %202 = vector.extract_strided_slice %197 {offsets = [0, 0, 0], sizes = [8, 16, 576], strides = [1, 1, 1]} : vector<10x16x576xf32> to vector<8x16x576xf32>
    %203 = vector.extract_strided_slice %202 {offsets = [0, 0, 0], sizes = [8, 16, 64], strides = [1, 1, 1]} : vector<8x16x576xf32> to vector<8x16x64xf32>
    %c1_i32_98 = arith.constant 1 : i32
    %204 = tpu.dynamic_rotate %203 by %c1_i32_98 dim 1 : vector<8x16x64xf32>, i32 -> vector<8x16x64xf32>
    %205 = arith.addf %201, %204 : vector<8x16x64xf32>
    %206 = vector.extract_strided_slice %202 {offsets = [0, 0, 64], sizes = [8, 16, 64], strides = [1, 1, 1]} : vector<8x16x576xf32> to vector<8x16x64xf32>
    %207 = arith.addf %205, %206 : vector<8x16x64xf32>
    %208 = vector.extract_strided_slice %202 {offsets = [0, 0, 128], sizes = [8, 16, 64], strides = [1, 1, 1]} : vector<8x16x576xf32> to vector<8x16x64xf32>
    %c15_i32_99 = arith.constant 15 : i32
    %209 = tpu.dynamic_rotate %208 by %c15_i32_99 dim 1 : vector<8x16x64xf32>, i32 -> vector<8x16x64xf32>
    %210 = arith.addf %207, %209 : vector<8x16x64xf32>
    %211 = vector.extract_strided_slice %197 {offsets = [1, 0, 0], sizes = [8, 16, 576], strides = [1, 1, 1]} : vector<10x16x576xf32> to vector<8x16x576xf32>
    %212 = vector.extract_strided_slice %211 {offsets = [0, 0, 192], sizes = [8, 16, 64], strides = [1, 1, 1]} : vector<8x16x576xf32> to vector<8x16x64xf32>
    %c1_i32_100 = arith.constant 1 : i32
    %213 = tpu.dynamic_rotate %212 by %c1_i32_100 dim 1 : vector<8x16x64xf32>, i32 -> vector<8x16x64xf32>
    %214 = arith.addf %210, %213 : vector<8x16x64xf32>
    %215 = vector.extract_strided_slice %211 {offsets = [0, 0, 256], sizes = [8, 16, 64], strides = [1, 1, 1]} : vector<8x16x576xf32> to vector<8x16x64xf32>
    %216 = arith.addf %214, %215 : vector<8x16x64xf32>
    %217 = vector.extract_strided_slice %211 {offsets = [0, 0, 320], sizes = [8, 16, 64], strides = [1, 1, 1]} : vector<8x16x576xf32> to vector<8x16x64xf32>
    %c15_i32_101 = arith.constant 15 : i32
    %218 = tpu.dynamic_rotate %217 by %c15_i32_101 dim 1 : vector<8x16x64xf32>, i32 -> vector<8x16x64xf32>
    %219 = arith.addf %216, %218 : vector<8x16x64xf32>
    %220 = vector.extract_strided_slice %197 {offsets = [2, 0, 0], sizes = [8, 16, 576], strides = [1, 1, 1]} : vector<10x16x576xf32> to vector<8x16x576xf32>
    %221 = vector.extract_strided_slice %220 {offsets = [0, 0, 384], sizes = [8, 16, 64], strides = [1, 1, 1]} : vector<8x16x576xf32> to vector<8x16x64xf32>
    %c1_i32_102 = arith.constant 1 : i32
    %222 = tpu.dynamic_rotate %221 by %c1_i32_102 dim 1 : vector<8x16x64xf32>, i32 -> vector<8x16x64xf32>
    %223 = arith.addf %219, %222 : vector<8x16x64xf32>
    %224 = vector.extract_strided_slice %220 {offsets = [0, 0, 448], sizes = [8, 16, 64], strides = [1, 1, 1]} : vector<8x16x576xf32> to vector<8x16x64xf32>
    %225 = arith.addf %223, %224 : vector<8x16x64xf32>
    %226 = vector.extract_strided_slice %220 {offsets = [0, 0, 512], sizes = [8, 16, 64], strides = [1, 1, 1]} : vector<8x16x576xf32> to vector<8x16x64xf32>
    %c15_i32_103 = arith.constant 15 : i32
    %227 = tpu.dynamic_rotate %226 by %c15_i32_103 dim 1 : vector<8x16x64xf32>, i32 -> vector<8x16x64xf32>
    %228 = arith.addf %225, %227 : vector<8x16x64xf32>
    %cst_104 = arith.constant 0.000000e+00 : f32
    %229 = vector.broadcast %cst_104 : f32 to vector<8x16x64xf32>
    %230 = arith.cmpf oge, %228, %229 : vector<8x16x64xf32>
    %cst_105 = arith.constant 2.000000e-01 : f32
    %231 = vector.broadcast %cst_105 : f32 to vector<8x16x64xf32>
    %232 = arith.mulf %231, %228 : vector<8x16x64xf32>
    %233 = arith.select %230, %228, %232 : vector<8x16x64xi1>, vector<8x16x64xf32>
    %cst_106 = arith.constant 0.000000e+00 : f32
    %234 = vector.broadcast %cst_106 : f32 to vector<8x16x64xf32>
    %235 = arith.select %12, %233, %234 : vector<8x16x64xi1>, vector<8x16x64xf32>
    %236 = arith.truncf %235 : vector<8x16x64xf32> to vector<8x16x64xbf16>
    %c1_107 = arith.constant 1 : index
    %c0_108 = arith.constant 0 : index
    %c320 = arith.constant 320 : index
    %237 = vector.load %arg9[%c1_107, %c0_108, %c320] : memref<10x16x384xbf16, #tpu.memory_space<vmem>>, vector<8x16x64xbf16>
    tpu.vector_store %arg9[%c1_107, %c0_108, %c320], %236 {strides = array<i32>} : memref<10x16x384xbf16, #tpu.memory_space<vmem>>, vector<8x16x64xbf16>,
    %c1_109 = arith.constant 1 : index
    %c0_110 = arith.constant 0 : index
    %c0_111 = arith.constant 0 : index
    %238 = vector.load %arg9[%c1_109, %c0_110, %c0_111] : memref<10x16x384xbf16, #tpu.memory_space<vmem>>, vector<8x8x384xbf16>
    %239 = arith.extf %238 : vector<8x8x384xbf16> to vector<8x8x384xf32>
    %c0_112 = arith.constant 0 : index
    %c0_113 = arith.constant 0 : index
    %c0_114 = arith.constant 0 : index
    %c0_115 = arith.constant 0 : index
    %240 = vector.load %arg8[%c0_112, %c0_113, %c0_114, %c0_115] : memref<1x8x8x384xf32, #tpu.memory_space<vmem>>, vector<1x8x8x384xf32>
    %241 = vector.shape_cast %240 : vector<1x8x8x384xf32> to vector<8x8x384xf32>
    %242 = vector.shape_cast %239 : vector<8x8x384xf32> to vector<1x8x8x384xf32>
    tpu.vector_store %arg8[%c0_112, %c0_113, %c0_114, %c0_115], %242 {strides = array<i32>} : memref<1x8x8x384xf32, #tpu.memory_space<vmem>>, vector<1x8x8x384xf32>,
    return
  }
  func.func @transform_0(%arg0: i32) -> (i32, i32, i32, i32) {
    %c0_i32 = arith.constant 0 : i32
    %c0_i32_0 = arith.constant 0 : i32
    %c0_i32_1 = arith.constant 0 : i32
    %c0_i32_2 = arith.constant 0 : i32
    return %arg0, %c0_i32, %c0_i32_0, %c0_i32_1 : i32, i32, i32, i32
  }
  func.func @transform_1(%arg0: i32) -> (i32, i32) {
    %c0_i32 = arith.constant 0 : i32
    %c0_i32_0 = arith.constant 0 : i32
    %c0_i32_1 = arith.constant 0 : i32
    return %c0_i32, %c0_i32_0 : i32, i32
  }
  func.func @transform_2(%arg0: i32) -> (i32, i32) {
    %c0_i32 = arith.constant 0 : i32
    %c0_i32_0 = arith.constant 0 : i32
    %c0_i32_1 = arith.constant 0 : i32
    return %c0_i32, %c0_i32_0 : i32, i32
  }
  func.func @transform_3(%arg0: i32) -> (i32, i32) {
    %c0_i32 = arith.constant 0 : i32
    %c0_i32_0 = arith.constant 0 : i32
    %c0_i32_1 = arith.constant 0 : i32
    return %c0_i32, %c0_i32_0 : i32, i32
  }
  func.func @transform_4(%arg0: i32) -> (i32, i32) {
    %c0_i32 = arith.constant 0 : i32
    %c0_i32_0 = arith.constant 0 : i32
    %c0_i32_1 = arith.constant 0 : i32
    return %c0_i32, %c0_i32_0 : i32, i32
  }
  func.func @transform_5(%arg0: i32) -> (i32, i32) {
    %c0_i32 = arith.constant 0 : i32
    %c0_i32_0 = arith.constant 0 : i32
    %c0_i32_1 = arith.constant 0 : i32
    return %c0_i32, %c0_i32_0 : i32, i32
  }
  func.func @transform_6(%arg0: i32) -> (i32, i32, i32) {
    %c0_i32 = arith.constant 0 : i32
    %c0_i32_0 = arith.constant 0 : i32
    %c0_i32_1 = arith.constant 0 : i32
    %c0_i32_2 = arith.constant 0 : i32
    return %c0_i32, %c0_i32_0, %c0_i32_1 : i32, i32, i32
  }
  func.func @transform_7(%arg0: i32) -> (i32, i32, i32, i32) {
    %c0_i32 = arith.constant 0 : i32
    %c0_i32_0 = arith.constant 0 : i32
    %c0_i32_1 = arith.constant 0 : i32
    %c0_i32_2 = arith.constant 0 : i32
    return %arg0, %c0_i32, %c0_i32_0, %c0_i32_1 : i32, i32, i32, i32
  }
}

</mosaic_0001>

<bundles_post_ra>
// kernel: dense_block_forward.1
= control target key start
LH: loop header
LB: loop body
LE: loop exit
PB: predicated region body
PF: predicated region fallthrough
CT: control target
= control target key end

     0   :  { %12 = vsyncpa [#allocation4], 0  ;;  %s12718_s0 = inlined_call_operand.vmem [shape: f32[2,8,8,64], index: 0, kind: input, shape index: {}]   ;;  %s12719_s1 = inlined_call_operand.vmem [shape: bf16[64,576], index: 1, kind: input, shape index: {}]   ;;  %s12720_s2 = inlined_call_operand.vmem [shape: bf16[128,576], index: 2, kind: input, shape index: {}]   ;;  %s12721_s3 = inlined_call_operand.hbm [shape: bf16[192,576], index: 3, kind: input, shape index: {}]   ;;  %s12722_s4 = inlined_call_operand.vmem [shape: bf16[256,576], index: 4, kind: input, shape index: {}]   ;;  %s12723_s5 = inlined_call_operand.vmem [shape: bf16[320,576], index: 5, kind: input, shape index: {}]   ;;  %s12724_s6 = inlined_call_operand.vmem [shape: f32[5,1,64], index: 6, kind: input, shape index: {}]   ;;  %s12725_s7 = inlined_call_operand.hbm [shape: f32[2,8,8,384], index: 7, kind: output, shape index: {}]  }
   0x1   :  { %13 = vsyncpa [#allocation5], 0 }
   0x2   :  { %15 = vsyncpa [#allocation5 + $0x1], 0  ;;  %s9721_s24 = smov 0   ;;  %s9723_s25 = smov 0  }
   0x3   :  { %s9725_s26 = smov 0   ;;  %s9727_s27 = smov 0  }
   0x4 LB: > { %s9742_s28 = sadd.s32 4294967295, %s9670_s27   ;;  %s8286_s29 = sadd.s32 4294967294, %s9670_s27   ;;  %s9670_s27 = sphi %s9727_s27, %s12741_s27   ;;  %s9666_s26 = sphi %s9725_s26, %s12740_s26   ;;  %s9662_s25 = sphi %s9723_s25, %s12739_s25   ;;  %s9658_s24 = sphi %s9721_s24, %s12738_s24  }
   0x5   : > { %s9746_s30 = sadd.s32 1, %s9670_s27   ;;  %s180_s8 = sadd.s32 1, %s9666_s26 }
   0x6   : > { %s177_s9 = ssub.s32 %s9670_s27, %s9746_s30  ;;  %p190_p0 = scmp.ne.s32.totalorder %s9666_s26, %s9662_s25 }
   0x7   : > { %p178_p1 = scmp.eq.s32.totalorder %s177_s9, 0  ;;  %p191_p2 = scmp.eq.s32.totalorder %s9742_s28, 1 }
   0x8   : > { %p196_p3 = scmp.ne.s32.totalorder %s9662_s25, %s9658_s24  ;;  %p197_p4 = scmp.eq.s32.totalorder %s8286_s29, 1 }
   0x9   : > { %s9757_s10 = scalar_select %p178_p1, %s9666_s26, %s180_s8  }
   0xa   : > { %p9759_p5 = por %p191_p2, %p190_p0  ;;  %p9763_p6 = por %p197_p4, %p196_p3 }
   0xb   : > { %p8287_p7 = scmp.ge.s32.totalorder %s9670_s27, 1  ;;  %p204_p8 = scmp.lt.s32.totalorder %s9670_s27, 3 }
   0xc   : > { %s12729_s11 = scalar_select %p9759_p5, 1, 0 }
   0xd   : > { %s12730_s12 = scalar_select %p9763_p6, 1, 0 }
   0xe   : > { %p12726_p9 = scmp.eq.s32.totalorder %s9742_s28, 0  ;;  %p9770_p10 = pnand %p8287_p7, %p204_p8 }
   0xf   : > { %s9672_s14 = smov [#allocation3]   ;;  %s9576_s19 = scalar_lea.hbm %s12721_s3, 7680 }
  0x10   : > { %s12731_s13 = scalar_select %p9770_p10, 1, 0 }
  0x11   : > { %s222_s15 = sshll.u32 %s9672_s14, 4  ;;  %p9075_p11 = pneg %p9770_p10  ;;  %s223_s15 = int_to_ptr.vmem [resolvable:$true] %s222_s15 }
  0x12   : > { %p9577_p13 = scmp.ne.s32.totalorder %s12721_s3, %s9576_s19  ;;  %p9583_p3 = scmp.lt.u32.totalorder %s9576_s19, %s12721_s3 }
  0x13   : > { %p9778_p12 = pnand %p12726_p9, %p9075_p11 }
  0x15   : > { %p9578_p0 = pneg %p9778_p12 }
  0x17   : > { %p9579_p1 = pnand %p9578_p0, %p9577_p13 }
  0x19   : > { %p9580_p2 = pneg %p9579_p1 }
  0x1b   : > { %p9585_p4 = pnand %p9583_p3, %p9580_p2 }
  0x1d   : > { %9588 = shalt.err (!%p9585_p4)
}
  0x1e   : > { %s9589_s29 = scalar_lea.vmem %s223_s15, 7680  ;;  %p9597_p9 = scmp.lt.s32.totalorder %s223_s15, %s223_s15 }
  0x1f   : > { %p9590_p7 = scmp.ne.s32.totalorder %s223_s15, %s9589_s29  ;;  %p9598_p6 = scmp.lt.s32.totalorder %s9589_s29, %s9589_s29 }
  0x21   : > { %p9592_p8 = pnand %p9590_p7, %p9578_p0  ;;  %p9599_p5 = por %p9598_p6, %p9597_p9 }
  0x23   : > { %p9593_p11 = pneg %p9592_p8 }
  0x25   : > { %p9600_p10 = pnand %p9599_p5, %p9593_p11 }
  0x27   : > { %9603 = shalt.err (!%p9600_p10)
}
  0x28   : > { %s9673_s8 = smov 320   ;;  %s9674_s9 = smov 20  }
  0x29   : > { %9078 = dma.hbm_to_vmem [thread:$0]  (!%p9778_p12), %s12721_s3, 7680, %s223_s15, [#allocation4], %s9673_s8, %s9673_s8, %s9674_s9  }
  0x2a   : > { %p12733_p13 = scmp.ne.s32.totalorder %s12731_s13, 0 }
  0x2b   : > { %p12734_p1 = scmp.eq.s32.totalorder (!%p12733_p13), %s9742_s28, 0 }
  0x2c   : > { %255 = sbr.rel (%p12733_p13) target bundleno = 2359 (0x937), region = 48 }
  0x33   : > { %9649 = dma.done.wait (%p12734_p1), [#allocation4], 7680   ;;  %p12735_p0 = pmov %p12734_p1 }
  0x34   : > { %p287_p5 = scmp.lt.s32.totalorder %s9742_s28, 1  ;;  %v9675_v0 = vmov 0   ;;  %v9126_v1 = vld [vmem:[%s12719_s1 + $0x4] ss:$20 sps:$4 sm:$0xff]   ;;  %v9128_v2 = vld [vmem:[%s12719_s1] ss:$20 sps:$4 sm:$0xff]   ;;  %v356_v47 = vlaneseq }
  0x35   : > { %9651 = vsyncadd (%p12735_p0), [#allocation4], 4294959616  ;;  %562 = vmatprep.mubr.bf16.mxu0 %v9675_v0  ;;  %293 = vst [vmem:[#allocation2] sm:$0xff] %v9675_v0  ;;  %642 = vmatprep.mubr.bf16.mxu1 %v9675_v0  ;;  %v9129_v3 = vld [vmem:[%s12719_s1 + $0x2c] ss:$20 sps:$4 sm:$0xff]   ;;  %vm347_vm0 = vcmask 519168  }
  0x36   : > { %294 = vst [vmem:[#allocation2 + $0x8] sm:$0xff] %v9675_v0  ;;  %295 = vst [vmem:[#allocation2 + $0x10] sm:$0xff] %v9675_v0  ;;  %s288_s13 = scalar_select %p287_p5, %s9742_s28, 1  ;;  %530 = vmatprep.subr.bf16.mxu0 %v9126_v1  ;;  %8987 = vmatprep.subr.bf16.mxu1 %v9126_v1  ;;  %v9131_v4 = vld [vmem:[%s12719_s1 + $0x28] ss:$20 sps:$4 sm:$0xff]   ;;  %vm499_vm1 = vcmask 523264  }
  0x37   : > { %297 = vst [vmem:[#allocation2 + $0xd8] sm:$0xff] %v9675_v0  ;;  %298 = vst [vmem:[#allocation2 + $0xe0] sm:$0xff] %v9675_v0  ;;  %531 = vmatpush1.bf16.msra.mxu0 %v9128_v2  ;;  %8991 = vmatpush1.bf16.msra.mxu1 %v9128_v2  ;;  %v9132_v5 = vld [vmem:[%s12719_s1 + $0x54] ss:$20 sps:$4 sm:$0xff]   ;;  %v9134_v8 = vld [vmem:[%s12719_s1 + $0x50] ss:$20 sps:$4 sm:$0xff]  }
  0x38   : > { %299 = vst [vmem:[#allocation2 + $0xe8] sm:$0xff] %v9675_v0  ;;  %303 = vst [vmem:[#allocation2 + $0x18] sm:$0xf0] %v9675_v0  ;;  %s8696_s15 = sshll.u32 %s288_s13, 6  ;;  %532 = vmatprep.subr.bf16.mxu0 %v9129_v3  ;;  %8988 = vmatprep.subr.bf16.mxu1 %v9129_v3  ;;  %v9135_v9 = vld [vmem:[%s12719_s1 + $0x7c] ss:$20 sps:$4 sm:$0xff]  }
  0x39   : > { %304 = vst [vmem:[#allocation2 + $0x20] sm:$0xf0] %v9675_v0  ;;  %305 = vst [vmem:[#allocation2 + $0x28] sm:$0xf0] %v9675_v0  ;;  %s9858_s8 = scalar_lea.vmem %s12718_s0, %s8696_s15  ;;  %v9137_v12 = vld [vmem:[%s12719_s1 + $0x78] ss:$20 sps:$4 sm:$0xff]  }
  0x3a   : > { %306 = vst [vmem:[#allocation2 + $0x30] sm:$0xf0] %v9675_v0  ;;  %307 = vst [vmem:[#allocation2 + $0x38] sm:$0xf0] %v9675_v0  ;;  %v337_v6 = vld [vmem:[%s9858_s8 + $0x38] sm:$0xff]  ;;  %v330_v10 = vld [vmem:[%s9858_s8] sm:$0xff] }
  0x3b   : > { %308 = vst [vmem:[#allocation2 + $0x40] sm:$0xf0] %v9675_v0  ;;  %309 = vst [vmem:[#allocation2 + $0x48] sm:$0xf0] %v9675_v0  ;;  %v345_v7 = vpack.c.bf16 %v337_v6, %v337_v6  ;;  %533 = vmatpush1.bf16.msra.mxu0 %v9131_v4  ;;  %8992 = vmatpush1.bf16.msra.mxu1 %v9131_v4  ;;  %v338_v11 = vpack.c.bf16 %v330_v10, %v330_v10  ;;  %v9140_v13 = vld [vmem:[%s12719_s1 + $0xc] ss:$20 sps:$4 sm:$0xff]  }
  0x3c   : > { %310 = vst [vmem:[#allocation2 + $0x50] sm:$0xf0] %v9675_v0  ;;  %311 = vst [vmem:[#allocation2 + $0x58] sm:$0xf0] %v9675_v0  ;;  %534 = vmatprep.subr.bf16.mxu0 %v9132_v5  ;;  %8989 = vmatprep.subr.bf16.mxu1 %v9132_v5  ;;  %v331_v14 = vld [vmem:[%s9858_s8 + $0x8] sm:$0xff]  ;;  %v332_v15 = vld [vmem:[%s9858_s8 + $0x10] sm:$0xff] }
  0x3d   : > { %312 = vst [vmem:[#allocation2 + $0x60] sm:$0xf0] %v9675_v0  ;;  %313 = vst [vmem:[#allocation2 + $0x68] sm:$0xf0] %v9675_v0  ;;  %v333_v16 = vld [vmem:[%s9858_s8 + $0x18] sm:$0xff]  ;;  %v339_v19 = vpack.c.bf16 %v331_v14, %v331_v14  ;;  %v340_v20 = vpack.c.bf16 %v332_v15, %v332_v15  ;;  %v334_v22 = vld [vmem:[%s9858_s8 + $0x20] sm:$0xff] }
  0x3e   : > { %314 = vst [vmem:[#allocation2 + $0x70] sm:$0xf0] %v9675_v0  ;;  %315 = vst [vmem:[#allocation2 + $0x78] sm:$0xf0] %v9675_v0  ;;  %v9138_v18 = vld [vmem:[%s12719_s1 + $0x8] ss:$20 sps:$4 sm:$0xff]   ;;  %v341_v21 = vpack.c.bf16 %v333_v16, %v333_v16  ;;  %v342_v25 = vpack.c.bf16 %v334_v22, %v334_v22 }
  0x3f   : > { %316 = vst [vmem:[#allocation2 + $0x80] sm:$0xf0] %v9675_v0  ;;  %317 = vst [vmem:[#allocation2 + $0x88] sm:$0xf0] %v9675_v0  ;;  %535 = vmatpush1.bf16.msra.mxu0 %v9134_v8  ;;  %8993 = vmatpush1.bf16.msra.mxu1 %v9134_v8  ;;  %v335_v23 = vld [vmem:[%s9858_s8 + $0x28] sm:$0xff]  ;;  %v336_v24 = vld [vmem:[%s9858_s8 + $0x30] sm:$0xff] }
  0x40   : > { %318 = vst [vmem:[#allocation2 + $0x90] sm:$0xf0] %v9675_v0  ;;  %319 = vst [vmem:[#allocation2 + $0x98] sm:$0xf0] %v9675_v0  ;;  %536 = vmatprep.subr.bf16.mxu0 %v9135_v9  ;;  %8990 = vmatprep.subr.bf16.mxu1 %v9135_v9  ;;  %v343_v26 = vpack.c.bf16 %v335_v23, %v335_v23  ;;  %v344_v27 = vpack.c.bf16 %v336_v24, %v336_v24  ;;  %v9150_v28 = vld [vmem:[%s12719_s1 + $0x10] ss:$20 sps:$4 sm:$0xff]  }
  0x41   : > { %320 = vst [vmem:[#allocation2 + $0xa0] sm:$0xf0] %v9675_v0  ;;  %321 = vst [vmem:[#allocation2 + $0xa8] sm:$0xf0] %v9675_v0  ;;  %v9143_v30 = vld [vmem:[%s12719_s1 + $0x34] ss:$20 sps:$4 sm:$0xff]  }
  0x42   : > { %322 = vst [vmem:[#allocation2 + $0xb0] sm:$0xf0] %v9675_v0  ;;  %323 = vst [vmem:[#allocation2 + $0xb8] sm:$0xf0] %v9675_v0  ;;  %v9141_v31 = vld [vmem:[%s12719_s1 + $0x30] ss:$20 sps:$4 sm:$0xff]  }
  0x43   : > { %324 = vst [vmem:[#allocation2 + $0xc0] sm:$0xf0] %v9675_v0  ;;  %325 = vst [vmem:[#allocation2 + $0xc8] sm:$0xf0] %v9675_v0  ;;  %537 = vmatpush1.bf16.msra.mxu0 %v9137_v12  ;;  %8994 = vmatpush1.bf16.msra.mxu1 %v9137_v12  ;;  %v9146_v32 = vld [vmem:[%s12719_s1 + $0x5c] ss:$20 sps:$4 sm:$0xff]  }
  0x44   : > { %326 = vst [vmem:[#allocation2 + $0xd0] sm:$0xf0] %v9675_v0  ;;  %300 = vst [vmem:[#allocation2] sm:$0xf0] %v9675_v0  ;;  %657 = vmatprep.subr.bf16.mxu1 %v9140_v13  ;;  %8895 = vmatprep.subr.bf16.mxu0 %v9150_v28  ;;  %v9151_v33 = vld [vmem:[%s12719_s1 + $0x38] ss:$20 sps:$4 sm:$0xff]  }
  0x45   : > { %301 = vst [vmem:[#allocation2 + $0x8] sm:$0xf0] %v9675_v0  ;;  %302 = vst [vmem:[#allocation2 + $0x10] sm:$0xf0] %v9675_v0  ;;  %v9144_v35 = vld [vmem:[%s12719_s1 + $0x58] ss:$20 sps:$4 sm:$0xff]  }
  0x46   : > { %327 = vst [vmem:[#allocation2 + $0xd8] sm:$0xf0] %v9675_v0  ;;  %328 = vst [vmem:[#allocation2 + $0xe0] sm:$0xf0] %v9675_v0  ;;  %v9149_v37 = vld [vmem:[%s12719_s1 + $0x84] ss:$20 sps:$4 sm:$0xff]  }
  0x47   : > { %329 = vst [vmem:[#allocation2 + $0xe8] sm:$0xf0] %v9675_v0  ;;  %355 = vst.msk [vmem:[#allocation2 + $0xc0] sm:$0xf] %vm347_vm0, %v345_v7  ;;  %v9152_v38 = vld [vmem:[%s12719_s1 + $0x60] ss:$20 sps:$4 sm:$0xff]  }
  0x48   : > { %348 = vst.msk [vmem:[#allocation2 + $0x18] sm:$0xf] %vm347_vm0, %v338_v11  ;;  %349 = vst.msk [vmem:[#allocation2 + $0x30] sm:$0xf] %vm347_vm0, %v339_v19  ;;  %v9147_v39 = vld [vmem:[%s12719_s1 + $0x80] ss:$20 sps:$4 sm:$0xff]  }
  0x49   : > { %350 = vst.msk [vmem:[#allocation2 + $0x48] sm:$0xf] %vm347_vm0, %v340_v20  ;;  %351 = vst.msk [vmem:[#allocation2 + $0x60] sm:$0xf] %vm347_vm0, %v341_v21  ;;  %v9153_v40 = vld [vmem:[%s12719_s1 + $0x88] ss:$20 sps:$4 sm:$0xff]  }
  0x4a   : > { %352 = vst.msk [vmem:[#allocation2 + $0x78] sm:$0xf] %vm347_vm0, %v342_v25  ;;  %353 = vst.msk [vmem:[#allocation2 + $0x90] sm:$0xf] %vm347_vm0, %v343_v26  ;;  %v9992_v48 = vshrl.u32 %v356_v47, 7  ;;  %s9676_s18 = smov 64  }
  0x4b   : > { %v9885_v17 = vld [vmem:[#allocation2] sm:$0xff]  ;;  %354 = vst.msk [vmem:[#allocation2 + $0xa8] sm:$0xf] %vm347_vm0, %v344_v27  ;;  %v9157_v9 = vld [vmem:[%s12720_s2 + $0x28] ss:$20 sps:$4 sm:$0xff]   ;;  %vm1596_vm12 = vcmask 1048064  }
  0x4c   : > { %8314 = vmatmul.mubr.msk.bf16.vlgmr.msra.gmra.mrb[0].mxu0 %vm499_vm1, %v9885_v17  ;;  %vm914_vm2 = vcmp.lt.s32.totalorder %v9992_v48, 1  ;;  %vm1043_vm3 = vcmp.lt.s32.totalorder %v9992_v48, 7  ;;  %v9156_v62 = vld [vmem:[%s12720_s2 + $0x4] ss:$20 sps:$4 sm:$0xff]   ;;  %v9154_v1 = vld [vmem:[%s12720_s2] ss:$20 sps:$4 sm:$0xff]  }
  0x4d   : > { %572 = vmatprep.mubr.bf16.mxu0 %v9675_v0  ;;  %8896 = vmatpush3.bf16.msra.mxu0 %v9150_v28  ;;  %v9922_v34 = vld [vmem:[#allocation2 + $0xd8] sm:$0xff]  ;;  %v9159_v6 = vld [vmem:[%s12720_s2 + $0x2c] ss:$20 sps:$4 sm:$0xff]   ;;  %v9160_v19 = vld [vmem:[%s12720_s2 + $0x50] ss:$20 sps:$4 sm:$0xff]   ;;  %s284_s23 = sand.u32 1, %s9662_s25  }
  0x4e   : > { %v9896_v29 = vld [vmem:[#allocation2 + $0xc0] sm:$0xff]  ;;  %8897 = vmatprep.subr.bf16.mxu0 %v9151_v33  ;;  %v9165_v24 = vld [vmem:[%s12720_s2 + $0x7c] ss:$20 sps:$4 sm:$0xff]   ;;  %v9163_v27 = vld [vmem:[%s12720_s2 + $0x78] ss:$20 sps:$4 sm:$0xff]   ;;  %s9067_s29 = smul.u32 192, %s284_s23 }
  0x4f   : > { %8322 = vmatmul.mubr.msk.bf16.vlgmr.msra.gmra.mrb[0].mxu1 %vm499_vm1, %v9896_v29  ;;  %v362_v36 = vld [vmem:[#allocation2 + $0x18] sm:$0xff]  ;;  %v363_v41 = vld [vmem:[#allocation2 + $0x30] sm:$0xff]  ;;  %p12736_p9 = scmp.ne.s32.totalorder %s12729_s11, 0  ;;  %s9678_s16 = smov [#allocation6]  }
  0x50   : > { %658 = vmatpush1.bf16.msra.mxu1 %v9138_v18  ;;  %650 = vmatprep.mubr.bf16.mxu1 %v9675_v0  ;;  %v364_v42 = vld [vmem:[#allocation2 + $0x48] sm:$0xff]  ;;  %v365_v43 = vld [vmem:[#allocation2 + $0x60] sm:$0xff]  ;;  %s10452_s9 = scalar_lea.vmem [#allocation6], %s9067_s29  ;;  %s9608_s19 = sshll.u32 %s9678_s16, 4  ;;  %s9609_s19 = int_to_ptr.vmem [resolvable:$false] %s9608_s19 }
  0x51   : > { %659 = vmatprep.subr.bf16.mxu1 %v9143_v30  ;;  %8898 = vmatpush3.bf16.msra.mxu0 %v9151_v33  ;;  %v366_v44 = vld [vmem:[#allocation2 + $0x78] sm:$0xff]  ;;  %v367_v45 = vld [vmem:[#allocation2 + $0x90] sm:$0xff]  ;;  %s8212_s14 = sshll.u32 %s10452_s9, 4  ;;  %s9610_s20 = scalar_lea.vmem %s9609_s19, 6144  ;;  %s12672_s14 = int_to_ptr.vmem [resolvable:$true] %s8212_s14 }
  0x52   : > { %8899 = vmatprep.subr.bf16.mxu0 %v9152_v38  ;;  %v368_v46 = vld [vmem:[#allocation2 + $0xa8] sm:$0xff]  ;;  %s9604_s15 = scalar_lea.vmem %s12672_s14, 3072  ;;  %p9611_p2 = scmp.lt.s32.totalorder %s12672_s14, %s9609_s19 }
  0x53   : > { %p9605_p6 = scmp.ne.s32.totalorder %s12672_s14, %s9604_s15  ;;  %p9612_p3 = scmp.lt.s32.totalorder %s9610_s20, %s9604_s15 }
  0x54   : > { %660 = vmatpush1.bf16.msra.mxu1 %v9141_v31  ;;  %8315 = vmatmul.mubr.msk.bf16.gmra.mrb[4].mxu0 %vm499_vm1, %v362_v36 }
  0x55   : > { %661 = vmatprep.subr.bf16.mxu1 %v9146_v32  ;;  %582 = vmatprep.mubr.bf16.mxu0 %v9675_v0  ;;  %p9606_p10 = pnand %p9605_p6, %p12736_p9  ;;  %p9613_p4 = por %p9612_p3, %p9611_p2 }
  0x56   : > { %8900 = vmatpush3.bf16.msra.mxu0 %v9152_v38 }
  0x57   : > { %8323 = vmatmul.mubr.msk.bf16.gmra.mrb[4].mxu1 %vm499_vm1, %v9922_v34  ;;  %8901 = vmatprep.subr.bf16.mxu0 %v9153_v40  ;;  %p9607_p12 = pneg %p9606_p10 }
  0x58   : > { %662 = vmatpush1.bf16.msra.mxu1 %v9144_v35  ;;  %689 = vmatprep.mubr.bf16.mxu1 %v9675_v0  ;;  %v9168_v35 = vld [vmem:[%s12720_s2 + $0xa4] ss:$20 sps:$4 sm:$0xff]  }
  0x59   : > { %663 = vmatprep.subr.bf16.mxu1 %v9149_v37  ;;  %v9166_v37 = vld [vmem:[%s12720_s2 + $0xa0] ss:$20 sps:$4 sm:$0xff]   ;;  %p9614_p7 = pnand %p9613_p4, %p9607_p12 }
  0x5a   : > { %8902 = vmatpush3.bf16.msra.mxu0 %v9153_v40 }
  0x5c   : > { %664 = vmatpush1.bf16.msra.mxu1 %v9147_v39  ;;  %8316 = vmatmul.mubr.msk.bf16.gmra.mrb[8].mxu0 %vm499_vm1, %v363_v41 }
  0x5d   : > { %592 = vmatprep.mubr.bf16.mxu0 %v9675_v0  ;;  %1871 = vmatprep.subr.bf16.mxu1 %v9156_v62 }
  0x5f   : > { %8324 = vmatmul.mubr.msk.bf16.vlgmr.msra.gmra.mrb[8].mxu1 %vm499_vm1, %v9885_v17 }
  0x60   : > { %695 = vmatprep.mubr.bf16.mxu1 %v9675_v0  ;;  %1872 = vmatpush1.bf16.msra.mxu1 %v9154_v1 }
  0x61   : > { %1873 = vmatprep.subr.bf16.mxu1 %v9159_v6 }
  0x64   : > { %8317 = vmatmul.mubr.msk.bf16.gmra.mrb[12].mxu0 %vm499_vm1, %v364_v42  ;;  %1874 = vmatpush1.bf16.msra.mxu1 %v9157_v9 }
  0x65   : > { %602 = vmatprep.mubr.bf16.mxu0 %v9675_v0 }
  0x67   : > { %8325 = vmatmul.mubr.msk.bf16.gmra.mrb[12].mxu1 %vm499_vm1, %v362_v36 }
  0x68   : > { %703 = vmatprep.mubr.bf16.mxu1 %v9675_v0 }
  0x6c   : > { %8318 = vmatmul.mubr.msk.bf16.gmra.mrb[16].mxu0 %vm499_vm1, %v365_v43 }
  0x6d   : > { %612 = vmatprep.mubr.bf16.mxu0 %v9675_v0 }
  0x6f   : > { %8326 = vmatmul.mubr.msk.bf16.gmra.mrb[16].mxu1 %vm499_vm1, %v363_v41 }
  0x70   : > { %713 = vmatprep.mubr.bf16.mxu1 %v9675_v0 }
  0x74   : > { %8319 = vmatmul.mubr.msk.bf16.gmra.mrb[20].mxu0 %vm499_vm1, %v366_v44 }
  0x75   : > { %622 = vmatprep.mubr.bf16.mxu0 %v9675_v0 }
  0x77   : > { %8327 = vmatmul.mubr.msk.bf16.gmra.mrb[20].mxu1 %vm499_vm1, %v364_v42 }
  0x78   : > { %723 = vmatprep.mubr.bf16.mxu1 %v9675_v0 }
  0x7c   : > { %8320 = vmatmul.mubr.msk.bf16.gmra.mrb[24].mxu0 %vm499_vm1, %v367_v45 }
  0x7d   : > { %632 = vmatprep.mubr.bf16.mxu0 %v9675_v0 }
  0x7f   : > { %8328 = vmatmul.mubr.msk.bf16.gmra.mrb[24].mxu1 %vm499_vm1, %v365_v43 }
  0x80   : > { %733 = vmatprep.mubr.bf16.mxu1 %v9675_v0 }
  0x84   : > { %8321 = vmatmul.mubr.msk.bf16.gmra.mrb[28].mxu0 %vm499_vm1, %v368_v46 }
  0x85   : > { %8903 = vmatprep.mubr.msk.bf16.mxu0 %vm499_vm1, %v9885_v17  ;;  %v9162_v17 = vld [vmem:[%s12720_s2 + $0x54] ss:$20 sps:$4 sm:$0xff]  }
  0x86   : > { %1875 = vmatprep.subr.bf16.mxu1 %v9162_v17 }
  0x87   : > { %8329 = vmatmul.mubr.msk.bf16.gmra.mrb[28].mxu1 %vm499_vm1, %v366_v44 }
  0x88   : > { %743 = vmatprep.mubr.bf16.mxu1 %v9675_v0  ;;  %1876 = vmatpush1.bf16.msra.mxu1 %v9160_v19  ;;  %v10113_v19 = vld [vmem:[#allocation2] sm:$0xff] }
  0x89   : > { %1877 = vmatprep.subr.bf16.mxu1 %v9165_v24 }
  0x8c   : > { %8904 = vmatmul.mubr.msk.bf16.vlgmr.msra.gmra.mrb[32].mxu0 %vm499_vm1, %v362_v36  ;;  %1878 = vmatpush1.bf16.msra.mxu1 %v9163_v27 }
  0x8d   : > { %8907 = vmatprep.mubr.msk.bf16.mxu0 %vm499_vm1, %v363_v41  ;;  %1879 = vmatprep.subr.bf16.mxu1 %v9168_v35 }
  0x8f   : > { %8330 = vmatmul.mubr.msk.bf16.gmra.mrb[32].mxu1 %vm499_vm1, %v367_v45 }
  0x90   : > { %753 = vmatprep.mubr.bf16.mxu1 %v9675_v0  ;;  %1880 = vmatpush1.bf16.msra.mxu1 %v9166_v37 }
  0x94   : > { %8908 = vmatmul.mubr.msk.bf16.gmra.mrb[36].mxu0 %vm499_vm1, %v364_v42  ;;  %v9171_v42 = vld [vmem:[%s12720_s2 + $0xcc] ss:$20 sps:$4 sm:$0xff]  }
  0x95   : > { %8911 = vmatprep.mubr.msk.bf16.mxu0 %vm499_vm1, %v365_v43  ;;  %1881 = vmatprep.subr.bf16.mxu1 %v9171_v42 }
  0x97   : > { %8331 = vmatmul.mubr.msk.bf16.gmra.mrb[36].mxu1 %vm499_vm1, %v368_v46 }
  0x98   : > { %763 = vmatprep.mubr.bf16.mxu1 %v9675_v0 }
  0x9c   : > { %8912 = vmatmul.mubr.msk.bf16.gmra.mrb[40].mxu0 %vm499_vm1, %v366_v44 }
  0x9d   : > { %8915 = vmatprep.mubr.msk.bf16.mxu0 %vm499_vm1, %v367_v45  ;;  %v9169_v45 = vld [vmem:[%s12720_s2 + $0xc8] ss:$20 sps:$4 sm:$0xff]  }
  0x9e   : > { %1882 = vmatpush1.bf16.msra.mxu1 %v9169_v45 }
  0x9f   : > { %8332 = vmatmul.mubr.msk.bf16.gmra.mrb[40].mxu1 %vm499_vm1, %v9896_v29 }
  0xa0   : > { %773 = vmatprep.mubr.bf16.mxu1 %v9675_v0 }
  0xa4   : > { %8916 = vmatmul.mubr.msk.bf16.gmra.mrb[44].mxu0 %vm499_vm1, %v368_v46 }
  0xa5   : > { %8919 = vmatprep.mubr.msk.bf16.mxu0 %vm499_vm1, %v9896_v29 }
  0xa7   : > { %8333 = vmatmul.mubr.msk.bf16.gmra.mrb[44].mxu1 %vm499_vm1, %v9922_v34 }
  0xa8   : > { %1903 = vmatprep.mubr.bf16.mxu1 %v9675_v0 }
  0xac   : > { %8920 = vmatmul.mubr.msk.bf16.gmra.mrb[48].mxu0 %vm499_vm1, %v9922_v34 }
  0xad   : > { %2030 = vmatprep.mubr.bf16.mxu0 %v9675_v0 }
 0x11f   : > { %v564_v49 = vpop.f32.mrb[0].mxu0 }
 0x120   : > { %963 = vrot.lane.b32.xlu0 %v564_v49, %s9676_s18  ;;  %v566_v52 = vpop.f32.mrb[1].mxu0  ;;  %v898_v55 = vrot.slane %v564_v49, 7 }
 0x121   : > { %v568_v53 = vpop.f32.mrb[2].mxu0  ;;  %v1027_v59 = vrot.slane %v566_v52, 1 }
 0x122   : > { %v644_v50 = vpop.f32.mrb[0].mxu1  ;;  %v906_v56 = vrot.slane %v568_v53, 7  ;;  %v570_v57 = vpop.f32.mrb[3].mxu0 }
 0x123   : > { %v9994_v51 = vpop.f32.mrb[1].mxu1  ;;  %v1035_v60 = vrot.slane %v570_v57, 1  ;;  %v9172_v57 = vld [vmem:[%s12720_s2 + $0xf0] ss:$20 sps:$4 sm:$0xff]  }
 0x124   : > { %v647_v54 = vpop.f32.mrb[2].mxu1  ;;  %v10003_v61 = vsel %vm914_vm2, %v906_v56, %v898_v55  ;;  %v9174_v55 = vld [vmem:[%s12720_s2 + $0xf4] ss:$20 sps:$4 sm:$0xff]  }
 0x125   : > { %v9998_v58 = vpop.f32.mrb[3].mxu1  ;;  %v10010_v63 = vsel %vm1043_vm3, %v1027_v59, %v1035_v60  ;;  %1883 = vmatprep.subr.bf16.mxu1 %v9174_v55 }
 0x126   : > { %1884 = vmatpush1.bf16.msra.mxu1 %v9172_v57 }
 0x127   : > { %v574_v2 = vpop.f32.mrb[4].mxu0 }
 0x128   : > { %967 = vrot.lane.b32.xlu1 %v574_v2, %s9676_s18  ;;  %v576_v5 = vpop.f32.mrb[5].mxu0  ;;  %v899_v10 = vrot.slane %v574_v2, 7 }
 0x129   : > { %1092 = vrot.lane.b32.xlu0 %v576_v5, %s9676_s18  ;;  %v578_v8 = vpop.f32.mrb[6].mxu0  ;;  %v1028_v14 = vrot.slane %v576_v5, 1 }
 0x12a   : > { %v652_v3 = vpop.f32.mrb[4].mxu1  ;;  %v907_v11 = vrot.slane %v578_v8, 7  ;;  %v580_v12 = vpop.f32.mrb[7].mxu0 }
 0x12b   : > { %v653_v4 = vpop.f32.mrb[5].mxu1  ;;  %v1036_v15 = vrot.slane %v580_v12, 1  ;;  %v9177_v3 = vld [vmem:[%s12720_s2 + $0x11c] ss:$20 sps:$4 sm:$0xff]  }
 0x12c   : > { %v654_v7 = vpop.f32.mrb[6].mxu1  ;;  %1094 = vrot.lane.b32.xlu1 %v580_v12, %s9676_s18  ;;  %v10026_v16 = vsel %vm914_vm2, %v907_v11, %v899_v10  ;;  %1885 = vmatprep.subr.bf16.mxu1 %v9177_v3 }
 0x12d   : > { %v655_v13 = vpop.f32.mrb[7].mxu1  ;;  %v10033_v18 = vsel %vm1043_vm3, %v1028_v14, %v1036_v15  ;;  %v9175_v7 = vld [vmem:[%s12720_s2 + $0x118] ss:$20 sps:$4 sm:$0xff]  }
 0x12e   : > { %1886 = vmatpush1.bf16.msra.mxu1 %v9175_v7 }
 0x12f   : > { %v584_v20 = vpop.f32.mrb[8].mxu0 }
 0x130   : > { %971 = vrot.lane.b32.xlu1 %v584_v20, %s9676_s18  ;;  %v586_v23 = vpop.f32.mrb[9].mxu0  ;;  %v900_v28 = vrot.slane %v584_v20, 7 }
 0x131   : > { %1096 = vrot.lane.b32.xlu0 %v586_v23, %s9676_s18  ;;  %v588_v26 = vpop.f32.mrb[10].mxu0  ;;  %v1029_v32 = vrot.slane %v586_v23, 1  ;;  %1904 = vmatmul.mubr.bf16.vlgmr.msra.gmra.mrb[48].mxu1 %v10113_v19 }
 0x132   : > { %v691_v21 = vpop.f32.mrb[8].mxu1  ;;  %v908_v29 = vrot.slane %v588_v26, 7  ;;  %v590_v30 = vpop.f32.mrb[11].mxu0  ;;  %1913 = vmatprep.mubr.bf16.mxu1 %v9675_v0 }
 0x133   : > { %v692_v22 = vpop.f32.mrb[9].mxu1  ;;  %v1037_v33 = vrot.slane %v590_v30, 1 }
 0x134   : > { %v693_v25 = vpop.f32.mrb[10].mxu1  ;;  %1098 = vrot.lane.b32.xlu1 %v590_v30, %s9676_s18  ;;  %v10049_v34 = vsel %vm914_vm2, %v908_v29, %v900_v28 }
 0x135   : > { %v694_v31 = vpop.f32.mrb[11].mxu1  ;;  %v10056_v36 = vsel %vm1043_vm3, %v1029_v32, %v1037_v33 }
 0x137   : > { %v594_v38 = vpop.f32.mrb[12].mxu0 }
 0x138   : > { %v596_v41 = vpop.f32.mrb[13].mxu0  ;;  %v901_v46 = vrot.slane %v594_v38, 7 }
 0x139   : > { %1100 = vrot.lane.b32.xlu0 %v596_v41, %s9676_s18  ;;  %v598_v44 = vpop.f32.mrb[14].mxu0  ;;  %v1030_v52 = vrot.slane %v596_v41, 1 }
 0x13a   : > { %v10061_v39 = vpop.f32.mrb[12].mxu1  ;;  %v909_v47 = vrot.slane %v598_v44, 7  ;;  %v600_v49 = vpop.f32.mrb[15].mxu0 }
 0x13b   : > { %v699_v40 = vpop.f32.mrb[13].mxu1  ;;  %1220 = vrot.lane.b32.xlu1 %v10061_v39, %s9676_s18  ;;  %v1038_v53 = vrot.slane %v600_v49, 1 }
 0x13c   : > { %v700_v43 = vpop.f32.mrb[14].mxu1  ;;  %v10075_v54 = vsel %vm914_vm2, %v909_v47, %v901_v46 }
 0x13d   : > { %v702_v50 = vpop.f32.mrb[15].mxu1  ;;  %1222 = vrot.lane.b32.xlu0 %v700_v43, %s9676_s18  ;;  %v10083_v56 = vsel %vm1043_vm3, %v1030_v52, %v1038_v53 }
 0x13f   : > { %975 = vrot.lane.b32.xlu1 %v594_v38, %s9676_s18  ;;  %v604_v60 = vpop.f32.mrb[16].mxu0 }
 0x140   : > { %v902_v1 = vrot.slane %v604_v60, 7  ;;  %v606_v2 = vpop.f32.mrb[17].mxu0 }
 0x141   : > { %v1031_v5 = vrot.slane %v606_v2, 1  ;;  %v608_v6 = vpop.f32.mrb[18].mxu0 }
 0x142   : > { %v10088_v59 = vpop.f32.mrb[16].mxu1  ;;  %v910_v9 = vrot.slane %v608_v6, 7  ;;  %v610_v10 = vpop.f32.mrb[19].mxu0 }
 0x143   : > { %v707_v62 = vpop.f32.mrb[17].mxu1  ;;  %1102 = vrot.lane.b32.xlu1 %v600_v49, %s9676_s18  ;;  %v1039_v13 = vrot.slane %v610_v10, 1 }
 0x144   : > { %v709_v4 = vpop.f32.mrb[18].mxu1  ;;  %1380 = vrot.lane.b32.xlu0 %v707_v62, %s9676_s18  ;;  %v1316_v11 = vrot.slane %v707_v62, 7  ;;  %v10102_v14 = vsel %vm914_vm2, %v910_v9, %v902_v1 }
 0x145   : > { %v711_v8 = vpop.f32.mrb[19].mxu1  ;;  %v10111_v17 = vsel %vm1043_vm3, %v1031_v5, %v1039_v13 }
 0x146   : > { %v1324_v12 = vrot.slane %v711_v8, 7 }
 0x147   : > { %1224 = vrot.lane.b32.xlu1 %v10088_v59, %s9676_s18  ;;  %v614_v21 = vpop.f32.mrb[20].mxu0 }
 0x148   : > { %1104 = vrot.lane.b32.xlu0 %v606_v2, %s9676_s18  ;;  %v10107_v15 = vsel %vm914_vm2, %v1324_v12, %v1316_v11  ;;  %v903_v23 = vrot.slane %v614_v21, 7  ;;  %v616_v24 = vpop.f32.mrb[21].mxu0 }
 0x149   : > { %v1032_v27 = vrot.slane %v616_v24, 1  ;;  %v618_v28 = vpop.f32.mrb[22].mxu0 }
 0x14a   : > { %v10116_v20 = vpop.f32.mrb[20].mxu1  ;;  %v911_v30 = vrot.slane %v618_v28, 7  ;;  %v620_v31 = vpop.f32.mrb[23].mxu0 }
 0x14b   : > { %979 = vrot.lane.b32.xlu1 %v604_v60, %s9676_s18  ;;  %v717_v22 = vpop.f32.mrb[21].mxu1  ;;  %v1040_v33 = vrot.slane %v620_v31, 1  ;;  %v10144_v60 = vld [vmem:[%s12724_s6] ss:$0 sm:$0xff] }
 0x14c   : > { %1226 = vrot.lane.b32.xlu0 %v709_v4, %s9676_s18  ;;  %v1317_v25 = vrot.slane %v717_v22, 7  ;;  %v719_v26 = vpop.f32.mrb[22].mxu1  ;;  %v10124_v35 = vsel %vm914_vm2, %v911_v30, %v903_v23 }
 0x14d   : > { %v721_v29 = vpop.f32.mrb[23].mxu1  ;;  %v10133_v38 = vsel %vm1043_vm3, %v1032_v27, %v1040_v33 }
 0x14e   : > { %v1325_v32 = vrot.slane %v721_v29, 7 }
 0x14f   : > { %1106 = vrot.lane.b32.xlu1 %v610_v10, %s9676_s18  ;;  %v624_v41 = vpop.f32.mrb[24].mxu0 }
 0x150   : > { %1384 = vrot.lane.b32.xlu0 %v717_v22, %s9676_s18  ;;  %v10129_v37 = vsel %vm914_vm2, %v1325_v32, %v1317_v25  ;;  %v904_v43 = vrot.slane %v624_v41, 7  ;;  %v626_v44 = vpop.f32.mrb[25].mxu0 }
 0x151   : > { %v1033_v47 = vrot.slane %v626_v44, 1  ;;  %v628_v49 = vpop.f32.mrb[26].mxu0 }
 0x152   : > { %v10135_v40 = vpop.f32.mrb[24].mxu1  ;;  %v912_v52 = vrot.slane %v628_v49, 7  ;;  %v630_v53 = vpop.f32.mrb[27].mxu0 }
 0x153   : > { %1228 = vrot.lane.b32.xlu1 %v10116_v20, %s9676_s18  ;;  %v727_v42 = vpop.f32.mrb[25].mxu1  ;;  %v1041_v57 = vrot.slane %v630_v53, 1 }
 0x154   : > { %1108 = vrot.lane.b32.xlu0 %v616_v24, %s9676_s18  ;;  %v1318_v45 = vrot.slane %v727_v42, 7  ;;  %v729_v46 = vpop.f32.mrb[26].mxu1  ;;  %v929_v62 = vsel %vm914_vm2, %v912_v52, %v904_v43 }
 0x155   : > { %v731_v50 = vpop.f32.mrb[27].mxu1  ;;  %v10154_v2 = vadd.f32 %v10144_v60, %v929_v62  ;;  %v10158_v3 = vsel %vm1043_vm3, %v1033_v47, %v1041_v57 }
 0x156   : > { %v1326_v55 = vrot.slane %v731_v50, 7 }
 0x157   : > { %983 = vrot.lane.b32.xlu1 %v614_v21, %s9676_s18  ;;  %v10162_v5 = vpop.f32.mrb[28].mxu0 }
 0x158   : > { %1230 = vrot.lane.b32.xlu0 %v719_v26, %s9676_s18  ;;  %v10151_v1 = vsel %vm914_vm2, %v1326_v55, %v1318_v45  ;;  %v905_v7 = vrot.slane %v10162_v5, 7  ;;  %v636_v8 = vpop.f32.mrb[29].mxu0 }
 0x159   : > { %v1034_v11 = vrot.slane %v636_v8, 1  ;;  %v638_v12 = vpop.f32.mrb[30].mxu0 }
 0x15a   : > { %v10160_v4 = vpop.f32.mrb[28].mxu1  ;;  %v913_v21 = vrot.slane %v638_v12, 7  ;;  %v640_v22 = vpop.f32.mrb[31].mxu0 }
 0x15b   : > { %1110 = vrot.lane.b32.xlu1 %v620_v31, %s9676_s18  ;;  %v737_v6 = vpop.f32.mrb[29].mxu1  ;;  %v1042_v24 = vrot.slane %v640_v22, 1 }
 0x15c   : > { %1388 = vrot.lane.b32.xlu0 %v727_v42, %s9676_s18  ;;  %v1319_v9 = vrot.slane %v737_v6, 7  ;;  %v739_v10 = vpop.f32.mrb[30].mxu1  ;;  %v930_v25 = vsel %vm914_vm2, %v913_v21, %v905_v7 }
 0x15d   : > { %v741_v13 = vpop.f32.mrb[31].mxu1  ;;  %v10177_v27 = vadd.f32 %v10144_v60, %v930_v25  ;;  %v10181_v28 = vsel %vm1043_vm3, %v1034_v11, %v1042_v24 }
 0x15e   : > { %v1327_v23 = vrot.slane %v741_v13, 7 }
 0x15f   : > { %1232 = vrot.lane.b32.xlu1 %v10135_v40, %s9676_s18  ;;  %v8905_v30 = vpop.f32.mrb[32].mxu0 }
 0x160   : > { %1112 = vrot.lane.b32.xlu0 %v626_v44, %s9676_s18  ;;  %v10174_v26 = vsel %vm914_vm2, %v1327_v23, %v1319_v9  ;;  %v816_v32 = vpop.f32.mrb[33].mxu0 }
 0x161   : > { %v8906_v43 = vpop.f32.mrb[34].mxu0 }
 0x162   : > { %v10183_v29 = vpop.f32.mrb[32].mxu1  ;;  %v818_v45 = vpop.f32.mrb[35].mxu0 }
 0x163   : > { %987 = vrot.lane.b32.xlu1 %v624_v41, %s9676_s18  ;;  %v747_v31 = vpop.f32.mrb[33].mxu1 }
 0x164   : > { %1234 = vrot.lane.b32.xlu0 %v729_v46, %s9676_s18  ;;  %v1320_v33 = vrot.slane %v747_v31, 7  ;;  %v749_v42 = vpop.f32.mrb[34].mxu1 }
 0x165   : > { %v751_v44 = vpop.f32.mrb[35].mxu1 }
 0x166   : > { %v1328_v47 = vrot.slane %v751_v44, 7 }
 0x167   : > { %1114 = vrot.lane.b32.xlu1 %v630_v53, %s9676_s18  ;;  %v8909_v41 = vpop.f32.mrb[36].mxu0 }
 0x168   : > { %1392 = vrot.lane.b32.xlu0 %v737_v6, %s9676_s18  ;;  %v10191_v49 = vsel %vm914_vm2, %v1328_v47, %v1320_v33  ;;  %v1445_v52 = vrot.slane %v8909_v41, 1  ;;  %v828_v55 = vpop.f32.mrb[37].mxu0 }
 0x169   : > { %v1444_v53 = vrot.slane %v828_v55, 1  ;;  %v8910_v7 = vpop.f32.mrb[38].mxu0 }
 0x16a   : > { %v10193_v50 = vpop.f32.mrb[36].mxu1  ;;  %v1453_v9 = vrot.slane %v8910_v7, 1  ;;  %v831_v11 = vpop.f32.mrb[39].mxu0 }
 0x16b   : > { %1236 = vrot.lane.b32.xlu1 %v10160_v4, %s9676_s18  ;;  %v757_v46 = vpop.f32.mrb[37].mxu1  ;;  %v1452_v13 = vrot.slane %v831_v11, 1 }
 0x16c   : > { %1116 = vrot.lane.b32.xlu0 %v636_v8, %s9676_s18  ;;  %v1321_v57 = vrot.slane %v757_v46, 7  ;;  %v759_v62 = vpop.f32.mrb[38].mxu1  ;;  %v10201_v21 = vsel %vm1043_vm3, %v1445_v52, %v1453_v9 }
 0x16d   : > { %v761_v6 = vpop.f32.mrb[39].mxu1  ;;  %v10206_v8 = vsel %vm1043_vm3, %v1444_v53, %v1452_v13 }
 0x16e   : > { %v1329_v12 = vrot.slane %v761_v6, 7 }
 0x16f   : > { %1118 = vrot.lane.b32.xlu1 %v640_v22, %s9676_s18  ;;  %v8913_v25 = vpop.f32.mrb[40].mxu0 }
 0x170   : > { %1238 = vrot.lane.b32.xlu0 %v739_v10, %s9676_s18  ;;  %v10210_v23 = vsel %vm914_vm2, %v1329_v12, %v1321_v57  ;;  %v1447_v30 = vrot.slane %v8913_v25, 1  ;;  %v844_v32 = vpop.f32.mrb[41].mxu0 }
 0x171   : > { %v1446_v43 = vrot.slane %v844_v32, 1  ;;  %v8914_v44 = vpop.f32.mrb[42].mxu0 }
 0x172   : > { %v10212_v24 = vpop.f32.mrb[40].mxu1  ;;  %v1455_v47 = vrot.slane %v8914_v44, 1  ;;  %v847_v41 = vpop.f32.mrb[43].mxu0 }
 0x173   : > { %1240 = vrot.lane.b32.xlu1 %v10183_v29, %s9676_s18  ;;  %v767_v22 = vpop.f32.mrb[41].mxu1  ;;  %v1454_v55 = vrot.slane %v847_v41, 1 }
 0x174   : > { %1120 = vrot.lane.b32.xlu0 %v9994_v51, %s9676_s18  ;;  %v1322_v10 = vrot.slane %v767_v22, 7  ;;  %v769_v33 = vpop.f32.mrb[42].mxu1  ;;  %v10222_v57 = vsel %vm1043_vm3, %v1447_v30, %v1455_v47 }
 0x175   : > { %v771_v45 = vpop.f32.mrb[43].mxu1  ;;  %v10227_v51 = vsel %vm1043_vm3, %v1446_v43, %v1454_v55 }
 0x176   : > { %v1330_v52 = vrot.slane %v771_v45, 7 }
 0x177   : > { %991 = vrot.lane.b32.xlu1 %v10162_v5, %s9676_s18  ;;  %v8917_v6 = vpop.f32.mrb[44].mxu0 }
 0x178   : > { %1396 = vrot.lane.b32.xlu0 %v747_v31, %s9676_s18  ;;  %v10231_v53 = vsel %vm914_vm2, %v1330_v52, %v1322_v10  ;;  %v1449_v9 = vrot.slane %v8917_v6, 1  ;;  %v860_v11 = vpop.f32.mrb[45].mxu0 }
 0x179   : > { %v1448_v13 = vrot.slane %v860_v11, 1  ;;  %v8918_v25 = vpop.f32.mrb[46].mxu0 }
 0x17a   : > { %v775_v7 = vpop.f32.mrb[44].mxu1  ;;  %v1457_v32 = vrot.slane %v8918_v25, 1  ;;  %v863_v43 = vpop.f32.mrb[47].mxu0  ;;  %v9189_v25 = vld [vmem:[%s12720_s2 + $0x84] ss:$20 sps:$4 sm:$0xff]  }
 0x17b   : > { %1244 = vrot.lane.b32.xlu1 %v10193_v50, %s9676_s18  ;;  %v776_v5 = vpop.f32.mrb[45].mxu1  ;;  %v1456_v10 = vrot.slane %v863_v43, 1 }
 0x17c   : > { %1242 = vrot.lane.b32.xlu0 %v749_v42, %s9676_s18  ;;  %v1323_v12 = vrot.slane %v776_v5, 7  ;;  %v778_v31 = vpop.f32.mrb[46].mxu1  ;;  %v10240_v45 = vsel %vm1043_vm3, %v1449_v9, %v1457_v32 }
 0x17d   : > { %v779_v30 = vpop.f32.mrb[47].mxu1  ;;  %v10245_v42 = vsel %vm1043_vm3, %v1448_v13, %v1456_v10  ;;  %v9180_v31 = vld [vmem:[%s12720_s2 + $0xc] ss:$20 sps:$4 sm:$0xff]   ;;  %v9186_v13 = vld [vmem:[%s12720_s2 + $0x5c] ss:$20 sps:$4 sm:$0xff]  }
 0x17e   : > { %v1331_v44 = vrot.slane %v779_v30, 7  ;;  %1998 = vmatprep.subr.bf16.mxu0 %v9180_v31  ;;  %v931_v30 = vadd.f32 %v10144_v60, %v10003_v61  ;;  %v9192_v10 = vld [vmem:[%s12720_s2 + $0xac] ss:$20 sps:$4 sm:$0xff]   ;;  %v9195_v61 = vld [vmem:[%s12720_s2 + $0xd4] ss:$20 sps:$4 sm:$0xff]  }
 0x17f   : > { %1122 = vrot.lane.b32.xlu1 %v9998_v58, %s9676_s18  ;;  %v8921_v41 = vpop.f32.mrb[48].mxu0 }
 0x180   : > { %1400 = vrot.lane.b32.xlu0 %v757_v46, %s9676_s18  ;;  %v10249_v47 = vsel %vm914_vm2, %v1331_v44, %v1323_v12  ;;  %v1451_v52 = vrot.slane %v8921_v41, 1  ;;  %v876_v58 = vpop.f32.mrb[49].mxu0  ;;  %v9187_v44 = vld [vmem:[%s12720_s2 + $0x80] ss:$20 sps:$4 sm:$0xff]  }
 0x181   : > { %v1450_v55 = vrot.slane %v876_v58, 1  ;;  %v8922_v7 = vpop.f32.mrb[50].mxu0  ;;  %v933_v58 = vadd.f32 %v10144_v60, %v10026_v16  ;;  %v9196_v16 = vld [vmem:[%s12720_s2 + $0xf8] ss:$20 sps:$4 sm:$0xff]  }
 0x182   : > { %v1459_v6 = vrot.slane %v8922_v7, 1  ;;  %v879_v46 = vpop.f32.mrb[51].mxu0 }
 0x183   : > { %1248 = vrot.lane.b32.xlu1 %v10212_v24, %s9676_s18  ;;  %v1458_v9 = vrot.slane %v879_v46, 1  ;;  %v9198_v46 = vld [vmem:[%s12720_s2 + $0xfc] ss:$20 sps:$4 sm:$0xff]  }
 0x184   : > { %1246 = vrot.lane.b32.xlu0 %v759_v62, %s9676_s18  ;;  %v10257_v11 = vsel %vm1043_vm3, %v1451_v52, %v1459_v6  ;;  %v9178_v62 = vld [vmem:[%s12720_s2 + $0x8] ss:$20 sps:$4 sm:$0xff]  }
 0x185   : > { %v10262_v12 = vsel %vm1043_vm3, %v1450_v55, %v1458_v9  ;;  %1999 = vmatpush1.bf16.msra.mxu0 %v9178_v62  ;;  %v9190_v52 = vld [vmem:[%s12720_s2 + $0xa8] ss:$20 sps:$4 sm:$0xff]  }
 0x187   : > { %1408 = vrot.lane.b32.xlu1 %v776_v5, %s9676_s18  ;;  %v9183_v5 = vld [vmem:[%s12720_s2 + $0x34] ss:$20 sps:$4 sm:$0xff]  }
 0x188   : > { %1404 = vrot.lane.b32.xlu0 %v767_v22, %s9676_s18  ;;  %v9181_v22 = vld [vmem:[%s12720_s2 + $0x30] ss:$20 sps:$4 sm:$0xff]   ;;  %2000 = vmatprep.subr.bf16.mxu0 %v9183_v5 }
 0x189   : > { %2001 = vmatpush1.bf16.msra.mxu0 %v9181_v22  ;;  %v9201_v5 = vld [vmem:[%s12720_s2 + $0x124] ss:$20 sps:$4 sm:$0xff]  }
 0x18a   : > { %2002 = vmatprep.subr.bf16.mxu0 %v9186_v13 }
 0x18c   : > { %1250 = vrot.lane.b32.xlu0 %v769_v33, %s9676_s18  ;;  %v9184_v33 = vld [vmem:[%s12720_s2 + $0x58] ss:$20 sps:$4 sm:$0xff]  }
 0x18d   : > { %2003 = vmatpush1.bf16.msra.mxu0 %v9184_v33  ;;  %v935_v33 = vadd.f32 %v10144_v60, %v10049_v34 }
 0x18e   : > { %2004 = vmatprep.subr.bf16.mxu0 %v9189_v25 }
 0x191   : > { %2005 = vmatpush1.bf16.msra.mxu0 %v9187_v44 }
 0x192   : > { %v964_v32 = vpop.permute.xlu0 %963  ;;  %2006 = vmatprep.subr.bf16.mxu0 %v9192_v10 }
 0x193   : > { %v1011_v43 = vadd.f32 %v964_v32, %v931_v30  ;;  %v9199_v32 = vld [vmem:[%s12720_s2 + $0x120] ss:$20 sps:$4 sm:$0xff]  }
 0x195   : > { %v1060_v41 = vadd.f32 %v10010_v63, %v1011_v43  ;;  %2007 = vmatpush1.bf16.msra.mxu0 %v9190_v52  ;;  %v9193_v63 = vld [vmem:[%s12720_s2 + $0xd0] ss:$20 sps:$4 sm:$0xff]  }
 0x196   : > { %2008 = vmatprep.subr.bf16.mxu0 %v9195_v61 }
 0x199   : > { %2009 = vmatpush1.bf16.msra.mxu0 %v9193_v63 }
 0x19a   : > { %v968_v55 = vpop.permute.xlu1 %967  ;;  %2010 = vmatprep.subr.bf16.mxu0 %v9198_v46 }
 0x19b   : > { %v1013_v7 = vadd.f32 %v968_v55, %v933_v58  ;;  %v1093_v6 = vpop.permute.xlu0 %1092 }
 0x19c   : > { %v1140_v31 = vrot.slane %v1093_v6, 7 }
 0x19d   : > { %v1062_v9 = vadd.f32 %v10033_v18, %v1013_v7  ;;  %2011 = vmatpush1.bf16.msra.mxu0 %v9196_v16 }
 0x19e   : > { %v1095_v62 = vpop.permute.xlu1 %1094  ;;  %2012 = vmatprep.subr.bf16.mxu0 %v9201_v5 }
 0x19f   : > { %v1148_v22 = vrot.slane %v1095_v62, 7 }
 0x1a1   : > { %v1164_v13 = vsel %vm914_vm2, %v1148_v22, %v1140_v31  ;;  %2013 = vmatpush1.bf16.msra.mxu0 %v9199_v32 }
 0x1a2   : > { %v1172_v18 = vadd.f32 %v1164_v13, %v1060_v41  ;;  %v972_v25 = vpop.permute.xlu1 %971 }
 0x1a3   : > { %v1015_v30 = vadd.f32 %v972_v25, %v935_v33  ;;  %v1097_v43 = vpop.permute.xlu0 %1096 }
 0x1a4   : > { %v1188_v44 = vadd.f32 %v1172_v18, %v10061_v39  ;;  %v1141_v61 = vrot.slane %v1097_v43, 7  ;;  %2031 = vmatmul.mubr.bf16.vlgmr.msra.gmra.mrb[52].mxu0 %v10113_v19  ;;  %v937_v39 = vadd.f32 %v10144_v60, %v10075_v54 }
 0x1a5   : > { %v1064_v10 = vadd.f32 %v10056_v36, %v1015_v30  ;;  %2036 = vmatprep.mubr.bf16.mxu0 %v9675_v0 }
 0x1a6   : > { %v1099_v52 = vpop.permute.xlu1 %1098 }
 0x1a7   : > { %v1149_v58 = vrot.slane %v1099_v52, 7  ;;  %v939_v52 = vadd.f32 %v10144_v60, %v10102_v14 }
 0x1a9   : > { %v1165_v34 = vsel %vm914_vm2, %v1149_v58, %v1141_v61 }
 0x1aa   : > { %v1174_v41 = vadd.f32 %v1165_v34, %v1062_v9 }
 0x1ab   : > { %v1101_v7 = vpop.permute.xlu0 %1100 }
 0x1ac   : > { %v1190_v63 = vadd.f32 %v1174_v41, %v10088_v59  ;;  %v1142_v19 = vrot.slane %v1101_v7, 7 }
 0x1ad   : > { %v1221_v55 = vpop.permute.xlu1 %1220 }
 0x1ae   : > { %v1268_v62 = vrot.slane %v1221_v55, 1 }
 0x1af   : > { %v1223_v46 = vpop.permute.xlu0 %1222 }
 0x1b0   : > { %v1276_v31 = vrot.slane %v1223_v46, 1 }
 0x1b1   : > { %v976_v36 = vpop.permute.xlu1 %975 }
 0x1b2   : > { %v1017_v6 = vadd.f32 %v976_v36, %v937_v39  ;;  %v1284_v9 = vsel %vm1043_vm3, %v1268_v62, %v1276_v31 }
 0x1b3   : > { %v1300_v13 = vadd.f32 %v1284_v9, %v1188_v44 }
 0x1b4   : > { %v1066_v22 = vadd.f32 %v10083_v56, %v1017_v6 }
 0x1b5   : > { %v1103_v16 = vpop.permute.xlu1 %1102  ;;  %v1348_v54 = vadd.f32 %v10107_v15, %v1300_v13 }
 0x1b6   : > { %v1150_v5 = vrot.slane %v1103_v16, 7  ;;  %v1381_v33 = vpop.permute.xlu0 %1380 }
 0x1b7   : > { %v1428_v30 = vadd.f32 %v1381_v33, %v1348_v54  ;;  %v941_v33 = vadd.f32 %v10144_v60, %v10124_v35 }
 0x1b8   : > { %v1166_v59 = vsel %vm914_vm2, %v1150_v5, %v1142_v19 }
 0x1b9   : > { %v1176_v18 = vadd.f32 %v1166_v59, %v1064_v10  ;;  %v1225_v25 = vpop.permute.xlu1 %1224  ;;  %v1476_v56 = vadd.f32 %v10206_v8, %v1428_v30 }
 0x1ba   : > { %v1105_v32 = vpop.permute.xlu0 %1104  ;;  %v1269_v41 = vrot.slane %v1225_v25, 1 }
 0x1bb   : > { %v1192_v43 = vadd.f32 %v1176_v18, %v10116_v20  ;;  %vm1492_vm4 = vcmp.ge.f32.partialorder %v1476_v56, 0.0  ;;  %v1508_v34 = vmul.f32 0.2, %v1476_v56  ;;  %v9677_v20 = vmov 0.0  }
 0x1bc   : > { %v1143_v36 = vrot.slane %v1105_v32, 7 }
 0x1bd   : > { %v980_v61 = vpop.permute.xlu1 %979  ;;  %v1524_v10 = vsel %vm1492_vm4, %v1476_v56, %v1508_v34 }
 0x1be   : > { %v1019_v58 = vadd.f32 %v980_v61, %v939_v52  ;;  %v1227_v44 = vpop.permute.xlu0 %1226  ;;  %v1556_v8 = vpack.c.bf16 %v9677_v20, %v1524_v10 }
 0x1bf   : > { %v1277_v55 = vrot.slane %v1227_v44, 1 }
 0x1c0   : > { %v1068_v15 = vadd.f32 %v10111_v17, %v1019_v58  ;;  %1572 = vrot.lane.b32.xlu0 %v1556_v8, %s9676_s18 }
 0x1c1   : > { %v1285_v7 = vsel %vm1043_vm3, %v1269_v41, %v1277_v55  ;;  %v1107_v39 = vpop.permute.xlu1 %1106 }
 0x1c2   : > { %v1151_v6 = vrot.slane %v1107_v39, 7  ;;  %v1302_v14 = vadd.f32 %v1285_v7, %v1190_v63  ;;  %v1385_v46 = vpop.permute.xlu0 %1384 }
 0x1c4   : > { %v1167_v62 = vsel %vm914_vm2, %v1151_v6, %v1143_v36  ;;  %v1350_v31 = vadd.f32 %v10129_v37, %v1302_v14 }
 0x1c5   : > { %v1178_v17 = vadd.f32 %v1167_v62, %v1066_v22  ;;  %v1229_v9 = vpop.permute.xlu1 %1228 }
 0x1c6   : > { %v1430_v16 = vadd.f32 %v1385_v46, %v1350_v31  ;;  %v1109_v19 = vpop.permute.xlu0 %1108  ;;  %v1270_v25 = vrot.slane %v1229_v9, 1 }
 0x1c7   : > { %v1194_v5 = vadd.f32 %v1178_v17, %v10135_v40 }
 0x1c8   : > { %v1478_v13 = vadd.f32 %v10201_v21, %v1430_v16  ;;  %v1144_v21 = vrot.slane %v1109_v19, 7 }
 0x1c9   : > { %v984_v63 = vpop.permute.xlu1 %983 }
 0x1ca   : > { %v1510_v59 = vmul.f32 0.2, %v1478_v13  ;;  %v1021_v54 = vadd.f32 %v984_v63, %v941_v33  ;;  %v1231_v18 = vpop.permute.xlu0 %1230  ;;  %vm1494_vm5 = vcmp.ge.f32.partialorder %v1478_v13, 0.0 }
 0x1cb   : > { %v1278_v30 = vrot.slane %v1231_v18, 1 }
 0x1cc   : > { %v1070_v37 = vadd.f32 %v10133_v38, %v1021_v54  ;;  %v1526_v22 = vsel %vm1494_vm5, %v1478_v13, %v1510_v59 }
 0x1cd   : > { %v1286_v32 = vsel %vm1043_vm3, %v1270_v25, %v1278_v30  ;;  %v1111_v56 = vpop.permute.xlu1 %1110  ;;  %v1557_v40 = vpack.c.bf16 %v9677_v20, %v1526_v22 }
 0x1ce   : > { %v1152_v52 = vrot.slane %v1111_v56, 7  ;;  %v1304_v61 = vadd.f32 %v1286_v32, %v1192_v43  ;;  %v1389_v35 = vpop.permute.xlu0 %1388 }
 0x1cf   : > { %1574 = vrot.lane.b32.xlu1 %v1557_v40, %s9676_s18 }
 0x1d0   : > { %v1168_v60 = vsel %vm914_vm2, %v1152_v52, %v1144_v21  ;;  %v1352_v58 = vadd.f32 %v10151_v1, %v1304_v61 }
 0x1d1   : > { %v1180_v44 = vadd.f32 %v1168_v60, %v1068_v15  ;;  %v1233_v38 = vpop.permute.xlu1 %1232 }
 0x1d2   : > { %v1432_v34 = vadd.f32 %v1389_v35, %v1352_v58  ;;  %v1113_v41 = vpop.permute.xlu0 %1112  ;;  %v1271_v36 = vrot.slane %v1233_v38, 1 }
 0x1d3   : > { %v1196_v55 = vadd.f32 %v1180_v44, %v10160_v4  ;;  %v1145_v4 = vrot.slane %v1113_v41, 7 }
 0x1d4   : > { %v1480_v10 = vadd.f32 %v10227_v51, %v1432_v34 }
 0x1d5   : > { %v988_v7 = vpop.permute.xlu1 %987 }
 0x1d6   : > { %v1023_v39 = vadd.f32 %v988_v7, %v10154_v2  ;;  %v1235_v43 = vpop.permute.xlu0 %1234  ;;  %vm1496_vm6 = vcmp.ge.f32.partialorder %v1480_v10, 0.0  ;;  %v1512_v8 = vmul.f32 0.2, %v1480_v10 }
 0x1d7   : > { %v1279_v6 = vrot.slane %v1235_v43, 1 }
 0x1d8   : > { %v1072_v14 = vadd.f32 %v10158_v3, %v1023_v39  ;;  %v1528_v46 = vsel %vm1496_vm6, %v1480_v10, %v1512_v8 }
 0x1d9   : > { %v1287_v1 = vsel %vm1043_vm3, %v1271_v36, %v1279_v6  ;;  %v1115_v15 = vpop.permute.xlu1 %1114  ;;  %v1558_v62 = vpack.c.bf16 %v9677_v20, %v1528_v46 }
 0x1da   : > { %v1153_v31 = vrot.slane %v1115_v15, 7  ;;  %v1306_v51 = vadd.f32 %v1287_v1, %v1194_v5  ;;  %v1393_v17 = vpop.permute.xlu0 %1392 }
 0x1db   : > { %1576 = vrot.lane.b32.xlu0 %v1558_v62, %s9676_s18 }
 0x1dc   : > { %v1169_v2 = vsel %vm914_vm2, %v1153_v31, %v1145_v4  ;;  %v1354_v9 = vadd.f32 %v10174_v26, %v1306_v51 }
 0x1dd   : > { %v1182_v16 = vadd.f32 %v1169_v2, %v1070_v37  ;;  %v1237_v3 = vpop.permute.xlu1 %1236 }
 0x1de   : > { %v1434_v19 = vadd.f32 %v1393_v17, %v1354_v9  ;;  %v1117_v13 = vpop.permute.xlu0 %1116  ;;  %v1272_v30 = vrot.slane %v1237_v3, 1 }
 0x1df   : > { %v1198_v33 = vadd.f32 %v1182_v16, %v10183_v29  ;;  %v1146_v18 = vrot.slane %v1117_v13, 7 }
 0x1e0   : > { %v1482_v63 = vadd.f32 %v10222_v57, %v1434_v19 }
 0x1e1   : > { %v1119_v59 = vpop.permute.xlu1 %1118 }
 0x1e2   : > { %v1514_v54 = vmul.f32 0.2, %v1482_v63  ;;  %v1154_v5 = vrot.slane %v1119_v59, 7  ;;  %v1239_v25 = vpop.permute.xlu0 %1238  ;;  %vm1498_vm7 = vcmp.ge.f32.partialorder %v1482_v63, 0.0 }
 0x1e3   : > { %v1280_v22 = vrot.slane %v1239_v25, 1 }
 0x1e4   : > { %v1170_v32 = vsel %vm914_vm2, %v1154_v5, %v1146_v18  ;;  %v1530_v26 = vsel %vm1498_vm7, %v1482_v63, %v1514_v54 }
 0x1e5   : > { %v1184_v37 = vadd.f32 %v1170_v32, %v1072_v14  ;;  %v1288_v56 = vsel %vm1043_vm3, %v1272_v30, %v1280_v22  ;;  %v1241_v40 = vpop.permute.xlu1 %1240  ;;  %v1559_v29 = vpack.c.bf16 %v9677_v20, %v1530_v26 }
 0x1e6   : > { %v1121_v57 = vpop.permute.xlu0 %1120  ;;  %v1308_v21 = vadd.f32 %v1288_v56, %v1196_v55  ;;  %v1273_v7 = vrot.slane %v1241_v40, 1 }
 0x1e7   : > { %1578 = vrot.lane.b32.xlu1 %v1559_v29, %s9676_s18  ;;  %v1200_v52 = vadd.f32 %v1184_v37, %v10193_v50  ;;  %v1147_v8 = vrot.slane %v1121_v57, 7  ;;  %v9206_v29 = vld [vmem:[%s12720_s2 + $0xb0] ss:$20 sps:$4 sm:$0xff]  }
 0x1e8   : > { %v1356_v61 = vadd.f32 %v10191_v49, %v1308_v21  ;;  %v9207_v21 = vld [vmem:[%s12720_s2 + $0xd8] ss:$20 sps:$4 sm:$0xff]  }
 0x1e9   : > { %v992_v35 = vpop.permute.xlu1 %991 }
 0x1ea   : > { %v1025_v60 = vadd.f32 %v992_v35, %v10177_v27  ;;  %v1397_v58 = vpop.permute.xlu0 %1396  ;;  %v9202_v27 = vld [vmem:[%s12720_s2 + $0x10] ss:$20 sps:$4 sm:$0xff]  }
 0x1eb   : > { %v1436_v44 = vadd.f32 %v1397_v58, %v1356_v61  ;;  %8923 = vmatprep.subr.bf16.mxu1 %v9202_v27  ;;  %v9209_v61 = vld [vmem:[%s12720_s2 + $0x128] ss:$20 sps:$4 sm:$0xff]  }
 0x1ec   : > { %v1074_v38 = vadd.f32 %v10181_v28, %v1025_v60  ;;  %8924 = vmatpush3.bf16.msra.mxu1 %v9202_v27  ;;  %v9210_v60 = vld [vmem:[#allocation3] ss:$20 sps:$4 sm:$0xff]   ;;  %v9212_v58 = vld [vmem:[#allocation3 + $0x4] ss:$20 sps:$4 sm:$0xff]  }
 0x1ed   : > { %v1484_v34 = vadd.f32 %v10245_v42, %v1436_v44  ;;  %v1245_v41 = vpop.permute.xlu1 %1244  ;;  %3346 = vmatprep.subr.bf16.mxu0 %v9212_v58  ;;  %v9227_v58 = vld [vmem:[#allocation3 + $0xcc] ss:$20 sps:$4 sm:$0xff]  }
 0x1ee   : > { %v1243_v10 = vpop.permute.xlu0 %1242  ;;  %v1274_v1 = vrot.slane %v1245_v41, 1  ;;  %3347 = vmatpush1.bf16.msra.mxu0 %v9210_v60  ;;  %v9213_v41 = vld [vmem:[#allocation3 + $0x28] ss:$20 sps:$4 sm:$0xff]   ;;  %v9222_v60 = vld [vmem:[#allocation3 + $0xa0] ss:$20 sps:$4 sm:$0xff]  }
 0x1ef   : > { %v1516_v39 = vmul.f32 0.2, %v1484_v34  ;;  %v1281_v55 = vrot.slane %v1243_v10, 1  ;;  %vm1500_vm8 = vcmp.ge.f32.partialorder %v1484_v34, 0.0  ;;  %v9215_v10 = vld [vmem:[#allocation3 + $0x2c] ss:$20 sps:$4 sm:$0xff]  }
 0x1f0   : > { %3348 = vmatprep.subr.bf16.mxu0 %v9215_v10  ;;  %v9231_v10 = vld [vmem:[#allocation3 + $0x118] ss:$20 sps:$4 sm:$0xff]  }
 0x1f1   : > { %v1289_v50 = vsel %vm1043_vm3, %v1273_v7, %v1281_v55  ;;  %v1123_v43 = vpop.permute.xlu1 %1122  ;;  %v1532_v49 = vsel %vm1500_vm8, %v1484_v34, %v1516_v39 }
 0x1f2   : > { %v1155_v36 = vrot.slane %v1123_v43, 7  ;;  %v1401_v28 = vpop.permute.xlu0 %1400  ;;  %v1310_v6 = vadd.f32 %v1289_v50, %v1198_v33  ;;  %v1560_v42 = vpack.c.bf16 %v9677_v20, %v1532_v49  ;;  %v9203_v33 = vld [vmem:[%s12720_s2 + $0x38] ss:$20 sps:$4 sm:$0xff]   ;;  %3349 = vmatpush1.bf16.msra.mxu0 %v9213_v41 }
 0x1f3   : > { %8925 = vmatprep.subr.bf16.mxu1 %v9203_v33  ;;  %v9218_v50 = vld [vmem:[#allocation3 + $0x54] ss:$20 sps:$4 sm:$0xff]   ;;  %v9233_v41 = vld [vmem:[#allocation3 + $0x11c] ss:$20 sps:$4 sm:$0xff]  }
 0x1f4   : > { %v1171_v14 = vsel %vm914_vm2, %v1155_v36, %v1147_v8  ;;  %v1358_v46 = vadd.f32 %v10210_v23, %v1310_v6  ;;  %1580 = vrot.lane.b32.xlu0 %v1560_v42, %s9676_s18  ;;  %8926 = vmatpush3.bf16.msra.mxu1 %v9203_v33  ;;  %v9216_v8 = vld [vmem:[#allocation3 + $0x50] ss:$20 sps:$4 sm:$0xff]  }
 0x1f5   : > { %v1186_v15 = vadd.f32 %v1171_v14, %v1074_v38  ;;  %v1249_v19 = vpop.permute.xlu1 %1248  ;;  %3350 = vmatprep.subr.bf16.mxu0 %v9218_v50  ;;  %v9237_v50 = vld [vmem:[#allocation3 + $0x168] ss:$20 sps:$4 sm:$0xff]  }
 0x1f6   : > { %v1438_v62 = vadd.f32 %v1401_v28, %v1358_v46  ;;  %v1247_v4 = vpop.permute.xlu0 %1246  ;;  %v1275_v63 = vrot.slane %v1249_v19, 1  ;;  %3351 = vmatpush1.bf16.msra.mxu0 %v9216_v8  ;;  %v9245_v8 = vld [vmem:[#allocation3 + $0x1bc] ss:$20 sps:$4 sm:$0xff]  }
 0x1f7   : > { %v1282_v31 = vrot.slane %v1247_v4, 1  ;;  %v1202_v51 = vadd.f32 %v1186_v15, %v10212_v24 }
 0x1f8   : > { %v1486_v17 = vadd.f32 %v10240_v45, %v1438_v62 }
 0x1f9   : > { %v1290_v2 = vsel %vm1043_vm3, %v1274_v1, %v1282_v31  ;;  %v1409_v22 = vpop.permute.xlu1 %1408 }
 0x1fa   : > { %v1518_v9 = vmul.f32 0.2, %v1486_v17  ;;  %v1405_v16 = vpop.permute.xlu0 %1404  ;;  %v1312_v3 = vadd.f32 %v1290_v2, %v1200_v52  ;;  %vm1502_vm9 = vcmp.ge.f32.partialorder %v1486_v17, 0.0 }
 0x1fc   : > { %v1360_v23 = vadd.f32 %v10231_v53, %v1312_v3  ;;  %v1534_v13 = vsel %vm1502_vm9, %v1486_v17, %v1518_v9  ;;  %v9204_v53 = vld [vmem:[%s12720_s2 + $0x60] ss:$20 sps:$4 sm:$0xff]  }
 0x1fd   : > { %v1561_v24 = vpack.c.bf16 %v9677_v20, %v1534_v13  ;;  %8927 = vmatprep.subr.bf16.mxu1 %v9204_v53 }
 0x1fe   : > { %v1440_v59 = vadd.f32 %v1405_v16, %v1360_v23  ;;  %v1251_v45 = vpop.permute.xlu0 %1250  ;;  %8928 = vmatpush3.bf16.msra.mxu1 %v9204_v53 }
 0x1ff   : > { %v1283_v54 = vrot.slane %v1251_v45, 1  ;;  %1582 = vrot.lane.b32.xlu1 %v1561_v24, %s9676_s18 }
 0x200   : > { %v1488_v18 = vadd.f32 %v10262_v12, %v1440_v59  ;;  %v9205_v12 = vld [vmem:[%s12720_s2 + $0x88] ss:$20 sps:$4 sm:$0xff]  }
 0x201   : > { %v1291_v5 = vsel %vm1043_vm3, %v1275_v63, %v1283_v54  ;;  %8929 = vmatprep.subr.bf16.mxu1 %v9205_v12 }
 0x202   : > { %v1314_v25 = vadd.f32 %v1291_v5, %v1202_v51  ;;  %vm1504_vm10 = vcmp.ge.f32.partialorder %v1488_v18, 0.0  ;;  %v1520_v30 = vmul.f32 0.2, %v1488_v18  ;;  %8930 = vmatpush3.bf16.msra.mxu1 %v9205_v12 }
 0x203   : > { %8931 = vmatprep.subr.bf16.mxu1 %v9206_v29 }
 0x204   : > { %v1362_v32 = vadd.f32 %v10249_v47, %v1314_v25  ;;  %v1536_v26 = vsel %vm1504_vm10, %v1488_v18, %v1520_v30  ;;  %v1905_v35 = vpop.f32.mrb[48].mxu1 }
 0x205   : > { %v1562_v37 = vpack.c.bf16 %v9677_v20, %v1536_v26  ;;  %v2240_v38 = vrot.slane %v1905_v35, 7  ;;  %v1907_v34 = vpop.f32.mrb[49].mxu1 }
 0x206   : > { %v1442_v56 = vadd.f32 %v1409_v22, %v1362_v32  ;;  %8932 = vmatpush3.bf16.msra.mxu1 %v9206_v29  ;;  %v2368_v7 = vrot.slane %v1907_v34, 1  ;;  %v1909_v39 = vpop.f32.mrb[50].mxu1  ;;  %v1614_v29 = vld [vmem:[#allocation2 + $0xd8] sm:$0xff]  ;;  %v9228_v34 = vld [vmem:[#allocation3 + $0xf0] ss:$20 sps:$4 sm:$0xff]  }
 0x207   : > { %1584 = vrot.lane.b32.xlu0 %v1562_v37, %s9676_s18  ;;  %8933 = vmatprep.subr.bf16.mxu1 %v9207_v21  ;;  %v2248_v55 = vrot.slane %v1909_v39, 7  ;;  %v1911_v43 = vpop.f32.mrb[51].mxu1  ;;  %v10507_v37 = vld [vmem:[%s12724_s6 + $0x1] ss:$0 sm:$0xff]  ;;  %v9236_v39 = vld [vmem:[#allocation3 + $0x144] ss:$20 sps:$4 sm:$0xff]  }
 0x208   : > { %v1490_v40 = vadd.f32 %v10257_v11, %v1442_v56  ;;  %v9208_v11 = vld [vmem:[%s12720_s2 + $0x100] ss:$20 sps:$4 sm:$0xff]   ;;  %v2376_v36 = vrot.slane %v1911_v43, 1  ;;  %v9242_v43 = vld [vmem:[#allocation3 + $0x194] ss:$20 sps:$4 sm:$0xff]  }
 0x209   : > { %v10444_v6 = vsel %vm914_vm2, %v2248_v55, %v2240_v38  ;;  %v9230_v38 = vld [vmem:[#allocation3 + $0xf4] ss:$20 sps:$4 sm:$0xff]   ;;  %v9239_v55 = vld [vmem:[#allocation3 + $0x16c] ss:$20 sps:$4 sm:$0xff]  }
 0x20a   : > { %v1522_v57 = vmul.f32 0.2, %v1490_v40  ;;  %vm1506_vm11 = vcmp.ge.f32.partialorder %v1490_v40, 0.0  ;;  %8934 = vmatpush3.bf16.msra.mxu1 %v9207_v21  ;;  %v10450_v42 = vsel %vm1043_vm3, %v2368_v7, %v2376_v36  ;;  %v9234_v7 = vld [vmem:[#allocation3 + $0x140] ss:$20 sps:$4 sm:$0xff]   ;;  %v2913_v36 = vld [vmem:[#allocation2 + $0x8] sm:$0xff] }
 0x20b   : > { %8935 = vmatprep.subr.bf16.mxu1 %v9208_v11  ;;  %2304 = vrot.lane.b32.xlu0 %v1905_v35, %s9676_s18  ;;  %v9224_v35 = vld [vmem:[#allocation3 + $0xa4] ss:$20 sps:$4 sm:$0xff]  }
 0x20c   : > { %v1538_v47 = vsel %vm1506_vm11, %v1490_v40, %v1522_v57  ;;  %v2272_v40 = vadd.f32 %v10507_v37, %v10444_v6  ;;  %v9248_v6 = vld [vmem:[#allocation3 + $0xc] ss:$20 sps:$4 sm:$0xff]  }
 0x20d   : > { %v1563_v52 = vpack.c.bf16 %v9677_v20, %v1538_v47  ;;  %v9221_v47 = vld [vmem:[#allocation3 + $0x7c] ss:$20 sps:$4 sm:$0xff]  }
 0x20e   : > { %8936 = vmatpush3.bf16.msra.mxu1 %v9208_v11  ;;  %3352 = vmatprep.subr.bf16.mxu0 %v9221_v47  ;;  %v9279_v47 = vld [vmem:[#allocation3 + $0x1c0] ss:$20 sps:$4 sm:$0xff]  }
 0x20f   : > { %1586 = vrot.lane.b32.xlu1 %v1563_v52, %s9676_s18  ;;  %8937 = vmatprep.subr.bf16.mxu1 %v9209_v61  ;;  %v9219_v52 = vld [vmem:[#allocation3 + $0x78] ss:$20 sps:$4 sm:$0xff]  }
 0x210   : > { %3353 = vmatpush1.bf16.msra.mxu0 %v9219_v52 }
 0x211   : > { %3354 = vmatprep.subr.bf16.mxu0 %v9224_v35 }
 0x212   : > { %8938 = vmatpush3.bf16.msra.mxu1 %v9209_v61  ;;  %v9547_v61 = vld [vmem:[#allocation2] sm:$0xff] }
 0x213   : > { %3473 = vmatprep.subr.bf16.mxu1 %v9248_v6 }
 0x214   : > { %3355 = vmatpush1.bf16.msra.mxu0 %v9222_v60 }
 0x215   : > { %3356 = vmatprep.subr.bf16.mxu0 %v9227_v58 }
 0x232   : > { %v1573_v44 = vpop.permute.xlu0 %1572 }
 0x233   : > { %1597 = vst.msk [vmem:[#allocation2 + $0x18] sm:$0xff] %vm1596_vm12, %v1573_v44  ;;  %v9225_v44 = vld [vmem:[#allocation3 + $0xc8] ss:$20 sps:$4 sm:$0xff]  }
 0x234   : > { %3357 = vmatpush1.bf16.msra.mxu0 %v9225_v44 }
 0x235   : > { %3358 = vmatprep.subr.bf16.mxu0 %v9230_v38 }
 0x238   : > { %3359 = vmatpush1.bf16.msra.mxu0 %v9228_v34 }
 0x239   : > { %3360 = vmatprep.subr.bf16.mxu0 %v9233_v41 }
 0x23a   : > { %v8126_v49 = vld [vmem:[#allocation2 + $0x18] sm:$0xf] }
 0x23b   : > { %v10438_v27 = vld [vmem:[#allocation2 + $0x18] sm:$0xff]  ;;  %v8150_v28 = vunpack.c.l.bf16 %v8126_v49  ;;  %v9240_v49 = vld [vmem:[#allocation3 + $0x190] ss:$20 sps:$4 sm:$0xff]  }
 0x23c   : > { %1914 = vmatmul.mubr.bf16.gmra.mrb[52].mxu1 %v10438_v27  ;;  %2037 = vmatmul.mubr.bf16.gmra.mrb[56].mxu0 %v10438_v27 }
 0x23d   : > { %1923 = vmatprep.mubr.bf16.mxu1 %v9675_v0  ;;  %2044 = vmatprep.mubr.bf16.mxu0 %v9675_v0  ;;  %8174 = vst [vmem:[%s10452_s9] sm:$0xff] %v8150_v28  ;;  %v10525_v28 = vld [vmem:[#allocation2] sm:$0xff] }
 0x23e   : > { %3361 = vmatpush1.bf16.msra.mxu0 %v9231_v10 }
 0x23f   : > { %3362 = vmatprep.subr.bf16.mxu0 %v9236_v39 }
 0x241   : > { %v1575_v14 = vpop.permute.xlu1 %1574 }
 0x242   : > { %1598 = vst.msk [vmem:[#allocation2 + $0x30] sm:$0xff] %vm1596_vm12, %v1575_v14  ;;  %3363 = vmatpush1.bf16.msra.mxu0 %v9234_v7  ;;  %v9251_v14 = vld [vmem:[#allocation3 + $0x34] ss:$20 sps:$4 sm:$0xff]  }
 0x243   : > { %3364 = vmatprep.subr.bf16.mxu0 %v9239_v55 }
 0x246   : > { %3365 = vmatpush1.bf16.msra.mxu0 %v9237_v50 }
 0x247   : > { %3366 = vmatprep.subr.bf16.mxu0 %v9242_v43 }
 0x249   : > { %v8129_v46 = vld [vmem:[#allocation2 + $0x30] sm:$0xf] }
 0x24a   : > { %v10456_v1 = vld [vmem:[#allocation2 + $0x30] sm:$0xff]  ;;  %v8153_v15 = vunpack.c.l.bf16 %v8129_v46  ;;  %3367 = vmatpush1.bf16.msra.mxu0 %v9240_v49 }
 0x24b   : > { %1924 = vmatmul.mubr.bf16.gmra.mrb[56].mxu1 %v10456_v1  ;;  %2045 = vmatmul.mubr.bf16.gmra.mrb[60].mxu0 %v10456_v1  ;;  %v9249_v46 = vld [vmem:[#allocation3 + $0x30] ss:$20 sps:$4 sm:$0xff]  }
 0x24c   : > { %1933 = vmatprep.mubr.bf16.mxu1 %v9675_v0  ;;  %2054 = vmatprep.mubr.bf16.mxu0 %v9675_v0  ;;  %8177 = vst [vmem:[%s10452_s9 + $0x18] sm:$0xff] %v8153_v15  ;;  %v9252_v15 = vld [vmem:[#allocation3 + $0x58] ss:$20 sps:$4 sm:$0xff]  }
 0x24d   : > { %v1577_v62 = vpop.permute.xlu0 %1576  ;;  %3368 = vmatprep.subr.bf16.mxu0 %v9245_v8 }
 0x24e   : > { %1599 = vst.msk [vmem:[#allocation2 + $0x48] sm:$0xff] %vm1596_vm12, %v1577_v62  ;;  %v9257_v62 = vld [vmem:[#allocation3 + $0x84] ss:$20 sps:$4 sm:$0xff]  }
 0x255   : > { %v8132_v4 = vld [vmem:[#allocation2 + $0x48] sm:$0xf] }
 0x256   : > { %v10464_v31 = vld [vmem:[#allocation2 + $0x48] sm:$0xff]  ;;  %v8156_v51 = vunpack.c.l.bf16 %v8132_v4  ;;  %v9255_v4 = vld [vmem:[#allocation3 + $0x80] ss:$20 sps:$4 sm:$0xff]  }
 0x257   : > { %1934 = vmatmul.mubr.bf16.gmra.mrb[60].mxu1 %v10464_v31  ;;  %2055 = vmatmul.mubr.bf16.gmra.mrb[64].mxu0 %v10464_v31 }
 0x258   : > { %1943 = vmatprep.mubr.bf16.mxu1 %v9675_v0  ;;  %2064 = vmatprep.mubr.bf16.mxu0 %v9675_v0  ;;  %8180 = vst [vmem:[%s10452_s9 + $0x30] sm:$0xff] %v8156_v51  ;;  %v9258_v51 = vld [vmem:[#allocation3 + $0xa8] ss:$20 sps:$4 sm:$0xff]  }
 0x259   : > { %v1579_v17 = vpop.permute.xlu1 %1578 }
 0x25a   : > { %1600 = vst.msk [vmem:[#allocation2 + $0x60] sm:$0xff] %vm1596_vm12, %v1579_v17  ;;  %v9263_v17 = vld [vmem:[#allocation3 + $0xd4] ss:$20 sps:$4 sm:$0xff]  }
 0x261   : > { %v8135_v2 = vld [vmem:[#allocation2 + $0x60] sm:$0xf] }
 0x262   : > { %v10472_v9 = vld [vmem:[#allocation2 + $0x60] sm:$0xff]  ;;  %v8159_v16 = vunpack.c.l.bf16 %v8135_v2 }
 0x263   : > { %1944 = vmatmul.mubr.bf16.gmra.mrb[64].mxu1 %v10472_v9  ;;  %2065 = vmatmul.mubr.bf16.gmra.mrb[68].mxu0 %v10472_v9  ;;  %v9261_v2 = vld [vmem:[#allocation3 + $0xd0] ss:$20 sps:$4 sm:$0xff]  }
 0x264   : > { %1953 = vmatprep.mubr.bf16.mxu1 %v9675_v0  ;;  %2074 = vmatprep.mubr.bf16.mxu0 %v9675_v0  ;;  %8183 = vst [vmem:[%s10452_s9 + $0x48] sm:$0xff] %v8159_v16  ;;  %v9264_v16 = vld [vmem:[#allocation3 + $0xf8] ss:$20 sps:$4 sm:$0xff]  }
 0x266   : > { %v1581_v3 = vpop.permute.xlu0 %1580 }
 0x267   : > { %1601 = vst.msk [vmem:[#allocation2 + $0x78] sm:$0xff] %vm1596_vm12, %v1581_v3  ;;  %v9269_v3 = vld [vmem:[#allocation3 + $0x124] ss:$20 sps:$4 sm:$0xff]  }
 0x26e   : > { %v8138_v19 = vld [vmem:[#allocation2 + $0x78] sm:$0xf] }
 0x26f   : > { %v10480_v23 = vld [vmem:[#allocation2 + $0x78] sm:$0xff]  ;;  %v8162_v13 = vunpack.c.l.bf16 %v8138_v19  ;;  %v9267_v19 = vld [vmem:[#allocation3 + $0x120] ss:$20 sps:$4 sm:$0xff]  }
 0x270   : > { %1954 = vmatmul.mubr.bf16.gmra.mrb[68].mxu1 %v10480_v23  ;;  %2075 = vmatmul.mubr.bf16.gmra.mrb[72].mxu0 %v10480_v23 }
 0x271   : > { %1963 = vmatprep.mubr.bf16.mxu1 %v9675_v0  ;;  %2084 = vmatprep.mubr.bf16.mxu0 %v9675_v0  ;;  %8186 = vst [vmem:[%s10452_s9 + $0x60] sm:$0xff] %v8162_v13  ;;  %v1583_v33 = vpop.permute.xlu1 %1582  ;;  %v9270_v13 = vld [vmem:[#allocation3 + $0x148] ss:$20 sps:$4 sm:$0xff]  }
 0x272   : > { %1602 = vst.msk [vmem:[#allocation2 + $0x90] sm:$0xff] %vm1596_vm12, %v1583_v33 }
 0x277   : > { %v2032_v54 = vpop.f32.mrb[52].mxu0 }
 0x278   : > { %v2033_v25 = vpop.f32.mrb[53].mxu0 }
 0x279   : > { %v8141_v63 = vld [vmem:[#allocation2 + $0x90] sm:$0xf]  ;;  %v1585_v24 = vpop.permute.xlu0 %1584  ;;  %v2034_v22 = vpop.f32.mrb[54].mxu0 }
 0x27a   : > { %v10488_v59 = vld [vmem:[#allocation2 + $0x90] sm:$0xff]  ;;  %v8165_v45 = vunpack.c.l.bf16 %v8141_v63  ;;  %1603 = vst.msk [vmem:[#allocation2 + $0xa8] sm:$0xff] %vm1596_vm12, %v1585_v24  ;;  %v2035_v32 = vpop.f32.mrb[55].mxu0 }
 0x27b   : > { %1964 = vmatmul.mubr.bf16.gmra.mrb[72].mxu1 %v10488_v59  ;;  %2085 = vmatmul.mubr.bf16.gmra.mrb[76].mxu0 %v10488_v59 }
 0x27c   : > { %1973 = vmatprep.mubr.bf16.mxu1 %v9675_v0  ;;  %2094 = vmatprep.mubr.bf16.mxu0 %v9675_v0  ;;  %8189 = vst [vmem:[%s10452_s9 + $0x78] sm:$0xff] %v8165_v45  ;;  %v9275_v45 = vld [vmem:[#allocation3 + $0x174] ss:$20 sps:$4 sm:$0xff]  }
 0x27d   : > { %v2305_v57 = vpop.permute.xlu0 %2304 }
 0x27e   : > { %v2352_v21 = vadd.f32 %v2305_v57, %v2272_v40  ;;  %v9281_v57 = vld [vmem:[#allocation3 + $0x1c4] ss:$20 sps:$4 sm:$0xff]  }
 0x280   : > { %v10515_v11 = vadd.f32 %v10450_v42, %v2352_v21  ;;  %v9246_v42 = vld [vmem:[#allocation3 + $0x8] ss:$20 sps:$4 sm:$0xff]  }
 0x281   : > { %v8144_v18 = vld [vmem:[#allocation2 + $0xa8] sm:$0xf]  ;;  %v1587_v53 = vpop.permute.xlu1 %1586 }
 0x282   : > { %v10496_v5 = vld [vmem:[#allocation2 + $0xa8] sm:$0xff]  ;;  %v8168_v30 = vunpack.c.l.bf16 %v8144_v18  ;;  %1604 = vst.msk [vmem:[#allocation2 + $0xc0] sm:$0xff] %vm1596_vm12, %v1587_v53  ;;  %v9273_v53 = vld [vmem:[#allocation3 + $0x170] ss:$20 sps:$4 sm:$0xff]  }
 0x283   : > { %1974 = vmatmul.mubr.bf16.gmra.mrb[76].mxu1 %v10496_v5  ;;  %2095 = vmatmul.mubr.bf16.gmra.mrb[80].mxu0 %v10496_v5 }
 0x284   : > { %1983 = vmatprep.mubr.bf16.mxu1 %v9675_v0  ;;  %2104 = vmatprep.mubr.bf16.mxu0 %v9675_v0  ;;  %8192 = vst [vmem:[%s10452_s9 + $0x90] sm:$0xff] %v8168_v30 }
 0x289   : > { %v8147_v26 = vld [vmem:[#allocation2 + $0xc0] sm:$0xf] }
 0x28a   : > { %v1613_v12 = vld [vmem:[#allocation2 + $0xc0] sm:$0xff]  ;;  %v8171_v56 = vunpack.c.l.bf16 %v8147_v26 }
 0x28b   : > { %1984 = vmatmul.mubr.bf16.gmra.mrb[80].mxu1 %v1613_v12  ;;  %2105 = vmatmul.mubr.bf16.gmra.mrb[84].mxu0 %v1613_v12 }
 0x28c   : > { %1991 = vmatprep.mubr.bf16.mxu1 %v9675_v0  ;;  %2114 = vmatprep.mubr.bf16.mxu0 %v9675_v0  ;;  %8195 = vst [vmem:[%s10452_s9 + $0xa8] sm:$0xff] %v8171_v56  ;;  %v9278_v56 = vld [vmem:[#allocation3 + $0x19c] ss:$20 sps:$4 sm:$0xff]  }
 0x293   : > { %1992 = vmatmul.mubr.bf16.gmra.mrb[84].mxu1 %v1614_v29  ;;  %2115 = vmatmul.mubr.bf16.gmra.mrb[88].mxu0 %v1614_v29 }
 0x294   : > { %8939 = vmatprep.mubr.bf16.mxu1 %v9547_v61  ;;  %8447 = vmatprep.mubr.msk.bf16.mxu0 %vm499_vm1, %v2913_v36 }
 0x29b   : > { %8940 = vmatmul.mubr.bf16.vlgmr.msra.gmra.mrb[88].mxu1 %v10438_v27  ;;  %v9243_v27 = vld [vmem:[#allocation3 + $0x1b8] ss:$20 sps:$4 sm:$0xff]  }
 0x29c   : > { %8943 = vmatprep.mubr.bf16.mxu1 %v10456_v1  ;;  %3369 = vmatpush1.bf16.msra.mxu0 %v9243_v27  ;;  %v9254_v1 = vld [vmem:[#allocation3 + $0x5c] ss:$20 sps:$4 sm:$0xff]  }
 0x29d   : > { %3598 = vmatprep.subr.bf16.mxu0 %v9675_v0  ;;  %3474 = vmatpush1.bf16.msra.mxu1 %v9246_v42 }
 0x29e   : > { %3475 = vmatprep.subr.bf16.mxu1 %v9251_v14 }
 0x29f   : > { %3379 = vmatmul.mubr.bf16.vlgmr.msra.gmra.mrb[92].mxu0 %v10525_v28 }
 0x2a1   : > { %3476 = vmatpush1.bf16.msra.mxu1 %v9249_v46 }
 0x2a2   : > { %3477 = vmatprep.subr.bf16.mxu1 %v9254_v1 }
 0x2a3   : > { %8944 = vmatmul.mubr.bf16.gmra.mrb[92].mxu1 %v10464_v31  ;;  %v9260_v31 = vld [vmem:[#allocation3 + $0xac] ss:$20 sps:$4 sm:$0xff]  }
 0x2a4   : > { %8947 = vmatprep.mubr.bf16.mxu1 %v10472_v9  ;;  %v9266_v9 = vld [vmem:[#allocation3 + $0xfc] ss:$20 sps:$4 sm:$0xff]  }
 0x2a5   : > { %3478 = vmatpush1.bf16.msra.mxu1 %v9252_v15 }
 0x2a6   : > { %3479 = vmatprep.subr.bf16.mxu1 %v9257_v62 }
 0x2a9   : > { %3480 = vmatpush1.bf16.msra.mxu1 %v9255_v4 }
 0x2aa   : > { %3481 = vmatprep.subr.bf16.mxu1 %v9260_v31 }
 0x2ab   : > { %8948 = vmatmul.mubr.bf16.gmra.mrb[96].mxu1 %v10480_v23  ;;  %v9272_v23 = vld [vmem:[#allocation3 + $0x14c] ss:$20 sps:$4 sm:$0xff]  }
 0x2ac   : > { %8951 = vmatprep.mubr.bf16.mxu1 %v10488_v59 }
 0x2ad   : > { %3482 = vmatpush1.bf16.msra.mxu1 %v9258_v51 }
 0x2ae   : > { %3483 = vmatprep.subr.bf16.mxu1 %v9263_v17 }
 0x2b1   : > { %3484 = vmatpush1.bf16.msra.mxu1 %v9261_v2 }
 0x2b2   : > { %3485 = vmatprep.subr.bf16.mxu1 %v9266_v9 }
 0x2b3   : > { %8952 = vmatmul.mubr.bf16.gmra.mrb[100].mxu1 %v10496_v5 }
 0x2b4   : > { %8955 = vmatprep.mubr.bf16.mxu1 %v1613_v12 }
 0x2b5   : > { %3486 = vmatpush1.bf16.msra.mxu1 %v9264_v16 }
 0x2b6   : > { %3487 = vmatprep.subr.bf16.mxu1 %v9269_v3 }
 0x2b9   : > { %3488 = vmatpush1.bf16.msra.mxu1 %v9267_v19 }
 0x2ba   : > { %3489 = vmatprep.subr.bf16.mxu1 %v9272_v23 }
 0x2bb   : > { %8956 = vmatmul.mubr.bf16.gmra.mrb[104].mxu1 %v1614_v29  ;;  %v9276_v29 = vld [vmem:[#allocation3 + $0x198] ss:$20 sps:$4 sm:$0xff]  }
 0x2bc   : > { %8457 = vmatprep.mubr.msk.bf16.mxu1 %vm499_vm1, %v2913_v36 }
 0x2bd   : > { %3490 = vmatpush1.bf16.msra.mxu1 %v9270_v13 }
 0x2be   : > { %3491 = vmatprep.subr.bf16.mxu1 %v9275_v45 }
 0x2c1   : > { %3492 = vmatpush1.bf16.msra.mxu1 %v9273_v53 }
 0x2c2   : > { %3493 = vmatprep.subr.bf16.mxu1 %v9278_v56 }
 0x2c5   : > { %3494 = vmatpush1.bf16.msra.mxu1 %v9276_v29 }
 0x2c6   : > { %3495 = vmatprep.subr.bf16.mxu1 %v9281_v57 }
 0x2c9   : > { %3496 = vmatpush1.bf16.msra.mxu1 %v9279_v47 }
 0x2cc   : > { %3506 = vmatmul.mubr.bf16.vlgmr.msra.gmra.mrb[108].mxu1 %v10525_v28 }
 0x30f   : > { %v1915_v33 = vpop.f32.mrb[52].mxu1  ;;  %v10530_v63 = vpop.f32.mrb[56].mxu0 }
 0x310   : > { %v1917_v24 = vpop.f32.mrb[53].mxu1  ;;  %2560 = vrot.lane.b32.xlu1 %v10530_v63, %s9676_s18  ;;  %v2040_v59 = vpop.f32.mrb[57].mxu0  ;;  %v2241_v5 = vrot.slane %v1915_v33, 7 }
 0x311   : > { %v1919_v54 = vpop.f32.mrb[54].mxu1  ;;  %v2041_v18 = vpop.f32.mrb[58].mxu0  ;;  %v2369_v32 = vrot.slane %v1917_v24, 1 }
 0x312   : > { %v2249_v25 = vrot.slane %v1919_v54, 7  ;;  %v1921_v30 = vpop.f32.mrb[55].mxu1  ;;  %v2043_v22 = vpop.f32.mrb[59].mxu0  ;;  %2562 = vrot.lane.b32.xlu0 %v2041_v18, %s9676_s18 }
 0x313   : > { %v2377_v26 = vrot.slane %v1921_v30, 1 }
 0x314   : > { %2308 = vrot.lane.b32.xlu1 %v1915_v33, %s9676_s18  ;;  %v10538_v12 = vsel %vm914_vm2, %v2249_v25, %v2241_v5 }
 0x315   : > { %v10542_v40 = vsel %vm1043_vm3, %v2369_v32, %v2377_v26 }
 0x316   : > { %2434 = vrot.lane.b32.xlu0 %v1921_v30, %s9676_s18 }
 0x318   : > { %2432 = vrot.lane.b32.xlu1 %v1917_v24, %s9676_s18 }
 0x31e   : > { %v1925_v21 = vpop.f32.mrb[56].mxu1  ;;  %v10546_v52 = vpop.f32.mrb[60].mxu0 }
 0x31f   : > { %v1927_v61 = vpop.f32.mrb[57].mxu1  ;;  %2564 = vrot.lane.b32.xlu1 %v10546_v52, %s9676_s18  ;;  %v2048_v35 = vpop.f32.mrb[61].mxu0  ;;  %v2242_v44 = vrot.slane %v1925_v21, 7 }
 0x320   : > { %v1929_v60 = vpop.f32.mrb[58].mxu1  ;;  %v2050_v58 = vpop.f32.mrb[62].mxu0  ;;  %2436 = vrot.lane.b32.xlu0 %v1927_v61, %s9676_s18  ;;  %v2370_v10 = vrot.slane %v1927_v61, 1  ;;  %v2656_v7 = vrot.slane %v2048_v35, 7 }
 0x321   : > { %v2250_v38 = vrot.slane %v1929_v60, 7  ;;  %v1931_v34 = vpop.f32.mrb[59].mxu1  ;;  %v2052_v41 = vpop.f32.mrb[63].mxu0 }
 0x322   : > { %v2378_v39 = vrot.slane %v1931_v34, 1  ;;  %v2664_v55 = vrot.slane %v2052_v41, 7 }
 0x323   : > { %2312 = vrot.lane.b32.xlu1 %v1925_v21, %s9676_s18  ;;  %v10555_v50 = vsel %vm914_vm2, %v2250_v38, %v2242_v44 }
 0x324   : > { %2720 = vrot.lane.b32.xlu0 %v2048_v35, %s9676_s18  ;;  %v10560_v43 = vsel %vm1043_vm3, %v2370_v10, %v2378_v39  ;;  %v10564_v49 = vsel %vm914_vm2, %v2664_v55, %v2656_v7 }
 0x327   : > { %2438 = vrot.lane.b32.xlu1 %v1931_v34, %s9676_s18 }
 0x328   : > { %2566 = vrot.lane.b32.xlu0 %v2050_v58, %s9676_s18 }
 0x32a   : > { %v1935_v27 = vpop.f32.mrb[60].mxu1  ;;  %v10568_v8 = vpop.f32.mrb[64].mxu0 }
 0x32b   : > { %v1937_v36 = vpop.f32.mrb[61].mxu1  ;;  %2568 = vrot.lane.b32.xlu1 %v10568_v8, %s9676_s18  ;;  %v2058_v28 = vpop.f32.mrb[65].mxu0  ;;  %v2243_v14 = vrot.slane %v1935_v27, 7 }
 0x32c   : > { %v1939_v6 = vpop.f32.mrb[62].mxu1  ;;  %v2060_v42 = vpop.f32.mrb[66].mxu0  ;;  %2440 = vrot.lane.b32.xlu0 %v1937_v36, %s9676_s18  ;;  %v2371_v62 = vrot.slane %v1937_v36, 1  ;;  %v2657_v4 = vrot.slane %v2058_v28, 7 }
 0x32d   : > { %v2251_v46 = vrot.slane %v1939_v6, 7  ;;  %v1941_v1 = vpop.f32.mrb[63].mxu1  ;;  %v2062_v15 = vpop.f32.mrb[67].mxu0 }
 0x32e   : > { %v2379_v31 = vrot.slane %v1941_v1, 1  ;;  %v2665_v51 = vrot.slane %v2062_v15, 7 }
 0x32f   : > { %2316 = vrot.lane.b32.xlu1 %v1935_v27, %s9676_s18  ;;  %v10576_v17 = vsel %vm914_vm2, %v2251_v46, %v2243_v14 }
 0x330   : > { %2724 = vrot.lane.b32.xlu0 %v2058_v28, %s9676_s18  ;;  %v10581_v2 = vsel %vm1043_vm3, %v2371_v62, %v2379_v31  ;;  %v10585_v9 = vsel %vm914_vm2, %v2665_v51, %v2657_v4 }
 0x333   : > { %2442 = vrot.lane.b32.xlu1 %v1941_v1, %s9676_s18 }
 0x334   : > { %2570 = vrot.lane.b32.xlu0 %v2060_v42, %s9676_s18 }
 0x336   : > { %v1945_v16 = vpop.f32.mrb[64].mxu1  ;;  %v10589_v3 = vpop.f32.mrb[68].mxu0 }
 0x337   : > { %v1947_v19 = vpop.f32.mrb[65].mxu1  ;;  %2572 = vrot.lane.b32.xlu1 %v10589_v3, %s9676_s18  ;;  %v2068_v23 = vpop.f32.mrb[69].mxu0  ;;  %v2244_v24 = vrot.slane %v1945_v16, 7 }
 0x338   : > { %v1949_v13 = vpop.f32.mrb[66].mxu1  ;;  %v2070_v33 = vpop.f32.mrb[70].mxu0  ;;  %2444 = vrot.lane.b32.xlu0 %v1947_v19, %s9676_s18  ;;  %v2372_v18 = vrot.slane %v1947_v19, 1  ;;  %v2658_v53 = vrot.slane %v2068_v23, 7  ;;  %v9282_v19 = vld [vmem:[#allocation3 + $0x10] ss:$20 sps:$4 sm:$0xff]  }
 0x339   : > { %v2252_v59 = vrot.slane %v1949_v13, 7  ;;  %v1951_v45 = vpop.f32.mrb[67].mxu1  ;;  %v2072_v54 = vpop.f32.mrb[71].mxu0  ;;  %3599 = vmatpush1.bf16.msra.mxu0 %v9282_v19 }
 0x33a   : > { %v2380_v5 = vrot.slane %v1951_v45, 1  ;;  %v2666_v25 = vrot.slane %v2072_v54, 7  ;;  %3600 = vmatprep.subr.bf16.mxu0 %v9675_v0 }
 0x33b   : > { %2320 = vrot.lane.b32.xlu1 %v1945_v16, %s9676_s18  ;;  %v10597_v30 = vsel %vm914_vm2, %v2252_v59, %v2244_v24 }
 0x33c   : > { %2728 = vrot.lane.b32.xlu0 %v2068_v23, %s9676_s18  ;;  %v10602_v22 = vsel %vm1043_vm3, %v2372_v18, %v2380_v5  ;;  %v10606_v32 = vsel %vm914_vm2, %v2666_v25, %v2658_v53 }
 0x33f   : > { %2446 = vrot.lane.b32.xlu1 %v1951_v45, %s9676_s18 }
 0x340   : > { %2574 = vrot.lane.b32.xlu0 %v2070_v33, %s9676_s18 }
 0x343   : > { %v1955_v26 = vpop.f32.mrb[68].mxu1  ;;  %v10610_v56 = vpop.f32.mrb[72].mxu0 }
 0x344   : > { %v1957_v29 = vpop.f32.mrb[69].mxu1  ;;  %2576 = vrot.lane.b32.xlu1 %v10610_v56, %s9676_s18  ;;  %v2078_v57 = vpop.f32.mrb[73].mxu0  ;;  %v2245_v61 = vrot.slane %v1955_v26, 7 }
 0x345   : > { %v1959_v47 = vpop.f32.mrb[70].mxu1  ;;  %v2080_v21 = vpop.f32.mrb[74].mxu0  ;;  %2448 = vrot.lane.b32.xlu0 %v1957_v29, %s9676_s18  ;;  %v2373_v44 = vrot.slane %v1957_v29, 1  ;;  %v2659_v38 = vrot.slane %v2078_v57, 7 }
 0x346   : > { %v2253_v35 = vrot.slane %v1959_v47, 7  ;;  %v1961_v60 = vpop.f32.mrb[71].mxu1  ;;  %v2082_v58 = vpop.f32.mrb[75].mxu0 }
 0x347   : > { %v2381_v34 = vrot.slane %v1961_v60, 1  ;;  %v2667_v41 = vrot.slane %v2082_v58, 7 }
 0x348   : > { %2324 = vrot.lane.b32.xlu1 %v1955_v26, %s9676_s18  ;;  %v10618_v10 = vsel %vm914_vm2, %v2253_v35, %v2245_v61 }
 0x349   : > { %2732 = vrot.lane.b32.xlu0 %v2078_v57, %s9676_s18  ;;  %v10623_v7 = vsel %vm1043_vm3, %v2373_v44, %v2381_v34  ;;  %v10627_v39 = vsel %vm914_vm2, %v2667_v41, %v2659_v38  ;;  %v9283_v41 = vld [vmem:[#allocation3 + $0x38] ss:$20 sps:$4 sm:$0xff]  }
 0x34a   : > { %3601 = vmatpush1.bf16.msra.mxu0 %v9283_v41 }
 0x34b   : > { %3602 = vmatprep.subr.bf16.mxu0 %v9675_v0 }
 0x34c   : > { %2450 = vrot.lane.b32.xlu1 %v1961_v60, %s9676_s18 }
 0x34d   : > { %2578 = vrot.lane.b32.xlu0 %v2080_v21, %s9676_s18 }
 0x34e   : > { %v1965_v55 = vpop.f32.mrb[72].mxu1  ;;  %v10631_v27 = vpop.f32.mrb[76].mxu0 }
 0x34f   : > { %v1967_v36 = vpop.f32.mrb[73].mxu1  ;;  %v2088_v28 = vpop.f32.mrb[77].mxu0  ;;  %v2246_v14 = vrot.slane %v1965_v55, 7 }
 0x350   : > { %v1969_v6 = vpop.f32.mrb[74].mxu1  ;;  %2580 = vrot.lane.b32.xlu1 %v10631_v27, %s9676_s18  ;;  %v2090_v42 = vpop.f32.mrb[78].mxu0  ;;  %v2374_v62 = vrot.slane %v1967_v36, 1  ;;  %v2660_v4 = vrot.slane %v2088_v28, 7 }
 0x351   : > { %v2254_v46 = vrot.slane %v1969_v6, 7  ;;  %v1971_v1 = vpop.f32.mrb[75].mxu1  ;;  %v2092_v15 = vpop.f32.mrb[79].mxu0  ;;  %2452 = vrot.lane.b32.xlu0 %v1967_v36, %s9676_s18 }
 0x352   : > { %v2382_v31 = vrot.slane %v1971_v1, 1  ;;  %v2668_v51 = vrot.slane %v2092_v15, 7 }
 0x353   : > { %v10638_v16 = vsel %vm914_vm2, %v2254_v46, %v2246_v14 }
 0x354   : > { %2328 = vrot.lane.b32.xlu1 %v1965_v55, %s9676_s18  ;;  %v10643_v23 = vsel %vm1043_vm3, %v2374_v62, %v2382_v31  ;;  %v10647_v13 = vsel %vm914_vm2, %v2668_v51, %v2660_v4 }
 0x355   : > { %2736 = vrot.lane.b32.xlu0 %v2088_v28, %s9676_s18 }
 0x356   : > { %v1975_v33 = vpop.f32.mrb[76].mxu1  ;;  %v10650_v24 = vpop.f32.mrb[80].mxu0 }
 0x357   : > { %v1977_v59 = vpop.f32.mrb[77].mxu1  ;;  %v2098_v45 = vpop.f32.mrb[81].mxu0  ;;  %v2247_v53 = vrot.slane %v1975_v33, 7 }
 0x358   : > { %2454 = vrot.lane.b32.xlu1 %v1971_v1, %s9676_s18  ;;  %v1979_v54 = vpop.f32.mrb[78].mxu1  ;;  %v2100_v18 = vpop.f32.mrb[82].mxu0  ;;  %v2375_v29 = vrot.slane %v1977_v59, 1  ;;  %v2661_v57 = vrot.slane %v2098_v45, 7 }
 0x359   : > { %v2255_v5 = vrot.slane %v1979_v54, 7  ;;  %2582 = vrot.lane.b32.xlu0 %v2090_v42, %s9676_s18  ;;  %v1981_v25 = vpop.f32.mrb[79].mxu1  ;;  %v2102_v26 = vpop.f32.mrb[83].mxu0  ;;  %v9284_v42 = vld [vmem:[#allocation3 + $0x60] ss:$20 sps:$4 sm:$0xff]  }
 0x35a   : > { %v2383_v47 = vrot.slane %v1981_v25, 1  ;;  %v2669_v21 = vrot.slane %v2102_v26, 7  ;;  %3603 = vmatpush1.bf16.msra.mxu0 %v9284_v42 }
 0x35b   : > { %v10657_v61 = vsel %vm914_vm2, %v2255_v5, %v2247_v53  ;;  %3604 = vmatprep.subr.bf16.mxu0 %v9675_v0  ;;  %v9286_v5 = vld [vmem:[#allocation3 + $0xb0] ss:$20 sps:$4 sm:$0xff]  }
 0x35c   : > { %2584 = vrot.lane.b32.xlu1 %v10650_v24, %s9676_s18  ;;  %v10663_v35 = vsel %vm914_vm2, %v2669_v21, %v2661_v57  ;;  %v10667_v60 = vsel %vm1043_vm3, %v2375_v29, %v2383_v47  ;;  %v9287_v57 = vld [vmem:[#allocation3 + $0xd8] ss:$20 sps:$4 sm:$0xff]   ;;  %v9288_v21 = vld [vmem:[#allocation3 + $0x100] ss:$20 sps:$4 sm:$0xff]  }
 0x35d   : > { %2456 = vrot.lane.b32.xlu0 %v1977_v59, %s9676_s18 }
 0x35e   : > { %v1985_v58 = vpop.f32.mrb[80].mxu1  ;;  %v10670_v44 = vpop.f32.mrb[84].mxu0 }
 0x35f   : > { %v1986_v38 = vpop.f32.mrb[81].mxu1  ;;  %v2108_v34 = vpop.f32.mrb[85].mxu0 }
 0x360   : > { %v2110_v55 = vpop.f32.mrb[86].mxu0  ;;  %2458 = vrot.lane.b32.xlu1 %v1981_v25, %s9676_s18  ;;  %v1988_v36 = vpop.f32.mrb[82].mxu1  ;;  %v2662_v14 = vrot.slane %v2108_v34, 7 }
 0x361   : > { %v2112_v28 = vpop.f32.mrb[87].mxu0  ;;  %2740 = vrot.lane.b32.xlu0 %v2098_v45, %s9676_s18  ;;  %v1989_v6 = vpop.f32.mrb[83].mxu1  ;;  %v9285_v45 = vld [vmem:[#allocation3 + $0x88] ss:$20 sps:$4 sm:$0xff]  }
 0x362   : > { %v2670_v46 = vrot.slane %v2112_v28, 7  ;;  %3605 = vmatpush1.bf16.msra.mxu0 %v9285_v45 }
 0x363   : > { %3606 = vmatprep.subr.bf16.mxu0 %v9675_v0 }
 0x364   : > { %2332 = vrot.lane.b32.xlu1 %v1975_v33, %s9676_s18  ;;  %v10678_v1 = vsel %vm914_vm2, %v2670_v46, %v2662_v14 }
 0x365   : > { %2586 = vrot.lane.b32.xlu0 %v2100_v18, %s9676_s18 }
 0x366   : > { %v1993_v15 = vpop.f32.mrb[84].mxu1  ;;  %v2116_v62 = vpop.f32.mrb[88].mxu0  ;;  %3607 = vmatpush1.bf16.msra.mxu0 %v9286_v5 }
 0x367   : > { %v1994_v4 = vpop.f32.mrb[85].mxu1  ;;  %v2117_v31 = vpop.f32.mrb[89].mxu0  ;;  %3608 = vmatprep.subr.bf16.mxu0 %v9675_v0  ;;  %v9290_v15 = vld [vmem:[#allocation3 + $0x150] ss:$20 sps:$4 sm:$0xff]  }
 0x368   : > { %2462 = vrot.lane.b32.xlu1 %v1989_v6, %s9676_s18  ;;  %v1995_v51 = vpop.f32.mrb[86].mxu1  ;;  %v2663_v19 = vrot.slane %v2117_v31, 7  ;;  %v2119_v59 = vpop.f32.mrb[90].mxu0  ;;  %v9291_v4 = vld [vmem:[#allocation3 + $0x178] ss:$20 sps:$4 sm:$0xff]  }
 0x369   : > { %2460 = vrot.lane.b32.xlu0 %v1986_v38, %s9676_s18  ;;  %v1996_v33 = vpop.f32.mrb[87].mxu1  ;;  %v2120_v54 = vpop.f32.mrb[91].mxu0  ;;  %v9289_v38 = vld [vmem:[#allocation3 + $0x128] ss:$20 sps:$4 sm:$0xff]  }
 0x36a   : > { %v2671_v53 = vrot.slane %v2120_v54, 7  ;;  %3609 = vmatpush1.bf16.msra.mxu0 %v9287_v57  ;;  %v9293_v57 = vld [vmem:[#allocation3 + $0x1c8] ss:$20 sps:$4 sm:$0xff]  }
 0x36b   : > { %3610 = vmatprep.subr.bf16.mxu0 %v9675_v0 }
 0x36c   : > { %2588 = vrot.lane.b32.xlu1 %v10670_v44, %s9676_s18  ;;  %v10689_v18 = vsel %vm914_vm2, %v2671_v53, %v2663_v19 }
 0x36d   : > { %2744 = vrot.lane.b32.xlu0 %v2108_v34, %s9676_s18 }
 0x36e   : > { %v8941_v25 = vpop.f32.mrb[88].mxu1  ;;  %3611 = vmatpush1.bf16.msra.mxu0 %v9288_v21 }
 0x36f   : > { %v2157_v26 = vpop.f32.mrb[89].mxu1  ;;  %3612 = vmatprep.subr.bf16.mxu0 %v9675_v0  ;;  %v9292_v25 = vld [vmem:[#allocation3 + $0x1a0] ss:$20 sps:$4 sm:$0xff]  }
 0x370   : > { %v8942_v29 = vpop.f32.mrb[90].mxu1  ;;  %2748 = vrot.lane.b32.xlu1 %v2117_v31, %s9676_s18 }
 0x371   : > { %2590 = vrot.lane.b32.xlu0 %v2110_v55, %s9676_s18  ;;  %v2159_v47 = vpop.f32.mrb[91].mxu1 }
 0x372   : > { %3613 = vmatpush1.bf16.msra.mxu0 %v9289_v38  ;;  %v2274_v38 = vadd.f32 %v10507_v37, %v10538_v12 }
 0x373   : > { %3614 = vmatprep.subr.bf16.mxu0 %v9675_v0 }
 0x376   : > { %v8945_v58 = vpop.f32.mrb[92].mxu1  ;;  %3615 = vmatpush1.bf16.msra.mxu0 %v9290_v15  ;;  %v10719_v15 = vpop.f32.mrb[92].mxu0 }
 0x377   : > { %v2169_v34 = vpop.f32.mrb[93].mxu1  ;;  %v2785_v36 = vrot.slane %v8945_v58, 1  ;;  %3616 = vmatprep.subr.bf16.mxu0 %v9675_v0  ;;  %3779 = vrot.lane.b32.xlu0 %v10719_v15, %s9676_s18 }
 0x378   : > { %v8946_v41 = vpop.f32.mrb[94].mxu1  ;;  %v2784_v42 = vrot.slane %v2169_v34, 1 }
 0x379   : > { %v2793_v28 = vrot.slane %v8946_v41, 1  ;;  %v2172_v6 = vpop.f32.mrb[95].mxu1 }
 0x37a   : > { %v2792_v14 = vrot.slane %v2172_v6, 1  ;;  %3617 = vmatpush1.bf16.msra.mxu0 %v9291_v4 }
 0x37b   : > { %v10699_v55 = vsel %vm1043_vm3, %v2785_v36, %v2793_v28  ;;  %3618 = vmatprep.subr.bf16.mxu0 %v9675_v0 }
 0x37c   : > { %v10704_v46 = vsel %vm1043_vm3, %v2784_v42, %v2792_v14 }
 0x37e   : > { %v8949_v62 = vpop.f32.mrb[96].mxu1  ;;  %3619 = vmatpush1.bf16.msra.mxu0 %v9292_v25 }
 0x37f   : > { %v2185_v31 = vpop.f32.mrb[97].mxu1  ;;  %v2787_v19 = vrot.slane %v8949_v62, 1  ;;  %3620 = vmatprep.subr.bf16.mxu0 %v9675_v0 }
 0x380   : > { %v8950_v51 = vpop.f32.mrb[98].mxu1  ;;  %v2786_v33 = vrot.slane %v2185_v31, 1 }
 0x381   : > { %v2795_v59 = vrot.slane %v8950_v51, 1  ;;  %v2188_v45 = vpop.f32.mrb[99].mxu1 }
 0x382   : > { %v2794_v54 = vrot.slane %v2188_v45, 1  ;;  %v2561_v26 = vpop.permute.xlu1 %2560  ;;  %3621 = vmatpush1.bf16.msra.mxu0 %v9293_v57 }
 0x383   : > { %v10709_v53 = vsel %vm1043_vm3, %v2787_v19, %v2795_v59 }
 0x384   : > { %v10714_v5 = vsel %vm1043_vm3, %v2786_v33, %v2794_v54  ;;  %v2563_v21 = vpop.permute.xlu0 %2562 }
 0x385   : > { %v2616_v25 = vrot.slane %v2563_v21, 1 }
 0x386   : > { %v8953_v29 = vpop.f32.mrb[100].mxu1  ;;  %v2309_v36 = vpop.permute.xlu1 %2308 }
 0x387   : > { %v2201_v47 = vpop.f32.mrb[101].mxu1  ;;  %v2789_v34 = vrot.slane %v8953_v29, 1  ;;  %v2354_v42 = vadd.f32 %v2309_v36, %v2274_v38 }
 0x388   : > { %v8954_v58 = vpop.f32.mrb[102].mxu1  ;;  %v2788_v6 = vrot.slane %v2201_v47, 1  ;;  %v2435_v62 = vpop.permute.xlu0 %2434 }
 0x389   : > { %v2797_v41 = vrot.slane %v8954_v58, 1  ;;  %v2204_v28 = vpop.f32.mrb[103].mxu1  ;;  %v2402_v12 = vadd.f32 %v10542_v40, %v2354_v42  ;;  %v2488_v19 = vrot.slane %v2435_v62, 7 }
 0x38a   : > { %v2796_v14 = vrot.slane %v2204_v28, 1  ;;  %v2433_v51 = vpop.permute.xlu1 %2432 }
 0x38b   : > { %v10723_v4 = vsel %vm1043_vm3, %v2789_v34, %v2797_v41  ;;  %v2480_v59 = vrot.slane %v2433_v51, 7  ;;  %v2608_v41 = vrot.slane %v2561_v26, 1 }
 0x38c   : > { %v10730_v31 = vsel %vm1043_vm3, %v2788_v6, %v2796_v14  ;;  %v2276_v14 = vadd.f32 %v10507_v37, %v10555_v50 }
 0x38d   : > { %v2504_v29 = vsel %vm914_vm2, %v2488_v19, %v2480_v59  ;;  %v2624_v21 = vsel %vm1043_vm3, %v2608_v41, %v2616_v25 }
 0x38e   : > { %v8957_v45 = vpop.f32.mrb[104].mxu1  ;;  %v2512_v58 = vadd.f32 %v2504_v29, %v10515_v11 }
 0x38f   : > { %v2791_v33 = vrot.slane %v8957_v45, 1  ;;  %v2217_v54 = vpop.f32.mrb[105].mxu1 }
 0x390   : > { %v2790_v57 = vrot.slane %v2217_v54, 1  ;;  %v8958_v47 = vpop.f32.mrb[106].mxu1  ;;  %v2528_v6 = vadd.f32 %v2512_v58, %v10530_v63 }
 0x391   : > { %v2565_v38 = vpop.permute.xlu1 %2564  ;;  %v2799_v40 = vrot.slane %v8958_v47, 1  ;;  %v2220_v34 = vpop.f32.mrb[107].mxu1 }
 0x392   : > { %v2437_v36 = vpop.permute.xlu0 %2436  ;;  %v2798_v28 = vrot.slane %v2220_v34, 1  ;;  %v2640_v26 = vadd.f32 %v2624_v21, %v2528_v6  ;;  %v2609_v41 = vrot.slane %v2565_v38, 1 }
 0x393   : > { %v10738_v42 = vsel %vm1043_vm3, %v2791_v33, %v2799_v40  ;;  %v2481_v54 = vrot.slane %v2437_v36, 7 }
 0x394   : > { %v10746_v11 = vsel %vm1043_vm3, %v2790_v57, %v2798_v28  ;;  %v2688_v63 = vadd.f32 %v10564_v49, %v2640_v26 }
 0x395   : > { %v2313_v62 = vpop.permute.xlu1 %2312 }
 0x396   : > { %v2356_v51 = vadd.f32 %v2313_v62, %v2276_v14  ;;  %v2721_v19 = vpop.permute.xlu0 %2720 }
 0x397   : > { %v2768_v45 = vadd.f32 %v2721_v19, %v2688_v63 }
 0x398   : > { %v2404_v59 = vadd.f32 %v10560_v43, %v2356_v51 }
 0x399   : > { %v2439_v33 = vpop.permute.xlu1 %2438  ;;  %v2816_v47 = vadd.f32 %v10704_v46, %v2768_v45  ;;  %v2278_v46 = vadd.f32 %v10507_v37, %v10576_v17 }
 0x39a   : > { %v2489_v29 = vrot.slane %v2439_v33, 7  ;;  %v2567_v25 = vpop.permute.xlu0 %2566 }
 0x39b   : > { %v2617_v57 = vrot.slane %v2567_v25, 1  ;;  %vm2832_vm13 = vcmp.ge.f32.partialorder %v2816_v47, 0.0  ;;  %v2848_v58 = vmul.f32 0.2, %v2816_v47 }
 0x39c   : > { %v2505_v50 = vsel %vm914_vm2, %v2489_v29, %v2481_v54 }
 0x39d   : > { %v2514_v40 = vadd.f32 %v2505_v50, %v2402_v12  ;;  %v2569_v34 = vpop.permute.xlu1 %2568  ;;  %v2864_v49 = vsel %vm2832_vm13, %v2816_v47, %v2848_v58  ;;  %v2625_v36 = vsel %vm1043_vm3, %v2609_v41, %v2617_v57  ;;  %v10771_v57 = vld [vmem:[#allocation2 + $0x18] sm:$0xff] }
 0x39e   : > { %v2441_v28 = vpop.permute.xlu0 %2440  ;;  %v2896_v6 = vpack.c.bf16 %v9677_v20, %v2864_v49 }
 0x39f   : > { %v2530_v43 = vadd.f32 %v2514_v40, %v10546_v52  ;;  %v2482_v19 = vrot.slane %v2441_v28, 7 }
 0x3a0   : > { %2904 = vst.msk [vmem:[#allocation2 + $0x20] sm:$0xff] %vm499_vm1, %v2896_v6 }
 0x3a1   : > { %v2317_v21 = vpop.permute.xlu1 %2316  ;;  %v2642_v14 = vadd.f32 %v2625_v36, %v2530_v43 }
 0x3a2   : > { %v2358_v62 = vadd.f32 %v2317_v21, %v2278_v46  ;;  %v2725_v12 = vpop.permute.xlu0 %2724 }
 0x3a3   : > { %v2690_v38 = vadd.f32 %v10585_v9, %v2642_v14  ;;  %v2610_v9 = vrot.slane %v2569_v34, 1  ;;  %v2280_v34 = vadd.f32 %v10507_v37, %v10597_v30 }
 0x3a4   : > { %v2406_v26 = vadd.f32 %v10581_v2, %v2358_v62 }
 0x3a5   : > { %v2770_v51 = vadd.f32 %v2725_v12, %v2690_v38  ;;  %v2443_v52 = vpop.permute.xlu1 %2442 }
 0x3a6   : > { %v2490_v63 = vrot.slane %v2443_v52, 7  ;;  %v2571_v45 = vpop.permute.xlu0 %2570 }
 0x3a7   : > { %v2818_v33 = vadd.f32 %v10699_v55, %v2770_v51  ;;  %v2618_v54 = vrot.slane %v2571_v45, 1  ;;  %v10765_v50 = vld [vmem:[#allocation2 + $0x20] sm:$0xff] }
 0x3a8   : > { %v2506_v17 = vsel %vm914_vm2, %v2490_v63, %v2482_v19  ;;  %8448 = vmatprep.mubr.msk.bf16.mxu0 %vm499_vm1, %v10765_v50  ;;  %8458 = vmatprep.mubr.msk.bf16.mxu1 %vm499_vm1, %v10765_v50 }
 0x3a9   : > { %vm2834_vm14 = vcmp.ge.f32.partialorder %v2818_v33, 0.0  ;;  %v2850_v29 = vmul.f32 0.2, %v2818_v33  ;;  %v2516_v25 = vadd.f32 %v2506_v17, %v2404_v59  ;;  %v2573_v47 = vpop.permute.xlu1 %2572  ;;  %3389 = vmatmul.mubr.bf16.gmra.mrb[96].mxu0 %v10771_v57  ;;  %3512 = vmatmul.mubr.bf16.gmra.mrb[112].mxu1 %v10771_v57  ;;  %v2626_v40 = vsel %vm1043_vm3, %v2610_v9, %v2618_v54 }
 0x3aa   : > { %v2445_v2 = vpop.permute.xlu0 %2444  ;;  %v2611_v63 = vrot.slane %v2573_v47, 1  ;;  %v2282_v54 = vadd.f32 %v10507_v37, %v10618_v10 }
 0x3ab   : > { %v2866_v55 = vsel %vm2834_vm14, %v2818_v33, %v2850_v29  ;;  %v2532_v59 = vadd.f32 %v2516_v25, %v10568_v8  ;;  %v2483_v21 = vrot.slane %v2445_v2, 7 }
 0x3ac   : > { %v2897_v58 = vpack.c.bf16 %v9677_v20, %v2866_v55 }
 0x3ad   : > { %v2321_v41 = vpop.permute.xlu1 %2320  ;;  %v2644_v28 = vadd.f32 %v2626_v40, %v2532_v59 }
 0x3ae   : > { %2905 = vst.msk [vmem:[#allocation2 + $0x38] sm:$0xff] %vm499_vm1, %v2897_v58  ;;  %v2360_v49 = vadd.f32 %v2321_v41, %v2280_v34  ;;  %v2729_v43 = vpop.permute.xlu0 %2728 }
 0x3af   : > { %v2692_v6 = vadd.f32 %v10606_v32, %v2644_v28 }
 0x3b0   : > { %v2408_v36 = vadd.f32 %v10602_v22, %v2360_v49  ;;  %v10793_v22 = vld [vmem:[#allocation2 + $0x30] sm:$0xff] }
 0x3b1   : > { %v2772_v46 = vadd.f32 %v2729_v43, %v2692_v6  ;;  %v2447_v8 = vpop.permute.xlu1 %2446 }
 0x3b2   : > { %v2491_v14 = vrot.slane %v2447_v8, 7  ;;  %v2575_v62 = vpop.permute.xlu0 %2574 }
 0x3b3   : > { %v2820_v12 = vadd.f32 %v10714_v5, %v2772_v46  ;;  %v2619_v38 = vrot.slane %v2575_v62, 1 }
 0x3b4   : > { %v2507_v30 = vsel %vm914_vm2, %v2491_v14, %v2483_v21  ;;  %v9548_v14 = vld [vmem:[%s12724_s6 + $0x1] ss:$0 sm:$0xff] }
 0x3b5   : > { %vm2836_vm15 = vcmp.ge.f32.partialorder %v2820_v12, 0.0  ;;  %v2852_v51 = vmul.f32 0.2, %v2820_v12  ;;  %v2518_v52 = vadd.f32 %v2507_v30, %v2406_v26  ;;  %v10787_v19 = vld [vmem:[#allocation2 + $0x38] sm:$0xff]  ;;  %v2627_v17 = vsel %vm1043_vm3, %v2611_v63, %v2619_v38 }
 0x3b6   : > { %v2577_v32 = vpop.permute.xlu1 %2576  ;;  %8449 = vmatprep.mubr.msk.bf16.mxu0 %vm499_vm1, %v10787_v19  ;;  %8459 = vmatprep.mubr.msk.bf16.mxu1 %vm499_vm1, %v10787_v19  ;;  %v2284_v62 = vadd.f32 %v9548_v14, %v10638_v16 }
 0x3b7   : > { %v2868_v5 = vsel %vm2836_vm15, %v2820_v12, %v2852_v51  ;;  %3399 = vmatmul.mubr.bf16.gmra.mrb[100].mxu0 %v10793_v22  ;;  %3520 = vmatmul.mubr.bf16.gmra.mrb[116].mxu1 %v10793_v22  ;;  %v2449_v45 = vpop.permute.xlu0 %2448  ;;  %v2534_v26 = vadd.f32 %v2518_v52, %v10589_v3 }
 0x3b8   : > { %v2898_v33 = vpack.c.bf16 %v9677_v20, %v2868_v5  ;;  %v2484_v58 = vrot.slane %v2449_v45, 7 }
 0x3b9   : > { %v2646_v29 = vadd.f32 %v2627_v17, %v2534_v26 }
 0x3ba   : > { %2906 = vst.msk [vmem:[#allocation2 + $0x50] sm:$0xff] %vm499_vm1, %v2898_v33  ;;  %v2325_v25 = vpop.permute.xlu1 %2324 }
 0x3bb   : > { %v2362_v47 = vadd.f32 %v2325_v25, %v2282_v54  ;;  %v2694_v9 = vadd.f32 %v10627_v39, %v2646_v29  ;;  %v2733_v2 = vpop.permute.xlu0 %2732  ;;  %v3715_v29 = vrot.slane %v10719_v15, 7  ;;  %v3382_v25 = vpop.f32.mrb[93].mxu0 }
 0x3bd   : > { %v2410_v55 = vadd.f32 %v10623_v7, %v2362_v47  ;;  %v2774_v59 = vadd.f32 %v2733_v2, %v2694_v9  ;;  %v10815_v7 = vld [vmem:[#allocation2 + $0x48] sm:$0xff]  ;;  %v3384_v9 = vpop.f32.mrb[94].mxu0 }
 0x3be   : > { %v2451_v3 = vpop.permute.xlu1 %2450 }
 0x3bf   : > { %v2822_v40 = vadd.f32 %v10709_v53, %v2774_v59  ;;  %v2492_v34 = vrot.slane %v2451_v3, 7  ;;  %v2579_v41 = vpop.permute.xlu0 %2578  ;;  %v2612_v53 = vrot.slane %v2577_v32, 1  ;;  %v3843_v59 = vrot.slane %v3382_v25, 1 }
 0x3c0   : > { %v2620_v10 = vrot.slane %v2579_v41, 1  ;;  %v3723_v3 = vrot.slane %v3384_v9, 7 }
 0x3c1   : > { %vm2838_vm0 = vcmp.ge.f32.partialorder %v2822_v40, 0.0  ;;  %v2854_v28 = vmul.f32 0.2, %v2822_v40  ;;  %v2508_v37 = vsel %vm914_vm2, %v2492_v34, %v2484_v58  ;;  %v10809_v49 = vld [vmem:[#allocation2 + $0x50] sm:$0xff]  ;;  %v3386_v58 = vpop.f32.mrb[95].mxu0 }
 0x3c2   : > { %v2520_v43 = vadd.f32 %v2508_v37, %v2408_v36  ;;  %v2581_v39 = vpop.permute.xlu1 %2580  ;;  %8450 = vmatprep.mubr.msk.bf16.mxu0 %vm499_vm1, %v10809_v49  ;;  %8460 = vmatprep.mubr.msk.bf16.mxu1 %vm499_vm1, %v10809_v49  ;;  %v2628_v21 = vsel %vm1043_vm3, %v2612_v53, %v2620_v10  ;;  %v3851_v34 = vrot.slane %v3386_v58, 1  ;;  %v10850_v37 = vsel %vm914_vm2, %v3723_v3, %v3715_v29 }
 0x3c3   : > { %v2870_v6 = vsel %vm2838_vm0, %v2822_v40, %v2854_v28  ;;  %3409 = vmatmul.mubr.bf16.gmra.mrb[104].mxu0 %v10815_v7  ;;  %3530 = vmatmul.mubr.bf16.gmra.mrb[120].mxu1 %v10815_v7  ;;  %v2453_v46 = vpop.permute.xlu0 %2452  ;;  %v2613_v2 = vrot.slane %v2581_v39, 1 }
 0x3c4   : > { %v2899_v8 = vpack.c.bf16 %v9677_v20, %v2870_v6  ;;  %v2536_v36 = vadd.f32 %v2520_v43, %v10610_v56  ;;  %v2485_v5 = vrot.slane %v2453_v46, 7  ;;  %v10854_v39 = vsel %vm1043_vm3, %v3843_v59, %v3851_v34 }
 0x3c6   : > { %2907 = vst.msk [vmem:[#allocation2 + $0x68] sm:$0xff] %vm499_vm1, %v2899_v8  ;;  %v2329_v12 = vpop.permute.xlu1 %2328  ;;  %v2648_v30 = vadd.f32 %v2628_v21, %v2536_v36  ;;  %v2286_v36 = vadd.f32 %v9548_v14, %v10657_v61 }
 0x3c7   : > { %v2364_v38 = vadd.f32 %v2329_v12, %v2284_v62  ;;  %v2737_v51 = vpop.permute.xlu0 %2736 }
 0x3c8   : > { %v2696_v52 = vadd.f32 %v10647_v13, %v2648_v30 }
 0x3c9   : > { %v2412_v63 = vadd.f32 %v10643_v23, %v2364_v38 }
 0x3ca   : > { %v2776_v56 = vadd.f32 %v2737_v51, %v2696_v52  ;;  %v2455_v32 = vpop.permute.xlu1 %2454 }
 0x3cb   : > { %v2493_v45 = vrot.slane %v2455_v32, 7  ;;  %v2583_v26 = vpop.permute.xlu0 %2582 }
 0x3cc   : > { %v2824_v33 = vadd.f32 %v10730_v31, %v2776_v56  ;;  %v2621_v17 = vrot.slane %v2583_v26, 1  ;;  %v10840_v31 = vld [vmem:[#allocation2 + $0x60] sm:$0xff] }
 0x3cd   : > { %v2509_v16 = vsel %vm914_vm2, %v2493_v45, %v2485_v5  ;;  %v10833_v54 = vld [vmem:[#allocation2 + $0x68] sm:$0xff] }
 0x3ce   : > { %vm2840_vm4 = vcmp.ge.f32.partialorder %v2824_v33, 0.0  ;;  %v2856_v13 = vmul.f32 0.2, %v2824_v33  ;;  %v2522_v47 = vadd.f32 %v2509_v16, %v2410_v55  ;;  %v2585_v23 = vpop.permute.xlu1 %2584  ;;  %8451 = vmatprep.mubr.msk.bf16.mxu0 %vm499_vm1, %v10833_v54  ;;  %8461 = vmatprep.mubr.msk.bf16.mxu1 %vm499_vm1, %v10833_v54  ;;  %v2629_v28 = vsel %vm1043_vm3, %v2613_v2, %v2621_v17 }
 0x3cf   : > { %3419 = vmatmul.mubr.bf16.gmra.mrb[108].mxu0 %v10840_v31  ;;  %3540 = vmatmul.mubr.bf16.gmra.mrb[124].mxu1 %v10840_v31  ;;  %v2457_v15 = vpop.permute.xlu0 %2456  ;;  %v2614_v51 = vrot.slane %v2585_v23, 1 }
 0x3d0   : > { %v2872_v55 = vsel %vm2840_vm4, %v2824_v33, %v2856_v13  ;;  %v2538_v40 = vadd.f32 %v2522_v47, %v10631_v27  ;;  %v2486_v53 = vrot.slane %v2457_v15, 7 }
 0x3d1   : > { %v2900_v41 = vpack.c.bf16 %v9677_v20, %v2872_v55 }
 0x3d2   : > { %v2459_v10 = vpop.permute.xlu1 %2458  ;;  %v2650_v43 = vadd.f32 %v2629_v28, %v2538_v40 }
 0x3d3   : > { %2908 = vst.msk [vmem:[#allocation2 + $0x80] sm:$0xff] %vm499_vm1, %v2900_v41  ;;  %v2494_v27 = vrot.slane %v2459_v10, 7  ;;  %v2741_v6 = vpop.permute.xlu0 %2740  ;;  %v2924_v41 = vld [vmem:[#allocation2 + $0x90] sm:$0xff] }
 0x3d4   : > { %v2698_v46 = vadd.f32 %v10663_v35, %v2650_v43 }
 0x3d5   : > { %v2510_v8 = vsel %vm914_vm2, %v2494_v27, %v2486_v53 }
 0x3d6   : > { %v2524_v21 = vadd.f32 %v2510_v8, %v2412_v63  ;;  %v2778_v62 = vadd.f32 %v2741_v6, %v2698_v46  ;;  %v2333_v12 = vpop.permute.xlu1 %2332  ;;  %v10872_v63 = vld [vmem:[#allocation2 + $0x78] sm:$0xff]  ;;  %v2926_v46 = vld [vmem:[#allocation2 + $0xa8] sm:$0xff] }
 0x3d7   : > { %v2366_v30 = vadd.f32 %v2333_v12, %v2286_v36  ;;  %v2587_v38 = vpop.permute.xlu0 %2586  ;;  %v3507_v36 = vpop.f32.mrb[108].mxu1 }
 0x3d8   : > { %v2826_v52 = vadd.f32 %v10723_v4, %v2778_v62  ;;  %v2622_v56 = vrot.slane %v2587_v38, 1  ;;  %v2540_v32 = vadd.f32 %v2524_v21, %v10650_v24  ;;  %v2931_v38 = vld [vmem:[#allocation2 + $0xe0] sm:$0xff] }
 0x3d9   : > { %v2414_v5 = vadd.f32 %v10667_v60, %v2366_v30 }
 0x3da   : > { %vm2842_vm5 = vcmp.ge.f32.partialorder %v2826_v52, 0.0  ;;  %v2858_v35 = vmul.f32 0.2, %v2826_v52  ;;  %v2630_v45 = vsel %vm1043_vm3, %v2614_v51, %v2622_v56  ;;  %v2463_v26 = vpop.permute.xlu1 %2462  ;;  %v10866_v61 = vld [vmem:[#allocation2 + $0x80] sm:$0xff] }
 0x3db   : > { %v2495_v14 = vrot.slane %v2463_v26, 7  ;;  %8452 = vmatprep.mubr.msk.bf16.mxu0 %vm499_vm1, %v10866_v61  ;;  %8462 = vmatprep.mubr.msk.bf16.mxu1 %vm499_vm1, %v10866_v61  ;;  %v2461_v4 = vpop.permute.xlu0 %2460  ;;  %v2652_v24 = vadd.f32 %v2630_v45, %v2540_v32  ;;  %v2928_v51 = vld [vmem:[#allocation2 + $0xc0] sm:$0xff] }
 0x3dc   : > { %v2874_v60 = vsel %vm2842_vm5, %v2826_v52, %v2858_v35  ;;  %v2487_v33 = vrot.slane %v2461_v4, 7  ;;  %3429 = vmatmul.mubr.bf16.gmra.mrb[112].mxu0 %v10872_v63  ;;  %3550 = vmatmul.mubr.bf16.gmra.mrb[128].mxu1 %v10872_v63  ;;  %v9550_v35 = vld [vmem:[#allocation2] sm:$0xff]  ;;  %v9314_v4 = vld [vmem:[%s12722_s4 + $0xf4] ss:$20 sps:$4 sm:$0xff]  }
 0x3dd   : > { %v2901_v16 = vpack.c.bf16 %v9677_v20, %v2874_v60  ;;  %v2700_v17 = vadd.f32 %v10678_v1, %v2652_v24  ;;  %v9308_v45 = vld [vmem:[%s12722_s4 + $0xa4] ss:$20 sps:$4 sm:$0xff]   ;;  %v9311_v26 = vld [vmem:[%s12722_s4 + $0xcc] ss:$20 sps:$4 sm:$0xff]  }
 0x3de   : > { %v2511_v29 = vsel %vm914_vm2, %v2495_v14, %v2487_v33  ;;  %v2589_v23 = vpop.permute.xlu1 %2588  ;;  %v9312_v14 = vld [vmem:[%s12722_s4 + $0xf0] ss:$20 sps:$4 sm:$0xff]   ;;  %v9315_v24 = vld [vmem:[%s12722_s4 + $0x118] ss:$20 sps:$4 sm:$0xff]   ;;  %v9318_v33 = vld [vmem:[%s12722_s4 + $0x140] ss:$20 sps:$4 sm:$0xff]  }
 0x3df   : > { %2909 = vst.msk [vmem:[#allocation2 + $0x98] sm:$0xff] %vm499_vm1, %v2901_v16  ;;  %v2526_v25 = vadd.f32 %v2511_v29, %v2414_v5  ;;  %v2745_v13 = vpop.permute.xlu0 %2744  ;;  %v2615_v59 = vrot.slane %v2589_v23, 1  ;;  %v2930_v5 = vld [vmem:[#allocation2 + $0xd8] sm:$0xff]  ;;  %v9323_v16 = vld [vmem:[%s12722_s4 + $0x16c] ss:$20 sps:$4 sm:$0xff]  }
 0x3e0   : > { %v2780_v47 = vadd.f32 %v2745_v13, %v2700_v17  ;;  %v9320_v60 = vld [vmem:[%s12722_s4 + $0x144] ss:$20 sps:$4 sm:$0xff]   ;;  %v9321_v17 = vld [vmem:[%s12722_s4 + $0x168] ss:$20 sps:$4 sm:$0xff]  }
 0x3e1   : > { %v2542_v9 = vadd.f32 %v2526_v25, %v10670_v44  ;;  %v9326_v29 = vld [vmem:[%s12722_s4 + $0x194] ss:$20 sps:$4 sm:$0xff]   ;;  %v9324_v25 = vld [vmem:[%s12722_s4 + $0x190] ss:$20 sps:$4 sm:$0xff]  }
 0x3e2   : > { %v2828_v2 = vadd.f32 %v10746_v11, %v2780_v47  ;;  %v2749_v11 = vpop.permute.xlu1 %2748 }
 0x3e3   : > { %v2591_v15 = vpop.permute.xlu0 %2590 }
 0x3e4   : > { %vm2844_vm6 = vcmp.ge.f32.partialorder %v2828_v2, 0.0  ;;  %v2860_v3 = vmul.f32 0.2, %v2828_v2  ;;  %v2623_v58 = vrot.slane %v2591_v15, 1 }
 0x3e6   : > { %v2876_v55 = vsel %vm2844_vm6, %v2828_v2, %v2860_v3  ;;  %v2631_v1 = vsel %vm1043_vm3, %v2615_v59, %v2623_v58  ;;  %v2925_v40 = vld [vmem:[#allocation2 + $0x98] sm:$0xff] }
 0x3e7   : > { %v2902_v34 = vpack.c.bf16 %v9677_v20, %v2876_v55  ;;  %8453 = vmatprep.mubr.msk.bf16.mxu0 %vm499_vm1, %v2925_v40  ;;  %8463 = vmatprep.mubr.msk.bf16.mxu1 %vm499_vm1, %v2925_v40  ;;  %v2654_v44 = vadd.f32 %v2631_v1, %v2542_v9  ;;  %v9329_v2 = vld [vmem:[%s12722_s4 + $0x1bc] ss:$20 sps:$4 sm:$0xff]   ;;  %v9327_v3 = vld [vmem:[%s12722_s4 + $0x1b8] ss:$20 sps:$4 sm:$0xff]  }
 0x3e8   : > { %3439 = vmatmul.mubr.bf16.gmra.mrb[116].mxu0 %v2924_v41  ;;  %3560 = vmatmul.mubr.bf16.gmra.mrb[132].mxu1 %v2924_v41 }
 0x3e9   : > { %2910 = vst.msk [vmem:[#allocation2 + $0xb0] sm:$0xff] %vm499_vm1, %v2902_v34  ;;  %v2702_v28 = vadd.f32 %v10689_v18, %v2654_v44  ;;  %v3508_v18 = vpop.f32.mrb[109].mxu1  ;;  %v3780_v52 = vpop.permute.xlu0 %3779 }
 0x3ea   : > { %v3509_v21 = vpop.f32.mrb[110].mxu1 }
 0x3eb   : > { %v2782_v10 = vadd.f32 %v2749_v11, %v2702_v28  ;;  %v3510_v62 = vpop.f32.mrb[111].mxu1  ;;  %v9332_v11 = vld [vmem:[%s12722_s4 + $0x1e4] ss:$20 sps:$4 sm:$0xff]   ;;  %v9338_v21 = vld [vmem:[%s12722_s4 + $0x234] ss:$20 sps:$4 sm:$0xff]  }
 0x3ed   : > { %v2830_v43 = vadd.f32 %v10738_v42, %v2782_v10  ;;  %v10898_v42 = vld [vmem:[%s12724_s6 + $0x2] ss:$0 sm:$0xff] }
 0x3ee   : > { %v3747_v12 = vadd.f32 %v10898_v42, %v10850_v37  ;;  %v9549_v37 = vld [vmem:[#allocation2 + $0x8] sm:$0xff]  ;;  %v9330_v10 = vld [vmem:[%s12722_s4 + $0x1e0] ss:$20 sps:$4 sm:$0xff]  }
 0x3ef   : > { %vm2846_vm7 = vcmp.ge.f32.partialorder %v2830_v43, 0.0  ;;  %v2862_v53 = vmul.f32 0.2, %v2830_v43 }
 0x3f0   : > { %v2927_v27 = vld [vmem:[#allocation2 + $0xb0] sm:$0xff]  ;;  %v3827_v56 = vadd.f32 %v3780_v52, %v3747_v12 }
 0x3f1   : > { %v2878_v6 = vsel %vm2846_vm7, %v2830_v43, %v2862_v53  ;;  %8454 = vmatprep.mubr.msk.bf16.mxu0 %vm499_vm1, %v2927_v27  ;;  %8464 = vmatprep.mubr.msk.bf16.mxu1 %vm499_vm1, %v2927_v27  ;;  %v9335_v43 = vld [vmem:[%s12722_s4 + $0x20c] ss:$20 sps:$4 sm:$0xff]   ;;  %v9333_v53 = vld [vmem:[%s12722_s4 + $0x208] ss:$20 sps:$4 sm:$0xff]  }
 0x3f2   : > { %v2903_v8 = vpack.c.bf16 %v9677_v20, %v2878_v6  ;;  %3449 = vmatmul.mubr.bf16.gmra.mrb[120].mxu0 %v2926_v46  ;;  %3570 = vmatmul.mubr.bf16.gmra.mrb[136].mxu1 %v2926_v46  ;;  %v10907_v32 = vadd.f32 %v10854_v39, %v3827_v56  ;;  %v9306_v39 = vld [vmem:[%s12722_s4 + $0xa0] ss:$20 sps:$4 sm:$0xff]  }
 0x3f4   : > { %2911 = vst.msk [vmem:[#allocation2 + $0xc8] sm:$0xff] %vm499_vm1, %v2903_v8 }
 0x3fb   : > { %v2929_v30 = vld [vmem:[#allocation2 + $0xc8] sm:$0xff] }
 0x3fc   : > { %8455 = vmatprep.mubr.msk.bf16.mxu0 %vm499_vm1, %v2929_v30  ;;  %8465 = vmatprep.mubr.msk.bf16.mxu1 %vm499_vm1, %v2929_v30 }
 0x3fd   : > { %3459 = vmatmul.mubr.bf16.gmra.mrb[124].mxu0 %v2928_v51  ;;  %3580 = vmatmul.mubr.bf16.gmra.mrb[140].mxu1 %v2928_v51 }
 0x3fe   : > { %8456 = vmatprep.mubr.msk.bf16.mxu0 %vm499_vm1, %v2931_v38  ;;  %8466 = vmatprep.mubr.msk.bf16.mxu1 %vm499_vm1, %v2931_v38 }
 0x405   : > { %3467 = vmatmul.mubr.bf16.gmra.mrb[128].mxu0 %v2930_v5  ;;  %3590 = vmatmul.mubr.bf16.gmra.mrb[144].mxu1 %v2930_v5 }
 0x406   : > { %8467 = vmatprep.mubr.msk.bf16.mxu0 %vm499_vm1, %v9549_v37 }
 0x40d   : > { %3631 = vmatmul.mubr.bf16.vlgmr.msra.gmra.mrb[132].mxu0 %v9550_v35 }
 0x40e   : > { %8468 = vmatprep.mubr.msk.bf16.mxu0 %vm499_vm1, %v10765_v50  ;;  %v9296_v50 = vld [vmem:[%s12722_s4 + $0x4] ss:$20 sps:$4 sm:$0xff]  }
 0x40f   : > { %4951 = vmatprep.subr.bf16.mxu1 %v9296_v50 }
 0x415   : > { %3637 = vmatmul.mubr.bf16.gmra.mrb[136].mxu0 %v10771_v57  ;;  %v9294_v57 = vld [vmem:[%s12722_s4] ss:$20 sps:$4 sm:$0xff]  }
 0x416   : > { %8469 = vmatprep.mubr.msk.bf16.mxu0 %vm499_vm1, %v10787_v19  ;;  %4952 = vmatpush1.bf16.msra.mxu1 %v9294_v57  ;;  %v9299_v19 = vld [vmem:[%s12722_s4 + $0x2c] ss:$20 sps:$4 sm:$0xff]  }
 0x417   : > { %4953 = vmatprep.subr.bf16.mxu1 %v9299_v19  ;;  %v9341_v19 = vld [vmem:[%s12722_s4 + $0x25c] ss:$20 sps:$4 sm:$0xff]  }
 0x41d   : > { %3643 = vmatmul.mubr.bf16.gmra.mrb[140].mxu0 %v10793_v22  ;;  %v9297_v22 = vld [vmem:[%s12722_s4 + $0x28] ss:$20 sps:$4 sm:$0xff]  }
 0x41e   : > { %8470 = vmatprep.mubr.msk.bf16.mxu0 %vm499_vm1, %v10809_v49  ;;  %4954 = vmatpush1.bf16.msra.mxu1 %v9297_v22  ;;  %v9302_v49 = vld [vmem:[%s12722_s4 + $0x54] ss:$20 sps:$4 sm:$0xff]   ;;  %v9339_v22 = vld [vmem:[%s12722_s4 + $0x258] ss:$20 sps:$4 sm:$0xff]  }
 0x41f   : > { %4955 = vmatprep.subr.bf16.mxu1 %v9302_v49  ;;  %v4420_v49 = vld [vmem:[#allocation2 + $0x8] sm:$0xff] }
 0x420   : > { %4983 = vmatprep.mubr.bf16.mxu1 %v4420_v49 }
 0x425   : > { %3651 = vmatmul.mubr.bf16.gmra.mrb[144].mxu0 %v10815_v7  ;;  %v9300_v7 = vld [vmem:[%s12722_s4 + $0x50] ss:$20 sps:$4 sm:$0xff]  }
 0x426   : > { %8471 = vmatprep.mubr.msk.bf16.mxu0 %vm499_vm1, %v10833_v54  ;;  %v9305_v54 = vld [vmem:[%s12722_s4 + $0x7c] ss:$20 sps:$4 sm:$0xff]   ;;  %4956 = vmatpush1.bf16.msra.mxu1 %v9300_v7  ;;  %v11062_v7 = vld [vmem:[#allocation2] sm:$0xff] }
 0x427   : > { %4957 = vmatprep.subr.bf16.mxu1 %v9305_v54 }
 0x42d   : > { %3659 = vmatmul.mubr.bf16.gmra.mrb[148].mxu0 %v10840_v31  ;;  %v9303_v31 = vld [vmem:[%s12722_s4 + $0x78] ss:$20 sps:$4 sm:$0xff]  }
 0x42e   : > { %8472 = vmatprep.mubr.msk.bf16.mxu0 %vm499_vm1, %v10866_v61  ;;  %4958 = vmatpush1.bf16.msra.mxu1 %v9303_v31  ;;  %v9309_v61 = vld [vmem:[%s12722_s4 + $0xc8] ss:$20 sps:$4 sm:$0xff]  }
 0x42f   : > { %4959 = vmatprep.subr.bf16.mxu1 %v9308_v45 }
 0x432   : > { %4960 = vmatpush1.bf16.msra.mxu1 %v9306_v39 }
 0x433   : > { %4961 = vmatprep.subr.bf16.mxu1 %v9311_v26 }
 0x435   : > { %3667 = vmatmul.mubr.bf16.gmra.mrb[152].mxu0 %v10872_v63  ;;  %v9317_v63 = vld [vmem:[%s12722_s4 + $0x11c] ss:$20 sps:$4 sm:$0xff]  }
 0x436   : > { %8473 = vmatprep.mubr.msk.bf16.mxu0 %vm499_vm1, %v2925_v40  ;;  %4962 = vmatpush1.bf16.msra.mxu1 %v9309_v61 }
 0x437   : > { %4963 = vmatprep.subr.bf16.mxu1 %v9314_v4 }
 0x43a   : > { %4964 = vmatpush1.bf16.msra.mxu1 %v9312_v14 }
 0x43b   : > { %4965 = vmatprep.subr.bf16.mxu1 %v9317_v63 }
 0x43d   : > { %3675 = vmatmul.mubr.bf16.gmra.mrb[156].mxu0 %v2924_v41 }
 0x43e   : > { %8474 = vmatprep.mubr.msk.bf16.mxu0 %vm499_vm1, %v2927_v27  ;;  %4966 = vmatpush1.bf16.msra.mxu1 %v9315_v24 }
 0x43f   : > { %4967 = vmatprep.subr.bf16.mxu1 %v9320_v60 }
 0x442   : > { %4968 = vmatpush1.bf16.msra.mxu1 %v9318_v33 }
 0x443   : > { %4969 = vmatprep.subr.bf16.mxu1 %v9323_v16 }
 0x445   : > { %3683 = vmatmul.mubr.bf16.gmra.mrb[160].mxu0 %v2926_v46 }
 0x446   : > { %8475 = vmatprep.mubr.msk.bf16.mxu0 %vm499_vm1, %v2929_v30  ;;  %4970 = vmatpush1.bf16.msra.mxu1 %v9321_v17 }
 0x447   : > { %4971 = vmatprep.subr.bf16.mxu1 %v9326_v29 }
 0x44a   : > { %4972 = vmatpush1.bf16.msra.mxu1 %v9324_v25 }
 0x44b   : > { %4973 = vmatprep.subr.bf16.mxu1 %v9329_v2 }
 0x44d   : > { %3691 = vmatmul.mubr.bf16.gmra.mrb[164].mxu0 %v2928_v51  ;;  %v9336_v51 = vld [vmem:[%s12722_s4 + $0x230] ss:$20 sps:$4 sm:$0xff]  }
 0x44e   : > { %8476 = vmatprep.mubr.msk.bf16.mxu0 %vm499_vm1, %v2931_v38  ;;  %4974 = vmatpush1.bf16.msra.mxu1 %v9327_v3 }
 0x44f   : > { %4975 = vmatprep.subr.bf16.mxu1 %v9332_v11 }
 0x452   : > { %4976 = vmatpush1.bf16.msra.mxu1 %v9330_v10 }
 0x453   : > { %4977 = vmatprep.subr.bf16.mxu1 %v9335_v43 }
 0x455   : > { %3699 = vmatmul.mubr.bf16.gmra.mrb[168].mxu0 %v2930_v5 }
 0x456   : > { %4978 = vmatpush1.bf16.msra.mxu1 %v9333_v53  ;;  %5110 = vmatprep.mubr.bf16.mxu0 %v4420_v49 }
 0x457   : > { %4979 = vmatprep.subr.bf16.mxu1 %v9338_v21 }
 0x45a   : > { %4980 = vmatpush1.bf16.msra.mxu1 %v9336_v51 }
 0x45b   : > { %4981 = vmatprep.subr.bf16.mxu1 %v9341_v19 }
 0x45e   : > { %4982 = vmatpush1.bf16.msra.mxu1 %v9339_v22 }
 0x461   : > { %4984 = vmatmul.mubr.bf16.vlgmr.msra.gmra.mrb[148].mxu1 %v11062_v7 }
 0x47c   : > { %v3390_v13 = vpop.f32.mrb[96].mxu0  ;;  %v10995_v47 = vpop.f32.mrb[112].mxu1 }
 0x47d   : > { %4035 = vrot.lane.b32.xlu1 %v10995_v47, %s9676_s18  ;;  %v3392_v23 = vpop.f32.mrb[97].mxu0  ;;  %v3515_v9 = vpop.f32.mrb[113].mxu1  ;;  %v3716_v58 = vrot.slane %v3390_v13, 7 }
 0x47e   : > { %v3394_v15 = vpop.f32.mrb[98].mxu0  ;;  %v3516_v59 = vpop.f32.mrb[114].mxu1  ;;  %v3844_v34 = vrot.slane %v3392_v23, 1 }
 0x47f   : > { %v3724_v55 = vrot.slane %v3394_v15, 7  ;;  %4037 = vrot.lane.b32.xlu0 %v3516_v59, %s9676_s18  ;;  %v3396_v1 = vpop.f32.mrb[99].mxu0  ;;  %v3518_v40 = vpop.f32.mrb[115].mxu1 }
 0x480   : > { %v3852_v41 = vrot.slane %v3396_v1, 1 }
 0x481   : > { %3783 = vrot.lane.b32.xlu1 %v3390_v13, %s9676_s18  ;;  %v11009_v44 = vsel %vm914_vm2, %v3724_v55, %v3716_v58 }
 0x482   : > { %v11016_v28 = vsel %vm1043_vm3, %v3844_v34, %v3852_v41 }
 0x483   : > { %3909 = vrot.lane.b32.xlu0 %v3396_v1, %s9676_s18 }
 0x485   : > { %3907 = vrot.lane.b32.xlu1 %v3392_v23, %s9676_s18 }
 0x48a   : > { %v3400_v27 = vpop.f32.mrb[100].mxu0  ;;  %v11029_v6 = vpop.f32.mrb[116].mxu1 }
 0x48b   : > { %4039 = vrot.lane.b32.xlu1 %v11029_v6, %s9676_s18  ;;  %v3402_v46 = vpop.f32.mrb[101].mxu0  ;;  %v3523_v8 = vpop.f32.mrb[117].mxu1  ;;  %v3717_v62 = vrot.slane %v3400_v27, 7 }
 0x48c   : > { %v3525_v36 = vpop.f32.mrb[118].mxu1  ;;  %3911 = vrot.lane.b32.xlu0 %v3402_v46, %s9676_s18  ;;  %v3404_v18 = vpop.f32.mrb[102].mxu0  ;;  %v3845_v52 = vrot.slane %v3402_v46, 1  ;;  %v4131_v56 = vrot.slane %v3523_v8, 7 }
 0x48d   : > { %v3725_v12 = vrot.slane %v3404_v18, 7  ;;  %v3406_v30 = vpop.f32.mrb[103].mxu0  ;;  %v3527_v38 = vpop.f32.mrb[119].mxu1 }
 0x48e   : > { %v3853_v5 = vrot.slane %v3406_v30, 1  ;;  %v4139_v37 = vrot.slane %v3527_v38, 7 }
 0x48f   : > { %3787 = vrot.lane.b32.xlu1 %v3400_v27, %s9676_s18  ;;  %v11043_v35 = vsel %vm914_vm2, %v3725_v12, %v3717_v62 }
 0x490   : > { %4195 = vrot.lane.b32.xlu0 %v3523_v8, %s9676_s18  ;;  %v11048_v50 = vsel %vm1043_vm3, %v3845_v52, %v3853_v5  ;;  %v11052_v57 = vsel %vm914_vm2, %v4139_v37, %v4131_v56 }
 0x493   : > { %3913 = vrot.lane.b32.xlu1 %v3406_v30, %s9676_s18 }
 0x494   : > { %4041 = vrot.lane.b32.xlu0 %v3525_v36, %s9676_s18 }
 0x496   : > { %v3410_v54 = vpop.f32.mrb[104].mxu0  ;;  %v11064_v31 = vpop.f32.mrb[120].mxu1 }
 0x497   : > { %4043 = vrot.lane.b32.xlu1 %v11064_v31, %s9676_s18  ;;  %v3412_v39 = vpop.f32.mrb[105].mxu0  ;;  %v3533_v45 = vpop.f32.mrb[121].mxu1  ;;  %v3718_v14 = vrot.slane %v3410_v54, 7 }
 0x498   : > { %v3535_v26 = vpop.f32.mrb[122].mxu1  ;;  %3915 = vrot.lane.b32.xlu0 %v3412_v39, %s9676_s18  ;;  %v3414_v61 = vpop.f32.mrb[106].mxu0  ;;  %v3846_v60 = vrot.slane %v3412_v39, 1  ;;  %v4132_v33 = vrot.slane %v3533_v45, 7 }
 0x499   : > { %v3726_v4 = vrot.slane %v3414_v61, 7  ;;  %v3416_v63 = vpop.f32.mrb[107].mxu0  ;;  %v3537_v24 = vpop.f32.mrb[123].mxu1  ;;  %v9342_v61 = vld [vmem:[%s12722_s4 + $0x8] ss:$20 sps:$4 sm:$0xff]  }
 0x49a   : > { %v3854_v16 = vrot.slane %v3416_v63, 1  ;;  %v4140_v17 = vrot.slane %v3537_v24, 7 }
 0x49b   : > { %3791 = vrot.lane.b32.xlu1 %v3410_v54, %s9676_s18  ;;  %v11073_v29 = vsel %vm914_vm2, %v3726_v4, %v3718_v14 }
 0x49c   : > { %4199 = vrot.lane.b32.xlu0 %v3533_v45, %s9676_s18  ;;  %v11078_v25 = vsel %vm1043_vm3, %v3846_v60, %v3854_v16  ;;  %v11082_v13 = vsel %vm914_vm2, %v4140_v17, %v4132_v33 }
 0x49f   : > { %3917 = vrot.lane.b32.xlu1 %v3416_v63, %s9676_s18  ;;  %v9344_v63 = vld [vmem:[%s12722_s4 + $0xc] ss:$20 sps:$4 sm:$0xff]  }
 0x4a0   : > { %4045 = vrot.lane.b32.xlu0 %v3535_v26, %s9676_s18  ;;  %5078 = vmatprep.subr.bf16.mxu0 %v9344_v63 }
 0x4a1   : > { %5079 = vmatpush1.bf16.msra.mxu0 %v9342_v61  ;;  %v9356_v61 = vld [vmem:[%s12722_s4 + $0xac] ss:$20 sps:$4 sm:$0xff]  }
 0x4a2   : > { %v3420_v23 = vpop.f32.mrb[108].mxu0  ;;  %v11086_v9 = vpop.f32.mrb[124].mxu1 }
 0x4a3   : > { %4047 = vrot.lane.b32.xlu1 %v11086_v9, %s9676_s18  ;;  %v3422_v2 = vpop.f32.mrb[109].mxu0  ;;  %v3543_v15 = vpop.f32.mrb[125].mxu1  ;;  %v3719_v58 = vrot.slane %v3420_v23, 7 }
 0x4a4   : > { %v3545_v59 = vpop.f32.mrb[126].mxu1  ;;  %3919 = vrot.lane.b32.xlu0 %v3422_v2, %s9676_s18  ;;  %v3424_v3 = vpop.f32.mrb[110].mxu0  ;;  %v3847_v34 = vrot.slane %v3422_v2, 1  ;;  %v4133_v41 = vrot.slane %v3543_v15, 7 }
 0x4a5   : > { %v3727_v55 = vrot.slane %v3424_v3, 7  ;;  %v3426_v1 = vpop.f32.mrb[111].mxu0  ;;  %v3547_v40 = vpop.f32.mrb[127].mxu1 }
 0x4a6   : > { %v3855_v11 = vrot.slane %v3426_v1, 1  ;;  %v4141_v10 = vrot.slane %v3547_v40, 7  ;;  %v9350_v40 = vld [vmem:[%s12722_s4 + $0x5c] ss:$20 sps:$4 sm:$0xff]  }
 0x4a7   : > { %3795 = vrot.lane.b32.xlu1 %v3420_v23, %s9676_s18  ;;  %v11094_v43 = vsel %vm914_vm2, %v3727_v55, %v3719_v58  ;;  %v9345_v58 = vld [vmem:[%s12722_s4 + $0x30] ss:$20 sps:$4 sm:$0xff]  }
 0x4a8   : > { %4203 = vrot.lane.b32.xlu0 %v3543_v15, %s9676_s18  ;;  %v11099_v53 = vsel %vm1043_vm3, %v3847_v34, %v3855_v11  ;;  %v11103_v27 = vsel %vm914_vm2, %v4141_v10, %v4133_v41  ;;  %v9348_v34 = vld [vmem:[%s12722_s4 + $0x58] ss:$20 sps:$4 sm:$0xff]  }
 0x4ab   : > { %3921 = vrot.lane.b32.xlu1 %v3426_v1, %s9676_s18 }
 0x4ac   : > { %4049 = vrot.lane.b32.xlu0 %v3545_v59, %s9676_s18  ;;  %v9347_v59 = vld [vmem:[%s12722_s4 + $0x34] ss:$20 sps:$4 sm:$0xff]  }
 0x4ad   : > { %5080 = vmatprep.subr.bf16.mxu0 %v9347_v59 }
 0x4ae   : > { %5081 = vmatpush1.bf16.msra.mxu0 %v9345_v58 }
 0x4af   : > { %v3430_v46 = vpop.f32.mrb[112].mxu0  ;;  %v11107_v8 = vpop.f32.mrb[128].mxu1  ;;  %5082 = vmatprep.subr.bf16.mxu0 %v9350_v40  ;;  %v9362_v40 = vld [vmem:[%s12722_s4 + $0xfc] ss:$20 sps:$4 sm:$0xff]  }
 0x4b0   : > { %4051 = vrot.lane.b32.xlu1 %v11107_v8, %s9676_s18  ;;  %v3432_v36 = vpop.f32.mrb[113].mxu0  ;;  %v3553_v18 = vpop.f32.mrb[129].mxu1  ;;  %v3720_v12 = vrot.slane %v3430_v46, 7 }
 0x4b1   : > { %v3555_v21 = vpop.f32.mrb[130].mxu1  ;;  %3923 = vrot.lane.b32.xlu0 %v3432_v36, %s9676_s18  ;;  %v3434_v62 = vpop.f32.mrb[114].mxu0  ;;  %v3848_v52 = vrot.slane %v3432_v36, 1  ;;  %v4134_v56 = vrot.slane %v3553_v18, 7 }
 0x4b2   : > { %v3728_v30 = vrot.slane %v3434_v62, 7  ;;  %v3436_v38 = vpop.f32.mrb[115].mxu0  ;;  %v3557_v51 = vpop.f32.mrb[131].mxu1  ;;  %5083 = vmatpush1.bf16.msra.mxu0 %v9348_v34 }
 0x4b3   : > { %v3856_v5 = vrot.slane %v3436_v38, 1  ;;  %v4142_v37 = vrot.slane %v3557_v51, 7 }
 0x4b4   : > { %3799 = vrot.lane.b32.xlu1 %v3430_v46, %s9676_s18  ;;  %v11115_v19 = vsel %vm914_vm2, %v3728_v30, %v3720_v12 }
 0x4b5   : > { %4207 = vrot.lane.b32.xlu0 %v3553_v18, %s9676_s18  ;;  %v11120_v22 = vsel %vm1043_vm3, %v3848_v52, %v3856_v5  ;;  %v11124_v49 = vsel %vm914_vm2, %v4142_v37, %v4134_v56  ;;  %v9353_v37 = vld [vmem:[%s12722_s4 + $0x84] ss:$20 sps:$4 sm:$0xff]  }
 0x4b6   : > { %5084 = vmatprep.subr.bf16.mxu0 %v9353_v37 }
 0x4b8   : > { %3925 = vrot.lane.b32.xlu1 %v3436_v38, %s9676_s18  ;;  %v9351_v38 = vld [vmem:[%s12722_s4 + $0x80] ss:$20 sps:$4 sm:$0xff]  }
 0x4b9   : > { %4053 = vrot.lane.b32.xlu0 %v3555_v21, %s9676_s18  ;;  %5085 = vmatpush1.bf16.msra.mxu0 %v9351_v38 }
 0x4ba   : > { %5086 = vmatprep.subr.bf16.mxu0 %v9356_v61  ;;  %v9366_v61 = vld [vmem:[%s12722_s4 + $0x148] ss:$20 sps:$4 sm:$0xff]  }
 0x4bb   : > { %v3440_v54 = vpop.f32.mrb[116].mxu0  ;;  %v11128_v39 = vpop.f32.mrb[132].mxu1 }
 0x4bc   : > { %4055 = vrot.lane.b32.xlu1 %v11128_v39, %s9676_s18  ;;  %v3442_v45 = vpop.f32.mrb[117].mxu0  ;;  %v3563_v26 = vpop.f32.mrb[133].mxu1  ;;  %v3721_v24 = vrot.slane %v3440_v54, 7 }
 0x4bd   : > { %v3565_v14 = vpop.f32.mrb[134].mxu1  ;;  %3927 = vrot.lane.b32.xlu0 %v3442_v45, %s9676_s18  ;;  %v3444_v4 = vpop.f32.mrb[118].mxu0  ;;  %v3849_v17 = vrot.slane %v3442_v45, 1  ;;  %v4135_v23 = vrot.slane %v3563_v26, 7 }
 0x4be   : > { %v3729_v60 = vrot.slane %v3444_v4, 7  ;;  %v3446_v33 = vpop.f32.mrb[119].mxu0  ;;  %v3567_v16 = vpop.f32.mrb[135].mxu1 }
 0x4bf   : > { %v3857_v2 = vrot.slane %v3446_v33, 1  ;;  %v4143_v15 = vrot.slane %v3567_v16, 7 }
 0x4c0   : > { %3803 = vrot.lane.b32.xlu1 %v3440_v54, %s9676_s18  ;;  %v11145_v3 = vsel %vm914_vm2, %v3729_v60, %v3721_v24 }
 0x4c1   : > { %4211 = vrot.lane.b32.xlu0 %v3563_v26, %s9676_s18  ;;  %v11153_v55 = vsel %vm1043_vm3, %v3849_v17, %v3857_v2  ;;  %v11157_v1 = vsel %vm914_vm2, %v4143_v15, %v4135_v23  ;;  %v9357_v17 = vld [vmem:[%s12722_s4 + $0xd0] ss:$20 sps:$4 sm:$0xff]   ;;  %v9359_v15 = vld [vmem:[%s12722_s4 + $0xd4] ss:$20 sps:$4 sm:$0xff]  }
 0x4c4   : > { %3929 = vrot.lane.b32.xlu1 %v3446_v33, %s9676_s18 }
 0x4c5   : > { %4057 = vrot.lane.b32.xlu0 %v3565_v14, %s9676_s18  ;;  %v3450_v41 = vpop.f32.mrb[120].mxu0  ;;  %v11167_v11 = vpop.f32.mrb[136].mxu1  ;;  %v9354_v14 = vld [vmem:[%s12722_s4 + $0xa8] ss:$20 sps:$4 sm:$0xff]  }
 0x4c6   : > { %v3452_v10 = vpop.f32.mrb[121].mxu0  ;;  %v3573_v46 = vpop.f32.mrb[137].mxu1  ;;  %v3722_v21 = vrot.slane %v3450_v41, 7  ;;  %5087 = vmatpush1.bf16.msra.mxu0 %v9354_v14 }
 0x4c7   : > { %v3454_v36 = vpop.f32.mrb[122].mxu0  ;;  %v3575_v18 = vpop.f32.mrb[138].mxu1  ;;  %v3850_v51 = vrot.slane %v3452_v10, 1  ;;  %v4136_v52 = vrot.slane %v3573_v46, 7  ;;  %5088 = vmatprep.subr.bf16.mxu0 %v9359_v15  ;;  %v9377_v15 = vld [vmem:[%s12722_s4 + $0x1c4] ss:$20 sps:$4 sm:$0xff]  }
 0x4c8   : > { %v3730_v62 = vrot.slane %v3454_v36, 7  ;;  %4059 = vrot.lane.b32.xlu1 %v11167_v11, %s9676_s18  ;;  %v3456_v12 = vpop.f32.mrb[123].mxu0  ;;  %v3577_v30 = vpop.f32.mrb[139].mxu1 }
 0x4c9   : > { %v3858_v56 = vrot.slane %v3456_v12, 1  ;;  %v4144_v5 = vrot.slane %v3577_v30, 7  ;;  %3931 = vrot.lane.b32.xlu0 %v3452_v10, %s9676_s18 }
 0x4ca   : > { %v11180_v54 = vsel %vm914_vm2, %v3730_v62, %v3722_v21  ;;  %5089 = vmatpush1.bf16.msra.mxu0 %v9357_v17  ;;  %v9374_v17 = vld [vmem:[%s12722_s4 + $0x19c] ss:$20 sps:$4 sm:$0xff]  }
 0x4cb   : > { %v11184_v45 = vsel %vm914_vm2, %v4144_v5, %v4136_v52  ;;  %v11188_v26 = vsel %vm1043_vm3, %v3850_v51, %v3858_v56  ;;  %5090 = vmatprep.subr.bf16.mxu0 %v9362_v40  ;;  %v9365_v52 = vld [vmem:[%s12722_s4 + $0x124] ss:$20 sps:$4 sm:$0xff]   ;;  %v9363_v56 = vld [vmem:[%s12722_s4 + $0x120] ss:$20 sps:$4 sm:$0xff]  }
 0x4cc   : > { %3933 = vrot.lane.b32.xlu1 %v3456_v12, %s9676_s18  ;;  %v9368_v5 = vld [vmem:[%s12722_s4 + $0x14c] ss:$20 sps:$4 sm:$0xff]  }
 0x4cd   : > { %4215 = vrot.lane.b32.xlu0 %v3573_v46, %s9676_s18 }
 0x4d0   : > { %3807 = vrot.lane.b32.xlu1 %v3450_v41, %s9676_s18  ;;  %v3460_v4 = vpop.f32.mrb[124].mxu0  ;;  %v11199_v63 = vpop.f32.mrb[140].mxu1  ;;  %v9360_v41 = vld [vmem:[%s12722_s4 + $0xf8] ss:$20 sps:$4 sm:$0xff]  }
 0x4d1   : > { %4061 = vrot.lane.b32.xlu0 %v3575_v18, %s9676_s18  ;;  %v3461_v24 = vpop.f32.mrb[125].mxu0  ;;  %v3583_v60 = vpop.f32.mrb[141].mxu1  ;;  %5091 = vmatpush1.bf16.msra.mxu0 %v9360_v41  ;;  %v9371_v4 = vld [vmem:[%s12722_s4 + $0x174] ss:$20 sps:$4 sm:$0xff]  }
 0x4d2   : > { %v3463_v33 = vpop.f32.mrb[126].mxu0  ;;  %v3585_v16 = vpop.f32.mrb[142].mxu1  ;;  %v4137_v59 = vrot.slane %v3583_v60, 7  ;;  %5092 = vmatprep.subr.bf16.mxu0 %v9365_v52  ;;  %v9375_v41 = vld [vmem:[%s12722_s4 + $0x1c0] ss:$20 sps:$4 sm:$0xff]  }
 0x4d3   : > { %v3464_v23 = vpop.f32.mrb[127].mxu0  ;;  %v3587_v2 = vpop.f32.mrb[143].mxu1 }
 0x4d4   : > { %v4145_v58 = vrot.slane %v3587_v2, 7  ;;  %3937 = vrot.lane.b32.xlu1 %v3464_v23, %s9676_s18  ;;  %v9372_v23 = vld [vmem:[%s12722_s4 + $0x198] ss:$20 sps:$4 sm:$0xff]  }
 0x4d5   : > { %3935 = vrot.lane.b32.xlu0 %v3461_v24, %s9676_s18  ;;  %5093 = vmatpush1.bf16.msra.mxu0 %v9363_v56  ;;  %v9381_v56 = vld [vmem:[%s12722_s4 + $0x210] ss:$20 sps:$4 sm:$0xff]  }
 0x4d6   : > { %v11215_v34 = vsel %vm914_vm2, %v4145_v58, %v4137_v59  ;;  %5094 = vmatprep.subr.bf16.mxu0 %v9368_v5  ;;  %v3749_v5 = vadd.f32 %v10898_v42, %v11009_v44  ;;  %v9389_v44 = vld [vmem:[%s12722_s4 + $0x264] ss:$20 sps:$4 sm:$0xff]  }
 0x4d8   : > { %4063 = vrot.lane.b32.xlu1 %v11199_v63, %s9676_s18  ;;  %v3468_v10 = vpop.f32.mrb[128].mxu0  ;;  %v3591_v46 = vpop.f32.mrb[144].mxu1 }
 0x4d9   : > { %4219 = vrot.lane.b32.xlu0 %v3583_v60, %s9676_s18  ;;  %v3469_v36 = vpop.f32.mrb[129].mxu0  ;;  %v3592_v18 = vpop.f32.mrb[145].mxu1  ;;  %5095 = vmatpush1.bf16.msra.mxu0 %v9366_v61  ;;  %v9380_v10 = vld [vmem:[%s12722_s4 + $0x1ec] ss:$20 sps:$4 sm:$0xff]   ;;  %v9378_v46 = vld [vmem:[%s12722_s4 + $0x1e8] ss:$20 sps:$4 sm:$0xff]  }
 0x4da   : > { %v3470_v21 = vpop.f32.mrb[130].mxu0  ;;  %v4138_v62 = vrot.slane %v3592_v18, 7  ;;  %v3594_v12 = vpop.f32.mrb[146].mxu1  ;;  %5096 = vmatprep.subr.bf16.mxu0 %v9371_v4  ;;  %v9386_v61 = vld [vmem:[%s12722_s4 + $0x23c] ss:$20 sps:$4 sm:$0xff]  }
 0x4db   : > { %v3471_v30 = vpop.f32.mrb[131].mxu0  ;;  %v3595_v38 = vpop.f32.mrb[147].mxu1 }
 0x4dc   : > { %4223 = vrot.lane.b32.xlu1 %v3592_v18, %s9676_s18  ;;  %v4146_v51 = vrot.slane %v3595_v38, 7  ;;  %v9383_v18 = vld [vmem:[%s12722_s4 + $0x214] ss:$20 sps:$4 sm:$0xff]  }
 0x4dd   : > { %4065 = vrot.lane.b32.xlu0 %v3585_v16, %s9676_s18  ;;  %v9369_v16 = vld [vmem:[%s12722_s4 + $0x170] ss:$20 sps:$4 sm:$0xff]  }
 0x4de   : > { %v11236_v37 = vsel %vm914_vm2, %v4146_v51, %v4138_v62  ;;  %5097 = vmatpush1.bf16.msra.mxu0 %v9369_v16 }
 0x4df   : > { %5098 = vmatprep.subr.bf16.mxu0 %v9374_v17 }
 0x4e0   : > { %v3632_v14 = vpop.f32.mrb[132].mxu0 }
 0x4e1   : > { %v3633_v24 = vpop.f32.mrb[133].mxu0 }
 0x4e2   : > { %v3634_v60 = vpop.f32.mrb[134].mxu0  ;;  %5099 = vmatpush1.bf16.msra.mxu0 %v9372_v23 }
 0x4e3   : > { %v3635_v33 = vpop.f32.mrb[135].mxu0  ;;  %5100 = vmatprep.subr.bf16.mxu0 %v9377_v15 }
 0x4e4   : > { %v9384_v33 = vld [vmem:[%s12722_s4 + $0x238] ss:$20 sps:$4 sm:$0xff]  }
 0x4e6   : > { %5101 = vmatpush1.bf16.msra.mxu0 %v9375_v41 }
 0x4e7   : > { %5102 = vmatprep.subr.bf16.mxu0 %v9380_v10 }
 0x4e8   : > { %v3638_v2 = vpop.f32.mrb[136].mxu0 }
 0x4e9   : > { %v3639_v59 = vpop.f32.mrb[137].mxu0 }
 0x4ea   : > { %v3640_v58 = vpop.f32.mrb[138].mxu0  ;;  %5103 = vmatpush1.bf16.msra.mxu0 %v9378_v46  ;;  %v9387_v46 = vld [vmem:[%s12722_s4 + $0x260] ss:$20 sps:$4 sm:$0xff]  }
 0x4eb   : > { %v3641_v40 = vpop.f32.mrb[139].mxu0  ;;  %5104 = vmatprep.subr.bf16.mxu0 %v9383_v18 }
 0x4ee   : > { %5105 = vmatpush1.bf16.msra.mxu0 %v9381_v56 }
 0x4ef   : > { %v4036_v21 = vpop.permute.xlu1 %4035  ;;  %5106 = vmatprep.subr.bf16.mxu0 %v9386_v61 }
 0x4f0   : > { %v3644_v36 = vpop.f32.mrb[140].mxu0 }
 0x4f1   : > { %v3646_v62 = vpop.f32.mrb[141].mxu0  ;;  %v4259_v30 = vrot.slane %v3644_v36, 1  ;;  %v4038_v52 = vpop.permute.xlu0 %4037 }
 0x4f2   : > { %v3647_v12 = vpop.f32.mrb[142].mxu0  ;;  %5107 = vmatpush1.bf16.msra.mxu0 %v9384_v33 }
 0x4f3   : > { %v4267_v38 = vrot.slane %v3647_v12, 1  ;;  %v3649_v51 = vpop.f32.mrb[143].mxu0  ;;  %v3784_v14 = vpop.permute.xlu1 %3783  ;;  %5108 = vmatprep.subr.bf16.mxu0 %v9389_v44 }
 0x4f4   : > { %v3829_v24 = vadd.f32 %v3784_v14, %v3749_v5 }
 0x4f5   : > { %v4275_v4 = vsel %vm1043_vm3, %v4259_v30, %v4267_v38  ;;  %v3910_v60 = vpop.permute.xlu0 %3909  ;;  %v4083_v30 = vrot.slane %v4036_v21, 1 }
 0x4f6   : > { %v3877_v16 = vadd.f32 %v11016_v28, %v3829_v24  ;;  %v3963_v15 = vrot.slane %v3910_v60, 7  ;;  %v4091_v28 = vrot.slane %v4038_v52, 1  ;;  %5109 = vmatpush1.bf16.msra.mxu0 %v9387_v46  ;;  %v3751_v52 = vadd.f32 %v10898_v42, %v11043_v35 }
 0x4f7   : > { %v3908_v23 = vpop.permute.xlu1 %3907 }
 0x4f8   : > { %v3652_v17 = vpop.f32.mrb[144].mxu0  ;;  %v3955_v59 = vrot.slane %v3908_v23, 7  ;;  %v4099_v56 = vsel %vm1043_vm3, %v4083_v30, %v4091_v28 }
 0x4f9   : > { %v3654_v2 = vpop.f32.mrb[145].mxu0  ;;  %v4260_v40 = vrot.slane %v3652_v17, 1  ;;  %5111 = vmatmul.mubr.bf16.vlgmr.msra.gmra.mrb[172].mxu0 %v11062_v7 }
 0x4fa   : > { %v3655_v58 = vpop.f32.mrb[146].mxu0  ;;  %v3979_v36 = vsel %vm914_vm2, %v3963_v15, %v3955_v59 }
 0x4fb   : > { %v4268_v41 = vrot.slane %v3655_v58, 1  ;;  %v3657_v10 = vpop.f32.mrb[147].mxu0  ;;  %v3987_v18 = vadd.f32 %v3979_v36, %v10907_v32 }
 0x4fd   : > { %v4040_v62 = vpop.permute.xlu1 %4039  ;;  %v4276_v12 = vsel %vm1043_vm3, %v4260_v40, %v4268_v41  ;;  %v4003_v51 = vadd.f32 %v3987_v18, %v10995_v47 }
 0x4fe   : > { %v3912_v38 = vpop.permute.xlu0 %3911  ;;  %v4084_v18 = vrot.slane %v4040_v62, 1 }
 0x4ff   : > { %v4115_v24 = vadd.f32 %v4099_v56, %v4003_v51  ;;  %v3956_v59 = vrot.slane %v3912_v38, 7 }
 0x500   : > { %v3660_v5 = vpop.f32.mrb[148].mxu0 }
 0x501   : > { %v3788_v61 = vpop.permute.xlu1 %3787  ;;  %v3662_v14 = vpop.f32.mrb[149].mxu0  ;;  %v4261_v21 = vrot.slane %v3660_v5, 1  ;;  %v4163_v47 = vadd.f32 %v11052_v57, %v4115_v24 }
 0x502   : > { %v3831_v32 = vadd.f32 %v3788_v61, %v3751_v52  ;;  %v3663_v60 = vpop.f32.mrb[150].mxu0  ;;  %v4196_v33 = vpop.permute.xlu0 %4195  ;;  %v3753_v14 = vadd.f32 %v10898_v42, %v11073_v29 }
 0x503   : > { %v4269_v17 = vrot.slane %v3663_v60, 1  ;;  %v3665_v44 = vpop.f32.mrb[151].mxu0  ;;  %v4243_v2 = vadd.f32 %v4196_v33, %v4163_v47 }
 0x504   : > { %v3879_v23 = vadd.f32 %v11048_v50, %v3831_v32 }
 0x505   : > { %v3914_v15 = vpop.permute.xlu1 %3913  ;;  %v11303_v35 = vsel %vm1043_vm3, %v4261_v21, %v4269_v17  ;;  %v4291_v41 = vadd.f32 %v4275_v4, %v4243_v2 }
 0x506   : > { %v3964_v58 = vrot.slane %v3914_v15, 7  ;;  %v4042_v40 = vpop.permute.xlu0 %4041 }
 0x507   : > { %v4092_v10 = vrot.slane %v4042_v40, 1  ;;  %vm4307_vm8 = vcmp.ge.f32.partialorder %v4291_v41, 0.0  ;;  %v4323_v57 = vmul.f32 0.2, %v4291_v41 }
 0x508   : > { %v3980_v7 = vsel %vm914_vm2, %v3964_v58, %v3956_v59  ;;  %v3668_v46 = vpop.f32.mrb[152].mxu0 }
 0x509   : > { %v3989_v28 = vadd.f32 %v3980_v7, %v3877_v16  ;;  %v4044_v36 = vpop.permute.xlu1 %4043  ;;  %v3670_v50 = vpop.f32.mrb[153].mxu0  ;;  %v4339_v56 = vsel %vm4307_vm8, %v4291_v41, %v4323_v57  ;;  %v4262_v5 = vrot.slane %v3668_v46, 1  ;;  %v4100_v4 = vsel %vm1043_vm3, %v4084_v18, %v4092_v10 }
 0x50a   : > { %v3671_v30 = vpop.f32.mrb[154].mxu0  ;;  %v3916_v51 = vpop.permute.xlu0 %3915  ;;  %v4371_v24 = vpack.c.bf16 %v9677_v20, %v4339_v56  ;;  %v4085_v50 = vrot.slane %v4044_v36, 1 }
 0x50b   : > { %v4270_v52 = vrot.slane %v3671_v30, 1  ;;  %v3673_v38 = vpop.f32.mrb[155].mxu0  ;;  %v4005_v61 = vadd.f32 %v3989_v28, %v11029_v6  ;;  %v3957_v2 = vrot.slane %v3916_v51, 7 }
 0x50c   : > { %4387 = vrot.lane.b32.xlu0 %v4371_v24, %s9676_s18 }
 0x50d   : > { %v3792_v16 = vpop.permute.xlu1 %3791  ;;  %v4117_v32 = vadd.f32 %v4100_v4, %v4005_v61  ;;  %v11315_v62 = vsel %vm1043_vm3, %v4262_v5, %v4270_v52  ;;  %v3755_v52 = vadd.f32 %v10898_v42, %v11094_v43 }
 0x50e   : > { %v3833_v60 = vadd.f32 %v3792_v16, %v3753_v14  ;;  %v4200_v33 = vpop.permute.xlu0 %4199 }
 0x50f   : > { %v4165_v6 = vadd.f32 %v11082_v13, %v4117_v32 }
 0x510   : > { %v3881_v21 = vadd.f32 %v11078_v25, %v3833_v60  ;;  %v3676_v17 = vpop.f32.mrb[156].mxu0 }
 0x511   : > { %v4245_v47 = vadd.f32 %v4200_v33, %v4165_v6  ;;  %v3918_v44 = vpop.permute.xlu1 %3917  ;;  %v3678_v29 = vpop.f32.mrb[157].mxu0  ;;  %v4263_v10 = vrot.slane %v3676_v17, 1 }
 0x512   : > { %v3965_v15 = vrot.slane %v3918_v44, 7  ;;  %v3679_v59 = vpop.f32.mrb[158].mxu0  ;;  %v4046_v58 = vpop.permute.xlu0 %4045 }
 0x513   : > { %v4293_v40 = vadd.f32 %v4276_v12, %v4245_v47  ;;  %v4271_v41 = vrot.slane %v3679_v59, 1  ;;  %v3681_v7 = vpop.f32.mrb[159].mxu0  ;;  %v4093_v57 = vrot.slane %v4046_v58, 1 }
 0x514   : > { %v3981_v46 = vsel %vm914_vm2, %v3965_v15, %v3957_v2 }
 0x515   : > { %vm4309_vm9 = vcmp.ge.f32.partialorder %v4293_v40, 0.0  ;;  %v4325_v13 = vmul.f32 0.2, %v4293_v40  ;;  %v3991_v28 = vadd.f32 %v3981_v46, %v3879_v23  ;;  %v4048_v25 = vpop.permute.xlu1 %4047  ;;  %v11324_v30 = vsel %vm1043_vm3, %v4263_v10, %v4271_v41 }
 0x516   : > { %v3920_v18 = vpop.permute.xlu0 %3919  ;;  %v4101_v56 = vsel %vm1043_vm3, %v4085_v50, %v4093_v57  ;;  %v4086_v41 = vrot.slane %v4048_v25, 1 }
 0x517   : > { %v4341_v51 = vsel %vm4309_vm9, %v4293_v40, %v4325_v13  ;;  %v4007_v12 = vadd.f32 %v3991_v28, %v11064_v31  ;;  %v3958_v47 = vrot.slane %v3920_v18, 7 }
 0x518   : > { %v3684_v5 = vpop.f32.mrb[160].mxu0  ;;  %v4372_v38 = vpack.c.bf16 %v9677_v20, %v4341_v51 }
 0x519   : > { %v3796_v23 = vpop.permute.xlu1 %3795  ;;  %v3686_v61 = vpop.f32.mrb[161].mxu0  ;;  %v4119_v36 = vadd.f32 %v4101_v56, %v4007_v12  ;;  %v4264_v16 = vrot.slane %v3684_v5, 1  ;;  %v3757_v12 = vadd.f32 %v10898_v42, %v11115_v19 }
 0x51a   : > { %v3835_v4 = vadd.f32 %v3796_v23, %v3755_v52  ;;  %v3687_v14 = vpop.f32.mrb[162].mxu0  ;;  %4389 = vrot.lane.b32.xlu1 %v4372_v38, %s9676_s18  ;;  %v4204_v24 = vpop.permute.xlu0 %4203 }
 0x51b   : > { %v4272_v32 = vrot.slane %v3687_v14, 1  ;;  %v4167_v31 = vadd.f32 %v11103_v27, %v4119_v36  ;;  %v3689_v60 = vpop.f32.mrb[163].mxu0 }
 0x51c   : > { %v3883_v33 = vadd.f32 %v11099_v53, %v3835_v4 }
 0x51d   : > { %v4247_v6 = vadd.f32 %v4204_v24, %v4167_v31  ;;  %v3922_v17 = vpop.permute.xlu1 %3921  ;;  %v11337_v43 = vsel %vm1043_vm3, %v4264_v16, %v4272_v32 }
 0x51e   : > { %v3966_v44 = vrot.slane %v3922_v17, 7  ;;  %v4050_v29 = vpop.permute.xlu0 %4049 }
 0x51f   : > { %v4295_v2 = vadd.f32 %v11303_v35, %v4247_v6  ;;  %v4094_v59 = vrot.slane %v4050_v29, 1 }
 0x520   : > { %v3982_v15 = vsel %vm914_vm2, %v3966_v44, %v3958_v47  ;;  %v3692_v58 = vpop.f32.mrb[164].mxu0 }
 0x521   : > { %vm4311_vm10 = vcmp.ge.f32.partialorder %v4295_v2, 0.0  ;;  %v4327_v27 = vmul.f32 0.2, %v4295_v2  ;;  %v3993_v40 = vadd.f32 %v3982_v15, %v3881_v21  ;;  %v3694_v53 = vpop.f32.mrb[165].mxu0  ;;  %v4265_v57 = vrot.slane %v3692_v58, 1 }
 0x522   : > { %v4052_v7 = vpop.permute.xlu1 %4051  ;;  %v3695_v10 = vpop.f32.mrb[166].mxu0  ;;  %v4102_v35 = vsel %vm1043_vm3, %v4086_v41, %v4094_v59  ;;  %v9393_v58 = vld [vmem:[%s12723_s5 + $0x28] ss:$20 sps:$4 sm:$0xff]   ;;  %v9551_v41 = vld [vmem:[%s12724_s6 + $0x2] ss:$0 sm:$0xff] }
 0x523   : > { %v4343_v46 = vsel %vm4311_vm10, %v4295_v2, %v4327_v27  ;;  %v4273_v13 = vrot.slane %v3695_v10, 1  ;;  %v3697_v28 = vpop.f32.mrb[167].mxu0  ;;  %v3924_v50 = vpop.permute.xlu0 %3923  ;;  %v4009_v18 = vadd.f32 %v3993_v40, %v11086_v9  ;;  %v4087_v2 = vrot.slane %v4052_v7, 1  ;;  %v9395_v27 = vld [vmem:[%s12723_s5 + $0x2c] ss:$20 sps:$4 sm:$0xff]  }
 0x524   : > { %v4373_v51 = vpack.c.bf16 %v9677_v20, %v4343_v46  ;;  %v3959_v19 = vrot.slane %v3924_v50, 7  ;;  %v3759_v7 = vadd.f32 %v9551_v41, %v11145_v3  ;;  %v9398_v50 = vld [vmem:[%s12723_s5 + $0x50] ss:$20 sps:$4 sm:$0xff]  }
 0x525   : > { %v4121_v21 = vadd.f32 %v4102_v35, %v4009_v18  ;;  %v11350_v25 = vsel %vm1043_vm3, %v4265_v57, %v4273_v13 }
 0x526   : > { %v3800_v56 = vpop.permute.xlu1 %3799  ;;  %4391 = vrot.lane.b32.xlu0 %v4373_v51, %s9676_s18 }
 0x527   : > { %v3837_v5 = vadd.f32 %v3800_v56, %v3757_v12  ;;  %v4169_v52 = vadd.f32 %v11124_v49, %v4121_v21  ;;  %v4208_v9 = vpop.permute.xlu0 %4207  ;;  %v9392_v49 = vld [vmem:[%s12723_s5 + $0x4] ss:$20 sps:$4 sm:$0xff]   ;;  %v9403_v56 = vld [vmem:[%s12723_s5 + $0x7c] ss:$20 sps:$4 sm:$0xff]  }
 0x528   : > { %v3700_v38 = vpop.f32.mrb[168].mxu0  ;;  %6692 = vmatprep.subr.bf16.mxu0 %v9392_v49 }
 0x529   : > { %v3885_v23 = vadd.f32 %v11120_v22, %v3837_v5  ;;  %v4249_v61 = vadd.f32 %v4208_v9, %v4169_v52  ;;  %v4266_v36 = vrot.slane %v3700_v38, 1  ;;  %v3702_v4 = vpop.f32.mrb[169].mxu0  ;;  %v9390_v22 = vld [vmem:[%s12723_s5] ss:$20 sps:$4 sm:$0xff]  }
 0x52a   : > { %v3926_v14 = vpop.permute.xlu1 %3925  ;;  %v3703_v42 = vpop.f32.mrb[170].mxu0  ;;  %6693 = vmatpush1.bf16.msra.mxu0 %v9390_v22 }
 0x52b   : > { %v4297_v24 = vadd.f32 %v11315_v62, %v4249_v61  ;;  %v3967_v16 = vrot.slane %v3926_v14, 7  ;;  %v4054_v32 = vpop.permute.xlu0 %4053  ;;  %v4274_v31 = vrot.slane %v3703_v42, 1  ;;  %v3705_v60 = vpop.f32.mrb[171].mxu0  ;;  %6694 = vmatprep.subr.bf16.mxu0 %v9395_v27 }
 0x52c   : > { %v4095_v6 = vrot.slane %v4054_v32, 1  ;;  %v9404_v32 = vld [vmem:[%s12722_s4 + $0x178] ss:$20 sps:$4 sm:$0xff]  }
 0x52d   : > { %vm4313_vm11 = vcmp.ge.f32.partialorder %v4297_v24, 0.0  ;;  %v4329_v17 = vmul.f32 0.2, %v4297_v24  ;;  %v3983_v47 = vsel %vm914_vm2, %v3967_v16, %v3959_v19  ;;  %v11366_v62 = vsel %vm1043_vm3, %v4266_v36, %v4274_v31  ;;  %v9396_v19 = vld [vmem:[%s12722_s4 + $0x150] ss:$20 sps:$4 sm:$0xff]  }
 0x52e   : > { %v3995_v44 = vadd.f32 %v3983_v47, %v3883_v33  ;;  %v4056_v29 = vpop.permute.xlu1 %4055  ;;  %v4103_v33 = vsel %vm1043_vm3, %v4087_v2, %v4095_v6  ;;  %6695 = vmatpush1.bf16.msra.mxu0 %v9393_v58  ;;  %8729 = vmatprep.subr.bf16.mxu1 %v9396_v19  ;;  %v9411_v47 = vld [vmem:[%s12723_s5 + $0xcc] ss:$20 sps:$4 sm:$0xff]   ;;  %v9424_v19 = vld [vmem:[%s12723_s5 + $0x168] ss:$20 sps:$4 sm:$0xff]  }
 0x52f   : > { %v4345_v15 = vsel %vm4313_vm11, %v4297_v24, %v4329_v17  ;;  %v3928_v59 = vpop.permute.xlu0 %3927  ;;  %v4088_v36 = vrot.slane %v4056_v29, 1  ;;  %v9397_v24 = vld [vmem:[%s12722_s4 + $0x10] ss:$20 sps:$4 sm:$0xff]   ;;  %v9408_v17 = vld [vmem:[%s12722_s4 + $0x38] ss:$20 sps:$4 sm:$0xff]  }
 0x530   : > { %v4374_v40 = vpack.c.bf16 %v9677_v20, %v4345_v15  ;;  %v4011_v53 = vadd.f32 %v3995_v44, %v11107_v8  ;;  %v9400_v8 = vld [vmem:[%s12723_s5 + $0x54] ss:$20 sps:$4 sm:$0xff]   ;;  %v3960_v51 = vrot.slane %v3928_v59, 7  ;;  %8730 = vmatpush3.bf16.msra.mxu1 %v9397_v24  ;;  %v3761_v15 = vadd.f32 %v9551_v41, %v11180_v54  ;;  %v9412_v54 = vld [vmem:[%s12723_s5 + $0xf0] ss:$20 sps:$4 sm:$0xff]  }
 0x531   : > { %6696 = vmatprep.subr.bf16.mxu0 %v9400_v8  ;;  %8731 = vmatprep.subr.bf16.mxu1 %v9404_v32  ;;  %v9409_v29 = vld [vmem:[%s12723_s5 + $0xc8] ss:$20 sps:$4 sm:$0xff]  }
 0x532   : > { %v3804_v10 = vpop.permute.xlu1 %3803  ;;  %4393 = vrot.lane.b32.xlu1 %v4374_v40, %s9676_s18  ;;  %v4123_v46 = vadd.f32 %v4103_v33, %v4011_v53  ;;  %6697 = vmatpush1.bf16.msra.mxu0 %v9398_v50 }
 0x533   : > { %v3839_v57 = vadd.f32 %v3804_v10, %v3759_v7  ;;  %v4212_v13 = vpop.permute.xlu0 %4211  ;;  %6698 = vmatprep.subr.bf16.mxu0 %v9403_v56 }
 0x534   : > { %v4171_v28 = vadd.f32 %v11157_v1, %v4123_v46  ;;  %v9401_v1 = vld [vmem:[%s12723_s5 + $0x78] ss:$20 sps:$4 sm:$0xff]   ;;  %8732 = vmatpush3.bf16.msra.mxu1 %v9408_v17 }
 0x535   : > { %v3887_v3 = vadd.f32 %v11153_v55, %v3839_v57  ;;  %v9431_v17 = vld [vmem:[%s12723_s5 + $0x1b8] ss:$20 sps:$4 sm:$0xff]  }
 0x536   : > { %v4251_v18 = vadd.f32 %v4212_v13, %v4171_v28  ;;  %v3930_v35 = vpop.permute.xlu1 %3929  ;;  %6699 = vmatpush1.bf16.msra.mxu0 %v9401_v1 }
 0x537   : > { %v3968_v12 = vrot.slane %v3930_v35, 7  ;;  %v4058_v21 = vpop.permute.xlu0 %4057  ;;  %v9416_v35 = vld [vmem:[%s12722_s4 + $0x60] ss:$20 sps:$4 sm:$0xff]  }
 0x538   : > { %v4299_v5 = vadd.f32 %v11324_v30, %v4251_v18  ;;  %v4096_v52 = vrot.slane %v4058_v21, 1  ;;  %v9407_v30 = vld [vmem:[%s12723_s5 + $0xa4] ss:$20 sps:$4 sm:$0xff]  }
 0x539   : > { %v3984_v55 = vsel %vm914_vm2, %v3968_v12, %v3960_v51  ;;  %6700 = vmatprep.subr.bf16.mxu0 %v9407_v30  ;;  %v9417_v21 = vld [vmem:[%s12723_s5 + $0x118] ss:$20 sps:$4 sm:$0xff]  }
 0x53a   : > { %vm4315_vm13 = vcmp.ge.f32.partialorder %v4299_v5, 0.0  ;;  %v4331_v9 = vmul.f32 0.2, %v4299_v5  ;;  %v3997_v38 = vadd.f32 %v3984_v55, %v3885_v23  ;;  %v4060_v61 = vpop.permute.xlu1 %4059  ;;  %v4104_v23 = vsel %vm1043_vm3, %v4088_v36, %v4096_v52  ;;  %v9422_v55 = vld [vmem:[%s12723_s5 + $0x144] ss:$20 sps:$4 sm:$0xff]  }
 0x53b   : > { %v3932_v4 = vpop.permute.xlu0 %3931  ;;  %v4089_v33 = vrot.slane %v4060_v61, 1  ;;  %v9426_v30 = vld [vmem:[%s12723_s5 + $0x16c] ss:$20 sps:$4 sm:$0xff]  }
 0x53c   : > { %v4347_v14 = vsel %vm4315_vm13, %v4299_v5, %v4331_v9  ;;  %v4013_v42 = vadd.f32 %v3997_v38, %v11128_v39  ;;  %v9405_v39 = vld [vmem:[%s12723_s5 + $0xa0] ss:$20 sps:$4 sm:$0xff]   ;;  %v3961_v49 = vrot.slane %v3932_v4, 7 }
 0x53d   : > { %v4375_v16 = vpack.c.bf16 %v9677_v20, %v4347_v14  ;;  %6701 = vmatpush1.bf16.msra.mxu0 %v9405_v39  ;;  %v9420_v9 = vld [vmem:[%s12723_s5 + $0x140] ss:$20 sps:$4 sm:$0xff]  }
 0x53e   : > { %v3934_v31 = vpop.permute.xlu1 %3933  ;;  %v4125_v60 = vadd.f32 %v4104_v23, %v4013_v42  ;;  %6702 = vmatprep.subr.bf16.mxu0 %v9411_v47  ;;  %v9427_v23 = vld [vmem:[%s12722_s4 + $0x88] ss:$20 sps:$4 sm:$0xff]  }
 0x53f   : > { %v3969_v6 = vrot.slane %v3934_v31, 7  ;;  %4395 = vrot.lane.b32.xlu0 %v4375_v16, %s9676_s18  ;;  %v4216_v22 = vpop.permute.xlu0 %4215  ;;  %v9430_v39 = vld [vmem:[%s12723_s5 + $0x194] ss:$20 sps:$4 sm:$0xff]  }
 0x540   : > { %v4173_v44 = vadd.f32 %v11184_v45, %v4125_v60  ;;  %v9414_v45 = vld [vmem:[%s12723_s5 + $0xf4] ss:$20 sps:$4 sm:$0xff]   ;;  %v9428_v60 = vld [vmem:[%s12723_s5 + $0x190] ss:$20 sps:$4 sm:$0xff]  }
 0x541   : > { %v3985_v2 = vsel %vm914_vm2, %v3969_v6, %v3961_v49  ;;  %6703 = vmatpush1.bf16.msra.mxu0 %v9409_v29  ;;  %v9435_v29 = vld [vmem:[%s12722_s4 + $0xb0] ss:$20 sps:$4 sm:$0xff]  }
 0x542   : > { %v3999_v59 = vadd.f32 %v3985_v2, %v3887_v3  ;;  %v4253_v58 = vadd.f32 %v4216_v22, %v4173_v44  ;;  %v3808_v27 = vpop.permute.xlu1 %3807  ;;  %6704 = vmatprep.subr.bf16.mxu0 %v9414_v45  ;;  %v9433_v22 = vld [vmem:[%s12723_s5 + $0x1bc] ss:$20 sps:$4 sm:$0xff]   ;;  %v9436_v2 = vld [vmem:[%s12723_s5 + $0x1e0] ss:$20 sps:$4 sm:$0xff]  }
 0x543   : > { %v3841_v40 = vadd.f32 %v3808_v27, %v3761_v15  ;;  %v4062_v53 = vpop.permute.xlu0 %4061  ;;  %v9444_v45 = vld [vmem:[%s12722_s4 + $0x240] ss:$20 sps:$4 sm:$0xff]  }
 0x544   : > { %v4301_v7 = vadd.f32 %v11337_v43, %v4253_v58  ;;  %v4097_v10 = vrot.slane %v4062_v53, 1  ;;  %v4015_v46 = vadd.f32 %v3999_v59, %v11167_v11  ;;  %v9419_v11 = vld [vmem:[%s12723_s5 + $0x11c] ss:$20 sps:$4 sm:$0xff]   ;;  %v9439_v59 = vld [vmem:[%s12722_s4 + $0x218] ss:$20 sps:$4 sm:$0xff]  }
 0x545   : > { %v3889_v41 = vadd.f32 %v11188_v26, %v3841_v40  ;;  %6705 = vmatpush1.bf16.msra.mxu0 %v9412_v54  ;;  %v9415_v26 = vld [vmem:[%s12722_s4 + $0x1a0] ss:$20 sps:$4 sm:$0xff]   ;;  %v9443_v40 = vld [vmem:[%s12722_s4 + $0xd8] ss:$20 sps:$4 sm:$0xff]   ;;  %v9440_v53 = vld [vmem:[%s12723_s5 + $0x208] ss:$20 sps:$4 sm:$0xff]  }
 0x546   : > { %vm4317_vm14 = vcmp.ge.f32.partialorder %v4301_v7, 0.0  ;;  %v4333_v57 = vmul.f32 0.2, %v4301_v7  ;;  %v4105_v13 = vsel %vm1043_vm3, %v4089_v33, %v4097_v10  ;;  %v3938_v8 = vpop.permute.xlu1 %3937  ;;  %6706 = vmatprep.subr.bf16.mxu0 %v9419_v11  ;;  %8733 = vmatprep.subr.bf16.mxu1 %v9415_v26  ;;  %v9442_v58 = vld [vmem:[%s12723_s5 + $0x20c] ss:$20 sps:$4 sm:$0xff]  }
 0x547   : > { %v3970_v28 = vrot.slane %v3938_v8, 7  ;;  %v3936_v50 = vpop.permute.xlu0 %3935  ;;  %v4127_v43 = vadd.f32 %v4105_v13, %v4015_v46  ;;  %8734 = vmatpush3.bf16.msra.mxu1 %v9416_v35  ;;  %v9447_v33 = vld [vmem:[%s12723_s5 + $0x234] ss:$20 sps:$4 sm:$0xff]   ;;  %v9452_v54 = vld [vmem:[%s12723_s5 + $0x25c] ss:$20 sps:$4 sm:$0xff]   ;;  %v11549_v13 = vpop.f32.mrb[148].mxu1 }
 0x548   : > { %v4349_v3 = vsel %vm4317_vm14, %v4301_v7, %v4333_v57  ;;  %v3962_v18 = vrot.slane %v3936_v50, 7  ;;  %v9445_v7 = vld [vmem:[%s12723_s5 + $0x230] ss:$20 sps:$4 sm:$0xff]   ;;  %v9448_v10 = vld [vmem:[%s12722_s4 + $0x100] ss:$20 sps:$4 sm:$0xff]  }
 0x549   : > { %v4376_v51 = vpack.c.bf16 %v9677_v20, %v4349_v3  ;;  %v4175_v12 = vadd.f32 %v11215_v34, %v4127_v43  ;;  %6707 = vmatpush1.bf16.msra.mxu0 %v9417_v21  ;;  %v9449_v46 = vld [vmem:[%s12722_s4 + $0x268] ss:$20 sps:$4 sm:$0xff]   ;;  %v9450_v57 = vld [vmem:[%s12723_s5 + $0x258] ss:$20 sps:$4 sm:$0xff]  }
 0x54a   : > { %v3986_v56 = vsel %vm914_vm2, %v3970_v28, %v3962_v18  ;;  %v4064_v52 = vpop.permute.xlu1 %4063  ;;  %6708 = vmatprep.subr.bf16.mxu0 %v9422_v55  ;;  %v9456_v8 = vld [vmem:[%s12723_s5 + $0xc] ss:$20 sps:$4 sm:$0xff]   ;;  %v11561_v3 = vld [vmem:[#allocation2 + $0x18] sm:$0xff] }
 0x54b   : > { %v4001_v5 = vadd.f32 %v3986_v56, %v3889_v41  ;;  %4397 = vrot.lane.b32.xlu1 %v4376_v51, %s9676_s18  ;;  %v4220_v1 = vpop.permute.xlu0 %4219  ;;  %v4090_v36 = vrot.slane %v4064_v52, 1  ;;  %v9453_v41 = vld [vmem:[%s12722_s4 + $0x128] ss:$20 sps:$4 sm:$0xff]  }
 0x54c   : > { %v4255_v34 = vadd.f32 %v4220_v1, %v4175_v12  ;;  %v11571_v12 = vld [vmem:[#allocation2 + $0x30] sm:$0xff]  ;;  %v11581_v55 = vld [vmem:[#allocation2 + $0x48] sm:$0xff] }
 0x54d   : > { %v4017_v38 = vadd.f32 %v4001_v5, %v11199_v63  ;;  %6709 = vmatpush1.bf16.msra.mxu0 %v9420_v9 }
 0x54e   : > { %v4303_v61 = vadd.f32 %v11350_v25, %v4255_v34  ;;  %6710 = vmatprep.subr.bf16.mxu0 %v9426_v30  ;;  %v9423_v25 = vld [vmem:[%s12722_s4 + $0x1c8] ss:$20 sps:$4 sm:$0xff]   ;;  %v4224_v31 = vpop.permute.xlu1 %4223  ;;  %v9492_v34 = vld [vmem:[%s12723_s5 + $0x284] ss:$20 sps:$4 sm:$0xff]  }
 0x54f   : > { %v4066_v4 = vpop.permute.xlu0 %4065  ;;  %8735 = vmatprep.subr.bf16.mxu1 %v9423_v25 }
 0x550   : > { %vm4319_vm15 = vcmp.ge.f32.partialorder %v4303_v61, 0.0  ;;  %v4335_v14 = vmul.f32 0.2, %v4303_v61  ;;  %v4098_v42 = vrot.slane %v4066_v4, 1  ;;  %8736 = vmatpush3.bf16.msra.mxu1 %v9427_v23 }
 0x551   : > { %6711 = vmatpush1.bf16.msra.mxu0 %v9424_v19  ;;  %v11604_v19 = vld [vmem:[#allocation2 + $0x78] sm:$0xff] }
 0x552   : > { %v4351_v24 = vsel %vm4319_vm15, %v4303_v61, %v4335_v14  ;;  %v4106_v63 = vsel %vm1043_vm3, %v4090_v36, %v4098_v42  ;;  %6712 = vmatprep.subr.bf16.mxu0 %v9430_v39  ;;  %v11594_v36 = vld [vmem:[#allocation2 + $0x60] sm:$0xff] }
 0x553   : > { %v4377_v16 = vpack.c.bf16 %v9677_v20, %v4351_v24  ;;  %v4129_v32 = vadd.f32 %v4106_v63, %v4017_v38 }
 0x555   : > { %4399 = vrot.lane.b32.xlu0 %v4377_v16, %s9676_s18  ;;  %v4177_v49 = vadd.f32 %v11236_v37, %v4129_v32  ;;  %6713 = vmatpush1.bf16.msra.mxu0 %v9428_v60  ;;  %v9434_v37 = vld [vmem:[%s12722_s4 + $0x1f0] ss:$20 sps:$4 sm:$0xff]  }
 0x556   : > { %6714 = vmatprep.subr.bf16.mxu0 %v9433_v22  ;;  %8737 = vmatprep.subr.bf16.mxu1 %v9434_v37  ;;  %v11614_v16 = vld [vmem:[#allocation2 + $0x90] sm:$0xff] }
 0x557   : > { %v4257_v6 = vadd.f32 %v4224_v31, %v4177_v49  ;;  %8738 = vmatpush3.bf16.msra.mxu1 %v9435_v29  ;;  %v11624_v49 = vld [vmem:[#allocation2 + $0xa8] sm:$0xff] }
 0x558   : > { %8739 = vmatprep.subr.bf16.mxu1 %v9439_v59 }
 0x559   : > { %v4305_v47 = vadd.f32 %v11366_v62, %v4257_v6  ;;  %6715 = vmatpush1.bf16.msra.mxu0 %v9431_v17  ;;  %v9438_v62 = vld [vmem:[%s12723_s5 + $0x1e4] ss:$20 sps:$4 sm:$0xff]   ;;  %5384 = vrot.lane.b32.xlu0 %v11549_v13, %s9676_s18  ;;  %v4987_v17 = vpop.f32.mrb[149].mxu1 }
 0x55a   : > { %6716 = vmatprep.subr.bf16.mxu0 %v9438_v62  ;;  %v4989_v37 = vpop.f32.mrb[150].mxu1 }
 0x55b   : > { %vm4321_vm0 = vcmp.ge.f32.partialorder %v4305_v47, 0.0  ;;  %v4337_v44 = vmul.f32 0.2, %v4305_v47  ;;  %8740 = vmatpush3.bf16.msra.mxu1 %v9443_v40  ;;  %v5328_v29 = vrot.slane %v4989_v37, 7  ;;  %v4991_v62 = vpop.f32.mrb[151].mxu1 }
 0x55c   : > { %8741 = vmatprep.subr.bf16.mxu1 %v9444_v45  ;;  %v11638_v45 = vld [vmem:[%s12724_s6 + $0x3] ss:$0 sm:$0xff]  ;;  %v9478_v37 = vld [vmem:[%s12723_s5 + $0x148] ss:$20 sps:$4 sm:$0xff]  }
 0x55d   : > { %v4353_v15 = vsel %vm4321_vm0, %v4305_v47, %v4337_v44  ;;  %6717 = vmatpush1.bf16.msra.mxu0 %v9436_v2  ;;  %v5320_v47 = vrot.slane %v11549_v13, 7 }
 0x55e   : > { %v4378_v27 = vpack.c.bf16 %v9677_v20, %v4353_v15  ;;  %6718 = vmatprep.subr.bf16.mxu0 %v9442_v58  ;;  %v5448_v15 = vrot.slane %v4987_v17, 1  ;;  %v5456_v58 = vrot.slane %v4991_v62, 1  ;;  %v9477_v17 = vld [vmem:[%s12723_s5 + $0x124] ss:$20 sps:$4 sm:$0xff]   ;;  %v9486_v62 = vld [vmem:[%s12723_s5 + $0x19c] ss:$20 sps:$4 sm:$0xff]  }
 0x55f   : > { %8742 = vmatpush3.bf16.msra.mxu1 %v9448_v10  ;;  %v11644_v10 = vld [vmem:[#allocation2 + $0xc0] sm:$0xff] }
 0x560   : > { %4401 = vrot.lane.b32.xlu1 %v4378_v27, %s9676_s18  ;;  %8743 = vmatprep.subr.bf16.mxu1 %v9449_v46  ;;  %v11631_v27 = vld [vmem:[#allocation2 + $0xe0] sm:$0xff] }
 0x561   : > { %6719 = vmatpush1.bf16.msra.mxu0 %v9440_v53 }
 0x562   : > { %6720 = vmatprep.subr.bf16.mxu0 %v9447_v33  ;;  %v5344_v33 = vsel %vm914_vm2, %v5328_v29, %v5320_v47  ;;  %v9475_v47 = vld [vmem:[%s12723_s5 + $0x120] ss:$20 sps:$4 sm:$0xff]  }
 0x563   : > { %8744 = vmatpush3.bf16.msra.mxu1 %v9453_v41  ;;  %v5352_v46 = vadd.f32 %v11638_v45, %v5344_v33  ;;  %v9483_v29 = vld [vmem:[%s12723_s5 + $0x174] ss:$20 sps:$4 sm:$0xff]  }
 0x564   : > { %6946 = vmatprep.subr.bf16.mxu1 %v9456_v8  ;;  %v11656_v8 = vld [vmem:[#allocation2 + $0xd8] sm:$0xff] }
 0x565   : > { %6721 = vmatpush1.bf16.msra.mxu0 %v9445_v7  ;;  %v9493_v33 = vld [vmem:[%s12723_s5 + $0x1e8] ss:$20 sps:$4 sm:$0xff]  }
 0x566   : > { %6722 = vmatprep.subr.bf16.mxu0 %v9452_v54  ;;  %v5464_v54 = vsel %vm1043_vm3, %v5448_v15, %v5456_v58  ;;  %v9484_v15 = vld [vmem:[%s12723_s5 + $0x198] ss:$20 sps:$4 sm:$0xff]   ;;  %v9487_v58 = vld [vmem:[%s12723_s5 + $0x1c0] ss:$20 sps:$4 sm:$0xff]  }
 0x569   : > { %6723 = vmatpush1.bf16.msra.mxu0 %v9450_v57 }
 0x56a   : > { %6819 = vmatprep.subr.bf16.mxu0 %v9492_v34  ;;  %v9462_v34 = vld [vmem:[%s12723_s5 + $0x5c] ss:$20 sps:$4 sm:$0xff]  }
 0x57e   : > { %v4388_v28 = vpop.permute.xlu0 %4387 }
 0x57f   : > { %4411 = vst.msk [vmem:[#allocation2 + $0x20] sm:$0xff] %vm1596_vm12, %v4388_v28  ;;  %v11658_v28 = vld [vmem:[#allocation2 + $0x8] sm:$0xff] }
 0x586   : > { %v8127_v50 = vld [vmem:[#allocation2 + $0x20] sm:$0xf] }
 0x587   : > { %v11557_v43 = vld [vmem:[#allocation2 + $0x20] sm:$0xff]  ;;  %v8151_v11 = vunpack.c.l.bf16 %v8127_v50  ;;  %v9552_v50 = vld [vmem:[#allocation2 + $0x8] sm:$0xff] }
 0x588   : > { %4993 = vmatprep.mubr.bf16.mxu1 %v11557_v43  ;;  %5116 = vmatprep.mubr.bf16.mxu0 %v11557_v43 }
 0x589   : > { %4994 = vmatmul.mubr.bf16.gmra.mrb[152].mxu1 %v11561_v3  ;;  %5117 = vmatmul.mubr.bf16.gmra.mrb[176].mxu0 %v11561_v3  ;;  %8175 = vst [vmem:[%s10452_s9 + $0x8] sm:$0xff] %v8151_v11  ;;  %v11663_v11 = vld [vmem:[#allocation2] sm:$0xff] }
 0x58c   : > { %v4390_v18 = vpop.permute.xlu1 %4389 }
 0x58d   : > { %4412 = vst.msk [vmem:[#allocation2 + $0x38] sm:$0xff] %vm1596_vm12, %v4390_v18  ;;  %v9454_v18 = vld [vmem:[%s12723_s5 + $0x8] ss:$20 sps:$4 sm:$0xff]  }
 0x594   : > { %v8130_v26 = vld [vmem:[#allocation2 + $0x38] sm:$0xf] }
 0x595   : > { %v11567_v35 = vld [vmem:[#allocation2 + $0x38] sm:$0xff]  ;;  %v8154_v51 = vunpack.c.l.bf16 %v8130_v26  ;;  %v9490_v26 = vld [vmem:[%s12723_s5 + $0x280] ss:$20 sps:$4 sm:$0xff]  }
 0x596   : > { %5003 = vmatprep.mubr.bf16.mxu1 %v11567_v35  ;;  %5124 = vmatprep.mubr.bf16.mxu0 %v11567_v35 }
 0x597   : > { %5004 = vmatmul.mubr.bf16.gmra.mrb[156].mxu1 %v11571_v12  ;;  %5125 = vmatmul.mubr.bf16.gmra.mrb[180].mxu0 %v11571_v12  ;;  %8178 = vst [vmem:[%s10452_s9 + $0x20] sm:$0xff] %v8154_v51  ;;  %v9459_v51 = vld [vmem:[%s12723_s5 + $0x34] ss:$20 sps:$4 sm:$0xff]  }
 0x598   : > { %v4392_v21 = vpop.permute.xlu0 %4391 }
 0x599   : > { %4413 = vst.msk [vmem:[#allocation2 + $0x50] sm:$0xff] %vm1596_vm12, %v4392_v21  ;;  %v9498_v21 = vld [vmem:[%s12723_s5 + $0x2ac] ss:$20 sps:$4 sm:$0xff]  }
 0x5a0   : > { %v8133_v56 = vld [vmem:[#allocation2 + $0x50] sm:$0xf] }
 0x5a1   : > { %v11577_v5 = vld [vmem:[#allocation2 + $0x50] sm:$0xff]  ;;  %v8157_v1 = vunpack.c.l.bf16 %v8133_v56  ;;  %v9553_v56 = vld [vmem:[#allocation2] sm:$0xff] }
 0x5a2   : > { %5013 = vmatprep.mubr.bf16.mxu1 %v11577_v5  ;;  %5134 = vmatprep.mubr.bf16.mxu0 %v11577_v5 }
 0x5a3   : > { %5014 = vmatmul.mubr.bf16.gmra.mrb[160].mxu1 %v11581_v55  ;;  %5135 = vmatmul.mubr.bf16.gmra.mrb[184].mxu0 %v11581_v55  ;;  %8181 = vst [vmem:[%s10452_s9 + $0x38] sm:$0xff] %v8157_v1  ;;  %v9457_v1 = vld [vmem:[%s12723_s5 + $0x30] ss:$20 sps:$4 sm:$0xff]  }
 0x5a4   : > { %v4394_v52 = vpop.permute.xlu1 %4393 }
 0x5a5   : > { %4414 = vst.msk [vmem:[#allocation2 + $0x68] sm:$0xff] %vm1596_vm12, %v4394_v52  ;;  %v9496_v52 = vld [vmem:[%s12723_s5 + $0x2a8] ss:$20 sps:$4 sm:$0xff]  }
 0x5ac   : > { %v8136_v9 = vld [vmem:[#allocation2 + $0x68] sm:$0xf] }
 0x5ad   : > { %v11590_v38 = vld [vmem:[#allocation2 + $0x68] sm:$0xff]  ;;  %v8160_v61 = vunpack.c.l.bf16 %v8136_v9 }
 0x5ae   : > { %5023 = vmatprep.mubr.bf16.mxu1 %v11590_v38  ;;  %5144 = vmatprep.mubr.bf16.mxu0 %v11590_v38  ;;  %v9504_v9 = vld [vmem:[%s12723_s5 + $0x2d4] ss:$20 sps:$4 sm:$0xff]  }
 0x5af   : > { %5024 = vmatmul.mubr.bf16.gmra.mrb[164].mxu1 %v11594_v36  ;;  %5145 = vmatmul.mubr.bf16.gmra.mrb[188].mxu0 %v11594_v36  ;;  %8184 = vst [vmem:[%s10452_s9 + $0x50] sm:$0xff] %v8160_v61  ;;  %v9460_v61 = vld [vmem:[%s12723_s5 + $0x58] ss:$20 sps:$4 sm:$0xff]  }
 0x5b1   : > { %v4396_v4 = vpop.permute.xlu0 %4395 }
 0x5b2   : > { %4415 = vst.msk [vmem:[#allocation2 + $0x80] sm:$0xff] %vm1596_vm12, %v4396_v4  ;;  %v9502_v4 = vld [vmem:[%s12723_s5 + $0x2d0] ss:$20 sps:$4 sm:$0xff]  }
 0x5b9   : > { %v8139_v30 = vld [vmem:[#allocation2 + $0x80] sm:$0xf] }
 0x5ba   : > { %v11600_v14 = vld [vmem:[#allocation2 + $0x80] sm:$0xff]  ;;  %v8163_v42 = vunpack.c.l.bf16 %v8139_v30 }
 0x5bb   : > { %5033 = vmatprep.mubr.bf16.mxu1 %v11600_v14  ;;  %5154 = vmatprep.mubr.bf16.mxu0 %v11600_v14  ;;  %v9465_v30 = vld [vmem:[%s12723_s5 + $0x84] ss:$20 sps:$4 sm:$0xff]  }
 0x5bc   : > { %5034 = vmatmul.mubr.bf16.gmra.mrb[168].mxu1 %v11604_v19  ;;  %5155 = vmatmul.mubr.bf16.gmra.mrb[192].mxu0 %v11604_v19  ;;  %8187 = vst [vmem:[%s10452_s9 + $0x68] sm:$0xff] %v8163_v42  ;;  %v9510_v42 = vld [vmem:[%s12723_s5 + $0x2fc] ss:$20 sps:$4 sm:$0xff]  }
 0x5bd   : > { %v4398_v24 = vpop.permute.xlu1 %4397 }
 0x5be   : > { %4416 = vst.msk [vmem:[#allocation2 + $0x98] sm:$0xff] %vm1596_vm12, %v4398_v24  ;;  %v9463_v24 = vld [vmem:[%s12723_s5 + $0x80] ss:$20 sps:$4 sm:$0xff]  }
 0x5c5   : > { %v8142_v63 = vld [vmem:[#allocation2 + $0x98] sm:$0xf] }
 0x5c6   : > { %v11610_v25 = vld [vmem:[#allocation2 + $0x98] sm:$0xff]  ;;  %v8166_v23 = vunpack.c.l.bf16 %v8142_v63 }
 0x5c7   : > { %5043 = vmatprep.mubr.bf16.mxu1 %v11610_v25  ;;  %5164 = vmatprep.mubr.bf16.mxu0 %v11610_v25  ;;  %v4400_v32 = vpop.permute.xlu0 %4399  ;;  %v9508_v63 = vld [vmem:[%s12723_s5 + $0x2f8] ss:$20 sps:$4 sm:$0xff]  }
 0x5c8   : > { %5044 = vmatmul.mubr.bf16.gmra.mrb[172].mxu1 %v11614_v16  ;;  %5165 = vmatmul.mubr.bf16.gmra.mrb[196].mxu0 %v11614_v16  ;;  %8190 = vst [vmem:[%s10452_s9 + $0x80] sm:$0xff] %v8166_v23  ;;  %4417 = vst.msk [vmem:[#allocation2 + $0xb0] sm:$0xff] %vm1596_vm12, %v4400_v32  ;;  %v9468_v23 = vld [vmem:[%s12723_s5 + $0xac] ss:$20 sps:$4 sm:$0xff]   ;;  %v9466_v32 = vld [vmem:[%s12723_s5 + $0xa8] ss:$20 sps:$4 sm:$0xff]  }
 0x5cb   : > { %v5385_v41 = vpop.permute.xlu0 %5384 }
 0x5cc   : > { %v5112_v22 = vpop.f32.mrb[172].mxu0  ;;  %v5432_v57 = vadd.f32 %v5385_v41, %v5352_v46  ;;  %v9499_v46 = vld [vmem:[%s12723_s5 + $0x210] ss:$20 sps:$4 sm:$0xff]   ;;  %v9505_v41 = vld [vmem:[%s12723_s5 + $0x238] ss:$20 sps:$4 sm:$0xff]  }
 0x5cd   : > { %v5113_v44 = vpop.f32.mrb[173].mxu0  ;;  %v9472_v22 = vld [vmem:[%s12723_s5 + $0xf8] ss:$20 sps:$4 sm:$0xff]  }
 0x5ce   : > { %v5114_v2 = vpop.f32.mrb[174].mxu0  ;;  %v11654_v13 = vadd.f32 %v5464_v54, %v5432_v57  ;;  %v9480_v44 = vld [vmem:[%s12723_s5 + $0x14c] ss:$20 sps:$4 sm:$0xff]   ;;  %v9507_v54 = vld [vmem:[%s12723_s5 + $0x23c] ss:$20 sps:$4 sm:$0xff]  }
 0x5cf   : > { %v8145_v39 = vld [vmem:[#allocation2 + $0xb0] sm:$0xf]  ;;  %v5115_v59 = vpop.f32.mrb[175].mxu0  ;;  %v9513_v57 = vld [vmem:[%s12723_s5 + $0x264] ss:$20 sps:$4 sm:$0xff]  }
 0x5d0   : > { %v11620_v31 = vld [vmem:[#allocation2 + $0xb0] sm:$0xff]  ;;  %v8169_v60 = vunpack.c.l.bf16 %v8145_v39  ;;  %v9489_v59 = vld [vmem:[%s12723_s5 + $0x1c4] ss:$20 sps:$4 sm:$0xff]  }
 0x5d1   : > { %5053 = vmatprep.mubr.bf16.mxu1 %v11620_v31  ;;  %5174 = vmatprep.mubr.bf16.mxu0 %v11620_v31  ;;  %v9471_v39 = vld [vmem:[%s12723_s5 + $0xd4] ss:$20 sps:$4 sm:$0xff]   ;;  %v9481_v2 = vld [vmem:[%s12723_s5 + $0x170] ss:$20 sps:$4 sm:$0xff]  }
 0x5d2   : > { %5054 = vmatmul.mubr.bf16.gmra.mrb[176].mxu1 %v11624_v49  ;;  %5175 = vmatmul.mubr.bf16.gmra.mrb[200].mxu0 %v11624_v49  ;;  %8193 = vst [vmem:[%s10452_s9 + $0x98] sm:$0xff] %v8169_v60  ;;  %v4402_v6 = vpop.permute.xlu1 %4401  ;;  %v9469_v60 = vld [vmem:[%s12723_s5 + $0xd0] ss:$20 sps:$4 sm:$0xff]  }
 0x5d3   : > { %4418 = vst.msk [vmem:[#allocation2 + $0xc8] sm:$0xff] %vm1596_vm12, %v4402_v6  ;;  %v9474_v6 = vld [vmem:[%s12723_s5 + $0xfc] ss:$20 sps:$4 sm:$0xff]  }
 0x5da   : > { %v8148_v40 = vld [vmem:[#allocation2 + $0xc8] sm:$0xf] }
 0x5db   : > { %v11633_v53 = vld [vmem:[#allocation2 + $0xc8] sm:$0xff]  ;;  %v8172_v7 = vunpack.c.l.bf16 %v8148_v40 }
 0x5dc   : > { %5063 = vmatprep.mubr.bf16.mxu1 %v11633_v53  ;;  %5184 = vmatprep.mubr.bf16.mxu0 %v11633_v53  ;;  %v9495_v40 = vld [vmem:[%s12723_s5 + $0x1ec] ss:$20 sps:$4 sm:$0xff]  }
 0x5dd   : > { %5064 = vmatmul.mubr.bf16.gmra.mrb[180].mxu1 %v11644_v10  ;;  %5185 = vmatmul.mubr.bf16.gmra.mrb[204].mxu0 %v11644_v10  ;;  %8196 = vst [vmem:[%s10452_s9 + $0xb0] sm:$0xff] %v8172_v7  ;;  %v9501_v7 = vld [vmem:[%s12723_s5 + $0x214] ss:$20 sps:$4 sm:$0xff]  }
 0x5de   : > { %5071 = vmatprep.mubr.bf16.mxu1 %v11631_v27  ;;  %5194 = vmatprep.mubr.bf16.mxu0 %v11631_v27 }
 0x5e5   : > { %5072 = vmatmul.mubr.bf16.gmra.mrb[184].mxu1 %v11656_v8  ;;  %5195 = vmatmul.mubr.bf16.gmra.mrb[208].mxu0 %v11656_v8 }
 0x5e6   : > { %5235 = vmatprep.mubr.bf16.mxu1 %v9552_v50  ;;  %6724 = vmatprep.mubr.bf16.mxu0 %v11658_v28  ;;  %v9511_v50 = vld [vmem:[%s12723_s5 + $0x260] ss:$20 sps:$4 sm:$0xff]  }
 0x5ed   : > { %5236 = vmatmul.mubr.bf16.vlgmr.msra.gmra.mrb[188].mxu1 %v9553_v56  ;;  %6725 = vmatmul.mubr.bf16.vlgmr.msra.gmra.mrb[212].mxu0 %v11663_v11 }
 0x5ee   : > { %5241 = vmatprep.mubr.bf16.mxu1 %v11557_v43  ;;  %6734 = vmatprep.mubr.bf16.mxu0 %v11557_v43 }
 0x5ef   : > { %6947 = vmatpush1.bf16.msra.mxu1 %v9454_v18  ;;  %6820 = vmatpush1.bf16.msra.mxu0 %v9490_v26  ;;  %v9516_v18 = vld [vmem:[%s12723_s5 + $0x28c] ss:$20 sps:$4 sm:$0xff]   ;;  %v11821_v26 = vld [vmem:[#allocation2 + $0x10] sm:$0xff] }
 0x5f0   : > { %6948 = vmatprep.subr.bf16.mxu1 %v9459_v51  ;;  %6821 = vmatprep.subr.bf16.mxu0 %v9498_v21  ;;  %v9514_v51 = vld [vmem:[%s12723_s5 + $0x288] ss:$20 sps:$4 sm:$0xff]  }
 0x5f1   : > { %v9519_v21 = vld [vmem:[%s12723_s5 + $0x2b4] ss:$20 sps:$4 sm:$0xff]  }
 0x5f3   : > { %6949 = vmatpush1.bf16.msra.mxu1 %v9457_v1  ;;  %6822 = vmatpush1.bf16.msra.mxu0 %v9496_v52 }
 0x5f4   : > { %6950 = vmatprep.subr.bf16.mxu1 %v9462_v34  ;;  %6823 = vmatprep.subr.bf16.mxu0 %v9504_v9 }
 0x5f5   : > { %5242 = vmatmul.mubr.bf16.gmra.mrb[192].mxu1 %v11561_v3  ;;  %6735 = vmatmul.mubr.bf16.gmra.mrb[216].mxu0 %v11561_v3 }
 0x5f6   : > { %5247 = vmatprep.mubr.bf16.mxu1 %v11567_v35  ;;  %6744 = vmatprep.mubr.bf16.mxu0 %v11567_v35 }
 0x5f7   : > { %6951 = vmatpush1.bf16.msra.mxu1 %v9460_v61  ;;  %6824 = vmatpush1.bf16.msra.mxu0 %v9502_v4  ;;  %v9525_v4 = vld [vmem:[%s12723_s5 + $0x304] ss:$20 sps:$4 sm:$0xff]  }
 0x5f8   : > { %6952 = vmatprep.subr.bf16.mxu1 %v9465_v30  ;;  %6825 = vmatprep.subr.bf16.mxu0 %v9510_v42 }
 0x5fb   : > { %6953 = vmatpush1.bf16.msra.mxu1 %v9463_v24  ;;  %6826 = vmatpush1.bf16.msra.mxu0 %v9508_v63  ;;  %v9523_v24 = vld [vmem:[%s12723_s5 + $0x300] ss:$20 sps:$4 sm:$0xff]  }
 0x5fc   : > { %6954 = vmatprep.subr.bf16.mxu1 %v9468_v23 }
 0x5fd   : > { %5248 = vmatmul.mubr.bf16.gmra.mrb[196].mxu1 %v11571_v12  ;;  %6745 = vmatmul.mubr.bf16.gmra.mrb[220].mxu0 %v11571_v12 }
 0x5fe   : > { %5255 = vmatprep.mubr.bf16.mxu1 %v11577_v5  ;;  %6754 = vmatprep.mubr.bf16.mxu0 %v11577_v5 }
 0x5ff   : > { %6955 = vmatpush1.bf16.msra.mxu1 %v9466_v32 }
 0x600   : > { %6956 = vmatprep.subr.bf16.mxu1 %v9471_v39 }
 0x603   : > { %6957 = vmatpush1.bf16.msra.mxu1 %v9469_v60 }
 0x604   : > { %6958 = vmatprep.subr.bf16.mxu1 %v9474_v6 }
 0x605   : > { %5256 = vmatmul.mubr.bf16.gmra.mrb[200].mxu1 %v11581_v55  ;;  %6755 = vmatmul.mubr.bf16.gmra.mrb[224].mxu0 %v11581_v55 }
 0x606   : > { %5263 = vmatprep.mubr.bf16.mxu1 %v11590_v38  ;;  %6764 = vmatprep.mubr.bf16.mxu0 %v11590_v38 }
 0x607   : > { %6959 = vmatpush1.bf16.msra.mxu1 %v9472_v22 }
 0x608   : > { %6960 = vmatprep.subr.bf16.mxu1 %v9477_v17 }
 0x60b   : > { %6961 = vmatpush1.bf16.msra.mxu1 %v9475_v47 }
 0x60c   : > { %6962 = vmatprep.subr.bf16.mxu1 %v9480_v44 }
 0x60d   : > { %5264 = vmatmul.mubr.bf16.gmra.mrb[204].mxu1 %v11594_v36  ;;  %6765 = vmatmul.mubr.bf16.gmra.mrb[228].mxu0 %v11594_v36 }
 0x60e   : > { %5271 = vmatprep.mubr.bf16.mxu1 %v11600_v14  ;;  %6774 = vmatprep.mubr.bf16.mxu0 %v11600_v14 }
 0x60f   : > { %6963 = vmatpush1.bf16.msra.mxu1 %v9478_v37 }
 0x610   : > { %6964 = vmatprep.subr.bf16.mxu1 %v9483_v29 }
 0x613   : > { %6965 = vmatpush1.bf16.msra.mxu1 %v9481_v2 }
 0x614   : > { %6966 = vmatprep.subr.bf16.mxu1 %v9486_v62 }
 0x615   : > { %5272 = vmatmul.mubr.bf16.gmra.mrb[208].mxu1 %v11604_v19  ;;  %6775 = vmatmul.mubr.bf16.gmra.mrb[232].mxu0 %v11604_v19 }
 0x616   : > { %5279 = vmatprep.mubr.bf16.mxu1 %v11610_v25  ;;  %6784 = vmatprep.mubr.bf16.mxu0 %v11610_v25 }
 0x617   : > { %6967 = vmatpush1.bf16.msra.mxu1 %v9484_v15 }
 0x618   : > { %6968 = vmatprep.subr.bf16.mxu1 %v9489_v59 }
 0x61b   : > { %6969 = vmatpush1.bf16.msra.mxu1 %v9487_v58 }
 0x61c   : > { %6970 = vmatprep.subr.bf16.mxu1 %v9495_v40 }
 0x61d   : > { %5280 = vmatmul.mubr.bf16.gmra.mrb[212].mxu1 %v11614_v16  ;;  %6785 = vmatmul.mubr.bf16.gmra.mrb[236].mxu0 %v11614_v16 }
 0x61e   : > { %5287 = vmatprep.mubr.bf16.mxu1 %v11620_v31  ;;  %6794 = vmatprep.mubr.bf16.mxu0 %v11620_v31 }
 0x61f   : > { %6971 = vmatpush1.bf16.msra.mxu1 %v9493_v33 }
 0x620   : > { %6972 = vmatprep.subr.bf16.mxu1 %v9501_v7 }
 0x623   : > { %6973 = vmatpush1.bf16.msra.mxu1 %v9499_v46 }
 0x624   : > { %6974 = vmatprep.subr.bf16.mxu1 %v9507_v54 }
 0x625   : > { %5288 = vmatmul.mubr.bf16.gmra.mrb[216].mxu1 %v11624_v49  ;;  %6795 = vmatmul.mubr.bf16.gmra.mrb[240].mxu0 %v11624_v49 }
 0x626   : > { %5295 = vmatprep.mubr.bf16.mxu1 %v11633_v53  ;;  %6804 = vmatprep.mubr.bf16.mxu0 %v11633_v53 }
 0x627   : > { %6975 = vmatpush1.bf16.msra.mxu1 %v9505_v41 }
 0x628   : > { %6976 = vmatprep.subr.bf16.mxu1 %v9513_v57 }
 0x62b   : > { %6977 = vmatpush1.bf16.msra.mxu1 %v9511_v50 }
 0x62c   : > { %7071 = vmatprep.subr.bf16.mxu1 %v9516_v18 }
 0x62d   : > { %5296 = vmatmul.mubr.bf16.gmra.mrb[220].mxu1 %v11644_v10  ;;  %6805 = vmatmul.mubr.bf16.gmra.mrb[244].mxu0 %v11644_v10 }
 0x62e   : > { %5303 = vmatprep.mubr.bf16.mxu1 %v11631_v27  ;;  %6812 = vmatprep.mubr.bf16.mxu0 %v11631_v27 }
 0x635   : > { %5304 = vmatmul.mubr.bf16.gmra.mrb[224].mxu1 %v11656_v8  ;;  %6813 = vmatmul.mubr.bf16.gmra.mrb[248].mxu0 %v11656_v8 }
 0x636   : > { %6851 = vmatprep.mubr.bf16.mxu0 %v9675_v0  ;;  %6978 = vmatprep.mubr.bf16.mxu1 %v11658_v28  ;;  %v9517_v28 = vld [vmem:[%s12723_s5 + $0x2b0] ss:$20 sps:$4 sm:$0xff]  }
 0x63d   : > { %8661 = vmatmul.mubr.msk.bf16.vlgmr.msra.gmra.mrb[212].mxu0 %vm499_vm1, %v11821_v26  ;;  %6979 = vmatmul.mubr.bf16.vlgmr.msra.gmra.mrb[228].mxu1 %v11663_v11  ;;  %v9522_v11 = vld [vmem:[%s12723_s5 + $0x2dc] ss:$20 sps:$4 sm:$0xff]  }
 0x63e   : > { %6984 = vmatprep.mubr.bf16.mxu1 %v11557_v43  ;;  %7072 = vmatpush1.bf16.msra.mxu1 %v9514_v51  ;;  %v9520_v43 = vld [vmem:[%s12723_s5 + $0x2d8] ss:$20 sps:$4 sm:$0xff]  }
 0x63f   : > { %7073 = vmatprep.subr.bf16.mxu1 %v9519_v21  ;;  %6861 = vmatprep.mubr.bf16.mxu0 %v9675_v0 }
 0x642   : > { %7074 = vmatpush1.bf16.msra.mxu1 %v9517_v28 }
 0x643   : > { %7075 = vmatprep.subr.bf16.mxu1 %v9522_v11 }
 0x645   : > { %6985 = vmatmul.mubr.bf16.gmra.mrb[232].mxu1 %v11561_v3 }
 0x646   : > { %6992 = vmatprep.mubr.bf16.mxu1 %v11567_v35  ;;  %7076 = vmatpush1.bf16.msra.mxu1 %v9520_v43 }
 0x647   : > { %7077 = vmatprep.subr.bf16.mxu1 %v9525_v4 }
 0x64a   : > { %7078 = vmatpush1.bf16.msra.mxu1 %v9523_v24 }
 0x64d   : > { %6993 = vmatmul.mubr.bf16.gmra.mrb[236].mxu1 %v11571_v12 }
 0x64e   : > { %7002 = vmatprep.mubr.bf16.mxu1 %v11577_v5 }
 0x655   : > { %7003 = vmatmul.mubr.bf16.gmra.mrb[240].mxu1 %v11581_v55 }
 0x656   : > { %7012 = vmatprep.mubr.bf16.mxu1 %v11590_v38 }
 0x65c   : > { %v4995_v3 = vpop.f32.mrb[152].mxu1  ;;  %v11850_v35 = vpop.f32.mrb[176].mxu0 }
 0x65d   : > { %7013 = vmatmul.mubr.bf16.gmra.mrb[244].mxu1 %v11594_v36  ;;  %5640 = vrot.lane.b32.xlu1 %v11850_v35, %s9676_s18  ;;  %v4997_v12 = vpop.f32.mrb[153].mxu1  ;;  %v5120_v5 = vpop.f32.mrb[177].mxu0  ;;  %v5321_v52 = vrot.slane %v4995_v3, 7 }
 0x65e   : > { %7022 = vmatprep.mubr.bf16.mxu1 %v11600_v14  ;;  %v4999_v56 = vpop.f32.mrb[154].mxu1  ;;  %v5121_v1 = vpop.f32.mrb[178].mxu0  ;;  %v5449_v9 = vrot.slane %v4997_v12, 1 }
 0x65f   : > { %v5329_v34 = vrot.slane %v4999_v56, 7  ;;  %5642 = vrot.lane.b32.xlu0 %v5121_v1, %s9676_s18  ;;  %v5001_v55 = vpop.f32.mrb[155].mxu1  ;;  %v5123_v38 = vpop.f32.mrb[179].mxu0 }
 0x660   : > { %v5457_v36 = vrot.slane %v5001_v55, 1 }
 0x661   : > { %5388 = vrot.lane.b32.xlu1 %v4995_v3, %s9676_s18  ;;  %v11859_v14 = vsel %vm914_vm2, %v5329_v34, %v5321_v52 }
 0x662   : > { %v11863_v61 = vsel %vm1043_vm3, %v5449_v9, %v5457_v36 }
 0x663   : > { %5514 = vrot.lane.b32.xlu0 %v5001_v55, %s9676_s18 }
 0x665   : > { %7023 = vmatmul.mubr.bf16.gmra.mrb[248].mxu1 %v11604_v19  ;;  %5512 = vrot.lane.b32.xlu1 %v4997_v12, %s9676_s18 }
 0x666   : > { %7032 = vmatprep.mubr.bf16.mxu1 %v11610_v25 }
 0x66a   : > { %v5005_v30 = vpop.f32.mrb[156].mxu1  ;;  %v11872_v42 = vpop.f32.mrb[180].mxu0 }
 0x66b   : > { %v5128_v63 = vpop.f32.mrb[181].mxu0  ;;  %5644 = vrot.lane.b32.xlu1 %v11872_v42, %s9676_s18  ;;  %v5007_v19 = vpop.f32.mrb[157].mxu1  ;;  %v5322_v32 = vrot.slane %v5005_v30, 7 }
 0x66c   : > { %v5130_v25 = vpop.f32.mrb[182].mxu0  ;;  %5516 = vrot.lane.b32.xlu0 %v5007_v19, %s9676_s18  ;;  %v5009_v23 = vpop.f32.mrb[158].mxu1  ;;  %v5736_v22 = vrot.slane %v5128_v63, 7  ;;  %v5450_v17 = vrot.slane %v5007_v19, 1 }
 0x66d   : > { %v5330_v39 = vrot.slane %v5009_v23, 7  ;;  %v5011_v60 = vpop.f32.mrb[159].mxu1  ;;  %v5132_v6 = vpop.f32.mrb[183].mxu0  ;;  %7033 = vmatmul.mubr.bf16.gmra.mrb[252].mxu1 %v11614_v16 }
 0x66e   : > { %v5458_v47 = vrot.slane %v5011_v60, 1  ;;  %v5744_v44 = vrot.slane %v5132_v6, 7  ;;  %7042 = vmatprep.mubr.bf16.mxu1 %v11620_v31 }
 0x66f   : > { %5392 = vrot.lane.b32.xlu1 %v5005_v30, %s9676_s18  ;;  %v11885_v37 = vsel %vm914_vm2, %v5330_v39, %v5322_v32 }
 0x670   : > { %5800 = vrot.lane.b32.xlu0 %v5128_v63, %s9676_s18  ;;  %v11890_v29 = vsel %vm1043_vm3, %v5450_v17, %v5458_v47  ;;  %v11894_v16 = vsel %vm914_vm2, %v5744_v44, %v5736_v22 }
 0x673   : > { %5518 = vrot.lane.b32.xlu1 %v5011_v60, %s9676_s18 }
 0x674   : > { %5646 = vrot.lane.b32.xlu0 %v5130_v25, %s9676_s18 }
 0x675   : > { %7043 = vmatmul.mubr.bf16.gmra.mrb[0].mxu1 %v11624_v49 }
 0x676   : > { %v5015_v31 = vpop.f32.mrb[160].mxu1  ;;  %v11899_v2 = vpop.f32.mrb[184].mxu0  ;;  %7052 = vmatprep.mubr.bf16.mxu1 %v11633_v53 }
 0x677   : > { %5648 = vrot.lane.b32.xlu1 %v11899_v2, %s9676_s18  ;;  %v5017_v62 = vpop.f32.mrb[161].mxu1  ;;  %v5138_v15 = vpop.f32.mrb[185].mxu0  ;;  %v5323_v40 = vrot.slane %v5015_v31, 7 }
 0x678   : > { %v5140_v59 = vpop.f32.mrb[186].mxu0  ;;  %5520 = vrot.lane.b32.xlu0 %v5017_v62, %s9676_s18  ;;  %v5019_v58 = vpop.f32.mrb[162].mxu1  ;;  %v5451_v54 = vrot.slane %v5017_v62, 1  ;;  %v5737_v49 = vrot.slane %v5138_v15, 7 }
 0x679   : > { %v5331_v33 = vrot.slane %v5019_v58, 7  ;;  %v5021_v7 = vpop.f32.mrb[163].mxu1  ;;  %v5142_v46 = vpop.f32.mrb[187].mxu0 }
 0x67a   : > { %v5459_v41 = vrot.slane %v5021_v7, 1  ;;  %v5745_v57 = vrot.slane %v5142_v46, 7 }
 0x67b   : > { %5396 = vrot.lane.b32.xlu1 %v5015_v31, %s9676_s18  ;;  %v11908_v53 = vsel %vm914_vm2, %v5331_v33, %v5323_v40 }
 0x67c   : > { %5804 = vrot.lane.b32.xlu0 %v5138_v15, %s9676_s18  ;;  %v11913_v50 = vsel %vm1043_vm3, %v5451_v54, %v5459_v41  ;;  %v11917_v18 = vsel %vm914_vm2, %v5745_v57, %v5737_v49 }
 0x67d   : > { %7053 = vmatmul.mubr.bf16.gmra.mrb[4].mxu1 %v11644_v10 }
 0x67e   : > { %7062 = vmatprep.mubr.bf16.mxu1 %v11631_v27 }
 0x67f   : > { %5522 = vrot.lane.b32.xlu1 %v5021_v7, %s9676_s18 }
 0x680   : > { %5650 = vrot.lane.b32.xlu0 %v5140_v59, %s9676_s18 }
 0x682   : > { %v5025_v51 = vpop.f32.mrb[164].mxu1  ;;  %v11923_v21 = vpop.f32.mrb[188].mxu0 }
 0x683   : > { %v5148_v28 = vpop.f32.mrb[189].mxu0  ;;  %5652 = vrot.lane.b32.xlu1 %v11923_v21, %s9676_s18  ;;  %v5027_v43 = vpop.f32.mrb[165].mxu1  ;;  %v5324_v12 = vrot.slane %v5025_v51, 7 }
 0x684   : > { %v5150_v11 = vpop.f32.mrb[190].mxu0  ;;  %5524 = vrot.lane.b32.xlu0 %v5027_v43, %s9676_s18  ;;  %v5029_v3 = vpop.f32.mrb[166].mxu1  ;;  %v5738_v56 = vrot.slane %v5148_v28, 7  ;;  %v5452_v1 = vrot.slane %v5027_v43, 1 }
 0x685   : > { %v5332_v10 = vrot.slane %v5029_v3, 7  ;;  %v5031_v5 = vpop.f32.mrb[167].mxu1  ;;  %v5152_v27 = vpop.f32.mrb[191].mxu0  ;;  %7063 = vmatmul.mubr.bf16.gmra.mrb[8].mxu1 %v11656_v8 }
 0x686   : > { %v5460_v52 = vrot.slane %v5031_v5, 1  ;;  %v5746_v34 = vrot.slane %v5152_v27, 7  ;;  %7103 = vmatprep.mubr.bf16.mxu1 %v9675_v0 }
 0x687   : > { %5400 = vrot.lane.b32.xlu1 %v5025_v51, %s9676_s18  ;;  %v11933_v55 = vsel %vm914_vm2, %v5332_v10, %v5324_v12 }
 0x688   : > { %5808 = vrot.lane.b32.xlu0 %v5148_v28, %s9676_s18  ;;  %v11938_v38 = vsel %vm1043_vm3, %v5452_v1, %v5460_v52  ;;  %v11942_v8 = vsel %vm914_vm2, %v5746_v34, %v5738_v56 }
 0x68b   : > { %5526 = vrot.lane.b32.xlu1 %v5031_v5, %s9676_s18 }
 0x68c   : > { %5654 = vrot.lane.b32.xlu0 %v5150_v11, %s9676_s18 }
 0x68d   : > { %8671 = vmatmul.mubr.msk.bf16.vlgmr.msra.gmra.mrb[12].mxu1 %vm499_vm1, %v11821_v26 }
 0x68e   : > { %7109 = vmatprep.mubr.bf16.mxu1 %v9675_v0 }
 0x68f   : > { %v5035_v9 = vpop.f32.mrb[168].mxu1  ;;  %v11949_v36 = vpop.f32.mrb[192].mxu0 }
 0x690   : > { %5656 = vrot.lane.b32.xlu1 %v11949_v36, %s9676_s18  ;;  %v5037_v4 = vpop.f32.mrb[169].mxu1  ;;  %v5158_v30 = vpop.f32.mrb[193].mxu0  ;;  %v5325_v19 = vrot.slane %v5035_v9, 7 }
 0x691   : > { %v5160_v24 = vpop.f32.mrb[194].mxu0  ;;  %5528 = vrot.lane.b32.xlu0 %v5037_v4, %s9676_s18  ;;  %v5039_v63 = vpop.f32.mrb[170].mxu1  ;;  %v5453_v39 = vrot.slane %v5037_v4, 1  ;;  %v5739_v26 = vrot.slane %v5158_v30, 7 }
 0x692   : > { %v5333_v25 = vrot.slane %v5039_v63, 7  ;;  %v5041_v23 = vpop.f32.mrb[171].mxu1  ;;  %v5162_v32 = vpop.f32.mrb[195].mxu0 }
 0x693   : > { %v5461_v60 = vrot.slane %v5041_v23, 1  ;;  %v5747_v6 = vrot.slane %v5162_v32, 7 }
 0x694   : > { %5404 = vrot.lane.b32.xlu1 %v5035_v9, %s9676_s18  ;;  %v11957_v22 = vsel %vm914_vm2, %v5333_v25, %v5325_v19 }
 0x695   : > { %5812 = vrot.lane.b32.xlu0 %v5158_v30, %s9676_s18  ;;  %v11962_v17 = vsel %vm1043_vm3, %v5453_v39, %v5461_v60  ;;  %v11966_v47 = vsel %vm914_vm2, %v5747_v6, %v5739_v26 }
 0x698   : > { %5530 = vrot.lane.b32.xlu1 %v5041_v23, %s9676_s18 }
 0x699   : > { %5658 = vrot.lane.b32.xlu0 %v5160_v24, %s9676_s18 }
 0x69b   : > { %v5045_v44 = vpop.f32.mrb[172].mxu1  ;;  %v11970_v31 = vpop.f32.mrb[196].mxu0 }
 0x69c   : > { %v5168_v62 = vpop.f32.mrb[197].mxu0  ;;  %5660 = vrot.lane.b32.xlu1 %v11970_v31, %s9676_s18  ;;  %v5047_v15 = vpop.f32.mrb[173].mxu1  ;;  %v5326_v40 = vrot.slane %v5045_v44, 7 }
 0x69d   : > { %v5170_v59 = vpop.f32.mrb[198].mxu0  ;;  %5532 = vrot.lane.b32.xlu0 %v5047_v15, %s9676_s18  ;;  %v5049_v58 = vpop.f32.mrb[174].mxu1  ;;  %v5740_v54 = vrot.slane %v5168_v62, 7  ;;  %v5454_v49 = vrot.slane %v5047_v15, 1 }
 0x69e   : > { %v5334_v33 = vrot.slane %v5049_v58, 7  ;;  %v5051_v7 = vpop.f32.mrb[175].mxu1  ;;  %v5172_v46 = vpop.f32.mrb[199].mxu0  ;;  %v9526_v58 = vld [vmem:[%s12723_s5 + $0x150] ss:$20 sps:$4 sm:$0xff]  }
 0x69f   : > { %v5462_v41 = vrot.slane %v5051_v7, 1  ;;  %v5748_v57 = vrot.slane %v5172_v46, 7  ;;  %8805 = vmatprep.subr.bf16.mxu0 %v9526_v58 }
 0x6a0   : > { %5408 = vrot.lane.b32.xlu1 %v5045_v44, %s9676_s18  ;;  %v11978_v51 = vsel %vm914_vm2, %v5334_v33, %v5326_v40  ;;  %v9527_v40 = vld [vmem:[%s12723_s5 + $0x10] ss:$20 sps:$4 sm:$0xff]  }
 0x6a1   : > { %5816 = vrot.lane.b32.xlu0 %v5168_v62, %s9676_s18  ;;  %v11983_v28 = vsel %vm1043_vm3, %v5454_v49, %v5462_v41  ;;  %v11987_v43 = vsel %vm914_vm2, %v5748_v57, %v5740_v54  ;;  %8806 = vmatpush3.bf16.msra.mxu0 %v9527_v40  ;;  %v9539_v40 = vld [vmem:[%s12723_s5 + $0xd8] ss:$20 sps:$4 sm:$0xff]  }
 0x6a4   : > { %5534 = vrot.lane.b32.xlu1 %v5051_v7, %s9676_s18 }
 0x6a5   : > { %5662 = vrot.lane.b32.xlu0 %v5170_v59, %s9676_s18  ;;  %v5055_v11 = vpop.f32.mrb[176].mxu1  ;;  %v11991_v3 = vpop.f32.mrb[200].mxu0 }
 0x6a6   : > { %v5057_v12 = vpop.f32.mrb[177].mxu1  ;;  %v5178_v10 = vpop.f32.mrb[201].mxu0  ;;  %v5327_v56 = vrot.slane %v5055_v11, 7 }
 0x6a7   : > { %v5059_v5 = vpop.f32.mrb[178].mxu1  ;;  %v5180_v27 = vpop.f32.mrb[202].mxu0  ;;  %v5455_v9 = vrot.slane %v5057_v12, 1  ;;  %v5741_v4 = vrot.slane %v5178_v10, 7 }
 0x6a8   : > { %v5335_v1 = vrot.slane %v5059_v5, 7  ;;  %5664 = vrot.lane.b32.xlu1 %v11991_v3, %s9676_s18  ;;  %v5061_v52 = vpop.f32.mrb[179].mxu1  ;;  %v5182_v34 = vpop.f32.mrb[203].mxu0  ;;  %v9528_v5 = vld [vmem:[%s12723_s5 + $0x178] ss:$20 sps:$4 sm:$0xff]  }
 0x6a9   : > { %v5463_v30 = vrot.slane %v5061_v52, 1  ;;  %v5749_v24 = vrot.slane %v5182_v34, 7  ;;  %5536 = vrot.lane.b32.xlu0 %v5057_v12, %s9676_s18  ;;  %8807 = vmatprep.subr.bf16.mxu0 %v9528_v5 }
 0x6aa   : > { %v11998_v63 = vsel %vm914_vm2, %v5335_v1, %v5327_v56  ;;  %v9529_v56 = vld [vmem:[%s12723_s5 + $0x38] ss:$20 sps:$4 sm:$0xff]  }
 0x6ab   : > { %v12002_v19 = vsel %vm914_vm2, %v5749_v24, %v5741_v4  ;;  %v12006_v25 = vsel %vm1043_vm3, %v5455_v9, %v5463_v30  ;;  %8808 = vmatpush3.bf16.msra.mxu0 %v9529_v56  ;;  %v9531_v9 = vld [vmem:[%s12723_s5 + $0x60] ss:$20 sps:$4 sm:$0xff]   ;;  %v9532_v4 = vld [vmem:[%s12723_s5 + $0x1c8] ss:$20 sps:$4 sm:$0xff]  }
 0x6ac   : > { %5538 = vrot.lane.b32.xlu1 %v5061_v52, %s9676_s18  ;;  %v9530_v52 = vld [vmem:[%s12723_s5 + $0x1a0] ss:$20 sps:$4 sm:$0xff]   ;;  %v9545_v56 = vld [vmem:[%s12723_s5 + $0x128] ss:$20 sps:$4 sm:$0xff]  }
 0x6ad   : > { %5820 = vrot.lane.b32.xlu0 %v5178_v10, %s9676_s18  ;;  %8809 = vmatprep.subr.bf16.mxu0 %v9530_v52 }
 0x6af   : > { %8810 = vmatpush3.bf16.msra.mxu0 %v9531_v9 }
 0x6b0   : > { %v12010_v23 = vpop.f32.mrb[204].mxu0  ;;  %5412 = vrot.lane.b32.xlu1 %v5055_v11, %s9676_s18  ;;  %v5065_v32 = vpop.f32.mrb[180].mxu1  ;;  %8811 = vmatprep.subr.bf16.mxu0 %v9532_v4  ;;  %v5354_v4 = vadd.f32 %v11638_v45, %v11859_v14 }
 0x6b1   : > { %v5188_v39 = vpop.f32.mrb[205].mxu0  ;;  %5666 = vrot.lane.b32.xlu0 %v5180_v27, %s9676_s18  ;;  %v5066_v26 = vpop.f32.mrb[181].mxu1  ;;  %v9533_v32 = vld [vmem:[%s12723_s5 + $0x88] ss:$20 sps:$4 sm:$0xff]  }
 0x6b2   : > { %v5068_v60 = vpop.f32.mrb[182].mxu1  ;;  %v5190_v6 = vpop.f32.mrb[206].mxu0  ;;  %v5742_v15 = vrot.slane %v5188_v39, 7 }
 0x6b3   : > { %v5069_v44 = vpop.f32.mrb[183].mxu1  ;;  %v5192_v62 = vpop.f32.mrb[207].mxu0  ;;  %8812 = vmatpush3.bf16.msra.mxu0 %v9533_v32  ;;  %v9535_v60 = vld [vmem:[%s12723_s5 + $0x290] ss:$20 sps:$4 sm:$0xff]  }
 0x6b4   : > { %v5750_v59 = vrot.slane %v5192_v62, 7  ;;  %5542 = vrot.lane.b32.xlu1 %v5069_v44, %s9676_s18  ;;  %v9536_v44 = vld [vmem:[%s12723_s5 + $0xb0] ss:$20 sps:$4 sm:$0xff]   ;;  %v9537_v62 = vld [vmem:[%s12723_s5 + $0x218] ss:$20 sps:$4 sm:$0xff]   ;;  %8959 = vmatprep.subr.bf16.mxu1 %v9535_v60 }
 0x6b5   : > { %5540 = vrot.lane.b32.xlu0 %v5066_v26, %s9676_s18  ;;  %v9534_v26 = vld [vmem:[%s12723_s5 + $0x1f0] ss:$20 sps:$4 sm:$0xff]   ;;  %8960 = vmatpush3.bf16.msra.mxu1 %v9535_v60 }
 0x6b6   : > { %v12024_v33 = vsel %vm914_vm2, %v5750_v59, %v5742_v15  ;;  %8813 = vmatprep.subr.bf16.mxu0 %v9534_v26  ;;  %v9538_v59 = vld [vmem:[%s12723_s5 + $0x2b8] ss:$20 sps:$4 sm:$0xff]  }
 0x6b7   : > { %8814 = vmatpush3.bf16.msra.mxu0 %v9536_v44  ;;  %8961 = vmatprep.subr.bf16.mxu1 %v9538_v59 }
 0x6b8   : > { %5668 = vrot.lane.b32.xlu1 %v12010_v23, %s9676_s18  ;;  %v5073_v7 = vpop.f32.mrb[184].mxu1  ;;  %v5196_v46 = vpop.f32.mrb[208].mxu0  ;;  %8815 = vmatprep.subr.bf16.mxu0 %v9537_v62 }
 0x6b9   : > { %5824 = vrot.lane.b32.xlu0 %v5188_v39, %s9676_s18  ;;  %v5074_v54 = vpop.f32.mrb[185].mxu1  ;;  %v5197_v49 = vpop.f32.mrb[209].mxu0  ;;  %8962 = vmatpush3.bf16.msra.mxu1 %v9538_v59  ;;  %v9540_v46 = vld [vmem:[%s12723_s5 + $0x240] ss:$20 sps:$4 sm:$0xff]  }
 0x6ba   : > { %v5743_v41 = vrot.slane %v5197_v49, 7  ;;  %v5075_v57 = vpop.f32.mrb[186].mxu1  ;;  %v5199_v11 = vpop.f32.mrb[210].mxu0  ;;  %v9541_v54 = vld [vmem:[%s12723_s5 + $0x2e0] ss:$20 sps:$4 sm:$0xff]  }
 0x6bb   : > { %v5076_v12 = vpop.f32.mrb[187].mxu1  ;;  %v5200_v10 = vpop.f32.mrb[211].mxu0  ;;  %8816 = vmatpush3.bf16.msra.mxu0 %v9539_v40  ;;  %v9543_v57 = vld [vmem:[%s12723_s5 + $0x268] ss:$20 sps:$4 sm:$0xff]   ;;  %8963 = vmatprep.subr.bf16.mxu1 %v9541_v54 }
 0x6bc   : > { %v5751_v27 = vrot.slane %v5200_v10, 7  ;;  %5828 = vrot.lane.b32.xlu1 %v5197_v49, %s9676_s18  ;;  %8817 = vmatprep.subr.bf16.mxu0 %v9540_v46  ;;  %v9544_v10 = vld [vmem:[%s12723_s5 + $0x308] ss:$20 sps:$4 sm:$0xff]  }
 0x6bd   : > { %5670 = vrot.lane.b32.xlu0 %v5190_v6, %s9676_s18  ;;  %8964 = vmatpush3.bf16.msra.mxu1 %v9541_v54 }
 0x6be   : > { %v12039_v1 = vsel %vm914_vm2, %v5751_v27, %v5743_v41  ;;  %v9542_v41 = vld [vmem:[%s12723_s5 + $0x100] ss:$20 sps:$4 sm:$0xff]   ;;  %8965 = vmatprep.subr.bf16.mxu1 %v9544_v10 }
 0x6bf   : > { %8818 = vmatpush3.bf16.msra.mxu0 %v9542_v41 }
 0x6c0   : > { %v8745_v34 = vpop.f32.mrb[188].mxu1  ;;  %8819 = vmatprep.subr.bf16.mxu0 %v9543_v57 }
 0x6c1   : > { %v8746_v30 = vpop.f32.mrb[189].mxu1  ;;  %8966 = vmatpush3.bf16.msra.mxu1 %v9544_v10 }
 0x6c2   : > { %v8748_v24 = vpop.f32.mrb[190].mxu1 }
 0x6c3   : > { %v8749_v39 = vpop.f32.mrb[191].mxu1  ;;  %8820 = vmatpush3.bf16.msra.mxu0 %v9545_v56 }
 0x6c8   : > { %v8751_v6 = vpop.f32.mrb[192].mxu1 }
 0x6c9   : > { %v8752_v15 = vpop.f32.mrb[193].mxu1 }
 0x6ca   : > { %v8754_v58 = vpop.f32.mrb[194].mxu1 }
 0x6cb   : > { %v8755_v7 = vpop.f32.mrb[195].mxu1 }
 0x6cf   : > { %v5641_v11 = vpop.permute.xlu1 %5640 }
 0x6d0   : > { %v8757_v49 = vpop.f32.mrb[196].mxu1 }
 0x6d1   : > { %v8758_v12 = vpop.f32.mrb[197].mxu1  ;;  %v5643_v34 = vpop.permute.xlu0 %5642 }
 0x6d2   : > { %v8759_v5 = vadd.f32 %v8758_v12, %v8757_v49  ;;  %v8760_v27 = vpop.f32.mrb[198].mxu1  ;;  %v5696_v46 = vrot.slane %v5643_v34, 1 }
 0x6d3   : > { %v8761_v52 = vpop.f32.mrb[199].mxu1  ;;  %v5389_v30 = vpop.permute.xlu1 %5388 }
 0x6d4   : > { %v8762_v9 = vadd.f32 %v8761_v52, %v8760_v27  ;;  %v5864_v24 = vrot.slane %v8759_v5, 1  ;;  %v5434_v39 = vadd.f32 %v5389_v30, %v5354_v4  ;;  %v5356_v52 = vadd.f32 %v11638_v45, %v11885_v37 }
 0x6d5   : > { %v5515_v26 = vpop.permute.xlu0 %5514 }
 0x6d6   : > { %v5872_v32 = vrot.slane %v8762_v9, 1  ;;  %v5482_v60 = vadd.f32 %v11863_v61, %v5434_v39  ;;  %v5568_v59 = vrot.slane %v5515_v26, 7  ;;  %v5688_v61 = vrot.slane %v5641_v11, 1 }
 0x6d7   : > { %v5513_v62 = vpop.permute.xlu1 %5512 }
 0x6d8   : > { %v8763_v6 = vpop.f32.mrb[200].mxu1  ;;  %v5880_v44 = vsel %vm1043_vm3, %v5864_v24, %v5872_v32  ;;  %v5560_v58 = vrot.slane %v5513_v62, 7  ;;  %v5704_v34 = vsel %vm1043_vm3, %v5688_v61, %v5696_v46 }
 0x6d9   : > { %v8764_v15 = vpop.f32.mrb[201].mxu1 }
 0x6da   : > { %v8765_v40 = vadd.f32 %v8764_v15, %v8763_v6  ;;  %v8766_v7 = vpop.f32.mrb[202].mxu1  ;;  %v5584_v54 = vsel %vm914_vm2, %v5568_v59, %v5560_v58 }
 0x6db   : > { %v8767_v14 = vpop.f32.mrb[203].mxu1  ;;  %v5592_v41 = vadd.f32 %v5584_v54, %v11654_v13 }
 0x6dc   : > { %v8768_v49 = vadd.f32 %v8767_v14, %v8766_v7  ;;  %v5865_v12 = vrot.slane %v8765_v40, 1 }
 0x6dd   : > { %v5645_v57 = vpop.permute.xlu1 %5644  ;;  %v5608_v27 = vadd.f32 %v5592_v41, %v11850_v35 }
 0x6de   : > { %v5873_v10 = vrot.slane %v8768_v49, 1  ;;  %v5517_v5 = vpop.permute.xlu0 %5516 }
 0x6df   : > { %v5720_v13 = vadd.f32 %v5704_v34, %v5608_v27  ;;  %v5561_v59 = vrot.slane %v5517_v5, 7  ;;  %v5689_v5 = vrot.slane %v5645_v57, 1 }
 0x6e0   : > { %v8769_v56 = vpop.f32.mrb[204].mxu1  ;;  %v5881_v9 = vsel %vm1043_vm3, %v5865_v12, %v5873_v10 }
 0x6e1   : > { %v5393_v4 = vpop.permute.xlu1 %5392  ;;  %v8770_v30 = vpop.f32.mrb[205].mxu1  ;;  %v5768_v26 = vadd.f32 %v11894_v16, %v5720_v13 }
 0x6e2   : > { %v5436_v24 = vadd.f32 %v5393_v4, %v5356_v52  ;;  %v8771_v11 = vadd.f32 %v8770_v30, %v8769_v56  ;;  %v8772_v32 = vpop.f32.mrb[206].mxu1  ;;  %v5801_v39 = vpop.permute.xlu0 %5800 }
 0x6e3   : > { %v8773_v35 = vpop.f32.mrb[207].mxu1  ;;  %v5848_v37 = vadd.f32 %v5801_v39, %v5768_v26 }
 0x6e4   : > { %v5484_v6 = vadd.f32 %v11890_v29, %v5436_v24  ;;  %v8774_v62 = vadd.f32 %v8773_v35, %v8772_v32  ;;  %v5866_v58 = vrot.slane %v8771_v11, 1  ;;  %v5358_v11 = vadd.f32 %v11638_v45, %v11908_v53 }
 0x6e5   : > { %v5519_v15 = vpop.permute.xlu1 %5518  ;;  %v5896_v46 = vadd.f32 %v5880_v44, %v5848_v37 }
 0x6e6   : > { %v5874_v40 = vrot.slane %v8774_v62, 1  ;;  %v5569_v7 = vrot.slane %v5519_v15, 7  ;;  %v5647_v14 = vpop.permute.xlu0 %5646 }
 0x6e7   : > { %v5697_v49 = vrot.slane %v5647_v14, 1  ;;  %vm5912_vm4 = vcmp.ge.f32.partialorder %v5896_v46, 0.0  ;;  %v5928_v29 = vmul.f32 0.2, %v5896_v46 }
 0x6e8   : > { %v5585_v54 = vsel %vm914_vm2, %v5569_v7, %v5561_v59  ;;  %v8775_v41 = vpop.f32.mrb[208].mxu1  ;;  %v12110_v16 = vsel %vm1043_vm3, %v5866_v58, %v5874_v40 }
 0x6e9   : > { %v5594_v61 = vadd.f32 %v5585_v54, %v5482_v60  ;;  %v5649_v12 = vpop.permute.xlu1 %5648  ;;  %v8776_v10 = vpop.f32.mrb[209].mxu1  ;;  %v5944_v34 = vsel %vm5912_vm4, %v5896_v46, %v5928_v29  ;;  %v5705_v13 = vsel %vm1043_vm3, %v5689_v5, %v5697_v49 }
 0x6ea   : > { %v8777_v27 = vadd.f32 %v8776_v10, %v8775_v41  ;;  %v8778_v56 = vpop.f32.mrb[210].mxu1  ;;  %v5521_v52 = vpop.permute.xlu0 %5520  ;;  %v5976_v30 = vpack.c.bf16 %v9677_v20, %v5944_v34 }
 0x6eb   : > { %v8779_v44 = vpop.f32.mrb[211].mxu1  ;;  %v5610_v4 = vadd.f32 %v5594_v61, %v11872_v42  ;;  %v5562_v58 = vrot.slane %v5521_v52, 7 }
 0x6ec   : > { %v8780_v24 = vadd.f32 %v8779_v44, %v8778_v56  ;;  %5984 = vst.msk [vmem:[#allocation2 + $0x28] sm:$0xff] %vm499_vm1, %v5976_v30  ;;  %v5867_v57 = vrot.slane %v8777_v27, 1  ;;  %v5690_v27 = vrot.slane %v5649_v12, 1  ;;  %v12144_v30 = vld [vmem:[%s12724_s6 + $0x3] ss:$0 sm:$0xff] }
 0x6ed   : > { %v5397_v60 = vpop.permute.xlu1 %5396  ;;  %v5722_v32 = vadd.f32 %v5705_v13, %v5610_v4  ;;  %v5360_v13 = vadd.f32 %v12144_v30, %v11933_v55 }
 0x6ee   : > { %v5875_v39 = vrot.slane %v8780_v24, 1  ;;  %v5438_v26 = vadd.f32 %v5397_v60, %v5358_v11  ;;  %v5805_v35 = vpop.permute.xlu0 %5804 }
 0x6ef   : > { %v5770_v62 = vadd.f32 %v11917_v18, %v5722_v32 }
 0x6f0   : > { %v12121_v42 = vadd.f32 %v11913_v50, %v5438_v26  ;;  %v8781_v37 = vpop.f32.mrb[212].mxu1  ;;  %v12125_v15 = vsel %vm1043_vm3, %v5867_v57, %v5875_v39 }
 0x6f1   : > { %v5850_v59 = vadd.f32 %v5805_v35, %v5770_v62  ;;  %v5523_v45 = vpop.permute.xlu1 %5522  ;;  %v8782_v53 = vpop.f32.mrb[213].mxu1 }
 0x6f2   : > { %v5570_v40 = vrot.slane %v5523_v45, 7  ;;  %v8783_v7 = vadd.f32 %v8782_v53, %v8781_v37  ;;  %v8784_v14 = vpop.f32.mrb[214].mxu1  ;;  %v5651_v46 = vpop.permute.xlu0 %5650 }
 0x6f3   : > { %v5898_v54 = vadd.f32 %v5881_v9, %v5850_v59  ;;  %v8785_v49 = vpop.f32.mrb[215].mxu1  ;;  %v5698_v50 = vrot.slane %v5651_v46, 1  ;;  %v12129_v5 = vld [vmem:[#allocation2 + $0x28] sm:$0xff] }
 0x6f4   : > { %v5586_v18 = vsel %vm914_vm2, %v5570_v40, %v5562_v58  ;;  %v8786_v41 = vadd.f32 %v8785_v49, %v8784_v14  ;;  %v5868_v56 = vrot.slane %v8783_v7, 1  ;;  %8662 = vmatmul.mubr.msk.bf16.gmra.mrb[216].mxu0 %vm499_vm1, %v12129_v5  ;;  %8672 = vmatmul.mubr.msk.bf16.gmra.mrb[232].mxu1 %vm499_vm1, %v12129_v5 }
 0x6f5   : > { %vm5914_vm5 = vcmp.ge.f32.partialorder %v5898_v54, 0.0  ;;  %v5930_v29 = vmul.f32 0.2, %v5898_v54  ;;  %v5596_v61 = vadd.f32 %v5586_v18, %v5484_v6  ;;  %v5653_v10 = vpop.permute.xlu1 %5652  ;;  %6871 = vmatprep.mubr.bf16.mxu0 %v9675_v0  ;;  %7117 = vmatprep.mubr.bf16.mxu1 %v9675_v0  ;;  %v5706_v12 = vsel %vm1043_vm3, %v5690_v27, %v5698_v50 }
 0x6f6   : > { %v5876_v52 = vrot.slane %v8786_v41, 1  ;;  %v5525_v9 = vpop.permute.xlu0 %5524 }
 0x6f7   : > { %v5946_v34 = vsel %vm5914_vm5, %v5898_v54, %v5930_v29  ;;  %v5612_v44 = vadd.f32 %v5596_v61, %v11899_v2  ;;  %v5563_v53 = vrot.slane %v5525_v9, 7  ;;  %v5691_v61 = vrot.slane %v5653_v10, 1 }
 0x6f8   : > { %v5977_v6 = vpack.c.bf16 %v9677_v20, %v5946_v34  ;;  %v8787_v4 = vpop.f32.mrb[216].mxu1  ;;  %v12150_v2 = vsel %vm1043_vm3, %v5868_v56, %v5876_v52 }
 0x6f9   : > { %v5401_v24 = vpop.permute.xlu1 %5400  ;;  %v8788_v11 = vpop.f32.mrb[217].mxu1  ;;  %v5724_v60 = vadd.f32 %v5706_v12, %v5612_v44  ;;  %v5362_v12 = vadd.f32 %v12144_v30, %v11957_v22 }
 0x6fa   : > { %5985 = vst.msk [vmem:[#allocation2 + $0x40] sm:$0xff] %vm499_vm1, %v5977_v6  ;;  %v5440_v32 = vadd.f32 %v5401_v24, %v5360_v13  ;;  %v8789_v57 = vadd.f32 %v8788_v11, %v8787_v4  ;;  %v8790_v39 = vpop.f32.mrb[218].mxu1  ;;  %v5809_v26 = vpop.permute.xlu0 %5808 }
 0x6fb   : > { %v5772_v35 = vadd.f32 %v11942_v8, %v5724_v60  ;;  %v8791_v62 = vpop.f32.mrb[219].mxu1 }
 0x6fc   : > { %v12155_v37 = vadd.f32 %v11938_v38, %v5440_v32  ;;  %v8792_v55 = vadd.f32 %v8791_v62, %v8790_v39  ;;  %v5869_v58 = vrot.slane %v8789_v57, 1 }
 0x6fd   : > { %v5852_v59 = vadd.f32 %v5809_v26, %v5772_v35  ;;  %v5527_v45 = vpop.permute.xlu1 %5526 }
 0x6fe   : > { %v5877_v40 = vrot.slane %v8792_v55, 1  ;;  %v5571_v7 = vrot.slane %v5527_v45, 7  ;;  %v5655_v14 = vpop.permute.xlu0 %5654 }
 0x6ff   : > { %v5900_v46 = vadd.f32 %v12110_v16, %v5852_v59  ;;  %v5699_v49 = vrot.slane %v5655_v14, 1 }
 0x700   : > { %v5587_v54 = vsel %vm914_vm2, %v5571_v7, %v5563_v53  ;;  %v8793_v18 = vpop.f32.mrb[220].mxu1  ;;  %v12162_v8 = vsel %vm1043_vm3, %v5869_v58, %v5877_v40 }
 0x701   : > { %vm5916_vm6 = vcmp.ge.f32.partialorder %v5900_v46, 0.0  ;;  %v5932_v38 = vmul.f32 0.2, %v5900_v46  ;;  %v5598_v50 = vadd.f32 %v5587_v54, %v12121_v42  ;;  %v8794_v41 = vpop.f32.mrb[221].mxu1  ;;  %v12165_v29 = vld [vmem:[#allocation2 + $0x40] sm:$0xff]  ;;  %v5707_v10 = vsel %vm1043_vm3, %v5691_v61, %v5699_v49 }
 0x702   : > { %v8795_v27 = vadd.f32 %v8794_v41, %v8793_v18  ;;  %v5657_v56 = vpop.permute.xlu1 %5656  ;;  %v8796_v16 = vpop.f32.mrb[222].mxu1  ;;  %8663 = vmatmul.mubr.msk.bf16.gmra.mrb[220].mxu0 %vm499_vm1, %v12165_v29  ;;  %8673 = vmatmul.mubr.msk.bf16.gmra.mrb[236].mxu1 %vm499_vm1, %v12165_v29 }
 0x703   : > { %v5948_v52 = vsel %vm5916_vm6, %v5900_v46, %v5932_v38  ;;  %v8797_v9 = vpop.f32.mrb[223].mxu1  ;;  %v5529_v34 = vpop.permute.xlu0 %5528  ;;  %v5614_v44 = vadd.f32 %v5598_v50, %v11923_v21  ;;  %6881 = vmatprep.mubr.bf16.mxu0 %v9675_v0  ;;  %7127 = vmatprep.mubr.bf16.mxu1 %v9675_v0 }
 0x704   : > { %v5978_v42 = vpack.c.bf16 %v9677_v20, %v5948_v52  ;;  %v8798_v6 = vadd.f32 %v8797_v9, %v8796_v16  ;;  %v5870_v13 = vrot.slane %v8795_v27, 1  ;;  %v5564_v58 = vrot.slane %v5529_v34, 7 }
 0x705   : > { %v5726_v4 = vadd.f32 %v5707_v10, %v5614_v44  ;;  %v5692_v27 = vrot.slane %v5657_v56, 1  ;;  %v5364_v56 = vadd.f32 %v12144_v30, %v11978_v51 }
 0x706   : > { %5986 = vst.msk [vmem:[#allocation2 + $0x58] sm:$0xff] %vm499_vm1, %v5978_v42  ;;  %v5878_v24 = vrot.slane %v8798_v6, 1  ;;  %v5405_v11 = vpop.permute.xlu1 %5404 }
 0x707   : > { %v5442_v21 = vadd.f32 %v5405_v11, %v5362_v12  ;;  %v5774_v60 = vadd.f32 %v11966_v47, %v5726_v4  ;;  %v5813_v32 = vpop.permute.xlu0 %5812 }
 0x708   : > { %v6814_v57 = vpop.f32.mrb[248].mxu0  ;;  %v12183_v39 = vsel %vm1043_vm3, %v5870_v13, %v5878_v24  ;;  %v8799_v26 = vpop.f32.mrb[224].mxu1 }
 0x709   : > { %v12186_v35 = vadd.f32 %v11962_v17, %v5442_v21  ;;  %v5854_v22 = vadd.f32 %v5813_v32, %v5774_v60  ;;  %v6815_v62 = vpop.f32.mrb[249].mxu0  ;;  %v8800_v55 = vpop.f32.mrb[225].mxu1 }
 0x70a   : > { %v5531_v59 = vpop.permute.xlu1 %5530  ;;  %v6816_v45 = vpop.f32.mrb[250].mxu0  ;;  %v8801_v53 = vadd.f32 %v8800_v55, %v8799_v26 }
 0x70b   : > { %v5902_v40 = vadd.f32 %v12125_v15, %v5854_v22  ;;  %v5572_v47 = vrot.slane %v5531_v59, 7  ;;  %v5659_v7 = vpop.permute.xlu0 %5658  ;;  %v6817_v14 = vpop.f32.mrb[251].mxu0 }
 0x70c   : > { %v8802_v46 = vpop.f32.mrb[226].mxu1  ;;  %v5700_v17 = vrot.slane %v5659_v7, 1  ;;  %v5871_v15 = vrot.slane %v8801_v53, 1 }
 0x70d   : > { %vm5918_vm7 = vcmp.ge.f32.partialorder %v5902_v40, 0.0  ;;  %v5934_v54 = vmul.f32 0.2, %v5902_v40  ;;  %v5588_v49 = vsel %vm914_vm2, %v5572_v47, %v5564_v58  ;;  %v12191_v18 = vld [vmem:[#allocation2 + $0x58] sm:$0xff]  ;;  %v8803_v38 = vpop.f32.mrb[227].mxu1 }
 0x70e   : > { %v5600_v50 = vadd.f32 %v5588_v49, %v12155_v37  ;;  %v5661_v41 = vpop.permute.xlu1 %5660  ;;  %8664 = vmatmul.mubr.msk.bf16.gmra.mrb[224].mxu0 %vm499_vm1, %v12191_v18  ;;  %8674 = vmatmul.mubr.msk.bf16.gmra.mrb[240].mxu1 %vm499_vm1, %v12191_v18  ;;  %v8804_v61 = vadd.f32 %v8803_v38, %v8802_v46  ;;  %v5708_v10 = vsel %vm1043_vm3, %v5692_v27, %v5700_v17 }
 0x70f   : > { %v5950_v16 = vsel %vm5918_vm7, %v5902_v40, %v5934_v54  ;;  %v5533_v52 = vpop.permute.xlu0 %5532  ;;  %6891 = vmatprep.mubr.bf16.mxu0 %v9675_v0  ;;  %7137 = vmatprep.mubr.bf16.mxu1 %v9675_v0 }
 0x710   : > { %v5979_v9 = vpack.c.bf16 %v9677_v20, %v5950_v16  ;;  %v6853_v34 = vpop.f32.mrb[212].mxu0  ;;  %v5616_v37 = vadd.f32 %v5600_v50, %v11949_v36  ;;  %v5879_v44 = vrot.slane %v8804_v61, 1  ;;  %v6980_v42 = vpop.f32.mrb[228].mxu1  ;;  %v5565_v47 = vrot.slane %v5533_v52, 7 }
 0x711   : > { %v7422_v6 = vrot.slane %v6853_v34, 7  ;;  %7486 = vrot.lane.b32.xlu0 %v6853_v34, %s9676_s18  ;;  %v6855_v12 = vpop.f32.mrb[213].mxu0  ;;  %v6981_v4 = vpop.f32.mrb[229].mxu1  ;;  %v5693_v50 = vrot.slane %v5661_v41, 1 }
 0x712   : > { %5987 = vst.msk [vmem:[#allocation2 + $0x70] sm:$0xff] %vm499_vm1, %v5979_v9  ;;  %v5409_v13 = vpop.permute.xlu1 %5408  ;;  %v5728_v24 = vadd.f32 %v5708_v10, %v5616_v37  ;;  %v12210_v36 = vsel %vm1043_vm3, %v5871_v15, %v5879_v44  ;;  %v7550_v11 = vrot.slane %v6855_v12, 1  ;;  %v6857_v21 = vpop.f32.mrb[214].mxu0 }
 0x713   : > { %v5444_v60 = vadd.f32 %v5409_v13, %v5364_v56  ;;  %v5817_v32 = vpop.permute.xlu0 %5816  ;;  %v7430_v57 = vrot.slane %v6857_v21, 7  ;;  %v6859_v26 = vpop.f32.mrb[215].mxu0 }
 0x714   : > { %v5776_v22 = vadd.f32 %v11987_v43, %v5728_v24  ;;  %v7558_v62 = vrot.slane %v6859_v26, 1  ;;  %v6982_v51 = vpop.f32.mrb[230].mxu1 }
 0x715   : > { %v5492_v55 = vadd.f32 %v11983_v28, %v5444_v60  ;;  %v6983_v59 = vpop.f32.mrb[231].mxu1  ;;  %v12216_v45 = vsel %vm914_vm2, %v7430_v57, %v7422_v6 }
 0x716   : > { %v5856_v53 = vadd.f32 %v5817_v32, %v5776_v22  ;;  %v5535_v58 = vpop.permute.xlu1 %5534  ;;  %v12220_v40 = vsel %vm1043_vm3, %v7550_v11, %v7558_v62 }
 0x717   : > { %v5573_v7 = vrot.slane %v5535_v58, 7  ;;  %v5663_v14 = vpop.permute.xlu0 %5662 }
 0x718   : > { %v5904_v43 = vadd.f32 %v12150_v2, %v5856_v53  ;;  %v5701_v28 = vrot.slane %v5663_v14, 1 }
 0x719   : > { %v5589_v46 = vsel %vm914_vm2, %v5573_v7, %v5565_v47  ;;  %v12225_v54 = vld [vmem:[#allocation2 + $0x70] sm:$0xff] }
 0x71a   : > { %vm5920_vm8 = vcmp.ge.f32.partialorder %v5904_v43, 0.0  ;;  %v5936_v49 = vmul.f32 0.2, %v5904_v43  ;;  %v5602_v17 = vadd.f32 %v5589_v46, %v12186_v35  ;;  %v5665_v38 = vpop.permute.xlu1 %5664  ;;  %8665 = vmatmul.mubr.msk.bf16.gmra.mrb[228].mxu0 %vm499_vm1, %v12225_v54  ;;  %8675 = vmatmul.mubr.msk.bf16.gmra.mrb[244].mxu1 %vm499_vm1, %v12225_v54  ;;  %v5709_v35 = vsel %vm1043_vm3, %v5693_v50, %v5701_v28 }
 0x71b   : > { %v5537_v15 = vpop.permute.xlu0 %5536  ;;  %6901 = vmatprep.mubr.bf16.mxu0 %v9675_v0  ;;  %7147 = vmatprep.mubr.bf16.mxu1 %v9675_v0  ;;  %v5694_v4 = vrot.slane %v5665_v38, 1 }
 0x71c   : > { %v5952_v2 = vsel %vm5920_vm8, %v5904_v43, %v5936_v49  ;;  %v5618_v61 = vadd.f32 %v5602_v17, %v11970_v31  ;;  %v5566_v9 = vrot.slane %v5537_v15, 7  ;;  %v5366_v31 = vadd.f32 %v12144_v30, %v11998_v63 }
 0x71d   : > { %v5980_v27 = vpack.c.bf16 %v9677_v20, %v5952_v2 }
 0x71e   : > { %v5539_v16 = vpop.permute.xlu1 %5538  ;;  %v5730_v52 = vadd.f32 %v5709_v35, %v5618_v61 }
 0x71f   : > { %5988 = vst.msk [vmem:[#allocation2 + $0x88] sm:$0xff] %vm499_vm1, %v5980_v27  ;;  %v5574_v34 = vrot.slane %v5539_v16, 7  ;;  %v5821_v41 = vpop.permute.xlu0 %5820  ;;  %v9555_v16 = vld [vmem:[#allocation2 + $0x8] sm:$0xff] }
 0x720   : > { %v5778_v37 = vadd.f32 %v12002_v19, %v5730_v52  ;;  %v9556_v52 = vld [vmem:[#allocation2 + $0x10] sm:$0xff] }
 0x721   : > { %v5590_v44 = vsel %vm914_vm2, %v5574_v34, %v5566_v9  ;;  %v9557_v9 = vld [vmem:[#allocation2] sm:$0xff] }
 0x722   : > { %v5604_v42 = vadd.f32 %v5590_v44, %v5492_v55  ;;  %v5858_v10 = vadd.f32 %v5821_v41, %v5778_v37  ;;  %v5413_v6 = vpop.permute.xlu1 %5412  ;;  %v9558_v34 = vld [vmem:[#allocation2 + $0x20] sm:$0xff]  ;;  %v9560_v37 = vld [vmem:[#allocation2 + $0x38] sm:$0xff] }
 0x723   : > { %v5446_v56 = vadd.f32 %v5413_v6, %v5366_v31  ;;  %v5667_v12 = vpop.permute.xlu0 %5666  ;;  %v9566_v6 = vld [vmem:[#allocation2 + $0x80] sm:$0xff] }
 0x724   : > { %v5906_v13 = vadd.f32 %v12162_v8, %v5858_v10  ;;  %v5702_v24 = vrot.slane %v5667_v12, 1  ;;  %v5620_v11 = vadd.f32 %v5604_v42, %v11991_v3  ;;  %v9563_v10 = vld [vmem:[#allocation2 + $0x48] sm:$0xff]  ;;  %v9567_v12 = vld [vmem:[#allocation2 + $0x78] sm:$0xff] }
 0x725   : > { %v5494_v21 = vadd.f32 %v12006_v25, %v5446_v56  ;;  %v12304_v56 = vld [vmem:[%s12724_s6 + $0x4] ss:$0 sm:$0xff] }
 0x726   : > { %vm5922_vm9 = vcmp.ge.f32.partialorder %v5906_v13, 0.0  ;;  %v5938_v19 = vmul.f32 0.2, %v5906_v13  ;;  %v5710_v60 = vsel %vm1043_vm3, %v5694_v4, %v5702_v24  ;;  %v5543_v32 = vpop.permute.xlu1 %5542  ;;  %v12249_v63 = vld [vmem:[#allocation2 + $0x88] sm:$0xff]  ;;  %v9568_v4 = vld [vmem:[#allocation2 + $0x98] sm:$0xff] }
 0x727   : > { %v5575_v30 = vrot.slane %v5543_v32, 7  ;;  %8666 = vmatmul.mubr.msk.bf16.gmra.mrb[232].mxu0 %vm499_vm1, %v12249_v63  ;;  %8676 = vmatmul.mubr.msk.bf16.gmra.mrb[248].mxu1 %vm499_vm1, %v12249_v63  ;;  %v5541_v8 = vpop.permute.xlu0 %5540  ;;  %v5732_v57 = vadd.f32 %v5710_v60, %v5620_v11  ;;  %v9570_v60 = vld [vmem:[#allocation2 + $0xb0] sm:$0xff]  ;;  %v9571_v32 = vld [vmem:[#allocation2 + $0xa8] sm:$0xff] }
 0x728   : > { %v5954_v3 = vsel %vm5922_vm9, %v5906_v13, %v5938_v19  ;;  %v5567_v26 = vrot.slane %v5541_v8, 7  ;;  %6911 = vmatprep.mubr.bf16.mxu0 %v9675_v0  ;;  %7157 = vmatprep.mubr.bf16.mxu1 %v9675_v0  ;;  %v7454_v13 = vadd.f32 %v12304_v56, %v12216_v45  ;;  %v9569_v19 = vld [vmem:[#allocation2 + $0x90] sm:$0xff]  ;;  %v9574_v8 = vld [vmem:[#allocation2 + $0xe0] sm:$0xff] }
 0x729   : > { %v5981_v25 = vpack.c.bf16 %v9677_v20, %v5954_v3  ;;  %v5780_v22 = vadd.f32 %v12024_v33, %v5732_v57  ;;  %v9575_v57 = vld [vmem:[#allocation2 + $0xd8] sm:$0xff] }
 0x72a   : > { %v5591_v62 = vsel %vm914_vm2, %v5575_v30, %v5567_v26  ;;  %v5669_v53 = vpop.permute.xlu1 %5668  ;;  %v9573_v30 = vld [vmem:[#allocation2 + $0xc0] sm:$0xff] }
 0x72b   : > { %5989 = vst.msk [vmem:[#allocation2 + $0xa0] sm:$0xff] %vm499_vm1, %v5981_v25  ;;  %v5606_v51 = vadd.f32 %v5591_v62, %v5494_v21  ;;  %v5825_v55 = vpop.permute.xlu0 %5824  ;;  %v5695_v14 = vrot.slane %v5669_v53, 1 }
 0x72c   : > { %v5860_v59 = vadd.f32 %v5825_v55, %v5780_v22 }
 0x72d   : > { %v5622_v58 = vadd.f32 %v5606_v51, %v12010_v23 }
 0x72e   : > { %v5908_v47 = vadd.f32 %v12183_v39, %v5860_v59  ;;  %v5829_v23 = vpop.permute.xlu1 %5828 }
 0x72f   : > { %v5671_v7 = vpop.permute.xlu0 %5670 }
 0x730   : > { %vm5924_vm10 = vcmp.ge.f32.partialorder %v5908_v47, 0.0  ;;  %v5940_v43 = vmul.f32 0.2, %v5908_v47  ;;  %v5703_v46 = vrot.slane %v5671_v7, 1 }
 0x732   : > { %v5956_v28 = vsel %vm5924_vm10, %v5908_v47, %v5940_v43  ;;  %v5711_v33 = vsel %vm1043_vm3, %v5695_v14, %v5703_v46  ;;  %v6012_v49 = vld [vmem:[#allocation2 + $0xa0] sm:$0xff] }
 0x733   : > { %v5982_v17 = vpack.c.bf16 %v9677_v20, %v5956_v28  ;;  %8667 = vmatmul.mubr.msk.bf16.gmra.mrb[236].mxu0 %vm499_vm1, %v6012_v49  ;;  %8677 = vmatmul.mubr.msk.bf16.gmra.mrb[252].mxu1 %vm499_vm1, %v6012_v49  ;;  %v5734_v38 = vadd.f32 %v5711_v33, %v5622_v58 }
 0x734   : > { %6921 = vmatprep.mubr.bf16.mxu0 %v9675_v0  ;;  %7167 = vmatprep.mubr.bf16.mxu1 %v9675_v0 }
 0x735   : > { %5990 = vst.msk [vmem:[#allocation2 + $0xb8] sm:$0xff] %vm499_vm1, %v5982_v17  ;;  %v5782_v39 = vadd.f32 %v12039_v1, %v5734_v38 }
 0x737   : > { %v5862_v50 = vadd.f32 %v5829_v23, %v5782_v39 }
 0x739   : > { %v5910_v15 = vadd.f32 %v12210_v36, %v5862_v50  ;;  %v6021_v36 = vld [vmem:[#allocation2 + $0xe8] sm:$0xff] }
 0x73b   : > { %vm5926_vm11 = vcmp.ge.f32.partialorder %v5910_v15, 0.0  ;;  %v5942_v2 = vmul.f32 0.2, %v5910_v15 }
 0x73c   : > { %v6015_v61 = vld [vmem:[#allocation2 + $0xb8] sm:$0xff] }
 0x73d   : > { %v5958_v27 = vsel %vm5926_vm11, %v5910_v15, %v5942_v2  ;;  %8668 = vmatmul.mubr.msk.bf16.gmra.mrb[240].mxu0 %vm499_vm1, %v6015_v61  ;;  %8678 = vmatmul.mubr.msk.bf16.gmra.mrb[0].mxu1 %vm499_vm1, %v6015_v61 }
 0x73e   : > { %v5983_v35 = vpack.c.bf16 %v9677_v20, %v5958_v27  ;;  %6931 = vmatprep.mubr.bf16.mxu0 %v9675_v0  ;;  %7177 = vmatprep.mubr.bf16.mxu1 %v9675_v0 }
 0x740   : > { %5991 = vst.msk [vmem:[#allocation2 + $0xd0] sm:$0xff] %vm499_vm1, %v5983_v35 }
 0x747   : > { %v6018_v1 = vld [vmem:[#allocation2 + $0xd0] sm:$0xff] }
 0x748   : > { %8669 = vmatmul.mubr.msk.bf16.gmra.mrb[244].mxu0 %vm499_vm1, %v6018_v1  ;;  %8679 = vmatmul.mubr.msk.bf16.gmra.mrb[4].mxu1 %vm499_vm1, %v6018_v1 }
 0x749   : > { %6939 = vmatprep.mubr.bf16.mxu0 %v9675_v0  ;;  %7187 = vmatprep.mubr.bf16.mxu1 %v9675_v0  ;;  %v9559_v0 = vld [vmem:[#allocation2 + $0x18] sm:$0xff] }
 0x750   : > { %8670 = vmatmul.mubr.msk.bf16.gmra.mrb[252].mxu0 %vm499_vm1, %v6021_v36  ;;  %8680 = vmatmul.mubr.msk.bf16.gmra.mrb[8].mxu1 %vm499_vm1, %v6021_v36 }
 0x751   : > { %7228 = vmatprep.mubr.bf16.mxu0 %v9555_v16  ;;  %8967 = vmatprep.mubr.msk.bf16.mxu1 %vm499_vm1, %v9556_v52 }
 0x758   : > { %7229 = vmatmul.mubr.bf16.vlgmr.msra.gmra.mrb[0].mxu0 %v9557_v9  ;;  %8968 = vmatmul.mubr.msk.bf16.vlgmr.msra.gmra.mrb[16].mxu1 %vm499_vm1, %v12129_v5  ;;  %v9561_v5 = vld [vmem:[#allocation2 + $0x30] sm:$0xff] }
 0x759   : > { %7234 = vmatprep.mubr.bf16.mxu0 %v9558_v34  ;;  %8971 = vmatprep.mubr.msk.bf16.mxu1 %vm499_vm1, %v12165_v29  ;;  %v9562_v29 = vld [vmem:[#allocation2 + $0x50] sm:$0xff] }
 0x760   : > { %7235 = vmatmul.mubr.bf16.gmra.mrb[4].mxu0 %v9559_v0  ;;  %8972 = vmatmul.mubr.msk.bf16.gmra.mrb[20].mxu1 %vm499_vm1, %v12191_v18  ;;  %v7105_v41 = vpop.f32.mrb[12].mxu1  ;;  %v9564_v18 = vld [vmem:[#allocation2 + $0x68] sm:$0xff] }
 0x761   : > { %7240 = vmatprep.mubr.bf16.mxu0 %v9560_v37  ;;  %8975 = vmatprep.mubr.msk.bf16.mxu1 %vm499_vm1, %v12225_v54  ;;  %v7106_v44 = vpop.f32.mrb[13].mxu1  ;;  %v9565_v54 = vld [vmem:[#allocation2 + $0x60] sm:$0xff] }
 0x762   : > { %v7107_v31 = vpop.f32.mrb[14].mxu1 }
 0x763   : > { %v7108_v42 = vpop.f32.mrb[15].mxu1 }
 0x768   : > { %7241 = vmatmul.mubr.bf16.gmra.mrb[8].mxu0 %v9561_v5  ;;  %8976 = vmatmul.mubr.msk.bf16.gmra.mrb[24].mxu1 %vm499_vm1, %v12249_v63  ;;  %v9572_v63 = vld [vmem:[#allocation2 + $0xc8] sm:$0xff] }
 0x769   : > { %7248 = vmatprep.mubr.bf16.mxu0 %v9562_v29  ;;  %8979 = vmatprep.mubr.msk.bf16.mxu1 %vm499_vm1, %v6012_v49 }
 0x770   : > { %7249 = vmatmul.mubr.bf16.gmra.mrb[12].mxu0 %v9563_v10  ;;  %8980 = vmatmul.mubr.msk.bf16.gmra.mrb[28].mxu1 %vm499_vm1, %v6015_v61 }
 0x771   : > { %7256 = vmatprep.mubr.bf16.mxu0 %v9564_v18  ;;  %8983 = vmatprep.mubr.msk.bf16.mxu1 %vm499_vm1, %v6018_v1 }
 0x778   : > { %7257 = vmatmul.mubr.bf16.gmra.mrb[16].mxu0 %v9565_v54  ;;  %8984 = vmatmul.mubr.msk.bf16.gmra.mrb[32].mxu1 %vm499_vm1, %v6021_v36 }
 0x779   : > { %7264 = vmatprep.mubr.bf16.mxu0 %v9566_v6 }
 0x780   : > { %7265 = vmatmul.mubr.bf16.gmra.mrb[20].mxu0 %v9567_v12 }
 0x781   : > { %7272 = vmatprep.mubr.bf16.mxu0 %v9568_v4 }
 0x783   : > { %v7487_v24 = vpop.permute.xlu0 %7486 }
 0x784   : > { %v7534_v11 = vadd.f32 %v7487_v24, %v7454_v13 }
 0x786   : > { %v12309_v21 = vadd.f32 %v12220_v40, %v7534_v11 }
 0x788   : > { %7273 = vmatmul.mubr.bf16.gmra.mrb[24].mxu0 %v9569_v19 }
 0x789   : > { %7280 = vmatprep.mubr.bf16.mxu0 %v9570_v60 }
 0x790   : > { %7281 = vmatmul.mubr.bf16.gmra.mrb[28].mxu0 %v9571_v32 }
 0x791   : > { %7288 = vmatprep.mubr.bf16.mxu0 %v9572_v63 }
 0x798   : > { %7289 = vmatmul.mubr.bf16.gmra.mrb[32].mxu0 %v9573_v30 }
 0x799   : > { %7296 = vmatprep.mubr.bf16.mxu0 %v9574_v8 }
 0x7a0   : > { %7297 = vmatmul.mubr.bf16.gmra.mrb[36].mxu0 %v9575_v57 }
 0x7c7   : > { %v6863_v45 = vpop.f32.mrb[216].mxu0  ;;  %v12311_v3 = vpop.f32.mrb[232].mxu1 }
 0x7c8   : > { %7742 = vrot.lane.b32.xlu0 %v12311_v3, %s9676_s18  ;;  %v7113_v40 = vpop.f32.mrb[233].mxu1  ;;  %7490 = vrot.lane.b32.xlu1 %v6863_v45, %s9676_s18  ;;  %v6865_v26 = vpop.f32.mrb[217].mxu0  ;;  %v7423_v62 = vrot.slane %v6863_v45, 7 }
 0x7c9   : > { %v6867_v25 = vpop.f32.mrb[218].mxu0  ;;  %v7114_v22 = vpop.f32.mrb[234].mxu1  ;;  %v7551_v53 = vrot.slane %v6865_v26, 1 }
 0x7ca   : > { %v7431_v51 = vrot.slane %v6867_v25, 7  ;;  %v6869_v55 = vpop.f32.mrb[219].mxu0  ;;  %v7116_v59 = vpop.f32.mrb[235].mxu1 }
 0x7cb   : > { %v7559_v58 = vrot.slane %v6869_v55, 1 }
 0x7cc   : > { %7744 = vrot.lane.b32.xlu1 %v7114_v22, %s9676_s18  ;;  %7614 = vrot.lane.b32.xlu0 %v6865_v26, %s9676_s18  ;;  %v12320_v47 = vsel %vm914_vm2, %v7431_v51, %v7423_v62 }
 0x7cd   : > { %v12324_v7 = vsel %vm1043_vm3, %v7551_v53, %v7559_v58 }
 0x7d0   : > { %7616 = vrot.lane.b32.xlu1 %v6869_v55, %s9676_s18 }
 0x7d5   : > { %v6873_v14 = vpop.f32.mrb[220].mxu0  ;;  %v12327_v43 = vpop.f32.mrb[236].mxu1 }
 0x7d6   : > { %v7121_v46 = vpop.f32.mrb[237].mxu1  ;;  %7494 = vrot.lane.b32.xlu0 %v6873_v14, %s9676_s18  ;;  %v6875_v28 = vpop.f32.mrb[221].mxu0  ;;  %v7424_v17 = vrot.slane %v6873_v14, 7 }
 0x7d7   : > { %v6877_v33 = vpop.f32.mrb[222].mxu0  ;;  %v7123_v49 = vpop.f32.mrb[238].mxu1  ;;  %v7838_v50 = vrot.slane %v7121_v46, 7  ;;  %v7552_v15 = vrot.slane %v6875_v28, 1 }
 0x7d8   : > { %v7432_v38 = vrot.slane %v6877_v33, 7  ;;  %7748 = vrot.lane.b32.xlu1 %v7123_v49, %s9676_s18  ;;  %v6879_v23 = vpop.f32.mrb[223].mxu0  ;;  %v7125_v39 = vpop.f32.mrb[239].mxu1 }
 0x7d9   : > { %v7560_v2 = vrot.slane %v6879_v23, 1  ;;  %v7846_v61 = vrot.slane %v7125_v39, 7 }
 0x7da   : > { %7746 = vrot.lane.b32.xlu0 %v12327_v43, %s9676_s18  ;;  %v12335_v27 = vsel %vm914_vm2, %v7432_v38, %v7424_v17 }
 0x7db   : > { %v12339_v35 = vsel %vm1043_vm3, %v7552_v15, %v7560_v2  ;;  %v12343_v1 = vsel %vm914_vm2, %v7846_v61, %v7838_v50 }
 0x7dc   : > { %7620 = vrot.lane.b32.xlu1 %v6879_v23, %s9676_s18 }
 0x7de   : > { %7618 = vrot.lane.b32.xlu0 %v6875_v28, %s9676_s18 }
 0x7e1   : > { %v6883_v36 = vpop.f32.mrb[224].mxu0  ;;  %v12347_v16 = vpop.f32.mrb[240].mxu1 }
 0x7e2   : > { %7902 = vrot.lane.b32.xlu0 %v7121_v46, %s9676_s18  ;;  %v7131_v52 = vpop.f32.mrb[241].mxu1  ;;  %7498 = vrot.lane.b32.xlu1 %v6883_v36, %s9676_s18  ;;  %v6885_v9 = vpop.f32.mrb[225].mxu0  ;;  %v7425_v41 = vrot.slane %v6883_v36, 7 }
 0x7e3   : > { %v6887_v34 = vpop.f32.mrb[226].mxu0  ;;  %v7133_v0 = vpop.f32.mrb[242].mxu1  ;;  %v7839_v42 = vrot.slane %v7131_v52, 7  ;;  %v7553_v5 = vrot.slane %v6885_v9, 1 }
 0x7e4   : > { %v7433_v37 = vrot.slane %v6887_v34, 7  ;;  %v6889_v44 = vpop.f32.mrb[227].mxu0  ;;  %v7135_v31 = vpop.f32.mrb[243].mxu1 }
 0x7e5   : > { %v7561_v29 = vrot.slane %v6889_v44, 1  ;;  %v7847_v10 = vrot.slane %v7135_v31, 7 }
 0x7e6   : > { %7750 = vrot.lane.b32.xlu0 %v12347_v16, %s9676_s18  ;;  %7906 = vrot.lane.b32.xlu1 %v7131_v52, %s9676_s18  ;;  %v12356_v18 = vsel %vm914_vm2, %v7433_v37, %v7425_v41 }
 0x7e7   : > { %v12360_v54 = vsel %vm1043_vm3, %v7553_v5, %v7561_v29  ;;  %v12364_v6 = vsel %vm914_vm2, %v7847_v10, %v7839_v42 }
 0x7ea   : > { %7752 = vrot.lane.b32.xlu1 %v7133_v0, %s9676_s18  ;;  %7622 = vrot.lane.b32.xlu0 %v6885_v9, %s9676_s18 }
 0x7ed   : > { %v6893_v12 = vpop.f32.mrb[228].mxu0  ;;  %v12368_v4 = vpop.f32.mrb[244].mxu1 }
 0x7ee   : > { %7624 = vrot.lane.b32.xlu1 %v6889_v44, %s9676_s18  ;;  %v12371_v13 = vpop.f32.mrb[245].mxu1  ;;  %7502 = vrot.lane.b32.xlu0 %v6893_v12, %s9676_s18  ;;  %v6895_v24 = vpop.f32.mrb[229].mxu0  ;;  %v7426_v60 = vrot.slane %v6893_v12, 7 }
 0x7ef   : > { %v6897_v11 = vpop.f32.mrb[230].mxu0  ;;  %v7143_v19 = vpop.f32.mrb[246].mxu1  ;;  %v7840_v8 = vrot.slane %v12371_v13, 7  ;;  %v7554_v57 = vrot.slane %v6895_v24, 1 }
 0x7f0   : > { %v7434_v32 = vrot.slane %v6897_v11, 7  ;;  %v6899_v63 = vpop.f32.mrb[231].mxu0  ;;  %v7145_v30 = vpop.f32.mrb[247].mxu1 }
 0x7f1   : > { %v7562_v45 = vrot.slane %v6899_v63, 1  ;;  %v7848_v40 = vrot.slane %v7145_v30, 7 }
 0x7f2   : > { %7756 = vrot.lane.b32.xlu1 %v7143_v19, %s9676_s18  ;;  %7754 = vrot.lane.b32.xlu0 %v12368_v4, %s9676_s18  ;;  %v12380_v26 = vsel %vm914_vm2, %v7434_v32, %v7426_v60 }
 0x7f3   : > { %v12384_v25 = vsel %vm1043_vm3, %v7554_v57, %v7562_v45  ;;  %v12388_v22 = vsel %vm914_vm2, %v7848_v40, %v7840_v8 }
 0x7f6   : > { %7626 = vrot.lane.b32.xlu0 %v6895_v24, %s9676_s18  ;;  %7628 = vrot.lane.b32.xlu1 %v6899_v63, %s9676_s18 }
 0x7fa   : > { %v6903_v62 = vpop.f32.mrb[232].mxu0  ;;  %v12392_v51 = vpop.f32.mrb[248].mxu1 }
 0x7fb   : > { %7758 = vrot.lane.b32.xlu0 %v12392_v51, %s9676_s18  ;;  %v12396_v55 = vpop.f32.mrb[249].mxu1  ;;  %7506 = vrot.lane.b32.xlu1 %v6903_v62, %s9676_s18  ;;  %v6905_v59 = vpop.f32.mrb[233].mxu0  ;;  %v7427_v14 = vrot.slane %v6903_v62, 7 }
 0x7fc   : > { %v6907_v53 = vpop.f32.mrb[234].mxu0  ;;  %v7153_v58 = vpop.f32.mrb[250].mxu1  ;;  %v7841_v49 = vrot.slane %v12396_v55, 7  ;;  %v7555_v17 = vrot.slane %v6905_v59, 1 }
 0x7fd   : > { %v7435_v46 = vrot.slane %v6907_v53, 7  ;;  %v6909_v28 = vpop.f32.mrb[235].mxu0  ;;  %v7155_v33 = vpop.f32.mrb[251].mxu1 }
 0x7fe   : > { %v7563_v38 = vrot.slane %v6909_v28, 1  ;;  %v7849_v23 = vrot.slane %v7155_v33, 7 }
 0x7ff   : > { %7760 = vrot.lane.b32.xlu1 %v7153_v58, %s9676_s18  ;;  %7630 = vrot.lane.b32.xlu0 %v6905_v59, %s9676_s18  ;;  %v12404_v39 = vsel %vm914_vm2, %v7435_v46, %v7427_v14 }
 0x800   : > { %v12408_v50 = vsel %vm1043_vm3, %v7555_v17, %v7563_v38  ;;  %v12412_v15 = vsel %vm914_vm2, %v7849_v23, %v7841_v49 }
 0x803   : > { %7632 = vrot.lane.b32.xlu1 %v6909_v28, %s9676_s18 }
 0x806   : > { %v6913_v2 = vpop.f32.mrb[236].mxu0  ;;  %v12415_v61 = vpop.f32.mrb[252].mxu1 }
 0x807   : > { %v12417_v36 = vpop.f32.mrb[253].mxu1  ;;  %7510 = vrot.lane.b32.xlu0 %v6913_v2, %s9676_s18  ;;  %v6915_v52 = vpop.f32.mrb[237].mxu0  ;;  %v7428_v0 = vrot.slane %v6913_v2, 7 }
 0x808   : > { %v6917_v9 = vpop.f32.mrb[238].mxu0  ;;  %v7163_v34 = vpop.f32.mrb[254].mxu1  ;;  %v7842_v31 = vrot.slane %v12417_v36, 7  ;;  %v7556_v42 = vrot.slane %v6915_v52, 1 }
 0x809   : > { %v7436_v41 = vrot.slane %v6917_v9, 7  ;;  %7764 = vrot.lane.b32.xlu1 %v7163_v34, %s9676_s18  ;;  %v6919_v37 = vpop.f32.mrb[239].mxu0  ;;  %v7165_v44 = vpop.f32.mrb[255].mxu1 }
 0x80a   : > { %v7564_v5 = vrot.slane %v6919_v37, 1  ;;  %v7850_v29 = vrot.slane %v7165_v44, 7 }
 0x80b   : > { %7762 = vrot.lane.b32.xlu0 %v12415_v61, %s9676_s18  ;;  %v12426_v10 = vsel %vm914_vm2, %v7436_v41, %v7428_v0 }
 0x80c   : > { %v12430_v12 = vsel %vm1043_vm3, %v7556_v42, %v7564_v5  ;;  %v12434_v24 = vsel %vm914_vm2, %v7850_v29, %v7842_v31 }
 0x80d   : > { %7636 = vrot.lane.b32.xlu1 %v6919_v37, %s9676_s18 }
 0x80f   : > { %7634 = vrot.lane.b32.xlu0 %v6915_v52, %s9676_s18 }
 0x810   : > { %v6923_v11 = vpop.f32.mrb[240].mxu0  ;;  %v12438_v19 = vpop.f32.mrb[0].mxu1 }
 0x811   : > { %v7171_v60 = vpop.f32.mrb[1].mxu1  ;;  %7514 = vrot.lane.b32.xlu1 %v6923_v11, %s9676_s18  ;;  %v6925_v32 = vpop.f32.mrb[241].mxu0  ;;  %v7429_v8 = vrot.slane %v6923_v11, 7 }
 0x812   : > { %v6927_v63 = vpop.f32.mrb[242].mxu0  ;;  %v7173_v30 = vpop.f32.mrb[2].mxu1  ;;  %v7843_v62 = vrot.slane %v7171_v60, 7  ;;  %v7557_v59 = vrot.slane %v6925_v32, 1 }
 0x813   : > { %v7437_v57 = vrot.slane %v6927_v63, 7  ;;  %7766 = vrot.lane.b32.xlu0 %v12438_v19, %s9676_s18  ;;  %v6929_v45 = vpop.f32.mrb[243].mxu0  ;;  %v7175_v40 = vpop.f32.mrb[3].mxu1 }
 0x814   : > { %v7565_v53 = vrot.slane %v6929_v45, 1  ;;  %v7851_v58 = vrot.slane %v7175_v40, 7 }
 0x815   : > { %7768 = vrot.lane.b32.xlu1 %v7173_v30, %s9676_s18  ;;  %v12446_v14 = vsel %vm914_vm2, %v7437_v57, %v7429_v8 }
 0x816   : > { %v12450_v46 = vsel %vm1043_vm3, %v7557_v59, %v7565_v53  ;;  %v12454_v28 = vsel %vm914_vm2, %v7851_v58, %v7843_v62 }
 0x817   : > { %7638 = vrot.lane.b32.xlu0 %v6925_v32, %s9676_s18 }
 0x819   : > { %7640 = vrot.lane.b32.xlu1 %v6929_v45, %s9676_s18 }
 0x81b   : > { %v6933_v33 = vpop.f32.mrb[244].mxu0  ;;  %v12458_v49 = vpop.f32.mrb[4].mxu1 }
 0x81c   : > { %7770 = vrot.lane.b32.xlu0 %v12458_v49, %s9676_s18  ;;  %v6934_v17 = vpop.f32.mrb[245].mxu0  ;;  %v7181_v38 = vpop.f32.mrb[5].mxu1 }
 0x81d   : > { %v6936_v23 = vpop.f32.mrb[246].mxu0  ;;  %v7183_v2 = vpop.f32.mrb[6].mxu1  ;;  %v7844_v34 = vrot.slane %v7181_v38, 7 }
 0x81e   : > { %7772 = vrot.lane.b32.xlu1 %v7183_v2, %s9676_s18  ;;  %v6937_v52 = vpop.f32.mrb[247].mxu0  ;;  %v7185_v9 = vpop.f32.mrb[7].mxu1 }
 0x81f   : > { %v7852_v0 = vrot.slane %v7185_v9, 7 }
 0x820   : > { %7642 = vrot.lane.b32.xlu0 %v6934_v17, %s9676_s18 }
 0x821   : > { %v12466_v41 = vsel %vm914_vm2, %v7852_v0, %v7844_v34 }
 0x822   : > { %7644 = vrot.lane.b32.xlu1 %v6937_v52, %s9676_s18 }
 0x823   : > { %v7189_v37 = vpop.f32.mrb[8].mxu1  ;;  %v6941_v44 = vpop.f32.mrb[252].mxu0 }
 0x824   : > { %v7190_v31 = vpop.f32.mrb[9].mxu1  ;;  %7910 = vrot.lane.b32.xlu0 %v12371_v13, %s9676_s18  ;;  %v6942_v42 = vpop.f32.mrb[253].mxu0 }
 0x825   : > { %v7192_v5 = vpop.f32.mrb[10].mxu1  ;;  %v6943_v29 = vpop.f32.mrb[254].mxu0  ;;  %v7845_v63 = vrot.slane %v7190_v31, 7 }
 0x826   : > { %v7193_v11 = vpop.f32.mrb[11].mxu1  ;;  %7914 = vrot.lane.b32.xlu1 %v12396_v55, %s9676_s18  ;;  %v6944_v32 = vpop.f32.mrb[255].mxu0 }
 0x827   : > { %v7853_v30 = vrot.slane %v7193_v11, 7 }
 0x828   : > { %7918 = vrot.lane.b32.xlu0 %v12417_v36, %s9676_s18 }
 0x829   : > { %v12477_v8 = vsel %vm914_vm2, %v7853_v30, %v7845_v63 }
 0x82a   : > { %7922 = vrot.lane.b32.xlu1 %v7171_v60, %s9676_s18 }
 0x82b   : > { %v8969_v13 = vpop.f32.mrb[16].mxu1  ;;  %v8821_v57 = vpop.f32.mrb[0].mxu0 }
 0x82c   : > { %v7339_v45 = vpop.f32.mrb[17].mxu1  ;;  %7926 = vrot.lane.b32.xlu0 %v7181_v38, %s9676_s18  ;;  %v8822_v40 = vpop.f32.mrb[1].mxu0  ;;  %v7456_v38 = vadd.f32 %v12304_v56, %v12320_v47 }
 0x82d   : > { %v8970_v62 = vpop.f32.mrb[18].mxu1  ;;  %v8824_v55 = vpop.f32.mrb[2].mxu0 }
 0x82e   : > { %v7341_v59 = vpop.f32.mrb[19].mxu1  ;;  %7930 = vrot.lane.b32.xlu1 %v7190_v31, %s9676_s18  ;;  %v8825_v53 = vpop.f32.mrb[3].mxu0 }
 0x833   : > { %v8827_v58 = vpop.f32.mrb[4].mxu0  ;;  %v8973_v36 = vpop.f32.mrb[20].mxu1 }
 0x834   : > { %v8828_v33 = vpop.f32.mrb[5].mxu0  ;;  %v7351_v17 = vpop.f32.mrb[21].mxu1 }
 0x835   : > { %v8830_v23 = vpop.f32.mrb[6].mxu0  ;;  %v8974_v2 = vpop.f32.mrb[22].mxu1 }
 0x836   : > { %v8831_v52 = vpop.f32.mrb[7].mxu0  ;;  %v7354_v60 = vpop.f32.mrb[23].mxu1 }
 0x83a   : > { %v7491_v0 = vpop.permute.xlu1 %7490  ;;  %v7743_v5 = vpop.permute.xlu0 %7742 }
 0x83b   : > { %v8833_v9 = vpop.f32.mrb[8].mxu0  ;;  %v12482_v34 = vpop.f32.mrb[24].mxu1  ;;  %v7536_v44 = vadd.f32 %v7491_v0, %v7456_v38 }
 0x83c   : > { %v8834_v37 = vpop.f32.mrb[9].mxu0  ;;  %v7367_v31 = vpop.f32.mrb[25].mxu1 }
 0x83d   : > { %v8835_v42 = vadd.f32 %v8834_v37, %v8833_v9  ;;  %v8836_v29 = vpop.f32.mrb[10].mxu0  ;;  %v12486_v11 = vpop.f32.mrb[26].mxu1  ;;  %v12489_v32 = vadd.f32 %v12324_v7, %v7536_v44 }
 0x83e   : > { %v8837_v30 = vpop.f32.mrb[11].mxu0  ;;  %v7370_v13 = vpop.f32.mrb[27].mxu1 }
 0x83f   : > { %v7352_v63 = vadd.f32 %v8835_v42, %v7351_v17  ;;  %v8838_v57 = vadd.f32 %v8837_v30, %v8836_v29  ;;  %v7745_v45 = vpop.permute.xlu1 %7744  ;;  %v7615_v62 = vpop.permute.xlu0 %7614 }
 0x840   : > { %v7662_v23 = vrot.slane %v7615_v62, 7  ;;  %v7798_v44 = vrot.slane %v7745_v45, 1  ;;  %v7790_v62 = vrot.slane %v7743_v5, 1 }
 0x841   : > { %v7355_v40 = vadd.f32 %v8838_v57, %v7354_v60  ;;  %v7966_v59 = vrot.slane %v7352_v63, 1  ;;  %v7458_v60 = vadd.f32 %v12304_v56, %v12335_v27 }
 0x843   : > { %v8839_v47 = vpop.f32.mrb[12].mxu0  ;;  %v12491_v55 = vpop.f32.mrb[28].mxu1  ;;  %v7974_v53 = vrot.slane %v7355_v40, 1 }
 0x844   : > { %v7617_v58 = vpop.permute.xlu1 %7616  ;;  %v8840_v33 = vpop.f32.mrb[13].mxu0 }
 0x845   : > { %v7670_v52 = vrot.slane %v7617_v58, 7  ;;  %v8841_v9 = vadd.f32 %v8840_v33, %v8839_v47  ;;  %v12493_v38 = vpop.f32.mrb[29].mxu1  ;;  %v8842_v7 = vpop.f32.mrb[14].mxu0  ;;  %v7982_v37 = vsel %vm1043_vm3, %v7966_v59, %v7974_v53  ;;  %v7806_v59 = vsel %vm1043_vm3, %v7790_v62, %v7798_v44 }
 0x846   : > { %v12495_v17 = vpop.f32.mrb[30].mxu1  ;;  %v8843_v0 = vpop.f32.mrb[15].mxu0 }
 0x847   : > { %v7686_v42 = vsel %vm914_vm2, %v7670_v52, %v7662_v23  ;;  %v7360_v29 = vadd.f32 %v8973_v36, %v8841_v9  ;;  %v8844_v63 = vadd.f32 %v8843_v0, %v8842_v7  ;;  %v12503_v30 = vpop.f32.mrb[31].mxu1 }
 0x848   : > { %v7694_v57 = vadd.f32 %v7686_v42, %v12309_v21  ;;  %v7495_v40 = vpop.permute.xlu0 %7494 }
 0x849   : > { %v7363_v47 = vadd.f32 %v8974_v2, %v8844_v63  ;;  %v7538_v58 = vadd.f32 %v7495_v40, %v7458_v60  ;;  %v7967_v45 = vrot.slane %v7360_v29, 1 }
 0x84a   : > { %v7749_v33 = vpop.permute.xlu1 %7748  ;;  %v7710_v27 = vadd.f32 %v7694_v57, %v12311_v3 }
 0x84b   : > { %v7975_v53 = vrot.slane %v7363_v47, 1  ;;  %v12510_v23 = vadd.f32 %v12339_v35, %v7538_v58  ;;  %v8845_v36 = vpop.f32.mrb[16].mxu0  ;;  %v12512_v52 = vpop.f32.mrb[32].mxu1 }
 0x84c   : > { %v8846_v9 = vpop.f32.mrb[17].mxu0  ;;  %v7747_v21 = vpop.permute.xlu0 %7746  ;;  %v7822_v7 = vadd.f32 %v7806_v59, %v7710_v27  ;;  %v7460_v27 = vadd.f32 %v12304_v56, %v12356_v18 }
 0x84d   : > { %v8847_v5 = vadd.f32 %v8846_v9, %v8845_v36  ;;  %v8848_v2 = vpop.f32.mrb[18].mxu0  ;;  %v7983_v0 = vsel %vm1043_vm3, %v7967_v45, %v7975_v53  ;;  %v12516_v3 = vpop.f32.mrb[33].mxu1  ;;  %v7791_v45 = vrot.slane %v7747_v21, 1 }
 0x84e   : > { %v7621_v60 = vpop.permute.xlu1 %7620  ;;  %v8849_v44 = vpop.f32.mrb[19].mxu0  ;;  %v7870_v42 = vadd.f32 %v12343_v1, %v7822_v7 }
 0x84f   : > { %v7368_v29 = vadd.f32 %v8847_v5, %v7367_v31  ;;  %v8850_v35 = vadd.f32 %v8849_v44, %v8848_v2  ;;  %v12519_v63 = vpop.f32.mrb[34].mxu1  ;;  %v7671_v62 = vrot.slane %v7621_v60, 7  ;;  %v7799_v5 = vrot.slane %v7749_v33, 1 }
 0x850   : > { %v7619_v57 = vpop.permute.xlu0 %7618  ;;  %v12521_v40 = vpop.f32.mrb[35].mxu1 }
 0x851   : > { %v7371_v47 = vadd.f32 %v8850_v35, %v7370_v13  ;;  %v7663_v58 = vrot.slane %v7619_v57, 7  ;;  %v7968_v59 = vrot.slane %v7368_v29, 1  ;;  %v7807_v57 = vsel %vm1043_vm3, %v7791_v45, %v7799_v5 }
 0x853   : > { %v7976_v53 = vrot.slane %v7371_v47, 1  ;;  %v7687_v36 = vsel %vm914_vm2, %v7671_v62, %v7663_v58  ;;  %v8851_v1 = vpop.f32.mrb[20].mxu0 }
 0x854   : > { %v7696_v31 = vadd.f32 %v7687_v36, %v12489_v32  ;;  %v7499_v9 = vpop.permute.xlu1 %7498  ;;  %v8852_v7 = vpop.f32.mrb[21].mxu0 }
 0x855   : > { %v7540_v2 = vadd.f32 %v7499_v9, %v7460_v27  ;;  %v8853_v44 = vadd.f32 %v8852_v7, %v8851_v1  ;;  %v7903_v60 = vpop.permute.xlu0 %7902  ;;  %v8854_v13 = vpop.f32.mrb[22].mxu0  ;;  %v12530_v35 = vsel %vm1043_vm3, %v7968_v59, %v7976_v53 }
 0x856   : > { %v7950_v18 = vadd.f32 %v7903_v60, %v7870_v42  ;;  %v8855_v21 = vpop.f32.mrb[23].mxu0  ;;  %v7712_v29 = vadd.f32 %v7696_v31, %v12327_v43 }
 0x857   : > { %v12536_v32 = vadd.f32 %v12360_v54, %v7540_v2  ;;  %v7376_v33 = vadd.f32 %v12482_v34, %v8853_v44  ;;  %v8856_v62 = vadd.f32 %v8855_v21, %v8854_v13 }
 0x858   : > { %v7998_v47 = vadd.f32 %v7982_v37, %v7950_v18  ;;  %v7907_v58 = vpop.permute.xlu1 %7906  ;;  %v7824_v27 = vadd.f32 %v7807_v57, %v7712_v29  ;;  %v7462_v29 = vadd.f32 %v12304_v56, %v12380_v26 }
 0x859   : > { %v7379_v36 = vadd.f32 %v12486_v11, %v8856_v62  ;;  %v7751_v59 = vpop.permute.xlu0 %7750  ;;  %v7969_v43 = vrot.slane %v7376_v33, 1 }
 0x85a   : > { %vm8014_vm1 = vcmp.ge.f32.partialorder %v7998_v47, 0.0  ;;  %v8030_v42 = vmul.f32 0.2, %v7998_v47  ;;  %v7872_v53 = vadd.f32 %v12364_v6, %v7824_v27 }
 0x85b   : > { %v7977_v1 = vrot.slane %v7379_v36, 1  ;;  %v8857_v31 = vpop.f32.mrb[24].mxu0 }
 0x85c   : > { %v8046_v45 = vsel %vm8014_vm1, %v7998_v47, %v8030_v42  ;;  %v7952_v9 = vadd.f32 %v7907_v58, %v7872_v53  ;;  %v7753_v54 = vpop.permute.xlu1 %7752  ;;  %v8858_v7 = vpop.f32.mrb[25].mxu0 }
 0x85d   : > { %v8859_v5 = vadd.f32 %v8858_v7, %v8857_v31  ;;  %v7623_v34 = vpop.permute.xlu0 %7622  ;;  %v8860_v2 = vpop.f32.mrb[26].mxu0  ;;  %v8078_v37 = vpack.c.bf16 %v9677_v20, %v8046_v45  ;;  %v12544_v11 = vsel %vm1043_vm3, %v7969_v43, %v7977_v1  ;;  %v7800_v27 = vrot.slane %v7753_v54, 1 }
 0x85e   : > { %v8000_v44 = vadd.f32 %v7983_v0, %v7952_v9  ;;  %v8861_v60 = vpop.f32.mrb[27].mxu0  ;;  %v7664_v57 = vrot.slane %v7623_v34, 7  ;;  %v7792_v45 = vrot.slane %v7751_v59, 1 }
 0x85f   : > { %v7384_v6 = vadd.f32 %v8859_v5, %v12493_v38  ;;  %v8862_v13 = vadd.f32 %v8861_v60, %v8860_v2  ;;  %8094 = vrot.lane.b32.xlu0 %v8078_v37, %s9676_s18 }
 0x860   : > { %vm8016_vm13 = vcmp.ge.f32.partialorder %v8000_v44, 0.0  ;;  %v8032_v18 = vmul.f32 0.2, %v8000_v44  ;;  %v7625_v21 = vpop.permute.xlu1 %7624 }
 0x861   : > { %v7387_v33 = vadd.f32 %v8862_v13, %v12503_v30  ;;  %v7672_v62 = vrot.slane %v7625_v21, 7  ;;  %v7503_v47 = vpop.permute.xlu0 %7502  ;;  %v7970_v36 = vrot.slane %v7384_v6, 1 }
 0x862   : > { %v8048_v58 = vsel %vm8016_vm13, %v8000_v44, %v8032_v18  ;;  %v7542_v0 = vadd.f32 %v7503_v47, %v7462_v29 }
 0x863   : > { %v7978_v42 = vrot.slane %v7387_v33, 1  ;;  %v7688_v38 = vsel %vm914_vm2, %v7672_v62, %v7664_v57  ;;  %v8863_v53 = vpop.f32.mrb[28].mxu0  ;;  %v8079_v43 = vpack.c.bf16 %v9677_v20, %v8048_v58  ;;  %v7464_v58 = vadd.f32 %v12304_v56, %v12404_v39 }
 0x864   : > { %v7698_v1 = vadd.f32 %v7688_v38, %v12510_v23  ;;  %v12556_v26 = vadd.f32 %v12384_v25, %v7542_v0  ;;  %v7757_v31 = vpop.permute.xlu1 %7756  ;;  %v8864_v30 = vpop.f32.mrb[29].mxu0  ;;  %v7808_v23 = vsel %vm1043_vm3, %v7792_v45, %v7800_v27 }
 0x865   : > { %v8865_v9 = vadd.f32 %v8864_v30, %v8863_v53  ;;  %v7755_v7 = vpop.permute.xlu0 %7754  ;;  %v8866_v54 = vpop.f32.mrb[30].mxu0  ;;  %8096 = vrot.lane.b32.xlu1 %v8079_v43, %s9676_s18  ;;  %v12561_v5 = vsel %vm1043_vm3, %v7970_v36, %v7978_v42 }
 0x866   : > { %v8867_v34 = vpop.f32.mrb[31].mxu0  ;;  %v7714_v2 = vadd.f32 %v7698_v1, %v12347_v16  ;;  %v7801_v16 = vrot.slane %v7757_v31, 1  ;;  %v7793_v62 = vrot.slane %v7755_v7, 1 }
 0x867   : > { %v7392_v25 = vadd.f32 %v12491_v55, %v8865_v9  ;;  %v8868_v37 = vadd.f32 %v8867_v34, %v8866_v54 }
 0x868   : > { %v7629_v44 = vpop.permute.xlu1 %7628  ;;  %v7826_v59 = vadd.f32 %v7808_v23, %v7714_v2  ;;  %v7809_v39 = vsel %vm1043_vm3, %v7793_v62, %v7801_v16 }
 0x869   : > { %v7395_v60 = vadd.f32 %v12495_v17, %v8868_v37  ;;  %v7673_v6 = vrot.slane %v7629_v44, 7  ;;  %v7627_v13 = vpop.permute.xlu0 %7626  ;;  %v7971_v29 = vrot.slane %v7392_v25, 1 }
 0x86a   : > { %v7665_v18 = vrot.slane %v7627_v13, 7  ;;  %v12569_v21 = vadd.f32 %v12388_v22, %v7826_v59 }
 0x86b   : > { %v7979_v57 = vrot.slane %v7395_v60, 1  ;;  %v8869_v33 = vpop.f32.mrb[32].mxu0 }
 0x86c   : > { %v7689_v47 = vsel %vm914_vm2, %v7673_v6, %v7665_v18  ;;  %v8870_v55 = vpop.f32.mrb[33].mxu0 }
 0x86d   : > { %v7700_v17 = vadd.f32 %v7689_v47, %v12536_v32  ;;  %v8871_v27 = vadd.f32 %v8870_v55, %v8869_v33  ;;  %v7507_v0 = vpop.permute.xlu1 %7506  ;;  %v8872_v36 = vpop.f32.mrb[34].mxu0  ;;  %v12578_v22 = vsel %vm1043_vm3, %v7971_v29, %v7979_v57 }
 0x86e   : > { %v7544_v42 = vadd.f32 %v7507_v0, %v7464_v58  ;;  %v7759_v38 = vpop.permute.xlu0 %7758  ;;  %v8873_v53 = vpop.f32.mrb[35].mxu0 }
 0x86f   : > { %v8874_v43 = vadd.f32 %v8873_v53, %v8872_v36  ;;  %v7400_v1 = vadd.f32 %v8871_v27, %v12516_v3  ;;  %v7716_v31 = vadd.f32 %v7700_v17, %v12368_v4  ;;  %v7794_v62 = vrot.slane %v7759_v38, 1 }
 0x870   : > { %v7592_v32 = vadd.f32 %v12408_v50, %v7544_v42 }
 0x871   : > { %v7403_v30 = vadd.f32 %v8874_v43, %v12521_v40  ;;  %v7761_v45 = vpop.permute.xlu1 %7760  ;;  %v7828_v9 = vadd.f32 %v7809_v39, %v7716_v31  ;;  %v7972_v7 = vrot.slane %v7400_v1, 1 }
 0x872   : > { %v7631_v34 = vpop.permute.xlu0 %7630  ;;  %v7802_v13 = vrot.slane %v7761_v45, 1 }
 0x873   : > { %v7980_v54 = vrot.slane %v7403_v30, 1  ;;  %v8875_v2 = vpop.f32.mrb[36].mxu0  ;;  %v12587_v23 = vadd.f32 %v12412_v15, %v7828_v9  ;;  %v7666_v50 = vrot.slane %v7631_v34, 7  ;;  %v7466_v15 = vadd.f32 %v12304_v56, %v12426_v10 }
 0x874   : > { %v8876_v25 = vpop.f32.mrb[37].mxu0  ;;  %v7810_v17 = vsel %vm1043_vm3, %v7794_v62, %v7802_v13 }
 0x875   : > { %v7633_v3 = vpop.permute.xlu1 %7632  ;;  %v8877_v37 = vadd.f32 %v8876_v25, %v8875_v2  ;;  %v8878_v4 = vpop.f32.mrb[38].mxu0  ;;  %v12591_v44 = vsel %vm1043_vm3, %v7972_v7, %v7980_v54 }
 0x876   : > { %v7674_v59 = vrot.slane %v7633_v3, 7  ;;  %v8879_v40 = vpop.f32.mrb[39].mxu0 }
 0x877   : > { %v7408_v60 = vadd.f32 %v12512_v52, %v8877_v37  ;;  %v8880_v6 = vadd.f32 %v8879_v40, %v8878_v4 }
 0x878   : > { %v7690_v18 = vsel %vm914_vm2, %v7674_v59, %v7666_v50 }
 0x879   : > { %v7702_v29 = vadd.f32 %v7690_v18, %v12556_v26  ;;  %v7511_v57 = vpop.permute.xlu0 %7510  ;;  %v7973_v33 = vrot.slane %v7408_v60, 1  ;;  %v7411_v16 = vadd.f32 %v12519_v63, %v8880_v6 }
 0x87a   : > { %v7546_v47 = vadd.f32 %v7511_v57, %v7466_v15 }
 0x87b   : > { %v7765_v55 = vpop.permute.xlu1 %7764  ;;  %v7981_v58 = vrot.slane %v7411_v16, 1  ;;  %v7718_v52 = vadd.f32 %v7702_v29, %v12392_v51  ;;  %v7468_v51 = vadd.f32 %v12304_v56, %v12446_v14 }
 0x87c   : > { %v7594_v27 = vadd.f32 %v12430_v12, %v7546_v47  ;;  %v7803_v45 = vrot.slane %v7765_v55, 1 }
 0x87d   : > { %v7763_v0 = vpop.permute.xlu0 %7762  ;;  %v7830_v36 = vadd.f32 %v7810_v17, %v7718_v52  ;;  %v12606_v10 = vsel %vm1043_vm3, %v7973_v33, %v7981_v58 }
 0x87e   : > { %v7795_v1 = vrot.slane %v7763_v0, 1 }
 0x87f   : > { %v7637_v26 = vpop.permute.xlu1 %7636  ;;  %v7878_v63 = vadd.f32 %v12434_v24, %v7830_v36 }
 0x880   : > { %v7675_v38 = vrot.slane %v7637_v26, 7  ;;  %v7811_v54 = vsel %vm1043_vm3, %v7795_v1, %v7803_v45 }
 0x881   : > { %v7635_v42 = vpop.permute.xlu0 %7634 }
 0x882   : > { %v7667_v53 = vrot.slane %v7635_v42, 7 }
 0x883   : > { %v7515_v43 = vpop.permute.xlu1 %7514 }
 0x884   : > { %v7691_v12 = vsel %vm914_vm2, %v7675_v38, %v7667_v53  ;;  %v7548_v31 = vadd.f32 %v7515_v43, %v7468_v51 }
 0x885   : > { %v7704_v39 = vadd.f32 %v7691_v12, %v7592_v32  ;;  %v7767_v30 = vpop.permute.xlu0 %7766 }
 0x886   : > { %v7596_v9 = vadd.f32 %v12450_v46, %v7548_v31  ;;  %v7796_v46 = vrot.slane %v7767_v30, 1 }
 0x887   : > { %v7769_v7 = vpop.permute.xlu1 %7768  ;;  %v7720_v24 = vadd.f32 %v7704_v39, %v12415_v61 }
 0x888   : > { %v7804_v37 = vrot.slane %v7769_v7, 1 }
 0x889   : > { %v7639_v34 = vpop.permute.xlu0 %7638  ;;  %v7832_v2 = vadd.f32 %v7811_v54, %v7720_v24 }
 0x88a   : > { %v7668_v25 = vrot.slane %v7639_v34, 7  ;;  %v7812_v40 = vsel %vm1043_vm3, %v7796_v46, %v7804_v37 }
 0x88b   : > { %v7641_v56 = vpop.permute.xlu1 %7640  ;;  %v7880_v14 = vadd.f32 %v12454_v28, %v7832_v2 }
 0x88c   : > { %v7676_v3 = vrot.slane %v7641_v56, 7 }
 0x88e   : > { %v7692_v32 = vsel %vm914_vm2, %v7676_v3, %v7668_v25  ;;  %v7771_v4 = vpop.permute.xlu0 %7770 }
 0x88f   : > { %v7706_v50 = vadd.f32 %v7692_v32, %v7594_v27  ;;  %v7797_v62 = vrot.slane %v7771_v4, 1 }
 0x890   : > { %v7773_v59 = vpop.permute.xlu1 %7772 }
 0x891   : > { %v7722_v61 = vadd.f32 %v7706_v50, %v12438_v19  ;;  %v7805_v29 = vrot.slane %v7773_v59, 1 }
 0x892   : > { %v7643_v60 = vpop.permute.xlu0 %7642 }
 0x893   : > { %v7834_v6 = vadd.f32 %v7812_v40, %v7722_v61  ;;  %v7669_v18 = vrot.slane %v7643_v60, 7  ;;  %v7813_v52 = vsel %vm1043_vm3, %v7797_v62, %v7805_v29 }
 0x894   : > { %v7645_v13 = vpop.permute.xlu1 %7644 }
 0x895   : > { %v7677_v28 = vrot.slane %v7645_v13, 7  ;;  %v7882_v15 = vadd.f32 %v12466_v41, %v7834_v6 }
 0x896   : > { %v7911_v57 = vpop.permute.xlu0 %7910 }
 0x897   : > { %v7693_v33 = vsel %vm914_vm2, %v7677_v28, %v7669_v18  ;;  %v7954_v16 = vadd.f32 %v7911_v57, %v12569_v21 }
 0x898   : > { %v7708_v47 = vadd.f32 %v7693_v33, %v7596_v9  ;;  %v7915_v19 = vpop.permute.xlu1 %7914 }
 0x899   : > { %v8002_v55 = vadd.f32 %v12530_v35, %v7954_v16  ;;  %v7956_v58 = vadd.f32 %v7915_v19, %v12587_v23 }
 0x89a   : > { %v7919_v17 = vpop.permute.xlu0 %7918  ;;  %v7724_v41 = vadd.f32 %v7708_v47, %v12458_v49 }
 0x89b   : > { %vm8018_vm14 = vcmp.ge.f32.partialorder %v8002_v55, 0.0  ;;  %v8034_v27 = vmul.f32 0.2, %v8002_v55  ;;  %v8004_v0 = vadd.f32 %v12544_v11, %v7956_v58  ;;  %v7958_v36 = vadd.f32 %v7919_v17, %v7878_v63 }
 0x89c   : > { %v7923_v26 = vpop.permute.xlu1 %7922  ;;  %v7836_v21 = vadd.f32 %v7813_v52, %v7724_v41 }
 0x89d   : > { %v8050_v42 = vsel %vm8018_vm14, %v8002_v55, %v8034_v27  ;;  %vm8020_vm2 = vcmp.ge.f32.partialorder %v8004_v0, 0.0  ;;  %v8036_v38 = vmul.f32 0.2, %v8004_v0  ;;  %v8006_v35 = vadd.f32 %v12561_v5, %v7958_v36 }
 0x89e   : > { %v7960_v53 = vadd.f32 %v7923_v26, %v7880_v14  ;;  %v7927_v23 = vpop.permute.xlu0 %7926  ;;  %v7884_v48 = vadd.f32 %v12477_v8, %v7836_v21  ;;  %v8080_v51 = vpack.c.bf16 %v9677_v20, %v8050_v42 }
 0x89f   : > { %v8052_v43 = vsel %vm8020_vm2, %v8004_v0, %v8036_v38  ;;  %vm8022_vm3 = vcmp.ge.f32.partialorder %v8006_v35, 0.0  ;;  %v8038_v49 = vmul.f32 0.2, %v8006_v35  ;;  %v7962_v1 = vadd.f32 %v7927_v23, %v7882_v15 }
 0x8a0   : > { %v8008_v11 = vadd.f32 %v12578_v22, %v7960_v53  ;;  %v7931_v63 = vpop.permute.xlu1 %7930  ;;  %8098 = vrot.lane.b32.xlu0 %v8080_v51, %s9676_s18  ;;  %v8081_v12 = vpack.c.bf16 %v9677_v20, %v8052_v43 }
 0x8a1   : > { %v8054_v31 = vsel %vm8022_vm3, %v8006_v35, %v8038_v49  ;;  %v8010_v5 = vadd.f32 %v12591_v44, %v7962_v1  ;;  %v7964_v39 = vadd.f32 %v7931_v63, %v7884_v48 }
 0x8a2   : > { %vm8024_vm15 = vcmp.ge.f32.partialorder %v8008_v11, 0.0  ;;  %v8040_v30 = vmul.f32 0.2, %v8008_v11  ;;  %8100 = vrot.lane.b32.xlu1 %v8081_v12, %s9676_s18  ;;  %v8082_v8 = vpack.c.bf16 %v9677_v20, %v8054_v31 }
 0x8a3   : > { %vm8026_vm0 = vcmp.ge.f32.partialorder %v8010_v5, 0.0  ;;  %v8042_v45 = vmul.f32 0.2, %v8010_v5  ;;  %v8012_v9 = vadd.f32 %v12606_v10, %v7964_v39 }
 0x8a4   : > { %v8056_v22 = vsel %vm8024_vm15, %v8008_v11, %v8040_v30  ;;  %8102 = vrot.lane.b32.xlu0 %v8082_v8, %s9676_s18 }
 0x8a5   : > { %v8058_v7 = vsel %vm8026_vm0, %v8010_v5, %v8042_v45  ;;  %vm8028_vm4 = vcmp.ge.f32.partialorder %v8012_v9, 0.0  ;;  %v8044_v24 = vmul.f32 0.2, %v8012_v9  ;;  %v8083_v44 = vpack.c.bf16 %v9677_v20, %v8056_v22 }
 0x8a6   : > { %v8084_v54 = vpack.c.bf16 %v9677_v20, %v8058_v7 }
 0x8a7   : > { %v8060_v34 = vsel %vm8028_vm4, %v8012_v9, %v8044_v24  ;;  %8104 = vrot.lane.b32.xlu1 %v8083_v44, %s9676_s18 }
 0x8a8   : > { %8106 = vrot.lane.b32.xlu0 %v8084_v54, %s9676_s18  ;;  %v8085_v2 = vpack.c.bf16 %v9677_v20, %v8060_v34 }
 0x8ab   : > { %8108 = vrot.lane.b32.xlu1 %v8085_v2, %s9676_s18  ;;  %s9068_s18 = smul.u32 3072, %s9742_s28  ;;  %s12677_s28 = scalar_lea.sflag [#allocation5], %s284_s23 }
 0x8ad   : > { %s12670_s13 = scalar_lea.hbm %s12725_s7, %s9068_s18 }
 0x8d1   : > { %v8095_v10 = vpop.permute.xlu0 %8094 }
 0x8d2   : > { %8118 = vst.msk [vmem:[#allocation2 + $0x28] sm:$0xff] %vm1596_vm12, %v8095_v10 }
 0x8d7   : > { %v8097_v56 = vpop.permute.xlu1 %8096 }
 0x8d8   : > { %8119 = vst.msk [vmem:[#allocation2 + $0x40] sm:$0xff] %vm1596_vm12, %v8097_v56 }
 0x8d9   : > { %v8128_v14 = vld [vmem:[#allocation2 + $0x28] sm:$0xf] }
 0x8da   : > { %v8152_v25 = vunpack.c.l.bf16 %v8128_v14 }
 0x8dc   : > { %8176 = vst [vmem:[%s10452_s9 + $0x10] sm:$0xff] %v8152_v25 }
 0x8df   : > { %v8131_v3 = vld [vmem:[#allocation2 + $0x40] sm:$0xf] }
 0x8e0   : > { %v8155_v37 = vunpack.c.l.bf16 %v8131_v3 }
 0x8e2   : > { %8179 = vst [vmem:[%s10452_s9 + $0x28] sm:$0xff] %v8155_v37 }
 0x912   : > { %v8099_v32 = vpop.permute.xlu0 %8098 }
 0x913   : > { %8120 = vst.msk [vmem:[#allocation2 + $0x58] sm:$0xff] %vm1596_vm12, %v8099_v32 }
 0x914   : > { %v8101_v4 = vpop.permute.xlu1 %8100 }
 0x915   : > { %8121 = vst.msk [vmem:[#allocation2 + $0x70] sm:$0xff] %vm1596_vm12, %v8101_v4 }
 0x916   : > { %v8103_v20 = vpop.permute.xlu0 %8102 }
 0x917   : > { %8122 = vst.msk [vmem:[#allocation2 + $0x88] sm:$0xff] %vm1596_vm12, %v8103_v20 }
 0x919   : > { %v8105_v50 = vpop.permute.xlu1 %8104 }
 0x91a   : > { %v8134_v46 = vld [vmem:[#allocation2 + $0x58] sm:$0xf]  ;;  %8123 = vst.msk [vmem:[#allocation2 + $0xa0] sm:$0xff] %vm1596_vm12, %v8105_v50  ;;  %v8107_v59 = vpop.permute.xlu0 %8106 }
 0x91b   : > { %v8158_v61 = vunpack.c.l.bf16 %v8134_v46  ;;  %8124 = vst.msk [vmem:[#allocation2 + $0xb8] sm:$0xff] %vm1596_vm12, %v8107_v59 }
 0x91c   : > { %v8137_v40 = vld [vmem:[#allocation2 + $0x70] sm:$0xf] }
 0x91d   : > { %8182 = vst [vmem:[%s10452_s9 + $0x40] sm:$0xff] %v8158_v61  ;;  %v8161_v60 = vunpack.c.l.bf16 %v8137_v40  ;;  %v8109_v6 = vpop.permute.xlu1 %8108 }
 0x91e   : > { %v8140_v13 = vld [vmem:[#allocation2 + $0x88] sm:$0xf]  ;;  %8125 = vst.msk [vmem:[#allocation2 + $0xd0] sm:$0xff] %vm1596_vm12, %v8109_v6 }
 0x91f   : > { %8185 = vst [vmem:[%s10452_s9 + $0x58] sm:$0xff] %v8161_v60  ;;  %v8164_v18 = vunpack.c.l.bf16 %v8140_v13 }
 0x921   : > { %8188 = vst [vmem:[%s10452_s9 + $0x70] sm:$0xff] %v8164_v18  ;;  %v8143_v28 = vld [vmem:[#allocation2 + $0xa0] sm:$0xf] }
 0x922   : > { %v8167_v15 = vunpack.c.l.bf16 %v8143_v28  ;;  %v8146_v29 = vld [vmem:[#allocation2 + $0xb8] sm:$0xf] }
 0x923   : > { %v8170_v57 = vunpack.c.l.bf16 %v8146_v29 }
 0x924   : > { %8191 = vst [vmem:[%s10452_s9 + $0x88] sm:$0xff] %v8167_v15 }
 0x925   : > { %8194 = vst [vmem:[%s10452_s9 + $0xa0] sm:$0xff] %v8170_v57  ;;  %v8149_v33 = vld [vmem:[#allocation2 + $0xd0] sm:$0xf] }
 0x926   : > { %v8173_v16 = vunpack.c.l.bf16 %v8149_v33 }
 0x928   : > { %8197 = vst [vmem:[%s10452_s9 + $0xb8] sm:$0xff] %v8173_v16 }
 0x929   : > { %9617 = shalt.err (!%p9614_p7)
}
 0x92a   : > { %s9618_s23 = scalar_lea.hbm %s12670_s13, 3072  ;;  %s9622_s22 = scalar_lea.hbm %s12725_s7, 6144 }
 0x92b   : > { %p9619_p8 = scmp.ne.s32.totalorder %s12670_s13, %s9618_s23  ;;  %p9623_p1 = scmp.lt.u32.totalorder %s12670_s13, %s12725_s7 }
 0x92c   : > { %p9624_p0 = scmp.lt.u32.totalorder %s9622_s22, %s9618_s23  ;;  %p9626_p6 = scmp.lt.u32.totalorder %s9618_s23, %s12670_s13 }
 0x92d   : > { %p9620_p11 = pnand %p9619_p8, %p12736_p9 }
 0x92e   : > { %p9625_p5 = por %p9624_p0, %p9623_p1 }
 0x92f   : > { %p9621_p13 = pneg %p9620_p11 }
 0x930   : > { %p9627_p10 = por %p9626_p6, %p9625_p5 }
 0x932   : > { %p9628_p12 = pnand %p9627_p10, %p9621_p13 }
 0x934   : > { %9631 = shalt.err (!%p9628_p12)
}
 0x935   : > { %s9679_s17 = smov 384   ;;  %s9680_s8 = smov 24  }
 0x936   : > { %9073 = dma.vmem_to_hbm [thread:$0]  (%p12736_p9), %s12672_s14, 3072, %s12670_s13, %s12677_s28, %s9679_s17, %s9679_s17, %s9680_s8  }
 0x937 PF: > { %p9085_p2 = scmp.ge.s32.totalorder %s9670_s27, 2  ;;  %s8227_s15 = sand.u32 1, %s9658_s24  }
 0x938   : > { %p12737_p3 = scmp.ne.s32.totalorder %s12730_s12, 0  ;;  %s8228_s16 = scalar_lea.sflag [#allocation5], %s8227_s15 }
 0x93a   : > { %p9080_p4 = pnand %p9085_p2, %p12737_p3 }
 0x93c   : > { %9653 = dma.done.wait (!%p9080_p4), %s8228_s16, 3072  }
 0x93d   : > { %9655 = vsyncadd (!%p9080_p4), %s8228_s16, 4294964224  ;;  %p18_p7 = scmp.ge.s32.totalorder %s9746_s30, 4   ;;  %s12738_s24 = smov %s9662_s25 }
 0x93e   : > { %s12739_s25 = smov %s9666_s26  ;;  %s12740_s26 = smov %s9757_s10 }
 0x93f   : > { %s12741_s27 = smov %s9746_s30  ;;  %20 = sbr.rel (!%p18_p7) target bundleno = 4 (0x4), region = 94 }
 0x946   :  { %8233 = vsyncpa [#allocation4], 1 }
 0x947   :  { %8235 = vsyncpa [#allocation4 + $0x1], 1 }
 0x948   :  { %8236 = vsyncpa [#allocation5], 1 }
 0x949   :  { %8238 = vsyncpa [#allocation5 + $0x1], 1 }

</bundles_post_ra>
